<compile_context>
chip_gen: v7x
topology: tpu7x:2x2x1
jax: 0.10.0
libtpu: 0.0.40
codegen_flags: <defaults>
</compile_context>

<pallas_src>
import jax
import jax.numpy as jnp
from jax.experimental import pallas as pl
from jax.experimental.pallas import tpu as pltpu

N_FILT = 32        # config['NN_models']['filters_per_layer'] (synthetic choice)
N_HISTORY = 4
N_MODELS = 5
NEG_SLOPE = 0.01   # nn.LeakyReLU() default
MATMUL_DTYPE = jnp.bfloat16   # MXU operand dtype (accumulation stays fp32)


def _leaky_relu(x):
    return jnp.where(x > 0, x, NEG_SLOPE * x)


def _zero_halo(ref):
    """Zero only the 1-pixel spatial halo of a (H+2, W+2, C) scratch buffer.

    The interior is fully overwritten every grid step, so a full memset is
    wasted store bandwidth.  Done unconditionally (NOT gated on program_id)
    so it stays correct when the parallel grid axis is split across cores.
    """
    hp, wp, c = ref.shape
    ref[0:1, :, :] = jnp.zeros((1, wp, c), ref.dtype)
    ref[hp - 1:hp, :, :] = jnp.zeros((1, wp, c), ref.dtype)
    ref[:, 0:1, :] = jnp.zeros((hp, 1, c), ref.dtype)
    ref[:, wp - 1:wp, :] = jnp.zeros((hp, 1, c), ref.dtype)


def ensemble_dynamics_kernel(x_ref, w1_ref, b1_ref, w2_ref, b2_ref,
                             w3_ref, b3_ref, out_ref, act1_ref, act2_ref):
    # x_ref   : (1, H, W, 9*C_in)   bf16  im2col'd conv1 input for one image
    # w1_ref  : (9*C_in, Fp)        bf16  ensemble-packed conv1 weights
    # w2_ref  : (9, Fp, Fp)         bf16  per-tap block-diagonal conv2 weights
    # w3_ref  : (9, Fp, n_models)   bf16  per-tap block conv3 weights
    # b*_ref  : (1, Fp) / (1, n_models)  f32 packed biases
    # out_ref : (1, H, W, n_models) f32
    # act*_ref: (H+2, W+2, Fp)      f32 VMEM scratch (spatially padded acts)
    _, H, W, K1 = x_ref.shape
    Hp, Wp, Fp = act1_ref.shape
    NM = out_ref.shape[3]
    M = H * W

    # M-tiling: 8 image rows = 128 matmul rows per chunk keeps the fp32
    # accumulator (+ operands) inside the 64-vreg register file.
    h_step = 8 if (H % 8 == 0 and H > 8) else H
    n_chunks = H // h_step

    _zero_halo(act1_ref)
    _zero_halo(act2_ref)

    # ---- conv1: single im2col matmul, all models packed on the lane axis ----
    x = x_ref[0:1].reshape(M, K1)                                 # bf16
    h1 = jnp.dot(x, w1_ref[...], preferred_element_type=jnp.float32)
    h1 = _leaky_relu(h1 + b1_ref[...])
    act1_ref[1:1 + H, 1:1 + W, :] = h1.reshape(H, W, Fp)

    # ---- conv2: 9 taps, block-diagonal over models, K = Fp ----
    # Load the three W-shifted columns once (reads of act1 complete before any
    # further act writes); dy shifts are free slices along the untiled H axis.
    xcol1 = [act1_ref[:, dx:dx + W, :].astype(w2_ref.dtype) for dx in range(3)]
    for c in range(n_chunks):
        h0 = c * h_step
        acc = jnp.zeros((h_step * W, Fp), jnp.float32)
        for dy in range(3):
            for dx in range(3):
                xs = xcol1[dx][h0 + dy:h0 + dy + h_step].reshape(h_step * W, Fp)
                acc = acc + jnp.dot(xs, w2_ref[dy * 3 + dx],
                                    preferred_element_type=jnp.float32)
        h2 = _leaky_relu(acc + b2_ref[...])
        act2_ref[1 + h0:1 + h0 + h_step, 1:1 + W, :] = h2.reshape(h_step, W, Fp)

    # ---- conv3: 9 taps on the MXU, N = n_models (one output ch per model) ----
    xcol2 = [act2_ref[:, dx:dx + W, :].astype(w3_ref.dtype) for dx in range(3)]
    for c in range(n_chunks):
        h0 = c * h_step
        acc = jnp.zeros((h_step * W, NM), jnp.float32)
        for dy in range(3):
            for dx in range(3):
                xs = xcol2[dx][h0 + dy:h0 + dy + h_step].reshape(h_step * W, Fp)
                acc = acc + jnp.dot(xs, w3_ref[dy * 3 + dx],
                                    preferred_element_type=jnp.float32)
        out_ref[0:1, h0:h0 + h_step, :, :] = (
            (acc + b3_ref[...]).reshape(1, h_step, W, NM))


def pack_params(params, matmul_dtype=MATMUL_DTYPE):
    """Pack the per-model weights into lane-packed / block-diagonal form."""
    w1, b1, w2, b2, w3, b3 = params
    n_models, n_taps, c_in, nf = w1.shape
    Fp = n_models * nf
    # conv1: same input feeds every model -> concatenate along c_out.
    # w1[m, k, c, f] -> w1p[k*c_in + c, m*nf + f]
    w1p = jnp.transpose(w1, (1, 2, 0, 3)).reshape(n_taps * c_in, Fp)
    b1p = b1.reshape(1, Fp)
    # conv2: per-tap block-diagonal over models.
    w2p = jnp.zeros((n_taps, Fp, Fp), w2.dtype)
    # conv3: per-tap block: model m's filter maps its 32 channels -> column m.
    w3p = jnp.zeros((n_taps, Fp, n_models), w3.dtype)
    for m in range(n_models):
        lo, hi = m * nf, (m + 1) * nf
        w2p = w2p.at[:, lo:hi, lo:hi].set(w2[m])
        w3p = w3p.at[:, lo:hi, m].set(w3[m])
    b2p = b2.reshape(1, Fp)
    b3p = b3.reshape(1, n_models)
    return (w1p.astype(matmul_dtype), b1p.astype(jnp.float32),
            w2p.astype(matmul_dtype), b2p.astype(jnp.float32),
            w3p.astype(matmul_dtype), b3p.astype(jnp.float32))


def ensemble_dynamics_forward(params, states, actions, history=None):
    """EnsembleDynamics.forward. states/actions: NCHW (B, n_history, H, W)."""
    if states.ndim == 3:
        states = states[None]
    if actions.ndim == 3:
        actions = actions[None]
    if history is not None:
        if history.ndim == 3:
            history = history[None, None]
        feats = jnp.concatenate([history, states, actions], axis=1)
    else:
        feats = jnp.concatenate([states, actions], axis=1)      # (B, C_in, H, W)

    w1, b1, w2, b2, w3, b3 = params
    n_models, n_taps, c_in, nf = w1.shape
    Fp = n_models * nf
    B, C, H, W = feats.shape
    # Mirrors PyTorch: a history tensor that changes C would also break the
    # fixed-in_channels Conv2d in the reference module.
    assert C == c_in, "feature channels must equal the conv in_channels"

    # --- wrapper-side layout plumbing (im2col for conv1, NCHW -> NHWC) ---
    x = jnp.transpose(feats, (0, 2, 3, 1)).astype(jnp.float32)   # (B, H, W, C)
    xp = jnp.pad(x, ((0, 0), (1, 1), (1, 1), (0, 0)))
    cols = [xp[:, dy:dy + H, dx:dx + W, :] for dy in range(3) for dx in range(3)]
    x_im2col = jnp.concatenate(cols, axis=-1).astype(MATMUL_DTYPE)  # (B,H,W,9C)

    w1p, b1p, w2p, b2p, w3p, b3p = pack_params(params)

    out = pl.pallas_call(
        ensemble_dynamics_kernel,
        out_shape=jax.ShapeDtypeStruct((B, H, W, n_models), jnp.float32),
        grid_spec=pltpu.PrefetchScalarGridSpec(
            num_scalar_prefetch=0,
            grid=(B,),
            in_specs=[
                pl.BlockSpec((1, H, W, n_taps * c_in), lambda b: (b, 0, 0, 0)),
                pl.BlockSpec((n_taps * c_in, Fp), lambda b: (0, 0)),
                pl.BlockSpec((1, Fp), lambda b: (0, 0)),
                pl.BlockSpec((n_taps, Fp, Fp), lambda b: (0, 0, 0)),
                pl.BlockSpec((1, Fp), lambda b: (0, 0)),
                pl.BlockSpec((n_taps, Fp, n_models), lambda b: (0, 0, 0)),
                pl.BlockSpec((1, n_models), lambda b: (0, 0)),
            ],
            out_specs=pl.BlockSpec((1, H, W, n_models), lambda b: (b, 0, 0, 0)),
            scratch_shapes=[
                pltpu.VMEM((H + 2, W + 2, Fp), jnp.float32),   # conv1 activation
                pltpu.VMEM((H + 2, W + 2, Fp), jnp.float32),   # conv2 activation
            ],
        ),
        compiler_params=pltpu.CompilerParams(
            dimension_semantics=("parallel",)),
    )(x_im2col, w1p, b1p, w2p, b2p, w3p, b3p)

    # torch.cat(next_states, dim=1): (B, n_models, H, W)
    return jnp.transpose(out, (0, 3, 1, 2))


def init_params(key, n_models=N_MODELS, n_history=N_HISTORY, n_filt=N_FILT):
    """Deterministic synthetic weights. Layout: w[m, kh*3+kw, c_in, c_out]."""
    c_in = 2 * n_history
    ks = jax.random.split(key, 6)
    s1 = 1.0 / jnp.sqrt(9.0 * c_in)
    s2 = 1.0 / jnp.sqrt(9.0 * n_filt)
    w1 = jax.random.normal(ks[0], (n_models, 9, c_in, n_filt), jnp.float32) * s1
    b1 = jax.random.normal(ks[1], (n_models, 1, n_filt), jnp.float32) * s1
    w2 = jax.random.normal(ks[2], (n_models, 9, n_filt, n_filt), jnp.float32) * s2
    b2 = jax.random.normal(ks[3], (n_models, 1, n_filt), jnp.float32) * s2
    w3 = jax.random.normal(ks[4], (n_models, 9, n_filt), jnp.float32) * s2
    b3 = jax.random.normal(ks[5], (n_models, 1, 1), jnp.float32) * s2
    return (w1, b1, w2, b2, w3, b3)


def reference_forward(params, states, actions):
    """Pure-JAX reference using lax.conv (mirrors the PyTorch net, fp32)."""
    w1, b1, w2, b2, w3, b3 = params
    n_models, _, c_in, n_filt = w1.shape
    feats = jnp.concatenate([states, actions], axis=1)
    x0 = jnp.transpose(feats, (0, 2, 3, 1)).astype(jnp.float32)  # NHWC

    def conv(x, w_hwio):
        return jax.lax.conv_general_dilated(
            x, w_hwio, (1, 1), 'SAME',
            dimension_numbers=('NHWC', 'HWIO', 'NHWC'))

    outs = []
    for m in range(n_models):
        h = conv(x0, w1[m].reshape(3, 3, c_in, n_filt)) + b1[m, 0]
        h = jnp.where(h > 0, h, NEG_SLOPE * h)
        h = conv(h, w2[m].reshape(3, 3, n_filt, n_filt)) + b2[m, 0]
        h = jnp.where(h > 0, h, NEG_SLOPE * h)
        o = conv(h, w3[m].reshape(3, 3, n_filt, 1)) + b3[m, 0, 0]
        outs.append(jnp.transpose(o, (0, 3, 1, 2)))              # (B, 1, H, W)
    return jnp.concatenate(outs, axis=1)


if __name__ == "__main__":
    key = jax.random.PRNGKey(0)
    k_params, k_s, k_a = jax.random.split(key, 3)

    B, H, W = 2, 16, 16
    states = jax.random.normal(k_s, (B, N_HISTORY, H, W), jnp.float32)
    actions = jax.random.normal(k_a, (B, N_HISTORY, H, W), jnp.float32)

    params = init_params(k_params)

    fwd = jax.jit(lambda p, s, a: ensemble_dynamics_forward(p, s, a))
    out = jax.block_until_ready(fwd(params, states, actions))
    assert out.shape == (B, N_MODELS, H, W), out.shape

    ref = jax.block_until_ready(reference_forward(params, states, actions))
    max_err = float(jnp.max(jnp.abs(out - ref)))
    # bf16 MXU operands (fp32 accumulation) vs fp32 reference -> ~1e-2 level.
    assert max_err < 5e-2, f"max abs error vs reference: {max_err}"

    print("KERNEL_OK")
</pallas_src>

<mosaic_0001>
module attributes {stable_mosaic.version = 11 : i64} {
  func.func @ensemble_dynamics_kernel(%arg0: i32, %arg1: memref<1x16x16x72xbf16, #tpu.memory_space<vmem>>, %arg2: memref<72x160xbf16, #tpu.memory_space<vmem>>, %arg3: memref<1x160xf32, #tpu.memory_space<vmem>>, %arg4: memref<9x160x160xbf16, #tpu.memory_space<vmem>>, %arg5: memref<1x160xf32, #tpu.memory_space<vmem>>, %arg6: memref<9x160x5xbf16, #tpu.memory_space<vmem>>, %arg7: memref<1x5xf32, #tpu.memory_space<vmem>>, %arg8: memref<1x16x16x5xf32, #tpu.memory_space<vmem>>, %arg9: memref<18x18x160xf32, #tpu.memory_space<vmem>>, %arg10: memref<18x18x160xf32, #tpu.memory_space<vmem>>) attributes {dimension_semantics = [#tpu.dimension_semantics<parallel>], iteration_bounds = array<i64: 2>, scalar_prefetch = 0 : i64, scratch_operands = 2 : i64, tpu.core_type = #tpu.core_type<tc>, window_params = [{transform_indices = @transform_0, window_bounds = array<i64: 1, 16, 16, 72>}, {pipeline_mode = #tpu.pipeline_mode<synchronous>, transform_indices = @transform_1, window_bounds = array<i64: 72, 160>}, {pipeline_mode = #tpu.pipeline_mode<synchronous>, transform_indices = @transform_2, window_bounds = array<i64: 1, 160>}, {pipeline_mode = #tpu.pipeline_mode<synchronous>, transform_indices = @transform_3, window_bounds = array<i64: 9, 160, 160>}, {pipeline_mode = #tpu.pipeline_mode<synchronous>, transform_indices = @transform_4, window_bounds = array<i64: 1, 160>}, {pipeline_mode = #tpu.pipeline_mode<synchronous>, transform_indices = @transform_5, window_bounds = array<i64: 9, 160, 5>}, {pipeline_mode = #tpu.pipeline_mode<synchronous>, transform_indices = @transform_6, window_bounds = array<i64: 1, 5>}, {transform_indices = @transform_7, window_bounds = array<i64: 1, 16, 16, 5>}]} {
    %cst = arith.constant 0.000000e+00 : f32
    %0 = vector.broadcast %cst : f32 to vector<1x18x160xf32>
    %c0 = arith.constant 0 : index
    %c0_0 = arith.constant 0 : index
    %c0_1 = arith.constant 0 : index
    %1 = vector.load %arg9[%c0, %c0_0, %c0_1] : memref<18x18x160xf32, #tpu.memory_space<vmem>>, vector<1x18x160xf32>
    tpu.vector_store %arg9[%c0, %c0_0, %c0_1], %0 {strides = array<i32>} : memref<18x18x160xf32, #tpu.memory_space<vmem>>, vector<1x18x160xf32>,
    %cst_2 = arith.constant 0.000000e+00 : f32
    %2 = vector.broadcast %cst_2 : f32 to vector<1x18x160xf32>
    %c17 = arith.constant 17 : index
    %c0_3 = arith.constant 0 : index
    %c0_4 = arith.constant 0 : index
    %3 = vector.load %arg9[%c17, %c0_3, %c0_4] : memref<18x18x160xf32, #tpu.memory_space<vmem>>, vector<1x18x160xf32>
    tpu.vector_store %arg9[%c17, %c0_3, %c0_4], %2 {strides = array<i32>} : memref<18x18x160xf32, #tpu.memory_space<vmem>>, vector<1x18x160xf32>,
    %cst_5 = arith.constant 0.000000e+00 : f32
    %4 = vector.broadcast %cst_5 : f32 to vector<18x1x160xf32>
    %c0_6 = arith.constant 0 : index
    %c0_7 = arith.constant 0 : index
    %c0_8 = arith.constant 0 : index
    %5 = vector.load %arg9[%c0_6, %c0_7, %c0_8] : memref<18x18x160xf32, #tpu.memory_space<vmem>>, vector<18x1x160xf32>
    tpu.vector_store %arg9[%c0_6, %c0_7, %c0_8], %4 {strides = array<i32>} : memref<18x18x160xf32, #tpu.memory_space<vmem>>, vector<18x1x160xf32>,
    %cst_9 = arith.constant 0.000000e+00 : f32
    %6 = vector.broadcast %cst_9 : f32 to vector<18x1x160xf32>
    %c0_10 = arith.constant 0 : index
    %c17_11 = arith.constant 17 : index
    %c0_12 = arith.constant 0 : index
    %7 = vector.load %arg9[%c0_10, %c17_11, %c0_12] : memref<18x18x160xf32, #tpu.memory_space<vmem>>, vector<18x1x160xf32>
    tpu.vector_store %arg9[%c0_10, %c17_11, %c0_12], %6 {strides = array<i32>} : memref<18x18x160xf32, #tpu.memory_space<vmem>>, vector<18x1x160xf32>,
    %cst_13 = arith.constant 0.000000e+00 : f32
    %8 = vector.broadcast %cst_13 : f32 to vector<1x18x160xf32>
    %c0_14 = arith.constant 0 : index
    %c0_15 = arith.constant 0 : index
    %c0_16 = arith.constant 0 : index
    %9 = vector.load %arg10[%c0_14, %c0_15, %c0_16] : memref<18x18x160xf32, #tpu.memory_space<vmem>>, vector<1x18x160xf32>
    tpu.vector_store %arg10[%c0_14, %c0_15, %c0_16], %8 {strides = array<i32>} : memref<18x18x160xf32, #tpu.memory_space<vmem>>, vector<1x18x160xf32>,
    %cst_17 = arith.constant 0.000000e+00 : f32
    %10 = vector.broadcast %cst_17 : f32 to vector<1x18x160xf32>
    %c17_18 = arith.constant 17 : index
    %c0_19 = arith.constant 0 : index
    %c0_20 = arith.constant 0 : index
    %11 = vector.load %arg10[%c17_18, %c0_19, %c0_20] : memref<18x18x160xf32, #tpu.memory_space<vmem>>, vector<1x18x160xf32>
    tpu.vector_store %arg10[%c17_18, %c0_19, %c0_20], %10 {strides = array<i32>} : memref<18x18x160xf32, #tpu.memory_space<vmem>>, vector<1x18x160xf32>,
    %cst_21 = arith.constant 0.000000e+00 : f32
    %12 = vector.broadcast %cst_21 : f32 to vector<18x1x160xf32>
    %c0_22 = arith.constant 0 : index
    %c0_23 = arith.constant 0 : index
    %c0_24 = arith.constant 0 : index
    %13 = vector.load %arg10[%c0_22, %c0_23, %c0_24] : memref<18x18x160xf32, #tpu.memory_space<vmem>>, vector<18x1x160xf32>
    tpu.vector_store %arg10[%c0_22, %c0_23, %c0_24], %12 {strides = array<i32>} : memref<18x18x160xf32, #tpu.memory_space<vmem>>, vector<18x1x160xf32>,
    %cst_25 = arith.constant 0.000000e+00 : f32
    %14 = vector.broadcast %cst_25 : f32 to vector<18x1x160xf32>
    %c0_26 = arith.constant 0 : index
    %c17_27 = arith.constant 17 : index
    %c0_28 = arith.constant 0 : index
    %15 = vector.load %arg10[%c0_26, %c17_27, %c0_28] : memref<18x18x160xf32, #tpu.memory_space<vmem>>, vector<18x1x160xf32>
    tpu.vector_store %arg10[%c0_26, %c17_27, %c0_28], %14 {strides = array<i32>} : memref<18x18x160xf32, #tpu.memory_space<vmem>>, vector<18x1x160xf32>,
    %c0_29 = arith.constant 0 : index
    %c0_30 = arith.constant 0 : index
    %c0_31 = arith.constant 0 : index
    %c0_32 = arith.constant 0 : index
    %16 = vector.load %arg1[%c0_29, %c0_30, %c0_31, %c0_32] : memref<1x16x16x72xbf16, #tpu.memory_space<vmem>>, vector<1x16x16x72xbf16>
    %17 = vector.shape_cast %16 : vector<1x16x16x72xbf16> to vector<256x72xbf16>
    %c0_33 = arith.constant 0 : index
    %c0_34 = arith.constant 0 : index
    %18 = vector.load %arg2[%c0_33, %c0_34] : memref<72x160xbf16, #tpu.memory_space<vmem>>, vector<72x160xbf16>
    %cst_35 = arith.constant dense<0.000000e+00> : vector<256x160xf32>
    %19 = tpu.matmul %17, %18, %cst_35 {dimension_numbers = #tpu.dot_dimension_numbers<[1], [0], [0], [1], [0, 0, 1, 1], [], []>} : vector<256x72xbf16>, vector<72x160xbf16>, vector<256x160xf32> -> vector<256x160xf32>
    %c0_36 = arith.constant 0 : index
    %c0_37 = arith.constant 0 : index
    %20 = vector.load %arg3[%c0_36, %c0_37] : memref<1x160xf32, #tpu.memory_space<vmem>>, vector<1x160xf32>
    %21 = vector.broadcast %20 : vector<1x160xf32> to vector<256x160xf32>
    %22 = arith.addf %19, %21 : vector<256x160xf32>
    %cst_38 = arith.constant 0.000000e+00 : f32
    %23 = vector.broadcast %cst_38 : f32 to vector<256x160xf32>
    %24 = arith.cmpf ogt, %22, %23 : vector<256x160xf32>
    %cst_39 = arith.constant 0.00999999977 : f32
    %25 = vector.broadcast %cst_39 : f32 to vector<256x160xf32>
    %26 = arith.mulf %25, %22 : vector<256x160xf32>
    %27 = arith.select %24, %22, %26 : vector<256x160xi1>, vector<256x160xf32>
    %28 = vector.shape_cast %27 : vector<256x160xf32> to vector<16x16x160xf32>
    %c1 = arith.constant 1 : index
    %c1_40 = arith.constant 1 : index
    %c0_41 = arith.constant 0 : index
    %29 = vector.load %arg9[%c1, %c1_40, %c0_41] : memref<18x18x160xf32, #tpu.memory_space<vmem>>, vector<16x16x160xf32>
    tpu.vector_store %arg9[%c1, %c1_40, %c0_41], %28 {strides = array<i32>} : memref<18x18x160xf32, #tpu.memory_space<vmem>>, vector<16x16x160xf32>,
    %c0_42 = arith.constant 0 : index
    %c0_43 = arith.constant 0 : index
    %c0_44 = arith.constant 0 : index
    %30 = vector.load %arg9[%c0_42, %c0_43, %c0_44] : memref<18x18x160xf32, #tpu.memory_space<vmem>>, vector<18x16x160xf32>
    %31 = arith.truncf %30 : vector<18x16x160xf32> to vector<18x16x160xbf16>
    %c0_45 = arith.constant 0 : index
    %c1_46 = arith.constant 1 : index
    %c0_47 = arith.constant 0 : index
    %32 = vector.load %arg9[%c0_45, %c1_46, %c0_47] : memref<18x18x160xf32, #tpu.memory_space<vmem>>, vector<18x16x160xf32>
    %33 = arith.truncf %32 : vector<18x16x160xf32> to vector<18x16x160xbf16>
    %c0_48 = arith.constant 0 : index
    %c2 = arith.constant 2 : index
    %c0_49 = arith.constant 0 : index
    %34 = vector.load %arg9[%c0_48, %c2, %c0_49] : memref<18x18x160xf32, #tpu.memory_space<vmem>>, vector<18x16x160xf32>
    %35 = arith.truncf %34 : vector<18x16x160xf32> to vector<18x16x160xbf16>
    %cst_50 = arith.constant 0.000000e+00 : f32
    %36 = vector.broadcast %cst_50 : f32 to vector<128x160xf32>
    %37 = vector.extract_strided_slice %31 {offsets = [0, 0, 0], sizes = [8, 16, 160], strides = [1, 1, 1]} : vector<18x16x160xbf16> to vector<8x16x160xbf16>
    %38 = vector.shape_cast %37 : vector<8x16x160xbf16> to vector<128x160xbf16>
    %c0_51 = arith.constant 0 : index
    %c0_52 = arith.constant 0 : index
    %c0_53 = arith.constant 0 : index
    %39 = vector.load %arg4[%c0_51, %c0_52, %c0_53] : memref<9x160x160xbf16, #tpu.memory_space<vmem>>, vector<1x160x160xbf16>
    %40 = vector.shape_cast %39 : vector<1x160x160xbf16> to vector<160x160xbf16>
    %cst_54 = arith.constant dense<0.000000e+00> : vector<128x160xf32>
    %41 = tpu.matmul %38, %40, %cst_54 {dimension_numbers = #tpu.dot_dimension_numbers<[1], [0], [0], [1], [0, 0, 1, 1], [], []>} : vector<128x160xbf16>, vector<160x160xbf16>, vector<128x160xf32> -> vector<128x160xf32>
    %42 = arith.addf %36, %41 : vector<128x160xf32>
    %43 = vector.extract_strided_slice %33 {offsets = [0, 0, 0], sizes = [8, 16, 160], strides = [1, 1, 1]} : vector<18x16x160xbf16> to vector<8x16x160xbf16>
    %44 = vector.shape_cast %43 : vector<8x16x160xbf16> to vector<128x160xbf16>
    %c1_55 = arith.constant 1 : index
    %c0_56 = arith.constant 0 : index
    %c0_57 = arith.constant 0 : index
    %45 = vector.load %arg4[%c1_55, %c0_56, %c0_57] : memref<9x160x160xbf16, #tpu.memory_space<vmem>>, vector<1x160x160xbf16>
    %46 = vector.shape_cast %45 : vector<1x160x160xbf16> to vector<160x160xbf16>
    %cst_58 = arith.constant dense<0.000000e+00> : vector<128x160xf32>
    %47 = tpu.matmul %44, %46, %cst_58 {dimension_numbers = #tpu.dot_dimension_numbers<[1], [0], [0], [1], [0, 0, 1, 1], [], []>} : vector<128x160xbf16>, vector<160x160xbf16>, vector<128x160xf32> -> vector<128x160xf32>
    %48 = arith.addf %42, %47 : vector<128x160xf32>
    %49 = vector.extract_strided_slice %35 {offsets = [0, 0, 0], sizes = [8, 16, 160], strides = [1, 1, 1]} : vector<18x16x160xbf16> to vector<8x16x160xbf16>
    %50 = vector.shape_cast %49 : vector<8x16x160xbf16> to vector<128x160xbf16>
    %c2_59 = arith.constant 2 : index
    %c0_60 = arith.constant 0 : index
    %c0_61 = arith.constant 0 : index
    %51 = vector.load %arg4[%c2_59, %c0_60, %c0_61] : memref<9x160x160xbf16, #tpu.memory_space<vmem>>, vector<1x160x160xbf16>
    %52 = vector.shape_cast %51 : vector<1x160x160xbf16> to vector<160x160xbf16>
    %cst_62 = arith.constant dense<0.000000e+00> : vector<128x160xf32>
    %53 = tpu.matmul %50, %52, %cst_62 {dimension_numbers = #tpu.dot_dimension_numbers<[1], [0], [0], [1], [0, 0, 1, 1], [], []>} : vector<128x160xbf16>, vector<160x160xbf16>, vector<128x160xf32> -> vector<128x160xf32>
    %54 = arith.addf %48, %53 : vector<128x160xf32>
    %55 = vector.extract_strided_slice %31 {offsets = [1, 0, 0], sizes = [8, 16, 160], strides = [1, 1, 1]} : vector<18x16x160xbf16> to vector<8x16x160xbf16>
    %56 = vector.shape_cast %55 : vector<8x16x160xbf16> to vector<128x160xbf16>
    %c3 = arith.constant 3 : index
    %c0_63 = arith.constant 0 : index
    %c0_64 = arith.constant 0 : index
    %57 = vector.load %arg4[%c3, %c0_63, %c0_64] : memref<9x160x160xbf16, #tpu.memory_space<vmem>>, vector<1x160x160xbf16>
    %58 = vector.shape_cast %57 : vector<1x160x160xbf16> to vector<160x160xbf16>
    %cst_65 = arith.constant dense<0.000000e+00> : vector<128x160xf32>
    %59 = tpu.matmul %56, %58, %cst_65 {dimension_numbers = #tpu.dot_dimension_numbers<[1], [0], [0], [1], [0, 0, 1, 1], [], []>} : vector<128x160xbf16>, vector<160x160xbf16>, vector<128x160xf32> -> vector<128x160xf32>
    %60 = arith.addf %54, %59 : vector<128x160xf32>
    %61 = vector.extract_strided_slice %33 {offsets = [1, 0, 0], sizes = [8, 16, 160], strides = [1, 1, 1]} : vector<18x16x160xbf16> to vector<8x16x160xbf16>
    %62 = vector.shape_cast %61 : vector<8x16x160xbf16> to vector<128x160xbf16>
    %c4 = arith.constant 4 : index
    %c0_66 = arith.constant 0 : index
    %c0_67 = arith.constant 0 : index
    %63 = vector.load %arg4[%c4, %c0_66, %c0_67] : memref<9x160x160xbf16, #tpu.memory_space<vmem>>, vector<1x160x160xbf16>
    %64 = vector.shape_cast %63 : vector<1x160x160xbf16> to vector<160x160xbf16>
    %cst_68 = arith.constant dense<0.000000e+00> : vector<128x160xf32>
    %65 = tpu.matmul %62, %64, %cst_68 {dimension_numbers = #tpu.dot_dimension_numbers<[1], [0], [0], [1], [0, 0, 1, 1], [], []>} : vector<128x160xbf16>, vector<160x160xbf16>, vector<128x160xf32> -> vector<128x160xf32>
    %66 = arith.addf %60, %65 : vector<128x160xf32>
    %67 = vector.extract_strided_slice %35 {offsets = [1, 0, 0], sizes = [8, 16, 160], strides = [1, 1, 1]} : vector<18x16x160xbf16> to vector<8x16x160xbf16>
    %68 = vector.shape_cast %67 : vector<8x16x160xbf16> to vector<128x160xbf16>
    %c5 = arith.constant 5 : index
    %c0_69 = arith.constant 0 : index
    %c0_70 = arith.constant 0 : index
    %69 = vector.load %arg4[%c5, %c0_69, %c0_70] : memref<9x160x160xbf16, #tpu.memory_space<vmem>>, vector<1x160x160xbf16>
    %70 = vector.shape_cast %69 : vector<1x160x160xbf16> to vector<160x160xbf16>
    %cst_71 = arith.constant dense<0.000000e+00> : vector<128x160xf32>
    %71 = tpu.matmul %68, %70, %cst_71 {dimension_numbers = #tpu.dot_dimension_numbers<[1], [0], [0], [1], [0, 0, 1, 1], [], []>} : vector<128x160xbf16>, vector<160x160xbf16>, vector<128x160xf32> -> vector<128x160xf32>
    %72 = arith.addf %66, %71 : vector<128x160xf32>
    %73 = vector.extract_strided_slice %31 {offsets = [2, 0, 0], sizes = [8, 16, 160], strides = [1, 1, 1]} : vector<18x16x160xbf16> to vector<8x16x160xbf16>
    %74 = vector.shape_cast %73 : vector<8x16x160xbf16> to vector<128x160xbf16>
    %c6 = arith.constant 6 : index
    %c0_72 = arith.constant 0 : index
    %c0_73 = arith.constant 0 : index
    %75 = vector.load %arg4[%c6, %c0_72, %c0_73] : memref<9x160x160xbf16, #tpu.memory_space<vmem>>, vector<1x160x160xbf16>
    %76 = vector.shape_cast %75 : vector<1x160x160xbf16> to vector<160x160xbf16>
    %cst_74 = arith.constant dense<0.000000e+00> : vector<128x160xf32>
    %77 = tpu.matmul %74, %76, %cst_74 {dimension_numbers = #tpu.dot_dimension_numbers<[1], [0], [0], [1], [0, 0, 1, 1], [], []>} : vector<128x160xbf16>, vector<160x160xbf16>, vector<128x160xf32> -> vector<128x160xf32>
    %78 = arith.addf %72, %77 : vector<128x160xf32>
    %79 = vector.extract_strided_slice %33 {offsets = [2, 0, 0], sizes = [8, 16, 160], strides = [1, 1, 1]} : vector<18x16x160xbf16> to vector<8x16x160xbf16>
    %80 = vector.shape_cast %79 : vector<8x16x160xbf16> to vector<128x160xbf16>
    %c7 = arith.constant 7 : index
    %c0_75 = arith.constant 0 : index
    %c0_76 = arith.constant 0 : index
    %81 = vector.load %arg4[%c7, %c0_75, %c0_76] : memref<9x160x160xbf16, #tpu.memory_space<vmem>>, vector<1x160x160xbf16>
    %82 = vector.shape_cast %81 : vector<1x160x160xbf16> to vector<160x160xbf16>
    %cst_77 = arith.constant dense<0.000000e+00> : vector<128x160xf32>
    %83 = tpu.matmul %80, %82, %cst_77 {dimension_numbers = #tpu.dot_dimension_numbers<[1], [0], [0], [1], [0, 0, 1, 1], [], []>} : vector<128x160xbf16>, vector<160x160xbf16>, vector<128x160xf32> -> vector<128x160xf32>
    %84 = arith.addf %78, %83 : vector<128x160xf32>
    %85 = vector.extract_strided_slice %35 {offsets = [2, 0, 0], sizes = [8, 16, 160], strides = [1, 1, 1]} : vector<18x16x160xbf16> to vector<8x16x160xbf16>
    %86 = vector.shape_cast %85 : vector<8x16x160xbf16> to vector<128x160xbf16>
    %c8 = arith.constant 8 : index
    %c0_78 = arith.constant 0 : index
    %c0_79 = arith.constant 0 : index
    %87 = vector.load %arg4[%c8, %c0_78, %c0_79] : memref<9x160x160xbf16, #tpu.memory_space<vmem>>, vector<1x160x160xbf16>
    %88 = vector.shape_cast %87 : vector<1x160x160xbf16> to vector<160x160xbf16>
    %cst_80 = arith.constant dense<0.000000e+00> : vector<128x160xf32>
    %89 = tpu.matmul %86, %88, %cst_80 {dimension_numbers = #tpu.dot_dimension_numbers<[1], [0], [0], [1], [0, 0, 1, 1], [], []>} : vector<128x160xbf16>, vector<160x160xbf16>, vector<128x160xf32> -> vector<128x160xf32>
    %90 = arith.addf %84, %89 : vector<128x160xf32>
    %c0_81 = arith.constant 0 : index
    %c0_82 = arith.constant 0 : index
    %91 = vector.load %arg5[%c0_81, %c0_82] : memref<1x160xf32, #tpu.memory_space<vmem>>, vector<1x160xf32>
    %92 = vector.broadcast %91 : vector<1x160xf32> to vector<128x160xf32>
    %93 = arith.addf %90, %92 : vector<128x160xf32>
    %cst_83 = arith.constant 0.000000e+00 : f32
    %94 = vector.broadcast %cst_83 : f32 to vector<128x160xf32>
    %95 = arith.cmpf ogt, %93, %94 : vector<128x160xf32>
    %cst_84 = arith.constant 0.00999999977 : f32
    %96 = vector.broadcast %cst_84 : f32 to vector<128x160xf32>
    %97 = arith.mulf %96, %93 : vector<128x160xf32>
    %98 = arith.select %95, %93, %97 : vector<128x160xi1>, vector<128x160xf32>
    %99 = vector.shape_cast %98 : vector<128x160xf32> to vector<8x16x160xf32>
    %c1_85 = arith.constant 1 : index
    %c1_86 = arith.constant 1 : index
    %c0_87 = arith.constant 0 : index
    %100 = vector.load %arg10[%c1_85, %c1_86, %c0_87] : memref<18x18x160xf32, #tpu.memory_space<vmem>>, vector<8x16x160xf32>
    tpu.vector_store %arg10[%c1_85, %c1_86, %c0_87], %99 {strides = array<i32>} : memref<18x18x160xf32, #tpu.memory_space<vmem>>, vector<8x16x160xf32>,
    %cst_88 = arith.constant 0.000000e+00 : f32
    %101 = vector.broadcast %cst_88 : f32 to vector<128x160xf32>
    %102 = vector.extract_strided_slice %31 {offsets = [8, 0, 0], sizes = [8, 16, 160], strides = [1, 1, 1]} : vector<18x16x160xbf16> to vector<8x16x160xbf16>
    %103 = vector.shape_cast %102 : vector<8x16x160xbf16> to vector<128x160xbf16>
    %c0_89 = arith.constant 0 : index
    %c0_90 = arith.constant 0 : index
    %c0_91 = arith.constant 0 : index
    %104 = vector.load %arg4[%c0_89, %c0_90, %c0_91] : memref<9x160x160xbf16, #tpu.memory_space<vmem>>, vector<1x160x160xbf16>
    %105 = vector.shape_cast %104 : vector<1x160x160xbf16> to vector<160x160xbf16>
    %cst_92 = arith.constant dense<0.000000e+00> : vector<128x160xf32>
    %106 = tpu.matmul %103, %105, %cst_92 {dimension_numbers = #tpu.dot_dimension_numbers<[1], [0], [0], [1], [0, 0, 1, 1], [], []>} : vector<128x160xbf16>, vector<160x160xbf16>, vector<128x160xf32> -> vector<128x160xf32>
    %107 = arith.addf %101, %106 : vector<128x160xf32>
    %108 = vector.extract_strided_slice %33 {offsets = [8, 0, 0], sizes = [8, 16, 160], strides = [1, 1, 1]} : vector<18x16x160xbf16> to vector<8x16x160xbf16>
    %109 = vector.shape_cast %108 : vector<8x16x160xbf16> to vector<128x160xbf16>
    %c1_93 = arith.constant 1 : index
    %c0_94 = arith.constant 0 : index
    %c0_95 = arith.constant 0 : index
    %110 = vector.load %arg4[%c1_93, %c0_94, %c0_95] : memref<9x160x160xbf16, #tpu.memory_space<vmem>>, vector<1x160x160xbf16>
    %111 = vector.shape_cast %110 : vector<1x160x160xbf16> to vector<160x160xbf16>
    %cst_96 = arith.constant dense<0.000000e+00> : vector<128x160xf32>
    %112 = tpu.matmul %109, %111, %cst_96 {dimension_numbers = #tpu.dot_dimension_numbers<[1], [0], [0], [1], [0, 0, 1, 1], [], []>} : vector<128x160xbf16>, vector<160x160xbf16>, vector<128x160xf32> -> vector<128x160xf32>
    %113 = arith.addf %107, %112 : vector<128x160xf32>
    %114 = vector.extract_strided_slice %35 {offsets = [8, 0, 0], sizes = [8, 16, 160], strides = [1, 1, 1]} : vector<18x16x160xbf16> to vector<8x16x160xbf16>
    %115 = vector.shape_cast %114 : vector<8x16x160xbf16> to vector<128x160xbf16>
    %c2_97 = arith.constant 2 : index
    %c0_98 = arith.constant 0 : index
    %c0_99 = arith.constant 0 : index
    %116 = vector.load %arg4[%c2_97, %c0_98, %c0_99] : memref<9x160x160xbf16, #tpu.memory_space<vmem>>, vector<1x160x160xbf16>
    %117 = vector.shape_cast %116 : vector<1x160x160xbf16> to vector<160x160xbf16>
    %cst_100 = arith.constant dense<0.000000e+00> : vector<128x160xf32>
    %118 = tpu.matmul %115, %117, %cst_100 {dimension_numbers = #tpu.dot_dimension_numbers<[1], [0], [0], [1], [0, 0, 1, 1], [], []>} : vector<128x160xbf16>, vector<160x160xbf16>, vector<128x160xf32> -> vector<128x160xf32>
    %119 = arith.addf %113, %118 : vector<128x160xf32>
    %120 = vector.extract_strided_slice %31 {offsets = [9, 0, 0], sizes = [8, 16, 160], strides = [1, 1, 1]} : vector<18x16x160xbf16> to vector<8x16x160xbf16>
    %121 = vector.shape_cast %120 : vector<8x16x160xbf16> to vector<128x160xbf16>
    %c3_101 = arith.constant 3 : index
    %c0_102 = arith.constant 0 : index
    %c0_103 = arith.constant 0 : index
    %122 = vector.load %arg4[%c3_101, %c0_102, %c0_103] : memref<9x160x160xbf16, #tpu.memory_space<vmem>>, vector<1x160x160xbf16>
    %123 = vector.shape_cast %122 : vector<1x160x160xbf16> to vector<160x160xbf16>
    %cst_104 = arith.constant dense<0.000000e+00> : vector<128x160xf32>
    %124 = tpu.matmul %121, %123, %cst_104 {dimension_numbers = #tpu.dot_dimension_numbers<[1], [0], [0], [1], [0, 0, 1, 1], [], []>} : vector<128x160xbf16>, vector<160x160xbf16>, vector<128x160xf32> -> vector<128x160xf32>
    %125 = arith.addf %119, %124 : vector<128x160xf32>
    %126 = vector.extract_strided_slice %33 {offsets = [9, 0, 0], sizes = [8, 16, 160], strides = [1, 1, 1]} : vector<18x16x160xbf16> to vector<8x16x160xbf16>
    %127 = vector.shape_cast %126 : vector<8x16x160xbf16> to vector<128x160xbf16>
    %c4_105 = arith.constant 4 : index
    %c0_106 = arith.constant 0 : index
    %c0_107 = arith.constant 0 : index
    %128 = vector.load %arg4[%c4_105, %c0_106, %c0_107] : memref<9x160x160xbf16, #tpu.memory_space<vmem>>, vector<1x160x160xbf16>
    %129 = vector.shape_cast %128 : vector<1x160x160xbf16> to vector<160x160xbf16>
    %cst_108 = arith.constant dense<0.000000e+00> : vector<128x160xf32>
    %130 = tpu.matmul %127, %129, %cst_108 {dimension_numbers = #tpu.dot_dimension_numbers<[1], [0], [0], [1], [0, 0, 1, 1], [], []>} : vector<128x160xbf16>, vector<160x160xbf16>, vector<128x160xf32> -> vector<128x160xf32>
    %131 = arith.addf %125, %130 : vector<128x160xf32>
    %132 = vector.extract_strided_slice %35 {offsets = [9, 0, 0], sizes = [8, 16, 160], strides = [1, 1, 1]} : vector<18x16x160xbf16> to vector<8x16x160xbf16>
    %133 = vector.shape_cast %132 : vector<8x16x160xbf16> to vector<128x160xbf16>
    %c5_109 = arith.constant 5 : index
    %c0_110 = arith.constant 0 : index
    %c0_111 = arith.constant 0 : index
    %134 = vector.load %arg4[%c5_109, %c0_110, %c0_111] : memref<9x160x160xbf16, #tpu.memory_space<vmem>>, vector<1x160x160xbf16>
    %135 = vector.shape_cast %134 : vector<1x160x160xbf16> to vector<160x160xbf16>
    %cst_112 = arith.constant dense<0.000000e+00> : vector<128x160xf32>
    %136 = tpu.matmul %133, %135, %cst_112 {dimension_numbers = #tpu.dot_dimension_numbers<[1], [0], [0], [1], [0, 0, 1, 1], [], []>} : vector<128x160xbf16>, vector<160x160xbf16>, vector<128x160xf32> -> vector<128x160xf32>
    %137 = arith.addf %131, %136 : vector<128x160xf32>
    %138 = vector.extract_strided_slice %31 {offsets = [10, 0, 0], sizes = [8, 16, 160], strides = [1, 1, 1]} : vector<18x16x160xbf16> to vector<8x16x160xbf16>
    %139 = vector.shape_cast %138 : vector<8x16x160xbf16> to vector<128x160xbf16>
    %c6_113 = arith.constant 6 : index
    %c0_114 = arith.constant 0 : index
    %c0_115 = arith.constant 0 : index
    %140 = vector.load %arg4[%c6_113, %c0_114, %c0_115] : memref<9x160x160xbf16, #tpu.memory_space<vmem>>, vector<1x160x160xbf16>
    %141 = vector.shape_cast %140 : vector<1x160x160xbf16> to vector<160x160xbf16>
    %cst_116 = arith.constant dense<0.000000e+00> : vector<128x160xf32>
    %142 = tpu.matmul %139, %141, %cst_116 {dimension_numbers = #tpu.dot_dimension_numbers<[1], [0], [0], [1], [0, 0, 1, 1], [], []>} : vector<128x160xbf16>, vector<160x160xbf16>, vector<128x160xf32> -> vector<128x160xf32>
    %143 = arith.addf %137, %142 : vector<128x160xf32>
    %144 = vector.extract_strided_slice %33 {offsets = [10, 0, 0], sizes = [8, 16, 160], strides = [1, 1, 1]} : vector<18x16x160xbf16> to vector<8x16x160xbf16>
    %145 = vector.shape_cast %144 : vector<8x16x160xbf16> to vector<128x160xbf16>
    %c7_117 = arith.constant 7 : index
    %c0_118 = arith.constant 0 : index
    %c0_119 = arith.constant 0 : index
    %146 = vector.load %arg4[%c7_117, %c0_118, %c0_119] : memref<9x160x160xbf16, #tpu.memory_space<vmem>>, vector<1x160x160xbf16>
    %147 = vector.shape_cast %146 : vector<1x160x160xbf16> to vector<160x160xbf16>
    %cst_120 = arith.constant dense<0.000000e+00> : vector<128x160xf32>
    %148 = tpu.matmul %145, %147, %cst_120 {dimension_numbers = #tpu.dot_dimension_numbers<[1], [0], [0], [1], [0, 0, 1, 1], [], []>} : vector<128x160xbf16>, vector<160x160xbf16>, vector<128x160xf32> -> vector<128x160xf32>
    %149 = arith.addf %143, %148 : vector<128x160xf32>
    %150 = vector.extract_strided_slice %35 {offsets = [10, 0, 0], sizes = [8, 16, 160], strides = [1, 1, 1]} : vector<18x16x160xbf16> to vector<8x16x160xbf16>
    %151 = vector.shape_cast %150 : vector<8x16x160xbf16> to vector<128x160xbf16>
    %c8_121 = arith.constant 8 : index
    %c0_122 = arith.constant 0 : index
    %c0_123 = arith.constant 0 : index
    %152 = vector.load %arg4[%c8_121, %c0_122, %c0_123] : memref<9x160x160xbf16, #tpu.memory_space<vmem>>, vector<1x160x160xbf16>
    %153 = vector.shape_cast %152 : vector<1x160x160xbf16> to vector<160x160xbf16>
    %cst_124 = arith.constant dense<0.000000e+00> : vector<128x160xf32>
    %154 = tpu.matmul %151, %153, %cst_124 {dimension_numbers = #tpu.dot_dimension_numbers<[1], [0], [0], [1], [0, 0, 1, 1], [], []>} : vector<128x160xbf16>, vector<160x160xbf16>, vector<128x160xf32> -> vector<128x160xf32>
    %155 = arith.addf %149, %154 : vector<128x160xf32>
    %c0_125 = arith.constant 0 : index
    %c0_126 = arith.constant 0 : index
    %156 = vector.load %arg5[%c0_125, %c0_126] : memref<1x160xf32, #tpu.memory_space<vmem>>, vector<1x160xf32>
    %157 = vector.broadcast %156 : vector<1x160xf32> to vector<128x160xf32>
    %158 = arith.addf %155, %157 : vector<128x160xf32>
    %cst_127 = arith.constant 0.000000e+00 : f32
    %159 = vector.broadcast %cst_127 : f32 to vector<128x160xf32>
    %160 = arith.cmpf ogt, %158, %159 : vector<128x160xf32>
    %cst_128 = arith.constant 0.00999999977 : f32
    %161 = vector.broadcast %cst_128 : f32 to vector<128x160xf32>
    %162 = arith.mulf %161, %158 : vector<128x160xf32>
    %163 = arith.select %160, %158, %162 : vector<128x160xi1>, vector<128x160xf32>
    %164 = vector.shape_cast %163 : vector<128x160xf32> to vector<8x16x160xf32>
    %c9 = arith.constant 9 : index
    %c1_129 = arith.constant 1 : index
    %c0_130 = arith.constant 0 : index
    %165 = vector.load %arg10[%c9, %c1_129, %c0_130] : memref<18x18x160xf32, #tpu.memory_space<vmem>>, vector<8x16x160xf32>
    tpu.vector_store %arg10[%c9, %c1_129, %c0_130], %164 {strides = array<i32>} : memref<18x18x160xf32, #tpu.memory_space<vmem>>, vector<8x16x160xf32>,
    %c0_131 = arith.constant 0 : index
    %c0_132 = arith.constant 0 : index
    %c0_133 = arith.constant 0 : index
    %166 = vector.load %arg10[%c0_131, %c0_132, %c0_133] : memref<18x18x160xf32, #tpu.memory_space<vmem>>, vector<18x16x160xf32>
    %167 = arith.truncf %166 : vector<18x16x160xf32> to vector<18x16x160xbf16>
    %c0_134 = arith.constant 0 : index
    %c1_135 = arith.constant 1 : index
    %c0_136 = arith.constant 0 : index
    %168 = vector.load %arg10[%c0_134, %c1_135, %c0_136] : memref<18x18x160xf32, #tpu.memory_space<vmem>>, vector<18x16x160xf32>
    %169 = arith.truncf %168 : vector<18x16x160xf32> to vector<18x16x160xbf16>
    %c0_137 = arith.constant 0 : index
    %c2_138 = arith.constant 2 : index
    %c0_139 = arith.constant 0 : index
    %170 = vector.load %arg10[%c0_137, %c2_138, %c0_139] : memref<18x18x160xf32, #tpu.memory_space<vmem>>, vector<18x16x160xf32>
    %171 = arith.truncf %170 : vector<18x16x160xf32> to vector<18x16x160xbf16>
    %cst_140 = arith.constant 0.000000e+00 : f32
    %172 = vector.broadcast %cst_140 : f32 to vector<128x5xf32>
    %173 = vector.extract_strided_slice %167 {offsets = [0, 0, 0], sizes = [8, 16, 160], strides = [1, 1, 1]} : vector<18x16x160xbf16> to vector<8x16x160xbf16>
    %174 = vector.shape_cast %173 : vector<8x16x160xbf16> to vector<128x160xbf16>
    %c0_141 = arith.constant 0 : index
    %c0_142 = arith.constant 0 : index
    %c0_143 = arith.constant 0 : index
    %175 = vector.load %arg6[%c0_141, %c0_142, %c0_143] : memref<9x160x5xbf16, #tpu.memory_space<vmem>>, vector<1x160x5xbf16>
    %176 = vector.shape_cast %175 : vector<1x160x5xbf16> to vector<160x5xbf16>
    %cst_144 = arith.constant dense<0.000000e+00> : vector<128x5xf32>
    %177 = tpu.matmul %174, %176, %cst_144 {dimension_numbers = #tpu.dot_dimension_numbers<[1], [0], [0], [1], [0, 0, 1, 1], [], []>} : vector<128x160xbf16>, vector<160x5xbf16>, vector<128x5xf32> -> vector<128x5xf32>
    %178 = arith.addf %172, %177 : vector<128x5xf32>
    %179 = vector.extract_strided_slice %169 {offsets = [0, 0, 0], sizes = [8, 16, 160], strides = [1, 1, 1]} : vector<18x16x160xbf16> to vector<8x16x160xbf16>
    %180 = vector.shape_cast %179 : vector<8x16x160xbf16> to vector<128x160xbf16>
    %c1_145 = arith.constant 1 : index
    %c0_146 = arith.constant 0 : index
    %c0_147 = arith.constant 0 : index
    %181 = vector.load %arg6[%c1_145, %c0_146, %c0_147] : memref<9x160x5xbf16, #tpu.memory_space<vmem>>, vector<1x160x5xbf16>
    %182 = vector.shape_cast %181 : vector<1x160x5xbf16> to vector<160x5xbf16>
    %cst_148 = arith.constant dense<0.000000e+00> : vector<128x5xf32>
    %183 = tpu.matmul %180, %182, %cst_148 {dimension_numbers = #tpu.dot_dimension_numbers<[1], [0], [0], [1], [0, 0, 1, 1], [], []>} : vector<128x160xbf16>, vector<160x5xbf16>, vector<128x5xf32> -> vector<128x5xf32>
    %184 = arith.addf %178, %183 : vector<128x5xf32>
    %185 = vector.extract_strided_slice %171 {offsets = [0, 0, 0], sizes = [8, 16, 160], strides = [1, 1, 1]} : vector<18x16x160xbf16> to vector<8x16x160xbf16>
    %186 = vector.shape_cast %185 : vector<8x16x160xbf16> to vector<128x160xbf16>
    %c2_149 = arith.constant 2 : index
    %c0_150 = arith.constant 0 : index
    %c0_151 = arith.constant 0 : index
    %187 = vector.load %arg6[%c2_149, %c0_150, %c0_151] : memref<9x160x5xbf16, #tpu.memory_space<vmem>>, vector<1x160x5xbf16>
    %188 = vector.shape_cast %187 : vector<1x160x5xbf16> to vector<160x5xbf16>
    %cst_152 = arith.constant dense<0.000000e+00> : vector<128x5xf32>
    %189 = tpu.matmul %186, %188, %cst_152 {dimension_numbers = #tpu.dot_dimension_numbers<[1], [0], [0], [1], [0, 0, 1, 1], [], []>} : vector<128x160xbf16>, vector<160x5xbf16>, vector<128x5xf32> -> vector<128x5xf32>
    %190 = arith.addf %184, %189 : vector<128x5xf32>
    %191 = vector.extract_strided_slice %167 {offsets = [1, 0, 0], sizes = [8, 16, 160], strides = [1, 1, 1]} : vector<18x16x160xbf16> to vector<8x16x160xbf16>
    %192 = vector.shape_cast %191 : vector<8x16x160xbf16> to vector<128x160xbf16>
    %c3_153 = arith.constant 3 : index
    %c0_154 = arith.constant 0 : index
    %c0_155 = arith.constant 0 : index
    %193 = vector.load %arg6[%c3_153, %c0_154, %c0_155] : memref<9x160x5xbf16, #tpu.memory_space<vmem>>, vector<1x160x5xbf16>
    %194 = vector.shape_cast %193 : vector<1x160x5xbf16> to vector<160x5xbf16>
    %cst_156 = arith.constant dense<0.000000e+00> : vector<128x5xf32>
    %195 = tpu.matmul %192, %194, %cst_156 {dimension_numbers = #tpu.dot_dimension_numbers<[1], [0], [0], [1], [0, 0, 1, 1], [], []>} : vector<128x160xbf16>, vector<160x5xbf16>, vector<128x5xf32> -> vector<128x5xf32>
    %196 = arith.addf %190, %195 : vector<128x5xf32>
    %197 = vector.extract_strided_slice %169 {offsets = [1, 0, 0], sizes = [8, 16, 160], strides = [1, 1, 1]} : vector<18x16x160xbf16> to vector<8x16x160xbf16>
    %198 = vector.shape_cast %197 : vector<8x16x160xbf16> to vector<128x160xbf16>
    %c4_157 = arith.constant 4 : index
    %c0_158 = arith.constant 0 : index
    %c0_159 = arith.constant 0 : index
    %199 = vector.load %arg6[%c4_157, %c0_158, %c0_159] : memref<9x160x5xbf16, #tpu.memory_space<vmem>>, vector<1x160x5xbf16>
    %200 = vector.shape_cast %199 : vector<1x160x5xbf16> to vector<160x5xbf16>
    %cst_160 = arith.constant dense<0.000000e+00> : vector<128x5xf32>
    %201 = tpu.matmul %198, %200, %cst_160 {dimension_numbers = #tpu.dot_dimension_numbers<[1], [0], [0], [1], [0, 0, 1, 1], [], []>} : vector<128x160xbf16>, vector<160x5xbf16>, vector<128x5xf32> -> vector<128x5xf32>
    %202 = arith.addf %196, %201 : vector<128x5xf32>
    %203 = vector.extract_strided_slice %171 {offsets = [1, 0, 0], sizes = [8, 16, 160], strides = [1, 1, 1]} : vector<18x16x160xbf16> to vector<8x16x160xbf16>
    %204 = vector.shape_cast %203 : vector<8x16x160xbf16> to vector<128x160xbf16>
    %c5_161 = arith.constant 5 : index
    %c0_162 = arith.constant 0 : index
    %c0_163 = arith.constant 0 : index
    %205 = vector.load %arg6[%c5_161, %c0_162, %c0_163] : memref<9x160x5xbf16, #tpu.memory_space<vmem>>, vector<1x160x5xbf16>
    %206 = vector.shape_cast %205 : vector<1x160x5xbf16> to vector<160x5xbf16>
    %cst_164 = arith.constant dense<0.000000e+00> : vector<128x5xf32>
    %207 = tpu.matmul %204, %206, %cst_164 {dimension_numbers = #tpu.dot_dimension_numbers<[1], [0], [0], [1], [0, 0, 1, 1], [], []>} : vector<128x160xbf16>, vector<160x5xbf16>, vector<128x5xf32> -> vector<128x5xf32>
    %208 = arith.addf %202, %207 : vector<128x5xf32>
    %209 = vector.extract_strided_slice %167 {offsets = [2, 0, 0], sizes = [8, 16, 160], strides = [1, 1, 1]} : vector<18x16x160xbf16> to vector<8x16x160xbf16>
    %210 = vector.shape_cast %209 : vector<8x16x160xbf16> to vector<128x160xbf16>
    %c6_165 = arith.constant 6 : index
    %c0_166 = arith.constant 0 : index
    %c0_167 = arith.constant 0 : index
    %211 = vector.load %arg6[%c6_165, %c0_166, %c0_167] : memref<9x160x5xbf16, #tpu.memory_space<vmem>>, vector<1x160x5xbf16>
    %212 = vector.shape_cast %211 : vector<1x160x5xbf16> to vector<160x5xbf16>
    %cst_168 = arith.constant dense<0.000000e+00> : vector<128x5xf32>
    %213 = tpu.matmul %210, %212, %cst_168 {dimension_numbers = #tpu.dot_dimension_numbers<[1], [0], [0], [1], [0, 0, 1, 1], [], []>} : vector<128x160xbf16>, vector<160x5xbf16>, vector<128x5xf32> -> vector<128x5xf32>
    %214 = arith.addf %208, %213 : vector<128x5xf32>
    %215 = vector.extract_strided_slice %169 {offsets = [2, 0, 0], sizes = [8, 16, 160], strides = [1, 1, 1]} : vector<18x16x160xbf16> to vector<8x16x160xbf16>
    %216 = vector.shape_cast %215 : vector<8x16x160xbf16> to vector<128x160xbf16>
    %c7_169 = arith.constant 7 : index
    %c0_170 = arith.constant 0 : index
    %c0_171 = arith.constant 0 : index
    %217 = vector.load %arg6[%c7_169, %c0_170, %c0_171] : memref<9x160x5xbf16, #tpu.memory_space<vmem>>, vector<1x160x5xbf16>
    %218 = vector.shape_cast %217 : vector<1x160x5xbf16> to vector<160x5xbf16>
    %cst_172 = arith.constant dense<0.000000e+00> : vector<128x5xf32>
    %219 = tpu.matmul %216, %218, %cst_172 {dimension_numbers = #tpu.dot_dimension_numbers<[1], [0], [0], [1], [0, 0, 1, 1], [], []>} : vector<128x160xbf16>, vector<160x5xbf16>, vector<128x5xf32> -> vector<128x5xf32>
    %220 = arith.addf %214, %219 : vector<128x5xf32>
    %221 = vector.extract_strided_slice %171 {offsets = [2, 0, 0], sizes = [8, 16, 160], strides = [1, 1, 1]} : vector<18x16x160xbf16> to vector<8x16x160xbf16>
    %222 = vector.shape_cast %221 : vector<8x16x160xbf16> to vector<128x160xbf16>
    %c8_173 = arith.constant 8 : index
    %c0_174 = arith.constant 0 : index
    %c0_175 = arith.constant 0 : index
    %223 = vector.load %arg6[%c8_173, %c0_174, %c0_175] : memref<9x160x5xbf16, #tpu.memory_space<vmem>>, vector<1x160x5xbf16>
    %224 = vector.shape_cast %223 : vector<1x160x5xbf16> to vector<160x5xbf16>
    %cst_176 = arith.constant dense<0.000000e+00> : vector<128x5xf32>
    %225 = tpu.matmul %222, %224, %cst_176 {dimension_numbers = #tpu.dot_dimension_numbers<[1], [0], [0], [1], [0, 0, 1, 1], [], []>} : vector<128x160xbf16>, vector<160x5xbf16>, vector<128x5xf32> -> vector<128x5xf32>
    %226 = arith.addf %220, %225 : vector<128x5xf32>
    %c0_177 = arith.constant 0 : index
    %c0_178 = arith.constant 0 : index
    %227 = vector.load %arg7[%c0_177, %c0_178] : memref<1x5xf32, #tpu.memory_space<vmem>>, vector<1x5xf32>
    %228 = vector.broadcast %227 : vector<1x5xf32> to vector<128x5xf32>
    %229 = arith.addf %226, %228 : vector<128x5xf32>
    %230 = vector.shape_cast %229 : vector<128x5xf32> to vector<1x8x16x5xf32>
    %c0_179 = arith.constant 0 : index
    %c0_180 = arith.constant 0 : index
    %c0_181 = arith.constant 0 : index
    %c0_182 = arith.constant 0 : index
    %231 = vector.load %arg8[%c0_179, %c0_180, %c0_181, %c0_182] : memref<1x16x16x5xf32, #tpu.memory_space<vmem>>, vector<1x8x16x5xf32>
    tpu.vector_store %arg8[%c0_179, %c0_180, %c0_181, %c0_182], %230 {strides = array<i32>} : memref<1x16x16x5xf32, #tpu.memory_space<vmem>>, vector<1x8x16x5xf32>,
    %cst_183 = arith.constant 0.000000e+00 : f32
    %232 = vector.broadcast %cst_183 : f32 to vector<128x5xf32>
    %233 = vector.extract_strided_slice %167 {offsets = [8, 0, 0], sizes = [8, 16, 160], strides = [1, 1, 1]} : vector<18x16x160xbf16> to vector<8x16x160xbf16>
    %234 = vector.shape_cast %233 : vector<8x16x160xbf16> to vector<128x160xbf16>
    %c0_184 = arith.constant 0 : index
    %c0_185 = arith.constant 0 : index
    %c0_186 = arith.constant 0 : index
    %235 = vector.load %arg6[%c0_184, %c0_185, %c0_186] : memref<9x160x5xbf16, #tpu.memory_space<vmem>>, vector<1x160x5xbf16>
    %236 = vector.shape_cast %235 : vector<1x160x5xbf16> to vector<160x5xbf16>
    %cst_187 = arith.constant dense<0.000000e+00> : vector<128x5xf32>
    %237 = tpu.matmul %234, %236, %cst_187 {dimension_numbers = #tpu.dot_dimension_numbers<[1], [0], [0], [1], [0, 0, 1, 1], [], []>} : vector<128x160xbf16>, vector<160x5xbf16>, vector<128x5xf32> -> vector<128x5xf32>
    %238 = arith.addf %232, %237 : vector<128x5xf32>
    %239 = vector.extract_strided_slice %169 {offsets = [8, 0, 0], sizes = [8, 16, 160], strides = [1, 1, 1]} : vector<18x16x160xbf16> to vector<8x16x160xbf16>
    %240 = vector.shape_cast %239 : vector<8x16x160xbf16> to vector<128x160xbf16>
    %c1_188 = arith.constant 1 : index
    %c0_189 = arith.constant 0 : index
    %c0_190 = arith.constant 0 : index
    %241 = vector.load %arg6[%c1_188, %c0_189, %c0_190] : memref<9x160x5xbf16, #tpu.memory_space<vmem>>, vector<1x160x5xbf16>
    %242 = vector.shape_cast %241 : vector<1x160x5xbf16> to vector<160x5xbf16>
    %cst_191 = arith.constant dense<0.000000e+00> : vector<128x5xf32>
    %243 = tpu.matmul %240, %242, %cst_191 {dimension_numbers = #tpu.dot_dimension_numbers<[1], [0], [0], [1], [0, 0, 1, 1], [], []>} : vector<128x160xbf16>, vector<160x5xbf16>, vector<128x5xf32> -> vector<128x5xf32>
    %244 = arith.addf %238, %243 : vector<128x5xf32>
    %245 = vector.extract_strided_slice %171 {offsets = [8, 0, 0], sizes = [8, 16, 160], strides = [1, 1, 1]} : vector<18x16x160xbf16> to vector<8x16x160xbf16>
    %246 = vector.shape_cast %245 : vector<8x16x160xbf16> to vector<128x160xbf16>
    %c2_192 = arith.constant 2 : index
    %c0_193 = arith.constant 0 : index
    %c0_194 = arith.constant 0 : index
    %247 = vector.load %arg6[%c2_192, %c0_193, %c0_194] : memref<9x160x5xbf16, #tpu.memory_space<vmem>>, vector<1x160x5xbf16>
    %248 = vector.shape_cast %247 : vector<1x160x5xbf16> to vector<160x5xbf16>
    %cst_195 = arith.constant dense<0.000000e+00> : vector<128x5xf32>
    %249 = tpu.matmul %246, %248, %cst_195 {dimension_numbers = #tpu.dot_dimension_numbers<[1], [0], [0], [1], [0, 0, 1, 1], [], []>} : vector<128x160xbf16>, vector<160x5xbf16>, vector<128x5xf32> -> vector<128x5xf32>
    %250 = arith.addf %244, %249 : vector<128x5xf32>
    %251 = vector.extract_strided_slice %167 {offsets = [9, 0, 0], sizes = [8, 16, 160], strides = [1, 1, 1]} : vector<18x16x160xbf16> to vector<8x16x160xbf16>
    %252 = vector.shape_cast %251 : vector<8x16x160xbf16> to vector<128x160xbf16>
    %c3_196 = arith.constant 3 : index
    %c0_197 = arith.constant 0 : index
    %c0_198 = arith.constant 0 : index
    %253 = vector.load %arg6[%c3_196, %c0_197, %c0_198] : memref<9x160x5xbf16, #tpu.memory_space<vmem>>, vector<1x160x5xbf16>
    %254 = vector.shape_cast %253 : vector<1x160x5xbf16> to vector<160x5xbf16>
    %cst_199 = arith.constant dense<0.000000e+00> : vector<128x5xf32>
    %255 = tpu.matmul %252, %254, %cst_199 {dimension_numbers = #tpu.dot_dimension_numbers<[1], [0], [0], [1], [0, 0, 1, 1], [], []>} : vector<128x160xbf16>, vector<160x5xbf16>, vector<128x5xf32> -> vector<128x5xf32>
    %256 = arith.addf %250, %255 : vector<128x5xf32>
    %257 = vector.extract_strided_slice %169 {offsets = [9, 0, 0], sizes = [8, 16, 160], strides = [1, 1, 1]} : vector<18x16x160xbf16> to vector<8x16x160xbf16>
    %258 = vector.shape_cast %257 : vector<8x16x160xbf16> to vector<128x160xbf16>
    %c4_200 = arith.constant 4 : index
    %c0_201 = arith.constant 0 : index
    %c0_202 = arith.constant 0 : index
    %259 = vector.load %arg6[%c4_200, %c0_201, %c0_202] : memref<9x160x5xbf16, #tpu.memory_space<vmem>>, vector<1x160x5xbf16>
    %260 = vector.shape_cast %259 : vector<1x160x5xbf16> to vector<160x5xbf16>
    %cst_203 = arith.constant dense<0.000000e+00> : vector<128x5xf32>
    %261 = tpu.matmul %258, %260, %cst_203 {dimension_numbers = #tpu.dot_dimension_numbers<[1], [0], [0], [1], [0, 0, 1, 1], [], []>} : vector<128x160xbf16>, vector<160x5xbf16>, vector<128x5xf32> -> vector<128x5xf32>
    %262 = arith.addf %256, %261 : vector<128x5xf32>
    %263 = vector.extract_strided_slice %171 {offsets = [9, 0, 0], sizes = [8, 16, 160], strides = [1, 1, 1]} : vector<18x16x160xbf16> to vector<8x16x160xbf16>
    %264 = vector.shape_cast %263 : vector<8x16x160xbf16> to vector<128x160xbf16>
    %c5_204 = arith.constant 5 : index
    %c0_205 = arith.constant 0 : index
    %c0_206 = arith.constant 0 : index
    %265 = vector.load %arg6[%c5_204, %c0_205, %c0_206] : memref<9x160x5xbf16, #tpu.memory_space<vmem>>, vector<1x160x5xbf16>
    %266 = vector.shape_cast %265 : vector<1x160x5xbf16> to vector<160x5xbf16>
    %cst_207 = arith.constant dense<0.000000e+00> : vector<128x5xf32>
    %267 = tpu.matmul %264, %266, %cst_207 {dimension_numbers = #tpu.dot_dimension_numbers<[1], [0], [0], [1], [0, 0, 1, 1], [], []>} : vector<128x160xbf16>, vector<160x5xbf16>, vector<128x5xf32> -> vector<128x5xf32>
    %268 = arith.addf %262, %267 : vector<128x5xf32>
    %269 = vector.extract_strided_slice %167 {offsets = [10, 0, 0], sizes = [8, 16, 160], strides = [1, 1, 1]} : vector<18x16x160xbf16> to vector<8x16x160xbf16>
    %270 = vector.shape_cast %269 : vector<8x16x160xbf16> to vector<128x160xbf16>
    %c6_208 = arith.constant 6 : index
    %c0_209 = arith.constant 0 : index
    %c0_210 = arith.constant 0 : index
    %271 = vector.load %arg6[%c6_208, %c0_209, %c0_210] : memref<9x160x5xbf16, #tpu.memory_space<vmem>>, vector<1x160x5xbf16>
    %272 = vector.shape_cast %271 : vector<1x160x5xbf16> to vector<160x5xbf16>
    %cst_211 = arith.constant dense<0.000000e+00> : vector<128x5xf32>
    %273 = tpu.matmul %270, %272, %cst_211 {dimension_numbers = #tpu.dot_dimension_numbers<[1], [0], [0], [1], [0, 0, 1, 1], [], []>} : vector<128x160xbf16>, vector<160x5xbf16>, vector<128x5xf32> -> vector<128x5xf32>
    %274 = arith.addf %268, %273 : vector<128x5xf32>
    %275 = vector.extract_strided_slice %169 {offsets = [10, 0, 0], sizes = [8, 16, 160], strides = [1, 1, 1]} : vector<18x16x160xbf16> to vector<8x16x160xbf16>
    %276 = vector.shape_cast %275 : vector<8x16x160xbf16> to vector<128x160xbf16>
    %c7_212 = arith.constant 7 : index
    %c0_213 = arith.constant 0 : index
    %c0_214 = arith.constant 0 : index
    %277 = vector.load %arg6[%c7_212, %c0_213, %c0_214] : memref<9x160x5xbf16, #tpu.memory_space<vmem>>, vector<1x160x5xbf16>
    %278 = vector.shape_cast %277 : vector<1x160x5xbf16> to vector<160x5xbf16>
    %cst_215 = arith.constant dense<0.000000e+00> : vector<128x5xf32>
    %279 = tpu.matmul %276, %278, %cst_215 {dimension_numbers = #tpu.dot_dimension_numbers<[1], [0], [0], [1], [0, 0, 1, 1], [], []>} : vector<128x160xbf16>, vector<160x5xbf16>, vector<128x5xf32> -> vector<128x5xf32>
    %280 = arith.addf %274, %279 : vector<128x5xf32>
    %281 = vector.extract_strided_slice %171 {offsets = [10, 0, 0], sizes = [8, 16, 160], strides = [1, 1, 1]} : vector<18x16x160xbf16> to vector<8x16x160xbf16>
    %282 = vector.shape_cast %281 : vector<8x16x160xbf16> to vector<128x160xbf16>
    %c8_216 = arith.constant 8 : index
    %c0_217 = arith.constant 0 : index
    %c0_218 = arith.constant 0 : index
    %283 = vector.load %arg6[%c8_216, %c0_217, %c0_218] : memref<9x160x5xbf16, #tpu.memory_space<vmem>>, vector<1x160x5xbf16>
    %284 = vector.shape_cast %283 : vector<1x160x5xbf16> to vector<160x5xbf16>
    %cst_219 = arith.constant dense<0.000000e+00> : vector<128x5xf32>
    %285 = tpu.matmul %282, %284, %cst_219 {dimension_numbers = #tpu.dot_dimension_numbers<[1], [0], [0], [1], [0, 0, 1, 1], [], []>} : vector<128x160xbf16>, vector<160x5xbf16>, vector<128x5xf32> -> vector<128x5xf32>
    %286 = arith.addf %280, %285 : vector<128x5xf32>
    %c0_220 = arith.constant 0 : index
    %c0_221 = arith.constant 0 : index
    %287 = vector.load %arg7[%c0_220, %c0_221] : memref<1x5xf32, #tpu.memory_space<vmem>>, vector<1x5xf32>
    %288 = vector.broadcast %287 : vector<1x5xf32> to vector<128x5xf32>
    %289 = arith.addf %286, %288 : vector<128x5xf32>
    %290 = vector.shape_cast %289 : vector<128x5xf32> to vector<1x8x16x5xf32>
    %c0_222 = arith.constant 0 : index
    %c8_223 = arith.constant 8 : index
    %c0_224 = arith.constant 0 : index
    %c0_225 = arith.constant 0 : index
    %291 = vector.load %arg8[%c0_222, %c8_223, %c0_224, %c0_225] : memref<1x16x16x5xf32, #tpu.memory_space<vmem>>, vector<1x8x16x5xf32>
    tpu.vector_store %arg8[%c0_222, %c8_223, %c0_224, %c0_225], %290 {strides = array<i32>} : memref<1x16x16x5xf32, #tpu.memory_space<vmem>>, vector<1x8x16x5xf32>,
    return
  }
  func.func @transform_0(%arg0: i32) -> (i32, i32, i32, i32) {
    %c0_i32 = arith.constant 0 : i32
    %c0_i32_0 = arith.constant 0 : i32
    %c0_i32_1 = arith.constant 0 : i32
    %c0_i32_2 = arith.constant 0 : i32
    return %arg0, %c0_i32, %c0_i32_0, %c0_i32_1 : i32, i32, i32, i32
  }
  func.func @transform_1(%arg0: i32) -> (i32, i32) {
    %c0_i32 = arith.constant 0 : i32
    %c0_i32_0 = arith.constant 0 : i32
    %c0_i32_1 = arith.constant 0 : i32
    return %c0_i32, %c0_i32_0 : i32, i32
  }
  func.func @transform_2(%arg0: i32) -> (i32, i32) {
    %c0_i32 = arith.constant 0 : i32
    %c0_i32_0 = arith.constant 0 : i32
    %c0_i32_1 = arith.constant 0 : i32
    return %c0_i32, %c0_i32_0 : i32, i32
  }
  func.func @transform_3(%arg0: i32) -> (i32, i32, i32) {
    %c0_i32 = arith.constant 0 : i32
    %c0_i32_0 = arith.constant 0 : i32
    %c0_i32_1 = arith.constant 0 : i32
    %c0_i32_2 = arith.constant 0 : i32
    return %c0_i32, %c0_i32_0, %c0_i32_1 : i32, i32, i32
  }
  func.func @transform_4(%arg0: i32) -> (i32, i32) {
    %c0_i32 = arith.constant 0 : i32
    %c0_i32_0 = arith.constant 0 : i32
    %c0_i32_1 = arith.constant 0 : i32
    return %c0_i32, %c0_i32_0 : i32, i32
  }
  func.func @transform_5(%arg0: i32) -> (i32, i32, i32) {
    %c0_i32 = arith.constant 0 : i32
    %c0_i32_0 = arith.constant 0 : i32
    %c0_i32_1 = arith.constant 0 : i32
    %c0_i32_2 = arith.constant 0 : i32
    return %c0_i32, %c0_i32_0, %c0_i32_1 : i32, i32, i32
  }
  func.func @transform_6(%arg0: i32) -> (i32, i32) {
    %c0_i32 = arith.constant 0 : i32
    %c0_i32_0 = arith.constant 0 : i32
    %c0_i32_1 = arith.constant 0 : i32
    return %c0_i32, %c0_i32_0 : i32, i32
  }
  func.func @transform_7(%arg0: i32) -> (i32, i32, i32, i32) {
    %c0_i32 = arith.constant 0 : i32
    %c0_i32_0 = arith.constant 0 : i32
    %c0_i32_1 = arith.constant 0 : i32
    %c0_i32_2 = arith.constant 0 : i32
    return %arg0, %c0_i32, %c0_i32_0, %c0_i32_1 : i32, i32, i32, i32
  }
}

</mosaic_0001>

<bundles_post_ra>
// kernel: _lambda_.1
= control target key start
LH: loop header
LB: loop body
LE: loop exit
PB: predicated region body
PF: predicated region fallthrough
CT: control target
= control target key end

     0   :  { %s15493_s24 = smov 0   ;;  %s20951_s0 = inlined_call_operand.vmem [shape: bf16[2,16,16,72], index: 0, kind: input, shape index: {}]   ;;  %s20952_s1 = inlined_call_operand.vmem [shape: bf16[72,160], index: 1, kind: input, shape index: {}]   ;;  %s20953_s2 = inlined_call_operand.vmem [shape: f32[1,160], index: 2, kind: input, shape index: {}]   ;;  %s20954_s3 = inlined_call_operand.vmem [shape: bf16[9,160,160], index: 3, kind: input, shape index: {}]   ;;  %s20955_s4 = inlined_call_operand.vmem [shape: f32[1,160], index: 4, kind: input, shape index: {}]   ;;  %s20956_s5 = inlined_call_operand.vmem [shape: bf16[9,160,5], index: 5, kind: input, shape index: {}]   ;;  %s20957_s6 = inlined_call_operand.vmem [shape: f32[1,5], index: 6, kind: input, shape index: {}]   ;;  %s20958_s7 = inlined_call_operand.vmem [shape: f32[2,16,16,5], index: 7, kind: output, shape index: {}]  }
   0x1 LB: > { %s12752_s25 = sadd.s32 4294967295, %s15449_s24   ;;  %p12756_p0 = scmp.ge.s32.totalorder %s15449_s24, 1  ;;  %s15449_s24 = sphi %s15493_s24, %s17_s24  }
   0x2   : > { %p237_p1 = scmp.lt.s32.totalorder %s15449_s24, 3 }
   0x4   : > { %p238_p2 = pnand %p12756_p0, %p237_p1 }
   0x6   : > { %241 = sbr.rel (%p238_p2) target bundleno = 1926 (0x786), region = 48 }
   0xd   : > { %v14836_v0 = vld [vmem:[%s20952_s1 + $0x4] ss:$8 sps:$4 sm:$0xff]   ;;  %v14838_v1 = vld [vmem:[%s20952_s1] ss:$8 sps:$4 sm:$0xff]   ;;  %v20959_v2 = vmov 0   ;;  %p269_p3 = scmp.lt.s32.totalorder %s12752_s25, 1  ;;  %v295_v39 = vlaneseq }
   0xe   : > { %792 = vmatprep.mubr.bf16.mxu0 %v20959_v2  ;;  %760 = vmatprep.subr.bf16.mxu0 %v14836_v0  ;;  %v14839_v3 = vld [vmem:[%s20952_s1 + $0x14] ss:$8 sps:$4 sm:$0xff]   ;;  %v14841_v4 = vld [vmem:[%s20952_s1 + $0x10] ss:$8 sps:$4 sm:$0xff]   ;;  %v14842_v5 = vld [vmem:[%s20952_s1 + $0x24] ss:$8 sps:$4 sm:$0xff]  }
   0xf   : > { %761 = vmatpush1.bf16.msra.mxu0 %v14838_v1  ;;  %s21535_s25 = smov (!%p269_p3, %s12752_s25), 1  ;;  %v14865_v6 = vld [vmem:[%s20954_s3 + $0xa4] ss:$8 sps:$4 sm:$0xff]   ;;  %v14867_v7 = vld [vmem:[%s20954_s3 + $0xa0] ss:$8 sps:$4 sm:$0xff]   ;;  %vm753_vm0 = vcmask 1043456  }
  0x10   : > { %762 = vmatprep.subr.bf16.mxu0 %v14839_v3  ;;  %s14292_s13 = sshll.u32 %s21535_s25, 7  ;;  %v14844_v8 = vld [vmem:[%s20952_s1 + $0x20] ss:$8 sps:$4 sm:$0xff]   ;;  %v14845_v9 = vld [vmem:[%s20952_s1 + $0x34] ss:$8 sps:$4 sm:$0xff]   ;;  %2263 = vmatprep.subr.bf16.mxu1 %v14865_v6  ;;  %vm704_vm1 = vcmask 588800  }
  0x11   : > { %s15523_s16 = scalar_lea.vmem %s20951_s0, %s14292_s13  ;;  %v566_v10 = vld [vmem:[%s20952_s1 + $0x40] sm:$0xff]  ;;  %2264 = vmatpush1.bf16.msra.mxu1 %v14867_v7  ;;  %v14847_v11 = vld [vmem:[%s20952_s1 + $0x30] ss:$8 sps:$4 sm:$0xff]   ;;  %v14868_v16 = vld [vmem:[%s20954_s3 + $0xb4] ss:$8 sps:$4 sm:$0xff]   ;;  %vm281_vm2 = vcmask 261120  }
  0x12   : > { %v12786_v12 = vcombine.high %v566_v10, %v566_v10  ;;  %v12785_v13 = vcombine.low %v566_v10, %v566_v10  ;;  %v14850_v15 = vld [vmem:[%s15523_s16] sm:$0xff]   ;;  %v14870_v17 = vld [vmem:[%s20954_s3 + $0xb0] ss:$8 sps:$4 sm:$0xff]   ;;  %2265 = vmatprep.subr.bf16.mxu1 %v14868_v16  ;;  %v14851_v19 = vld [vmem:[%s15523_s16 + $0x8] sm:$0xff]   ;;  %v15452_v38 = vmov 0.0   ;;  %vm286_vm3 = vcmask 254976  }
  0x13   : > { %763 = vmatpush1.bf16.msra.mxu0 %v14841_v4  ;;  %v14871_v18 = vld [vmem:[%s20954_s3 + $0xc4] ss:$8 sps:$4 sm:$0xff]   ;;  %v14873_v20 = vld [vmem:[%s20954_s3 + $0xc0] ss:$8 sps:$4 sm:$0xff]   ;;  %v14874_v21 = vld [vmem:[%s20954_s3 + $0xd4] ss:$8 sps:$4 sm:$0xff]  }
  0x14   : > { %764 = vmatprep.subr.bf16.mxu0 %v14842_v5  ;;  %v755_v14 = vsel %vm753_vm0, %v12785_v13, 0  ;;  %v14876_v22 = vld [vmem:[%s20954_s3 + $0xd0] ss:$8 sps:$4 sm:$0xff]   ;;  %v14877_v23 = vld [vmem:[%s20954_s3 + $0xe4] ss:$8 sps:$4 sm:$0xff]   ;;  %282 = vst.msk [vmem:[#allocation2 + $0x8] sm:$0xff] %vm281_vm2, %v15452_v38 }
  0x15   : > { %2266 = vmatpush1.bf16.msra.mxu1 %v14870_v17  ;;  %v14879_v24 = vld [vmem:[%s20954_s3 + $0xe0] ss:$8 sps:$4 sm:$0xff]   ;;  %v14852_v25 = vld [vmem:[%s15523_s16 + $0x10] sm:$0xff]   ;;  %v14853_v26 = vld [vmem:[%s15523_s16 + $0x18] sm:$0xff]   ;;  %284 = vst.msk [vmem:[#allocation2 + $0x18] sm:$0xff] %vm281_vm2, %v15452_v38  ;;  %vm15645_vm4 = vcmp.lt.s32.totalorder %v295_v39, 160 }
  0x16   : > { %2267 = vmatprep.subr.bf16.mxu1 %v14871_v18  ;;  %v14854_v27 = vld [vmem:[%s15523_s16 + $0x20] sm:$0xff]   ;;  %v14855_v28 = vld [vmem:[%s15523_s16 + $0x28] sm:$0xff]   ;;  %v14856_v29 = vld [vmem:[%s15523_s16 + $0x30] sm:$0xff]   ;;  %280 = vst [vmem:[#allocation2] sm:$0xff] %v15452_v38  ;;  %vm1917_vm5 = vsmask.f32 7424 }
  0x17   : > { %765 = vmatpush1.bf16.msra.mxu0 %v14844_v8  ;;  %v14857_v30 = vld [vmem:[%s15523_s16 + $0x38] sm:$0xff]   ;;  %v14858_v31 = vld [vmem:[%s15523_s16 + $0x40] sm:$0xff]   ;;  %v14859_v32 = vld [vmem:[%s15523_s16 + $0x48] sm:$0xff]   ;;  %283 = vst [vmem:[#allocation2 + $0x10] sm:$0xff] %v15452_v38  ;;  %vm1404_vm8 = vcmask 261121   ;;  %vm1209_vm10 = vcmask 1040384  }
  0x18   : > { %766 = vmatprep.subr.bf16.mxu0 %v14845_v9  ;;  %v14860_v33 = vld [vmem:[%s15523_s16 + $0x50] sm:$0xff]   ;;  %v14861_v34 = vld [vmem:[%s15523_s16 + $0x58] sm:$0xff]   ;;  %v14883_v37 = vld [vmem:[%s20954_s3 + $0x104] ss:$8 sps:$4 sm:$0xff]   ;;  %285 = vst [vmem:[#allocation2 + $0x20] sm:$0x3] %v15452_v38 }
  0x19   : > { %2268 = vmatpush1.bf16.msra.mxu1 %v14873_v20  ;;  %v14880_v35 = vld [vmem:[%s20954_s3 + $0xf4] ss:$8 sps:$4 sm:$0xff]   ;;  %v14882_v36 = vld [vmem:[%s20954_s3 + $0xf0] ss:$8 sps:$4 sm:$0xff]   ;;  %289 = vst [vmem:[#allocation2 + $0x330] sm:$0xff] %v15452_v38  ;;  %290 = vst.msk [vmem:[#allocation2 + $0x338] sm:$0xff] %vm281_vm2, %v15452_v38 }
  0x1a   : > { %2269 = vmatprep.subr.bf16.mxu1 %v14874_v21  ;;  %292 = vst.msk [vmem:[#allocation2 + $0x348] sm:$0xff] %vm281_vm2, %v15452_v38  ;;  %293 = vst [vmem:[#allocation2 + $0x350] sm:$0x3] %v15452_v38  ;;  %v14885_v40 = vld [vmem:[%s20954_s3 + $0x100] ss:$8 sps:$4 sm:$0xff]   ;;  %v14864_v10 = vld [vmem:[%s15523_s16 + $0x70] sm:$0xff]  }
  0x1b   : > { %767 = vmatpush1.bf16.msra.mxu0 %v14847_v11  ;;  %406 = vst [vmem:[#allocation3] sm:$0xff] %v15452_v38  ;;  %407 = vst.msk [vmem:[#allocation3 + $0x8] sm:$0xff] %vm281_vm2, %v15452_v38  ;;  %v15652_v42 = vld [vmem:[%s20954_s3 + $0x114] ss:$8 sps:$4 sm:$0xff]   ;;  %v14862_v43 = vld [vmem:[%s15523_s16 + $0x60] sm:$0xff]   ;;  %vm1409_vm12 = vcmask 253952  }
  0x1c   : > { %12787 = vmatprep.subr.msk.bf16.mxu0 %vm753_vm0, %v12786_v12  ;;  %409 = vst.msk [vmem:[#allocation3 + $0x18] sm:$0xff] %vm281_vm2, %v15452_v38  ;;  %410 = vst [vmem:[#allocation3 + $0x20] sm:$0x3] %v15452_v38  ;;  %v14888_v44 = vld [vmem:[%s20954_s3 + $0x110] ss:$8 sps:$4 sm:$0xff]   ;;  %v14863_v62 = vld [vmem:[%s15523_s16 + $0x68] sm:$0xff]  }
  0x1d   : > { %2270 = vmatpush1.bf16.msra.mxu1 %v14876_v22  ;;  %413 = vst [vmem:[#allocation3 + $0x330] sm:$0xff] %v15452_v38  ;;  %414 = vst.msk [vmem:[#allocation3 + $0x338] sm:$0xff] %vm281_vm2, %v15452_v38  ;;  %v15875_v45 = vld [vmem:[#allocation2 + $0x18] sm:$0xff]  ;;  %v1610_v46 = vld [vmem:[#allocation2 + $0x8] sm:$0xfe]  ;;  %s14293_s11 = sshll.u32 %s21535_s25, 8 }
  0x1e   : > { %2271 = vmatprep.subr.bf16.mxu1 %v14877_v23  ;;  %416 = vst.msk [vmem:[#allocation3 + $0x348] sm:$0xff] %vm281_vm2, %v15452_v38  ;;  %417 = vst [vmem:[#allocation3 + $0x350] sm:$0x3] %v15452_v38  ;;  %v14889_v47 = vld [vmem:[%s20954_s3 + $0x124] ss:$8 sps:$4 sm:$0xff]   ;;  %v1682_v48 = vpack.c.bf16 %v15875_v45, %v1610_v46  ;;  %s20344_s19 = scalar_lea.vmem %s20958_s7, %s14293_s11 }
  0x1f   : > { %769 = vmatpush1.bf16.msra.mxu0 %v755_v14  ;;  %287 = vst.msk [vmem:[#allocation2 + $0x28] sm:$0x3] %vm286_vm3, %v15452_v38  ;;  %294 = vst.msk [vmem:[#allocation2 + $0x358] sm:$0x3] %vm286_vm3, %v15452_v38  ;;  %v1609_v49 = vld [vmem:[#allocation2] sm:$0xfe] }
  0x20   : > { %5303 = vmatprep.subr.bf16.mxu0 %v14865_v6  ;;  %411 = vst.msk [vmem:[#allocation3 + $0x28] sm:$0x3] %vm286_vm3, %v15452_v38  ;;  %418 = vst.msk [vmem:[#allocation3 + $0x358] sm:$0x3] %vm286_vm3, %v15452_v38  ;;  %v14891_v50 = vld [vmem:[%s20954_s3 + $0x120] ss:$8 sps:$4 sm:$0xff]   ;;  %v1681_v52 = vpack.c.bf16 %v15452_v38, %v1609_v49 }
  0x21   : > { %2272 = vmatpush1.bf16.msra.mxu1 %v14879_v24  ;;  %299 = vst.msk [vmem:[#allocation2] ss:$8 sm:$0x3] %vm15645_vm4, %v15452_v38  ;;  %302 = vst.msk [vmem:[#allocation2 + $0x30] ss:$8 sm:$0x3] %vm15645_vm4, %v15452_v38 }
  0x22   : > { %12788 = vmatmul.mubr.msk.bf16.vlgmr.msra.gmra.mrb[0].mxu0 %vm704_vm1, %v14850_v15  ;;  %2273 = vmatprep.subr.bf16.mxu1 %v14880_v35  ;;  %305 = vst.msk [vmem:[#allocation2 + $0x60] ss:$8 sm:$0x3] %vm15645_vm4, %v15452_v38  ;;  %308 = vst.msk [vmem:[#allocation2 + $0x90] ss:$8 sm:$0x3] %vm15645_vm4, %v15452_v38 }
  0x23   : > { %802 = vmatprep.mubr.bf16.mxu0 %v20959_v2  ;;  %5304 = vmatpush1.bf16.msra.mxu0 %v14867_v7  ;;  %311 = vst.msk [vmem:[#allocation2 + $0xc0] ss:$8 sm:$0x3] %vm15645_vm4, %v15452_v38  ;;  %314 = vst.msk [vmem:[#allocation2 + $0xf0] ss:$8 sm:$0x3] %vm15645_vm4, %v15452_v38 }
  0x24   : > { %317 = vst.msk [vmem:[#allocation2 + $0x120] ss:$8 sm:$0x3] %vm15645_vm4, %v15452_v38  ;;  %320 = vst.msk [vmem:[#allocation2 + $0x150] ss:$8 sm:$0x3] %vm15645_vm4, %v15452_v38 }
  0x25   : > { %2274 = vmatpush1.bf16.msra.mxu1 %v14882_v36  ;;  %323 = vst.msk [vmem:[#allocation2 + $0x180] ss:$8 sm:$0x3] %vm15645_vm4, %v15452_v38  ;;  %326 = vst.msk [vmem:[#allocation2 + $0x1b0] ss:$8 sm:$0x3] %vm15645_vm4, %v15452_v38 }
  0x26   : > { %2275 = vmatprep.subr.bf16.mxu1 %v14883_v37  ;;  %329 = vst.msk [vmem:[#allocation2 + $0x1e0] ss:$8 sm:$0x3] %vm15645_vm4, %v15452_v38  ;;  %332 = vst.msk [vmem:[#allocation2 + $0x210] ss:$8 sm:$0x3] %vm15645_vm4, %v15452_v38 }
  0x27   : > { %335 = vst.msk [vmem:[#allocation2 + $0x240] ss:$8 sm:$0x3] %vm15645_vm4, %v15452_v38  ;;  %338 = vst.msk [vmem:[#allocation2 + $0x270] ss:$8 sm:$0x3] %vm15645_vm4, %v15452_v38 }
  0x28   : > { %341 = vst.msk [vmem:[#allocation2 + $0x2a0] ss:$8 sm:$0x3] %vm15645_vm4, %v15452_v38  ;;  %344 = vst.msk [vmem:[#allocation2 + $0x2d0] ss:$8 sm:$0x3] %vm15645_vm4, %v15452_v38 }
  0x29   : > { %2276 = vmatpush1.bf16.msra.mxu1 %v14885_v40  ;;  %347 = vst.msk [vmem:[#allocation2 + $0x300] ss:$8 sm:$0x3] %vm15645_vm4, %v15452_v38  ;;  %350 = vst.msk [vmem:[#allocation2 + $0x330] ss:$8 sm:$0x3] %vm15645_vm4, %v15452_v38 }
  0x2a   : > { %12789 = vmatmul.mubr.msk.bf16.gmra.mrb[4].mxu0 %vm704_vm1, %v14851_v19  ;;  %353 = vst.msk [vmem:[#allocation2 + $0x21] ss:$8 sm:$0x3] %vm15645_vm4, %v15452_v38  ;;  %356 = vst.msk [vmem:[#allocation2 + $0x51] ss:$8 sm:$0x3] %vm15645_vm4, %v15452_v38  ;;  %2277 = vmatprep.subr.bf16.mxu1 %v15652_v42 }
  0x2b   : > { %812 = vmatprep.mubr.bf16.mxu0 %v20959_v2  ;;  %359 = vst.msk [vmem:[#allocation2 + $0x81] ss:$8 sm:$0x3] %vm15645_vm4, %v15452_v38  ;;  %362 = vst.msk [vmem:[#allocation2 + $0xb1] ss:$8 sm:$0x3] %vm15645_vm4, %v15452_v38 }
  0x2c   : > { %365 = vst.msk [vmem:[#allocation2 + $0xe1] ss:$8 sm:$0x3] %vm15645_vm4, %v15452_v38  ;;  %368 = vst.msk [vmem:[#allocation2 + $0x111] ss:$8 sm:$0x3] %vm15645_vm4, %v15452_v38 }
  0x2d   : > { %371 = vst.msk [vmem:[#allocation2 + $0x141] ss:$8 sm:$0x3] %vm15645_vm4, %v15452_v38  ;;  %374 = vst.msk [vmem:[#allocation2 + $0x171] ss:$8 sm:$0x3] %vm15645_vm4, %v15452_v38  ;;  %2278 = vmatpush1.bf16.msra.mxu1 %v14888_v44 }
  0x2e   : > { %377 = vst.msk [vmem:[#allocation2 + $0x1a1] ss:$8 sm:$0x3] %vm15645_vm4, %v15452_v38  ;;  %380 = vst.msk [vmem:[#allocation2 + $0x1d1] ss:$8 sm:$0x3] %vm15645_vm4, %v15452_v38  ;;  %2279 = vmatprep.subr.bf16.mxu1 %v14889_v47 }
  0x2f   : > { %383 = vst.msk [vmem:[#allocation2 + $0x201] ss:$8 sm:$0x3] %vm15645_vm4, %v15452_v38  ;;  %386 = vst.msk [vmem:[#allocation2 + $0x231] ss:$8 sm:$0x3] %vm15645_vm4, %v15452_v38 }
  0x30   : > { %389 = vst.msk [vmem:[#allocation2 + $0x261] ss:$8 sm:$0x3] %vm15645_vm4, %v15452_v38  ;;  %392 = vst.msk [vmem:[#allocation2 + $0x291] ss:$8 sm:$0x3] %vm15645_vm4, %v15452_v38 }
  0x31   : > { %395 = vst.msk [vmem:[#allocation2 + $0x2c1] ss:$8 sm:$0x3] %vm15645_vm4, %v15452_v38  ;;  %398 = vst.msk [vmem:[#allocation2 + $0x2f1] ss:$8 sm:$0x3] %vm15645_vm4, %v15452_v38  ;;  %2280 = vmatpush1.bf16.msra.mxu1 %v14891_v50 }
  0x32   : > { %12790 = vmatmul.mubr.msk.bf16.gmra.mrb[8].mxu0 %vm704_vm1, %v14852_v25  ;;  %401 = vst.msk [vmem:[#allocation2 + $0x321] ss:$8 sm:$0x3] %vm15645_vm4, %v15452_v38  ;;  %404 = vst.msk [vmem:[#allocation2 + $0x351] ss:$8 sm:$0x3] %vm15645_vm4, %v15452_v38 }
  0x33   : > { %822 = vmatprep.mubr.bf16.mxu0 %v20959_v2  ;;  %419 = vst.msk [vmem:[#allocation3] ss:$8 sm:$0x3] %vm15645_vm4, %v15452_v38  ;;  %422 = vst.msk [vmem:[#allocation3 + $0x30] ss:$8 sm:$0x3] %vm15645_vm4, %v15452_v38 }
  0x34   : > { %425 = vst.msk [vmem:[#allocation3 + $0x60] ss:$8 sm:$0x3] %vm15645_vm4, %v15452_v38  ;;  %428 = vst.msk [vmem:[#allocation3 + $0x90] ss:$8 sm:$0x3] %vm15645_vm4, %v15452_v38 }
  0x35   : > { %431 = vst.msk [vmem:[#allocation3 + $0xc0] ss:$8 sm:$0x3] %vm15645_vm4, %v15452_v38  ;;  %434 = vst.msk [vmem:[#allocation3 + $0xf0] ss:$8 sm:$0x3] %vm15645_vm4, %v15452_v38 }
  0x36   : > { %437 = vst.msk [vmem:[#allocation3 + $0x120] ss:$8 sm:$0x3] %vm15645_vm4, %v15452_v38  ;;  %440 = vst.msk [vmem:[#allocation3 + $0x150] ss:$8 sm:$0x3] %vm15645_vm4, %v15452_v38 }
  0x37   : > { %443 = vst.msk [vmem:[#allocation3 + $0x180] ss:$8 sm:$0x3] %vm15645_vm4, %v15452_v38  ;;  %446 = vst.msk [vmem:[#allocation3 + $0x1b0] ss:$8 sm:$0x3] %vm15645_vm4, %v15452_v38 }
  0x38   : > { %449 = vst.msk [vmem:[#allocation3 + $0x1e0] ss:$8 sm:$0x3] %vm15645_vm4, %v15452_v38  ;;  %452 = vst.msk [vmem:[#allocation3 + $0x210] ss:$8 sm:$0x3] %vm15645_vm4, %v15452_v38 }
  0x39   : > { %455 = vst.msk [vmem:[#allocation3 + $0x240] ss:$8 sm:$0x3] %vm15645_vm4, %v15452_v38  ;;  %458 = vst.msk [vmem:[#allocation3 + $0x270] ss:$8 sm:$0x3] %vm15645_vm4, %v15452_v38 }
  0x3a   : > { %12791 = vmatmul.mubr.msk.bf16.gmra.mrb[12].mxu0 %vm704_vm1, %v14853_v26  ;;  %461 = vst.msk [vmem:[#allocation3 + $0x2a0] ss:$8 sm:$0x3] %vm15645_vm4, %v15452_v38  ;;  %464 = vst.msk [vmem:[#allocation3 + $0x2d0] ss:$8 sm:$0x3] %vm15645_vm4, %v15452_v38 }
  0x3b   : > { %832 = vmatprep.mubr.bf16.mxu0 %v20959_v2  ;;  %467 = vst.msk [vmem:[#allocation3 + $0x300] ss:$8 sm:$0x3] %vm15645_vm4, %v15452_v38  ;;  %470 = vst.msk [vmem:[#allocation3 + $0x330] ss:$8 sm:$0x3] %vm15645_vm4, %v15452_v38 }
  0x3c   : > { %473 = vst.msk [vmem:[#allocation3 + $0x21] ss:$8 sm:$0x3] %vm15645_vm4, %v15452_v38  ;;  %476 = vst.msk [vmem:[#allocation3 + $0x51] ss:$8 sm:$0x3] %vm15645_vm4, %v15452_v38 }
  0x3d   : > { %479 = vst.msk [vmem:[#allocation3 + $0x81] ss:$8 sm:$0x3] %vm15645_vm4, %v15452_v38  ;;  %482 = vst.msk [vmem:[#allocation3 + $0xb1] ss:$8 sm:$0x3] %vm15645_vm4, %v15452_v38 }
  0x3e   : > { %485 = vst.msk [vmem:[#allocation3 + $0xe1] ss:$8 sm:$0x3] %vm15645_vm4, %v15452_v38  ;;  %488 = vst.msk [vmem:[#allocation3 + $0x111] ss:$8 sm:$0x3] %vm15645_vm4, %v15452_v38 }
  0x3f   : > { %491 = vst.msk [vmem:[#allocation3 + $0x141] ss:$8 sm:$0x3] %vm15645_vm4, %v15452_v38  ;;  %494 = vst.msk [vmem:[#allocation3 + $0x171] ss:$8 sm:$0x3] %vm15645_vm4, %v15452_v38 }
  0x40   : > { %497 = vst.msk [vmem:[#allocation3 + $0x1a1] ss:$8 sm:$0x3] %vm15645_vm4, %v15452_v38  ;;  %500 = vst.msk [vmem:[#allocation3 + $0x1d1] ss:$8 sm:$0x3] %vm15645_vm4, %v15452_v38 }
  0x41   : > { %503 = vst.msk [vmem:[#allocation3 + $0x201] ss:$8 sm:$0x3] %vm15645_vm4, %v15452_v38  ;;  %506 = vst.msk [vmem:[#allocation3 + $0x231] ss:$8 sm:$0x3] %vm15645_vm4, %v15452_v38 }
  0x42   : > { %12792 = vmatmul.mubr.msk.bf16.gmra.mrb[16].mxu0 %vm704_vm1, %v14854_v27  ;;  %509 = vst.msk [vmem:[#allocation3 + $0x261] ss:$8 sm:$0x3] %vm15645_vm4, %v15452_v38  ;;  %512 = vst.msk [vmem:[#allocation3 + $0x291] ss:$8 sm:$0x3] %vm15645_vm4, %v15452_v38 }
  0x43   : > { %842 = vmatprep.mubr.bf16.mxu0 %v20959_v2  ;;  %515 = vst.msk [vmem:[#allocation3 + $0x2c1] ss:$8 sm:$0x3] %vm15645_vm4, %v15452_v38  ;;  %518 = vst.msk [vmem:[#allocation3 + $0x2f1] ss:$8 sm:$0x3] %vm15645_vm4, %v15452_v38 }
  0x44   : > { %521 = vst.msk [vmem:[#allocation3 + $0x321] ss:$8 sm:$0x3] %vm15645_vm4, %v15452_v38  ;;  %524 = vst.msk [vmem:[#allocation3 + $0x351] ss:$8 sm:$0x3] %vm15645_vm4, %v15452_v38 }
  0x45   : > { %v1612_v51 = vld [vmem:[#allocation2 + $0x28] sm:$0x1]  ;;  %v1933_v54 = vshll.u32 %v1682_v48, 16  ;;  %v1611_v55 = vld [vmem:[#allocation2 + $0x20] sm:$0x1]  ;;  %v1921_v57 = vshll.u32 %v1681_v52, 16 }
  0x46   : > { %v1684_v53 = vpack.c.bf16 %v1612_v51, %v1612_v51  ;;  %v1683_v56 = vpack.c.bf16 %v1611_v55, %v1611_v55  ;;  %v14892_v58 = vld [vmem:[%s20954_s3 + $0x134] ss:$8 sps:$4 sm:$0xff]   ;;  %v1931_v59 = vshrl.u32 %v1682_v48, 16  ;;  %v14894_v63 = vld [vmem:[%s20954_s3 + $0x130] ss:$8 sps:$4 sm:$0xff]   ;;  %v1919_v0 = vshrl.u32 %v1681_v52, 16 }
  0x47   : > { %v1935_v60 = vrot.slane %v1933_v54, 1  ;;  %v1923_v1 = vrot.slane %v1921_v57, 1  ;;  %2281 = vmatprep.subr.bf16.mxu1 %v14892_v58  ;;  %v14895_v11 = vld [vmem:[%s20954_s3] ss:$8 sps:$4 sm:$0xff]   ;;  %v14897_v12 = vld [vmem:[%s20954_s3 + $0x4] ss:$8 sps:$4 sm:$0xff]  }
  0x48   : > { %v1938_v61 = vshll.u32 %v1684_v53, 16  ;;  %v1926_v3 = vshll.u32 %v1683_v56, 16  ;;  %2282 = vmatpush1.bf16.msra.mxu1 %v14894_v63  ;;  %v14898_v13 = vld [vmem:[%s20954_s3 + $0x10] ss:$8 sps:$4 sm:$0xff]   ;;  %v14900_v14 = vld [vmem:[%s20954_s3 + $0x14] ss:$8 sps:$4 sm:$0xff]  }
  0x49   : > { %v1936_v4 = vor.u32 %v1935_v60, %v1931_v59  ;;  %v1924_v6 = vor.u32 %v1923_v1, %v1919_v0  ;;  %2500 = vmatprep.subr.bf16.mxu1 %v14897_v12  ;;  %v14901_v15 = vld [vmem:[%s20954_s3 + $0x20] ss:$8 sps:$4 sm:$0xff]   ;;  %v14903_v16 = vld [vmem:[%s20954_s3 + $0x24] ss:$8 sps:$4 sm:$0xff]   ;;  %v14904_v17 = vld [vmem:[%s20954_s3 + $0x30] ss:$8 sps:$4 sm:$0xff]  }
  0x4a   : > { %12793 = vmatmul.mubr.msk.bf16.gmra.mrb[20].mxu0 %vm704_vm1, %v14855_v28  ;;  %v1940_v5 = vrot.slane %v1938_v61, 1  ;;  %v1928_v7 = vrot.slane %v1926_v3, 1  ;;  %v14906_v18 = vld [vmem:[%s20954_s3 + $0x34] ss:$8 sps:$4 sm:$0xff]   ;;  %v14907_v19 = vld [vmem:[%s20954_s3 + $0x40] ss:$8 sps:$4 sm:$0xff]  }
  0x4b   : > { %852 = vmatprep.mubr.bf16.mxu0 %v20959_v2  ;;  %v14909_v20 = vld [vmem:[%s20954_s3 + $0x44] ss:$8 sps:$4 sm:$0xff]   ;;  %v14910_v21 = vld [vmem:[%s20954_s3 + $0xb0] ss:$8 sps:$4 sm:$0xff]   ;;  %v14912_v22 = vld [vmem:[%s20954_s3 + $0xb4] ss:$8 sps:$4 sm:$0xff]  }
  0x4c   : > { %v1941_v8 = vsel %vm1917_vm5, %v1936_v4, %v1940_v5  ;;  %v1929_v9 = vsel %vm1917_vm5, %v1924_v6, %v1928_v7  ;;  %5305 = vmatprep.subr.bf16.mxu0 %v14912_v22  ;;  %v14913_v23 = vld [vmem:[%s20954_s3 + $0x50] ss:$8 sps:$4 sm:$0xff]   ;;  %v14915_v24 = vld [vmem:[%s20954_s3 + $0x54] ss:$8 sps:$4 sm:$0xff]   ;;  %v14916_v25 = vld [vmem:[%s20954_s3 + $0xc0] ss:$8 sps:$4 sm:$0xff]  }
  0x4d   : > { %12844 = vmatprep.mubr.msk.bf16.mxu1 %vm281_vm2, %v1941_v8  ;;  %5306 = vmatpush1.bf16.msra.mxu0 %v14910_v21  ;;  %v14918_v26 = vld [vmem:[%s20954_s3 + $0xc4] ss:$8 sps:$4 sm:$0xff]   ;;  %v14919_v27 = vld [vmem:[%s20954_s3 + $0xd0] ss:$8 sps:$4 sm:$0xff]   ;;  %v14921_v28 = vld [vmem:[%s20954_s3 + $0xd4] ss:$8 sps:$4 sm:$0xff]  }
  0x4e   : > { %2296 = vmatmul.mubr.bf16.vlgmr.msra.gmra.mrb[0].mxu1 %v1929_v9  ;;  %5307 = vmatprep.subr.bf16.mxu0 %v14918_v26  ;;  %v14931_v35 = vld [vmem:[%s20954_s3 + $0xf0] ss:$8 sps:$4 sm:$0xff]   ;;  %v14933_v36 = vld [vmem:[%s20954_s3 + $0xf4] ss:$8 sps:$4 sm:$0xff]   ;;  %v14934_v37 = vld [vmem:[%s20954_s3 + $0x100] ss:$8 sps:$4 sm:$0xff]  }
  0x4f   : > { %2501 = vmatpush1.bf16.msra.mxu1 %v14895_v11  ;;  %v14936_v38 = vld [vmem:[%s20954_s3 + $0x104] ss:$8 sps:$4 sm:$0xff]   ;;  %v14937_v40 = vld [vmem:[%s20954_s3 + $0x80] ss:$8 sps:$4 sm:$0xff]   ;;  %v14940_v42 = vld [vmem:[%s20954_s3 + $0x110] ss:$8 sps:$4 sm:$0xff]  }
  0x50   : > { %2502 = vmatprep.subr.bf16.mxu1 %v14900_v14  ;;  %v14939_v41 = vld [vmem:[%s20954_s3 + $0x84] ss:$8 sps:$4 sm:$0xff]   ;;  %v14943_v44 = vld [vmem:[%s15523_s16 + $0x78] sm:$0xff]   ;;  %v14944_v46 = vld [vmem:[%s20954_s3 + $0x120] ss:$8 sps:$4 sm:$0xff]   ;;  %v570_v53 = vshrl.u32 %v295_v39, 7 }
  0x51   : > { %5308 = vmatpush1.bf16.msra.mxu0 %v14916_v25  ;;  %v14946_v47 = vld [vmem:[%s20954_s3 + $0x124] ss:$8 sps:$4 sm:$0xff]   ;;  %v14947_v48 = vld [vmem:[%s20954_s3 + $0x90] ss:$8 sps:$4 sm:$0xff]   ;;  %v14949_v49 = vld [vmem:[%s20954_s3 + $0x94] ss:$8 sps:$4 sm:$0xff]  }
  0x52   : > { %12794 = vmatmul.mubr.msk.bf16.gmra.mrb[24].mxu0 %vm704_vm1, %v14856_v29  ;;  %5309 = vmatprep.subr.bf16.mxu0 %v14921_v28  ;;  %v14922_v29 = vld [vmem:[%s20954_s3 + $0x60] ss:$8 sps:$4 sm:$0xff]   ;;  %v14950_v50 = vld [vmem:[%s20954_s3 + $0x130] ss:$8 sps:$4 sm:$0xff]   ;;  %v14952_v51 = vld [vmem:[%s20954_s3 + $0x134] ss:$8 sps:$4 sm:$0xff]  }
  0x53   : > { %862 = vmatprep.mubr.bf16.mxu0 %v20959_v2  ;;  %2503 = vmatpush1.bf16.msra.mxu1 %v14898_v13  ;;  %v14955_v52 = vld [vmem:[%s20954_s3 + $0x144] ss:$8 sps:$4 sm:$0xff]   ;;  %v16022_v54 = vsub.s32 0, %v570_v53  ;;  %v567_v55 = vld [vmem:[%s20953_s2] sm:$0x3]  ;;  %v16027_v56 = vsub.s32 1, %v570_v53 }
  0x54   : > { %2504 = vmatprep.subr.bf16.mxu1 %v14903_v16 }
  0x55   : > { %5310 = vmatpush1.bf16.msra.mxu0 %v14919_v27  ;;  %21171 = vst [vmem:[#allocation4_spill] sm:$0xff] %v16022_v54  ;;  %21172 = vst [vmem:[#allocation5_spill] sm:$0xff] %v16027_v56  ;;  %v16030_v57 = vrot.slane %v567_v55, %v16022_v54  ;;  %v16033_v58 = vrot.slane %v567_v55, %v16027_v56 }
  0x57   : > { %2505 = vmatpush1.bf16.msra.mxu1 %v14901_v15 }
  0x58   : > { %2506 = vmatprep.subr.bf16.mxu1 %v14906_v18 }
  0x5a   : > { %12795 = vmatmul.mubr.msk.bf16.gmra.mrb[28].mxu0 %vm704_vm1, %v14857_v30  ;;  %v14924_v30 = vld [vmem:[%s20954_s3 + $0x64] ss:$8 sps:$4 sm:$0xff]  }
  0x5b   : > { %872 = vmatprep.mubr.bf16.mxu0 %v20959_v2  ;;  %2507 = vmatpush1.bf16.msra.mxu1 %v14904_v17 }
  0x5c   : > { %2508 = vmatprep.subr.bf16.mxu1 %v14909_v20 }
  0x5f   : > { %2509 = vmatpush1.bf16.msra.mxu1 %v14907_v19 }
  0x60   : > { %2510 = vmatprep.subr.bf16.mxu1 %v14915_v24 }
  0x62   : > { %12796 = vmatmul.mubr.msk.bf16.gmra.mrb[32].mxu0 %vm704_vm1, %v14858_v31  ;;  %v14925_v31 = vld [vmem:[%s20954_s3 + $0xe0] ss:$8 sps:$4 sm:$0xff]  }
  0x63   : > { %882 = vmatprep.mubr.bf16.mxu0 %v20959_v2  ;;  %2511 = vmatpush1.bf16.msra.mxu1 %v14913_v23 }
  0x64   : > { %2512 = vmatprep.subr.bf16.mxu1 %v14924_v30  ;;  %v14967_v30 = vld [vmem:[%s20954_s3 + $0x4] ss:$8 sps:$4 sm:$0xff]  }
  0x67   : > { %2513 = vmatpush1.bf16.msra.mxu1 %v14922_v29  ;;  %v16048_v29 = vld [vmem:[#allocation2 + $0x8] sm:$0xff] }
  0x6a   : > { %12797 = vmatmul.mubr.msk.bf16.gmra.mrb[36].mxu0 %vm704_vm1, %v14859_v32  ;;  %v14927_v32 = vld [vmem:[%s20954_s3 + $0xe4] ss:$8 sps:$4 sm:$0xff]  }
  0x6b   : > { %892 = vmatprep.mubr.bf16.mxu0 %v20959_v2  ;;  %5311 = vmatprep.subr.bf16.mxu0 %v14927_v32 }
  0x6c   : > { %5312 = vmatpush1.bf16.msra.mxu0 %v14925_v31 }
  0x6d   : > { %5313 = vmatprep.subr.bf16.mxu0 %v14933_v36 }
  0x70   : > { %5314 = vmatpush1.bf16.msra.mxu0 %v14931_v35 }
  0x71   : > { %5315 = vmatprep.subr.bf16.mxu0 %v14936_v38 }
  0x72   : > { %12798 = vmatmul.mubr.msk.bf16.gmra.mrb[40].mxu0 %vm704_vm1, %v14860_v33  ;;  %v14928_v33 = vld [vmem:[%s20954_s3 + $0x70] ss:$8 sps:$4 sm:$0xff]  }
  0x73   : > { %902 = vmatprep.mubr.bf16.mxu0 %v20959_v2 }
  0x74   : > { %5316 = vmatpush1.bf16.msra.mxu0 %v14934_v37 }
  0x7a   : > { %12799 = vmatmul.mubr.msk.bf16.gmra.mrb[44].mxu0 %vm704_vm1, %v14861_v34  ;;  %v14930_v34 = vld [vmem:[%s20954_s3 + $0x74] ss:$8 sps:$4 sm:$0xff]  }
  0x7b   : > { %912 = vmatprep.mubr.bf16.mxu0 %v20959_v2  ;;  %2514 = vmatprep.subr.bf16.mxu1 %v14930_v34  ;;  %v16053_v34 = vld [vmem:[#allocation2] sm:$0xff] }
  0x7c   : > { %2515 = vmatpush1.bf16.msra.mxu1 %v14928_v33 }
  0x7d   : > { %2516 = vmatprep.subr.bf16.mxu1 %v14939_v41 }
  0x80   : > { %2517 = vmatpush1.bf16.msra.mxu1 %v14937_v40 }
  0x81   : > { %2518 = vmatprep.subr.bf16.mxu1 %v14949_v49 }
  0x82   : > { %12800 = vmatmul.mubr.msk.bf16.gmra.mrb[48].mxu0 %vm704_vm1, %v14862_v43  ;;  %v14942_v43 = vld [vmem:[%s20954_s3 + $0x114] ss:$8 sps:$4 sm:$0xff]  }
  0x83   : > { %922 = vmatprep.mubr.bf16.mxu0 %v20959_v2  ;;  %5317 = vmatprep.subr.bf16.mxu0 %v14942_v43 }
  0x84   : > { %5318 = vmatpush1.bf16.msra.mxu0 %v14940_v42  ;;  %2519 = vmatpush1.bf16.msra.mxu1 %v14947_v48 }
  0x85   : > { %5319 = vmatprep.subr.bf16.mxu0 %v14946_v47  ;;  %2847 = vmatprep.subr.bf16.mxu1 %v14955_v52 }
  0x88   : > { %5320 = vmatpush1.bf16.msra.mxu0 %v14944_v46 }
  0x89   : > { %5321 = vmatprep.subr.bf16.mxu0 %v14952_v51 }
  0x8a   : > { %12801 = vmatmul.mubr.msk.bf16.gmra.mrb[52].mxu0 %vm704_vm1, %v14863_v62 }
  0x8b   : > { %932 = vmatprep.mubr.bf16.mxu0 %v20959_v2 }
  0x8c   : > { %5322 = vmatpush1.bf16.msra.mxu0 %v14950_v50  ;;  %v16061_v50 = vld [vmem:[#allocation2 + $0x10] sm:$0xff] }
  0x8d   : > { %5534 = vmatprep.subr.bf16.mxu0 %v14967_v30  ;;  %v1573_v51 = vpack.c.bf16 %v16061_v50, %v16053_v34  ;;  %v14956_v50 = vld [vmem:[%s20954_s3 + $0x150] ss:$8 sps:$4 sm:$0xff]  }
  0x92   : > { %12802 = vmatmul.mubr.msk.bf16.gmra.mrb[56].mxu0 %vm704_vm1, %v14864_v10 }
  0x93   : > { %942 = vmatprep.mubr.bf16.mxu0 %v20959_v2 }
  0x9a   : > { %12803 = vmatmul.mubr.msk.bf16.gmra.mrb[60].mxu0 %vm704_vm1, %v14943_v44  ;;  %v1574_v44 = vpack.c.bf16 %v15875_v45, %v16048_v29  ;;  %v14953_v45 = vld [vmem:[%s20954_s3 + $0x140] ss:$8 sps:$4 sm:$0xff]  }
  0xf5   : > { %v794_v59 = vpop.f32.mrb[0].mxu0 }
  0xf6   : > { %v795_v60 = vadd.f32 %v794_v59, %v16030_v57  ;;  %v796_v61 = vpop.f32.mrb[1].mxu0 }
  0xf7   : > { %v797_v39 = vadd.f32 %v796_v61, %v16033_v58  ;;  %v798_v62 = vpop.f32.mrb[2].mxu0 }
  0xf8   : > { %vm953_vm6 = vcmp.gt.f32.partialorder %v795_v60, 0.0  ;;  %v1017_v63 = vmul.f32 0.01, %v795_v60  ;;  %v799_v0 = vadd.f32 %v798_v62, %v16030_v57  ;;  %v800_v1 = vpop.f32.mrb[3].mxu0 }
  0xf9   : > { %vm954_vm7 = vcmp.gt.f32.partialorder %v797_v39, 0.0  ;;  %v1018_v3 = vmul.f32 0.01, %v797_v39  ;;  %v801_v4 = vadd.f32 %v800_v1, %v16033_v58 }
  0xfa   : > { %v1081_v5 = vsel %vm953_vm6, %v795_v60, %v1017_v63  ;;  %vm955_vm9 = vcmp.gt.f32.partialorder %v799_v0, 0.0  ;;  %v1019_v6 = vmul.f32 0.01, %v799_v0 }
  0xfb   : > { %v1210_v7 = vrot.slane %v1081_v5, 7  ;;  %v1082_v8 = vsel %vm954_vm7, %v797_v39, %v1018_v3  ;;  %vm956_vm11 = vcmp.gt.f32.partialorder %v801_v4, 0.0  ;;  %v1020_v9 = vmul.f32 0.01, %v801_v4 }
  0xfc   : > { %v1211_v10 = vrot.slane %v1082_v8, 7  ;;  %v1083_v11 = vsel %vm955_vm9, %v799_v0, %v1019_v6 }
  0xfd   : > { %1403 = vst [vmem:[#allocation2 + $0x30] sm:$0xfe] %v1210_v7  ;;  %v1212_v12 = vrot.slane %v1083_v11, 7  ;;  %v1084_v13 = vsel %vm956_vm11, %v801_v4, %v1020_v9  ;;  %v804_v14 = vpop.f32.mrb[4].mxu0 }
  0xfe   : > { %1405 = vst.msk [vmem:[#allocation2 + $0x38] sm:$0xfe] %vm1404_vm8, %v1211_v10  ;;  %v1214_v15 = vrot.slane %v1084_v13, 7  ;;  %v805_v16 = vadd.f32 %v804_v14, %v16030_v57  ;;  %v806_v17 = vpop.f32.mrb[5].mxu0 }
  0xff   : > { %v1213_v18 = vsel %vm1209_vm10, %v1210_v7, %v1212_v12  ;;  %1408 = vst [vmem:[#allocation2 + $0x50] sm:$0x1] %v1212_v12  ;;  %v807_v19 = vadd.f32 %v806_v17, %v16033_v58  ;;  %v808_v20 = vpop.f32.mrb[6].mxu0 }
 0x100   : > { %1406 = vst [vmem:[#allocation2 + $0x40] sm:$0xff] %v1213_v18  ;;  %v1215_v21 = vsel %vm1209_vm10, %v1211_v10, %v1214_v15  ;;  %1410 = vst.msk [vmem:[#allocation2 + $0x58] sm:$0x1] %vm1409_vm12, %v1214_v15  ;;  %vm957_vm13 = vcmp.gt.f32.partialorder %v805_v16, 0.0  ;;  %v1021_v22 = vmul.f32 0.01, %v805_v16  ;;  %v809_v23 = vadd.f32 %v808_v20, %v16030_v57 }
 0x101   : > { %v810_v24 = vpop.f32.mrb[7].mxu0  ;;  %1407 = vst.msk [vmem:[#allocation2 + $0x48] sm:$0xff] %vm281_vm2, %v1215_v21  ;;  %vm958_vm14 = vcmp.gt.f32.partialorder %v807_v19, 0.0  ;;  %v1022_v25 = vmul.f32 0.01, %v807_v19 }
 0x102   : > { %v811_v26 = vadd.f32 %v810_v24, %v16033_v58  ;;  %v1085_v27 = vsel %vm957_vm13, %v805_v16, %v1021_v22  ;;  %vm959_vm15 = vcmp.gt.f32.partialorder %v809_v23, 0.0  ;;  %v1023_v28 = vmul.f32 0.01, %v809_v23 }
 0x103   : > { %v1216_v31 = vrot.slane %v1085_v27, 7  ;;  %v1086_v32 = vsel %vm958_vm14, %v807_v19, %v1022_v25 }
 0x104   : > { %vm960_vm0 = vcmp.gt.f32.partialorder %v811_v26, 0.0  ;;  %v1024_v33 = vmul.f32 0.01, %v811_v26  ;;  %v1217_v35 = vrot.slane %v1086_v32, 7  ;;  %v1087_v36 = vsel %vm959_vm15, %v809_v23, %v1023_v28  ;;  %v1613_v37 = vld [vmem:[#allocation2 + $0x30] sm:$0xfe] }
 0x105   : > { %v1505_v38 = vld [vmem:[#allocation2 + $0x30] sm:$0xff]  ;;  %1411 = vst [vmem:[#allocation2 + $0x60] sm:$0xfe] %v1216_v31  ;;  %v1218_v40 = vrot.slane %v1087_v36, 7  ;;  %v814_v42 = vpop.f32.mrb[8].mxu0  ;;  %v16055_v43 = vpack.c.bf16 %v1213_v18, %v1613_v37 }
 0x106   : > { %v1088_v41 = vsel %vm960_vm0, %v811_v26, %v1024_v33  ;;  %1412 = vst.msk [vmem:[#allocation2 + $0x68] sm:$0xfe] %vm1404_vm8, %v1217_v35  ;;  %v815_v47 = vadd.f32 %v814_v42, %v16030_v57  ;;  %v816_v48 = vpop.f32.mrb[9].mxu0  ;;  %v1615_v49 = vld [vmem:[#allocation2 + $0x50] sm:$0x1]  ;;  %v16065_v52 = vpack.c.bf16 %v1213_v18, %v1505_v38 }
 0x107   : > { %v1220_v46 = vrot.slane %v1088_v41, 7  ;;  %v16068_v53 = vsel %vm1209_vm10, %v1216_v31, %v1218_v40  ;;  %1415 = vst [vmem:[#allocation2 + $0x80] sm:$0x1] %v1218_v40  ;;  %v817_v55 = vadd.f32 %v816_v48, %v16033_v58  ;;  %v818_v59 = vpop.f32.mrb[10].mxu0  ;;  %v1614_v60 = vld [vmem:[#allocation2 + $0x38] sm:$0xfe]  ;;  %v1687_v39 = vpack.c.bf16 %v1615_v49, %v1615_v49 }
 0x108   : > { %21173 = vst [vmem:[#allocation6_spill] sm:$0xff] %v16065_v52  ;;  %v1616_v61 = vld [vmem:[#allocation2 + $0x58] sm:$0x1]  ;;  %v1943_v62 = vshrl.u32 %v16055_v43, 16  ;;  %1413 = vst [vmem:[#allocation2 + $0x70] sm:$0xff] %v16068_v53  ;;  %vm961_vm1 = vcmp.gt.f32.partialorder %v815_v47, 0.0  ;;  %v819_v1 = vadd.f32 %v818_v59, %v16030_v57 }
 0x109   : > { %v1221_v63 = vsel %vm1209_vm10, %v1217_v35, %v1220_v46  ;;  %1416 = vst.msk [vmem:[#allocation2 + $0x88] sm:$0x1] %vm1409_vm12, %v1220_v46  ;;  %v1025_v0 = vmul.f32 0.01, %v815_v47  ;;  %v820_v3 = vpop.f32.mrb[11].mxu0  ;;  %v16076_v4 = vld [vmem:[#allocation2 + $0x48] sm:$0xff]  ;;  %v1688_v10 = vpack.c.bf16 %v1616_v61, %v1616_v61 }
 0x10a   : > { %1414 = vst.msk [vmem:[#allocation2 + $0x78] sm:$0xff] %vm281_vm2, %v1221_v63  ;;  %vm962_vm3 = vcmp.gt.f32.partialorder %v817_v55, 0.0  ;;  %v1026_v5 = vmul.f32 0.01, %v817_v55  ;;  %v821_v6 = vadd.f32 %v820_v3, %v16033_v58  ;;  %v1686_v7 = vpack.c.bf16 %v16076_v4, %v1614_v60 }
 0x10b   : > { %v1089_v8 = vsel %vm961_vm1, %v815_v47, %v1025_v0  ;;  %vm963_vm4 = vcmp.gt.f32.partialorder %v819_v1, 0.0  ;;  %v1027_v9 = vmul.f32 0.01, %v819_v1  ;;  %v1962_v21 = vshll.u32 %v1688_v10, 16 }
 0x10c   : > { %v1222_v11 = vrot.slane %v1089_v8, 7  ;;  %v1090_v12 = vsel %vm962_vm3, %v817_v55, %v1026_v5  ;;  %vm964_vm6 = vcmp.gt.f32.partialorder %v821_v6, 0.0  ;;  %v1028_v13 = vmul.f32 0.01, %v821_v6  ;;  %v1617_v61 = vld [vmem:[#allocation2 + $0x60] sm:$0xfe] }
 0x10d   : > { %v1223_v14 = vrot.slane %v1090_v12, 7  ;;  %v1091_v15 = vsel %vm963_vm4, %v819_v1, %v1027_v9  ;;  %v1955_v16 = vshrl.u32 %v1686_v7, 16  ;;  %v1957_v17 = vshll.u32 %v1686_v7, 16  ;;  %v824_v20 = vpop.f32.mrb[12].mxu0  ;;  %v1618_v3 = vld [vmem:[#allocation2 + $0x68] sm:$0xfe] }
 0x10e   : > { %1417 = vst [vmem:[#allocation2 + $0x90] sm:$0xfe] %v1222_v11  ;;  %v1224_v18 = vrot.slane %v1091_v15, 7  ;;  %v1092_v19 = vsel %vm964_vm6, %v821_v6, %v1028_v13  ;;  %v1945_v22 = vshll.u32 %v16055_v43, 16  ;;  %v825_v24 = vadd.f32 %v824_v20, %v16030_v57  ;;  %v826_v25 = vpop.f32.mrb[13].mxu0 }
 0x10f   : > { %1418 = vst.msk [vmem:[#allocation2 + $0x98] sm:$0xfe] %vm1404_vm8, %v1223_v14  ;;  %v1226_v23 = vrot.slane %v1092_v19, 7  ;;  %v1959_v26 = vrot.slane %v1957_v17, 1  ;;  %v1950_v27 = vshll.u32 %v1687_v39, 16  ;;  %v827_v30 = vadd.f32 %v826_v25, %v16033_v58  ;;  %v828_v31 = vpop.f32.mrb[14].mxu0 }
 0x110   : > { %v16085_v28 = vsel %vm1209_vm10, %v1222_v11, %v1224_v18  ;;  %1421 = vst [vmem:[#allocation2 + $0xb0] sm:$0x1] %v1224_v18  ;;  %v1964_v32 = vrot.slane %v1962_v21, 1  ;;  %v1947_v33 = vrot.slane %v1945_v22, 1  ;;  %vm965_vm7 = vcmp.gt.f32.partialorder %v825_v24, 0.0  ;;  %v830_v38 = vpop.f32.mrb[15].mxu0 }
 0x111   : > { %1419 = vst [vmem:[#allocation2 + $0xa0] sm:$0xff] %v16085_v28  ;;  %v1227_v35 = vsel %vm1209_vm10, %v1223_v14, %v1226_v23  ;;  %1422 = vst.msk [vmem:[#allocation2 + $0xb8] sm:$0x1] %vm1409_vm12, %v1226_v23  ;;  %v1029_v36 = vmul.f32 0.01, %v825_v24  ;;  %v829_v37 = vadd.f32 %v828_v31, %v16030_v57  ;;  %vm966_vm9 = vcmp.gt.f32.partialorder %v827_v30, 0.0 }
 0x112   : > { %1420 = vst.msk [vmem:[#allocation2 + $0xa8] sm:$0xff] %vm281_vm2, %v1227_v35  ;;  %v1030_v40 = vmul.f32 0.01, %v827_v30  ;;  %v831_v41 = vadd.f32 %v830_v38, %v16033_v58  ;;  %v1960_v42 = vor.u32 %v1959_v26, %v1955_v16  ;;  %v1948_v47 = vor.u32 %v1947_v33, %v1943_v62  ;;  %v16094_v48 = vld [vmem:[#allocation2 + $0x78] sm:$0xff]  ;;  %v1620_v49 = vld [vmem:[#allocation2 + $0x88] sm:$0x1] }
 0x113   : > { %v1093_v43 = vsel %vm965_vm7, %v825_v24, %v1029_v36  ;;  %vm967_vm11 = vcmp.gt.f32.partialorder %v829_v37, 0.0  ;;  %v1031_v46 = vmul.f32 0.01, %v829_v37  ;;  %v1952_v1 = vrot.slane %v1950_v27, 1 }
 0x114   : > { %v1228_v55 = vrot.slane %v1093_v43, 7  ;;  %v1094_v59 = vsel %vm966_vm9, %v827_v30, %v1030_v40  ;;  %vm968_vm13 = vcmp.gt.f32.partialorder %v831_v41, 0.0  ;;  %v1032_v60 = vmul.f32 0.01, %v831_v41  ;;  %v1619_v30 = vld [vmem:[#allocation2 + $0x80] sm:$0x1] }
 0x115   : > { %v1229_v39 = vrot.slane %v1094_v59, 7  ;;  %v1095_v63 = vsel %vm967_vm11, %v829_v37, %v1031_v46  ;;  %v16097_v0 = vsel %vm1917_vm5, %v1960_v42, %v1964_v32  ;;  %v834_v62 = vpop.f32.mrb[16].mxu0  ;;  %v1690_v7 = vpack.c.bf16 %v16094_v48, %v1618_v3 }
 0x116   : > { %21174 = vst [vmem:[#allocation7_spill] sm:$0xff] %v16097_v0  ;;  %1423 = vst [vmem:[#allocation2 + $0xc0] sm:$0xfe] %v1228_v55  ;;  %v1230_v5 = vrot.slane %v1095_v63, 7  ;;  %v1096_v6 = vsel %vm968_vm13, %v831_v41, %v1032_v60  ;;  %12845 = vmatprep.mubr.msk.bf16.mxu1 %vm281_vm2, %v16097_v0  ;;  %v1692_v8 = vpack.c.bf16 %v1620_v49, %v1620_v49  ;;  %v836_v12 = vpop.f32.mrb[17].mxu0 }
 0x117   : > { %1424 = vst.msk [vmem:[#allocation2 + $0xc8] sm:$0xfe] %vm1404_vm8, %v1229_v39  ;;  %v1232_v9 = vrot.slane %v1096_v6, 7  ;;  %v16104_v10 = vsel %vm1917_vm5, %v1948_v47, %v1952_v1  ;;  %v835_v11 = vadd.f32 %v834_v62, %v16030_v57  ;;  %v16108_v13 = vpack.c.bf16 %v16068_v53, %v1617_v61  ;;  %v838_v16 = vpop.f32.mrb[18].mxu0 }
 0x118   : > { %21175 = vst [vmem:[#allocation8_spill] sm:$0xff] %v16104_v10  ;;  %v16111_v14 = vsel %vm1209_vm10, %v1228_v55, %v1230_v5  ;;  %1427 = vst [vmem:[#allocation2 + $0xe0] sm:$0x1] %v1230_v5  ;;  %2306 = vmatmul.mubr.bf16.gmra.mrb[4].mxu1 %v16104_v10  ;;  %v837_v15 = vadd.f32 %v836_v12, %v16033_v58  ;;  %v1979_v17 = vshrl.u32 %v1690_v7, 16  ;;  %v1981_v18 = vshll.u32 %v1690_v7, 16  ;;  %v840_v21 = vpop.f32.mrb[19].mxu0 }
 0x119   : > { %1425 = vst [vmem:[#allocation2 + $0xd0] sm:$0xff] %v16111_v14  ;;  %v1233_v19 = vsel %vm1209_vm10, %v1229_v39, %v1232_v9  ;;  %1428 = vst.msk [vmem:[#allocation2 + $0xe8] sm:$0x1] %vm1409_vm12, %v1232_v9  ;;  %vm969_vm14 = vcmp.gt.f32.partialorder %v835_v11, 0.0  ;;  %v1033_v53 = vmul.f32 0.01, %v835_v11  ;;  %v839_v20 = vadd.f32 %v838_v16, %v16030_v57 }
 0x11a   : > { %1426 = vst.msk [vmem:[#allocation2 + $0xd8] sm:$0xff] %vm281_vm2, %v1233_v19  ;;  %vm970_vm15 = vcmp.gt.f32.partialorder %v837_v15, 0.0  ;;  %v1034_v22 = vmul.f32 0.01, %v837_v15  ;;  %v841_v23 = vadd.f32 %v840_v21, %v16033_v58  ;;  %v1983_v24 = vrot.slane %v1981_v18, 1  ;;  %v1516_v40 = vld [vmem:[#allocation2 + $0xa8] sm:$0xff] }
 0x11b   : > { %v1097_v25 = vsel %vm969_vm14, %v835_v11, %v1033_v53  ;;  %vm971_vm0 = vcmp.gt.f32.partialorder %v839_v20, 0.0  ;;  %v1035_v26 = vmul.f32 0.01, %v839_v20  ;;  %v1986_v27 = vshll.u32 %v1692_v8, 16  ;;  %v1622_v39 = vld [vmem:[#allocation2 + $0x98] sm:$0xfe] }
 0x11c   : > { %v1234_v31 = vrot.slane %v1097_v25, 7  ;;  %v1098_v32 = vsel %vm970_vm15, %v837_v15, %v1034_v22  ;;  %vm972_vm1 = vcmp.gt.f32.partialorder %v841_v23, 0.0  ;;  %v1036_v33 = vmul.f32 0.01, %v841_v23  ;;  %v1624_v6 = vld [vmem:[#allocation2 + $0xb8] sm:$0x1] }
 0x11d   : > { %v1235_v35 = vrot.slane %v1098_v32, 7  ;;  %v1099_v36 = vsel %vm971_vm0, %v839_v20, %v1035_v26  ;;  %v1984_v37 = vor.u32 %v1983_v24, %v1979_v17  ;;  %v1988_v38 = vrot.slane %v1986_v27, 1  ;;  %v844_v47 = vpop.f32.mrb[20].mxu0  ;;  %v1621_v53 = vld [vmem:[#allocation2 + $0x90] sm:$0xfe] }
 0x11e   : > { %1429 = vst [vmem:[#allocation2 + $0xf0] sm:$0xfe] %v1234_v31  ;;  %v1236_v41 = vrot.slane %v1099_v36, 7  ;;  %v1100_v42 = vsel %vm972_vm1, %v841_v23, %v1036_v33  ;;  %v1691_v43 = vpack.c.bf16 %v1619_v30, %v1619_v30  ;;  %v1967_v46 = vshrl.u32 %v16108_v13, 16  ;;  %v846_v61 = vpop.f32.mrb[21].mxu0 }
 0x11f   : > { %1430 = vst.msk [vmem:[#allocation2 + $0xf8] sm:$0xfe] %vm1404_vm8, %v1235_v35  ;;  %v1238_v49 = vrot.slane %v1100_v42, 7  ;;  %v16124_v55 = vsel %vm1917_vm5, %v1984_v37, %v1988_v38  ;;  %v1969_v59 = vshll.u32 %v16108_v13, 16  ;;  %v845_v60 = vadd.f32 %v844_v47, %v16030_v57  ;;  %v848_v5 = vpop.f32.mrb[22].mxu0 }
 0x120   : > { %21176 = vst [vmem:[#allocation9_spill] sm:$0xff] %v16124_v55  ;;  %v16129_v63 = vsel %vm1209_vm10, %v1234_v31, %v1236_v41  ;;  %1433 = vst [vmem:[#allocation2 + $0x110] sm:$0x1] %v1236_v41  ;;  %12846 = vmatprep.mubr.msk.bf16.mxu1 %vm281_vm2, %v16124_v55  ;;  %v1974_v1 = vshll.u32 %v1691_v43, 16  ;;  %v847_v3 = vadd.f32 %v846_v61, %v16033_v58  ;;  %v850_v11 = vpop.f32.mrb[23].mxu0 }
 0x121   : > { %v1694_v62 = vpack.c.bf16 %v1516_v40, %v1622_v39  ;;  %1431 = vst [vmem:[#allocation2 + $0x100] sm:$0xff] %v16129_v63  ;;  %v1239_v7 = vsel %vm1209_vm10, %v1235_v35, %v1238_v49  ;;  %1434 = vst.msk [vmem:[#allocation2 + $0x118] sm:$0x1] %vm1409_vm12, %v1238_v49  ;;  %v1971_v8 = vrot.slane %v1969_v59, 1  ;;  %vm973_vm3 = vcmp.gt.f32.partialorder %v845_v60, 0.0 }
 0x122   : > { %v1037_v9 = vmul.f32 0.01, %v845_v60  ;;  %1432 = vst.msk [vmem:[#allocation2 + $0x108] sm:$0xff] %vm281_vm2, %v1239_v7  ;;  %v1976_v12 = vrot.slane %v1974_v1, 1  ;;  %vm974_vm4 = vcmp.gt.f32.partialorder %v847_v3, 0.0  ;;  %v849_v15 = vadd.f32 %v848_v5, %v16030_v57  ;;  %v1520_v1 = vld [vmem:[#allocation2 + $0xd8] sm:$0xff] }
 0x123   : > { %v1038_v13 = vmul.f32 0.01, %v847_v3  ;;  %v1972_v16 = vor.u32 %v1971_v8, %v1967_v46  ;;  %v851_v18 = vadd.f32 %v850_v11, %v16033_v58  ;;  %v1696_v19 = vpack.c.bf16 %v1624_v6, %v1624_v6  ;;  %v1623_v23 = vld [vmem:[#allocation2 + $0xb0] sm:$0x1] }
 0x124   : > { %v1101_v17 = vsel %vm973_vm3, %v845_v60, %v1037_v9  ;;  %vm975_vm6 = vcmp.gt.f32.partialorder %v849_v15, 0.0  ;;  %v1039_v22 = vmul.f32 0.01, %v849_v15  ;;  %v2003_v30 = vshrl.u32 %v1694_v62, 16  ;;  %v1626_v9 = vld [vmem:[#allocation2 + $0xc8] sm:$0xfe] }
 0x125   : > { %v1240_v20 = vrot.slane %v1101_v17, 7  ;;  %v1102_v21 = vsel %vm974_vm4, %v847_v3, %v1038_v13  ;;  %v16141_v24 = vsel %vm1917_vm5, %v1972_v16, %v1976_v12  ;;  %vm976_vm7 = vcmp.gt.f32.partialorder %v851_v18, 0.0  ;;  %v854_v33 = vpop.f32.mrb[24].mxu0  ;;  %v1521_v10 = vld [vmem:[#allocation2 + $0xf0] sm:$0xff] }
 0x126   : > { %21177 = vst [vmem:[#allocation10_spill] sm:$0xff] %v16141_v24  ;;  %v1241_v25 = vrot.slane %v1102_v21, 7  ;;  %v1040_v26 = vmul.f32 0.01, %v851_v18  ;;  %2316 = vmatmul.mubr.bf16.gmra.mrb[8].mxu1 %v16141_v24  ;;  %v1103_v27 = vsel %vm975_vm6, %v849_v15, %v1039_v22  ;;  %v2005_v31 = vshll.u32 %v1694_v62, 16  ;;  %v856_v40 = vpop.f32.mrb[25].mxu0 }
 0x127   : > { %1435 = vst [vmem:[#allocation2 + $0x120] sm:$0xfe] %v1240_v20  ;;  %v2010_v32 = vshll.u32 %v1696_v19, 16  ;;  %v1242_v35 = vrot.slane %v1103_v27, 7  ;;  %v1693_v37 = vpack.c.bf16 %v16085_v28, %v1621_v53  ;;  %v1695_v38 = vpack.c.bf16 %v1623_v23, %v1623_v23  ;;  %v858_v47 = vpop.f32.mrb[26].mxu0 }
 0x128   : > { %1436 = vst.msk [vmem:[#allocation2 + $0x128] sm:$0xfe] %vm1404_vm8, %v1241_v25  ;;  %v1104_v36 = vsel %vm976_vm7, %v851_v18, %v1040_v26  ;;  %v2007_v42 = vrot.slane %v2005_v31, 1  ;;  %v855_v46 = vadd.f32 %v854_v33, %v16030_v57  ;;  %v860_v39 = vpop.f32.mrb[27].mxu0  ;;  %v857_v7 = vadd.f32 %v856_v40, %v16033_v58  ;;  %v1628_v15 = vld [vmem:[#allocation2 + $0xe8] sm:$0x1] }
 0x129   : > { %v1244_v41 = vrot.slane %v1104_v36, 7  ;;  %v2012_v43 = vrot.slane %v2010_v32, 1  ;;  %v16148_v49 = vsel %vm1209_vm10, %v1240_v20, %v1242_v35  ;;  %1439 = vst [vmem:[#allocation2 + $0x140] sm:$0x1] %v1242_v35  ;;  %v1991_v59 = vshrl.u32 %v1693_v37, 16 }
 0x12a   : > { %v1993_v60 = vshll.u32 %v1693_v37, 16  ;;  %v1998_v61 = vshll.u32 %v1695_v38, 16  ;;  %1437 = vst [vmem:[#allocation2 + $0x130] sm:$0xff] %v16148_v49  ;;  %v2008_v3 = vor.u32 %v2007_v42, %v2003_v30  ;;  %vm977_vm9 = vcmp.gt.f32.partialorder %v855_v46, 0.0  ;;  %v1625_v53 = vld [vmem:[#allocation2 + $0xc0] sm:$0xfe] }
 0x12b   : > { %v1245_v28 = vsel %vm1209_vm10, %v1241_v25, %v1244_v41  ;;  %1440 = vst.msk [vmem:[#allocation2 + $0x148] sm:$0x1] %vm1409_vm12, %v1244_v41  ;;  %v1041_v5 = vmul.f32 0.01, %v855_v46  ;;  %v859_v8 = vadd.f32 %v858_v47, %v16030_v57  ;;  %v861_v13 = vadd.f32 %v860_v39, %v16033_v58  ;;  %v1627_v27 = vld [vmem:[#allocation2 + $0xe0] sm:$0x1] }
 0x12c   : > { %1438 = vst.msk [vmem:[#allocation2 + $0x138] sm:$0xff] %vm281_vm2, %v1245_v28  ;;  %v1995_v6 = vrot.slane %v1993_v60, 1  ;;  %v2000_v62 = vrot.slane %v1998_v61, 1  ;;  %v16157_v11 = vsel %vm1917_vm5, %v2008_v3, %v2012_v43  ;;  %v1698_v16 = vpack.c.bf16 %v1520_v1, %v1626_v9 }
 0x12d   : > { %21178 = vst [vmem:[#allocation11_spill] sm:$0xff] %v16157_v11  ;;  %v1105_v12 = vsel %vm977_vm9, %v855_v46, %v1041_v5  ;;  %12847 = vmatprep.mubr.msk.bf16.mxu1 %vm281_vm2, %v16157_v11  ;;  %vm978_vm11 = vcmp.gt.f32.partialorder %v857_v7, 0.0  ;;  %v1042_v19 = vmul.f32 0.01, %v857_v7  ;;  %vm979_vm13 = vcmp.gt.f32.partialorder %v859_v8, 0.0  ;;  %v864_v30 = vpop.f32.mrb[28].mxu0 }
 0x12e   : > { %v1996_v17 = vor.u32 %v1995_v6, %v1991_v59  ;;  %v1246_v18 = vrot.slane %v1105_v12, 7  ;;  %v1043_v20 = vmul.f32 0.01, %v859_v8  ;;  %vm980_vm14 = vcmp.gt.f32.partialorder %v861_v13, 0.0  ;;  %v866_v36 = vpop.f32.mrb[29].mxu0 }
 0x12f   : > { %v1044_v21 = vmul.f32 0.01, %v861_v13  ;;  %v1106_v23 = vsel %vm978_vm11, %v857_v7, %v1042_v19  ;;  %v1700_v25 = vpack.c.bf16 %v1628_v15, %v1628_v15  ;;  %v2027_v26 = vshrl.u32 %v1698_v16, 16  ;;  %v868_v42 = vpop.f32.mrb[30].mxu0 }
 0x130   : > { %v16163_v22 = vsel %vm1917_vm5, %v1996_v17, %v2000_v62  ;;  %1441 = vst [vmem:[#allocation2 + $0x150] sm:$0xfe] %v1246_v18  ;;  %v1247_v31 = vrot.slane %v1106_v23, 7  ;;  %v1107_v32 = vsel %vm979_vm13, %v859_v8, %v1043_v20  ;;  %v2029_v35 = vshll.u32 %v1698_v16, 16  ;;  %v870_v60 = vpop.f32.mrb[31].mxu0  ;;  %v1524_v16 = vld [vmem:[#allocation2 + $0x108] sm:$0xff] }
 0x131   : > { %21179 = vst [vmem:[#allocation12_spill] sm:$0xff] %v16163_v22  ;;  %2326 = vmatmul.mubr.bf16.gmra.mrb[12].mxu1 %v16163_v22  ;;  %v1108_v33 = vsel %vm980_vm14, %v861_v13, %v1044_v21  ;;  %v1248_v37 = vrot.slane %v1107_v32, 7  ;;  %v2034_v40 = vshll.u32 %v1700_v25, 16  ;;  %v1697_v41 = vpack.c.bf16 %v16111_v14, %v1625_v53  ;;  %v1629_v8 = vld [vmem:[#allocation2 + $0xf0] sm:$0xfe] }
 0x132   : > { %v1250_v38 = vrot.slane %v1108_v33, 7  ;;  %1442 = vst.msk [vmem:[#allocation2 + $0x158] sm:$0xfe] %vm1404_vm8, %v1247_v31  ;;  %v2031_v43 = vrot.slane %v2029_v35, 1  ;;  %v1699_v46 = vpack.c.bf16 %v1627_v27, %v1627_v27  ;;  %v865_v47 = vadd.f32 %v864_v30, %v16030_v57  ;;  %v1632_v17 = vld [vmem:[#allocation2 + $0x118] sm:$0x1] }
 0x133   : > { %v867_v59 = vadd.f32 %v866_v36, %v16033_v58  ;;  %v16171_v61 = vsel %vm1209_vm10, %v1246_v18, %v1248_v37  ;;  %1445 = vst [vmem:[#allocation2 + $0x170] sm:$0x1] %v1248_v37  ;;  %v2036_v1 = vrot.slane %v2034_v40, 1  ;;  %v2015_v14 = vshrl.u32 %v1697_v41, 16  ;;  %v1631_v21 = vld [vmem:[#allocation2 + $0x110] sm:$0x1] }
 0x134   : > { %v1251_v39 = vsel %vm1209_vm10, %v1247_v31, %v1250_v38  ;;  %1446 = vst.msk [vmem:[#allocation2 + $0x178] sm:$0x1] %vm1409_vm12, %v1250_v38  ;;  %1443 = vst [vmem:[#allocation2 + $0x160] sm:$0xff] %v16171_v61  ;;  %v2032_v28 = vor.u32 %v2031_v43, %v2027_v26  ;;  %v2017_v3 = vshll.u32 %v1697_v41, 16  ;;  %v2022_v5 = vshll.u32 %v1699_v46, 16 }
 0x135   : > { %1444 = vst.msk [vmem:[#allocation2 + $0x168] sm:$0xff] %vm281_vm2, %v1251_v39  ;;  %vm981_vm15 = vcmp.gt.f32.partialorder %v865_v47, 0.0  ;;  %v1045_v6 = vmul.f32 0.01, %v865_v47  ;;  %vm982_vm0 = vcmp.gt.f32.partialorder %v867_v59, 0.0  ;;  %v869_v7 = vadd.f32 %v868_v42, %v16030_v57  ;;  %v874_v18 = vpop.f32.mrb[32].mxu0 }
 0x136   : > { %v1046_v62 = vmul.f32 0.01, %v867_v59  ;;  %v16179_v9 = vsel %vm1917_vm5, %v2032_v28, %v2036_v1  ;;  %v2019_v12 = vrot.slane %v2017_v3, 1  ;;  %v2024_v13 = vrot.slane %v2022_v5, 1  ;;  %v876_v23 = vpop.f32.mrb[33].mxu0 }
 0x137   : > { %21180 = vst [vmem:[#allocation13_spill] sm:$0xff] %v16179_v9  ;;  %v871_v15 = vadd.f32 %v870_v60, %v16033_v58  ;;  %12848 = vmatprep.mubr.msk.bf16.mxu1 %vm281_vm2, %v16179_v9  ;;  %v1109_v19 = vsel %vm981_vm15, %v865_v47, %v1045_v6  ;;  %vm983_vm1 = vcmp.gt.f32.partialorder %v869_v7, 0.0  ;;  %v1047_v20 = vmul.f32 0.01, %v869_v7  ;;  %v1630_v30 = vld [vmem:[#allocation2 + $0xf8] sm:$0xfe] }
 0x138   : > { %v1110_v53 = vsel %vm982_vm0, %v867_v59, %v1046_v62  ;;  %v2020_v25 = vor.u32 %v2019_v12, %v2015_v14  ;;  %v1252_v26 = vrot.slane %v1109_v19, 7  ;;  %v878_v31 = vpop.f32.mrb[34].mxu0  ;;  %v1702_v35 = vpack.c.bf16 %v1524_v16, %v1630_v30  ;;  %v1634_v19 = vld [vmem:[#allocation2 + $0x128] sm:$0xfe]  ;;  %v1636_v30 = vld [vmem:[#allocation2 + $0x148] sm:$0x1] }
 0x139   : > { %v1253_v27 = vrot.slane %v1110_v53, 7  ;;  %vm984_vm3 = vcmp.gt.f32.partialorder %v871_v15, 0.0  ;;  %v1111_v32 = vsel %vm983_vm1, %v869_v7, %v1047_v20  ;;  %v1048_v33 = vmul.f32 0.01, %v871_v15  ;;  %v880_v37 = vpop.f32.mrb[35].mxu0 }
 0x13a   : > { %v1704_v36 = vpack.c.bf16 %v1632_v17, %v1632_v17  ;;  %v16185_v38 = vsel %vm1917_vm5, %v2020_v25, %v2024_v13  ;;  %1447 = vst [vmem:[#allocation2 + $0x180] sm:$0xfe] %v1252_v26  ;;  %v1254_v40 = vrot.slane %v1111_v32, 7  ;;  %v1701_v41 = vpack.c.bf16 %v16129_v63, %v1629_v8  ;;  %v1528_v17 = vld [vmem:[#allocation2 + $0x138] sm:$0xff] }
 0x13b   : > { %21181 = vst [vmem:[#allocation14_spill] sm:$0xff] %v16185_v38  ;;  %1448 = vst.msk [vmem:[#allocation2 + $0x188] sm:$0xfe] %vm1404_vm8, %v1253_v27  ;;  %v1703_v42 = vpack.c.bf16 %v1631_v21, %v1631_v21  ;;  %2336 = vmatmul.mubr.bf16.gmra.mrb[16].mxu1 %v16185_v38  ;;  %v1112_v43 = vsel %vm984_vm3, %v871_v15, %v1048_v33  ;;  %v2051_v46 = vshrl.u32 %v1702_v35, 16  ;;  %v2053_v47 = vshll.u32 %v1702_v35, 16  ;;  %v1522_v38 = vld [vmem:[#allocation2 + $0xf8] sm:$0xff] }
 0x13c   : > { %v2058_v59 = vshll.u32 %v1704_v36, 16  ;;  %v16191_v60 = vsel %vm1209_vm10, %v1252_v26, %v1254_v40  ;;  %1451 = vst [vmem:[#allocation2 + $0x1a0] sm:$0x1] %v1254_v40  ;;  %v1256_v39 = vrot.slane %v1112_v43, 7  ;;  %v2039_v1 = vshrl.u32 %v1701_v41, 16 }
 0x13d   : > { %v2041_v14 = vshll.u32 %v1701_v41, 16  ;;  %1449 = vst [vmem:[#allocation2 + $0x190] sm:$0xff] %v16191_v60  ;;  %v2055_v28 = vrot.slane %v2053_v47, 1  ;;  %v2046_v5 = vshll.u32 %v1703_v42, 16  ;;  %v875_v63 = vadd.f32 %v874_v18, %v16030_v57  ;;  %v884_v12 = vpop.f32.mrb[36].mxu0 }
 0x13e   : > { %v2060_v3 = vrot.slane %v2058_v59, 1  ;;  %v1257_v6 = vsel %vm1209_vm10, %v1253_v27, %v1256_v39  ;;  %1452 = vst.msk [vmem:[#allocation2 + $0x1a8] sm:$0x1] %vm1409_vm12, %v1256_v39  ;;  %v877_v7 = vadd.f32 %v876_v23, %v16033_v58  ;;  %v879_v8 = vadd.f32 %v878_v31, %v16030_v57  ;;  %v886_v53 = vpop.f32.mrb[37].mxu0  ;;  %v1633_v40 = vld [vmem:[#allocation2 + $0x120] sm:$0xfe] }
 0x13f   : > { %v2043_v62 = vrot.slane %v2041_v14, 1  ;;  %1450 = vst.msk [vmem:[#allocation2 + $0x198] sm:$0xff] %vm281_vm2, %v1257_v6  ;;  %v2056_v13 = vor.u32 %v2055_v28, %v2051_v46  ;;  %v2048_v15 = vrot.slane %v2046_v5, 1  ;;  %vm985_vm4 = vcmp.gt.f32.partialorder %v875_v63, 0.0  ;;  %v888_v21 = vpop.f32.mrb[38].mxu0 }
 0x140   : > { %v1049_v16 = vmul.f32 0.01, %v875_v63  ;;  %vm986_vm6 = vcmp.gt.f32.partialorder %v877_v7, 0.0  ;;  %v1050_v20 = vmul.f32 0.01, %v877_v7  ;;  %vm987_vm7 = vcmp.gt.f32.partialorder %v879_v8, 0.0 }
 0x141   : > { %v2044_v18 = vor.u32 %v2043_v62, %v2039_v1  ;;  %v16201_v25 = vsel %vm1917_vm5, %v2056_v13, %v2060_v3  ;;  %v1051_v26 = vmul.f32 0.01, %v879_v8  ;;  %v881_v27 = vadd.f32 %v880_v37, %v16033_v58  ;;  %v890_v31 = vpop.f32.mrb[39].mxu0  ;;  %v1635_v41 = vld [vmem:[#allocation2 + $0x140] sm:$0x1] }
 0x142   : > { %21182 = vst [vmem:[#allocation15_spill] sm:$0xff] %v16201_v25  ;;  %v1113_v23 = vsel %vm985_vm4, %v875_v63, %v1049_v16  ;;  %12849 = vmatprep.mubr.msk.bf16.mxu1 %vm281_vm2, %v16201_v25  ;;  %v1114_v35 = vsel %vm986_vm6, %v877_v7, %v1050_v20  ;;  %v1706_v36 = vpack.c.bf16 %v1528_v17, %v1634_v19  ;;  %v1532_v16 = vld [vmem:[#allocation2 + $0x168] sm:$0xff]  ;;  %v1517_v25 = vld [vmem:[#allocation2 + $0xc0] sm:$0xff] }
 0x143   : > { %v16207_v32 = vsel %vm1917_vm5, %v2044_v18, %v2048_v15  ;;  %v1258_v33 = vrot.slane %v1113_v23, 7  ;;  %v1259_v42 = vrot.slane %v1114_v35, 7  ;;  %v1115_v43 = vsel %vm987_vm7, %v879_v8, %v1051_v26 }
 0x144   : > { %21183 = vst [vmem:[#allocation16_spill] sm:$0xff] %v16207_v32  ;;  %2346 = vmatmul.mubr.bf16.gmra.mrb[20].mxu1 %v16207_v32  ;;  %vm988_vm9 = vcmp.gt.f32.partialorder %v881_v27, 0.0  ;;  %v1052_v37 = vmul.f32 0.01, %v881_v27  ;;  %v1260_v46 = vrot.slane %v1115_v43, 7  ;;  %v1708_v47 = vpack.c.bf16 %v1636_v30, %v1636_v30 }
 0x145   : > { %1453 = vst [vmem:[#allocation2 + $0x1b0] sm:$0xfe] %v1258_v33  ;;  %v2075_v59 = vshrl.u32 %v1706_v36, 16  ;;  %v2077_v39 = vshll.u32 %v1706_v36, 16  ;;  %1454 = vst.msk [vmem:[#allocation2 + $0x1b8] sm:$0xfe] %vm1404_vm8, %v1259_v42  ;;  %v1705_v14 = vpack.c.bf16 %v16148_v49, %v1633_v40  ;;  %v1707_v28 = vpack.c.bf16 %v1635_v41, %v1635_v41 }
 0x146   : > { %v1116_v1 = vsel %vm988_vm9, %v881_v27, %v1052_v37  ;;  %v885_v3 = vadd.f32 %v884_v12, %v16030_v57  ;;  %v16215_v5 = vsel %vm1209_vm10, %v1258_v33, %v1260_v46  ;;  %1457 = vst [vmem:[#allocation2 + $0x1d0] sm:$0x1] %v1260_v46  ;;  %v2082_v62 = vshll.u32 %v1708_v47, 16  ;;  %v894_v7 = vpop.f32.mrb[40].mxu0  ;;  %v1638_v33 = vld [vmem:[#allocation2 + $0x158] sm:$0xfe] }
 0x147   : > { %v1262_v63 = vrot.slane %v1116_v1, 7  ;;  %v2079_v6 = vrot.slane %v2077_v39, 1  ;;  %1455 = vst [vmem:[#allocation2 + $0x1c0] sm:$0xff] %v16215_v5  ;;  %v2063_v8 = vshrl.u32 %v1705_v14, 16  ;;  %v2065_v13 = vshll.u32 %v1705_v14, 16  ;;  %v896_v17 = vpop.f32.mrb[41].mxu0 }
 0x148   : > { %v2070_v15 = vshll.u32 %v1707_v28, 16  ;;  %vm989_vm11 = vcmp.gt.f32.partialorder %v885_v3, 0.0  ;;  %v2084_v19 = vrot.slane %v2082_v62, 1  ;;  %v1053_v18 = vmul.f32 0.01, %v885_v3  ;;  %v16220_v20 = vpop.f32.mrb[42].mxu0 }
 0x149   : > { %v1263_v49 = vsel %vm1209_vm10, %v1259_v42, %v1262_v63  ;;  %1458 = vst.msk [vmem:[#allocation2 + $0x1d8] sm:$0x1] %vm1409_vm12, %v1262_v63  ;;  %v2080_v12 = vor.u32 %v2079_v6, %v2075_v59  ;;  %v2067_v23 = vrot.slane %v2065_v13, 1  ;;  %v887_v27 = vadd.f32 %v886_v53, %v16033_v58  ;;  %v900_v35 = vpop.f32.mrb[43].mxu0  ;;  %v1640_v42 = vld [vmem:[#allocation2 + $0x178] sm:$0x1] }
 0x14a   : > { %1456 = vst.msk [vmem:[#allocation2 + $0x1c8] sm:$0xff] %vm281_vm2, %v1263_v49  ;;  %v2072_v26 = vrot.slane %v2070_v15, 1  ;;  %v889_v30 = vadd.f32 %v888_v21, %v16030_v57  ;;  %v1117_v40 = vsel %vm989_vm11, %v885_v3, %v1053_v18  ;;  %v891_v41 = vadd.f32 %v890_v31, %v16033_v58  ;;  %v1637_v47 = vld [vmem:[#allocation2 + $0x150] sm:$0xfe]  ;;  %v1639_v28 = vld [vmem:[#allocation2 + $0x170] sm:$0x1] }
 0x14b   : > { %v16226_v36 = vsel %vm1917_vm5, %v2080_v12, %v2084_v19  ;;  %v1710_v43 = vpack.c.bf16 %v1532_v16, %v1638_v33  ;;  %v2068_v37 = vor.u32 %v2067_v23, %v2063_v8  ;;  %v1264_v46 = vrot.slane %v1117_v40, 7 }
 0x14c   : > { %21184 = vst [vmem:[#allocation17_spill] sm:$0xff] %v16226_v36  ;;  %12850 = vmatprep.mubr.msk.bf16.mxu1 %vm281_vm2, %v16226_v36  ;;  %vm990_vm13 = vcmp.gt.f32.partialorder %v887_v27, 0.0  ;;  %v1054_v53 = vmul.f32 0.01, %v887_v27  ;;  %vm991_vm14 = vcmp.gt.f32.partialorder %v889_v30, 0.0  ;;  %vm992_vm15 = vcmp.gt.f32.partialorder %v891_v41, 0.0 }
 0x14d   : > { %v1055_v21 = vmul.f32 0.01, %v889_v30  ;;  %v1056_v59 = vmul.f32 0.01, %v891_v41  ;;  %v16233_v39 = vsel %vm1917_vm5, %v2068_v37, %v2072_v26  ;;  %1459 = vst [vmem:[#allocation2 + $0x1e0] sm:$0xfe] %v1264_v46  ;;  %v1712_v31 = vpack.c.bf16 %v1640_v42, %v1640_v42 }
 0x14e   : > { %21185 = vst [vmem:[#allocation18_spill] sm:$0xff] %v16233_v39  ;;  %v1118_v1 = vsel %vm990_vm13, %v887_v27, %v1054_v53  ;;  %v2099_v14 = vshrl.u32 %v1710_v43, 16  ;;  %2356 = vmatmul.mubr.bf16.gmra.mrb[24].mxu1 %v16233_v39  ;;  %v2101_v62 = vshll.u32 %v1710_v43, 16  ;;  %v16236_v8 = vpop.f32.mrb[44].mxu0  ;;  %v1709_v49 = vpack.c.bf16 %v16171_v61, %v1637_v47  ;;  %v1642_v43 = vld [vmem:[#allocation2 + $0x188] sm:$0xfe] }
 0x14f   : > { %v1265_v3 = vrot.slane %v1118_v1, 7  ;;  %v1119_v63 = vsel %vm991_vm14, %v889_v30, %v1055_v21  ;;  %v1120_v6 = vsel %vm992_vm15, %v891_v41, %v1056_v59  ;;  %v2106_v16 = vshll.u32 %v1712_v31, 16  ;;  %v16239_v12 = vpop.f32.mrb[45].mxu0  ;;  %v1641_v47 = vld [vmem:[#allocation2 + $0x180] sm:$0xfe] }
 0x150   : > { %v1266_v13 = vrot.slane %v1119_v63, 7  ;;  %v1268_v15 = vrot.slane %v1120_v6, 7  ;;  %v2103_v19 = vrot.slane %v2101_v62, 1  ;;  %v1711_v18 = vpack.c.bf16 %v1639_v28, %v1639_v28  ;;  %v16244_v27 = vpop.f32.mrb[46].mxu0  ;;  %v16261_v28 = vld [vmem:[#allocation2 + $0x198] sm:$0xff] }
 0x151   : > { %1460 = vst.msk [vmem:[#allocation2 + $0x1e8] sm:$0xfe] %vm1404_vm8, %v1265_v3  ;;  %v895_v23 = vadd.f32 %v894_v7, %v16030_v57  ;;  %v897_v26 = vadd.f32 %v896_v17, %v16033_v58  ;;  %v2108_v61 = vrot.slane %v2106_v16, 1  ;;  %v2087_v40 = vshrl.u32 %v1709_v49, 16  ;;  %v16251_v41 = vpop.f32.mrb[47].mxu0 }
 0x152   : > { %v16247_v30 = vsel %vm1209_vm10, %v1264_v46, %v1266_v13  ;;  %1463 = vst [vmem:[#allocation2 + $0x200] sm:$0x1] %v1266_v13  ;;  %v1269_v33 = vsel %vm1209_vm10, %v1265_v3, %v1268_v15  ;;  %1464 = vst.msk [vmem:[#allocation2 + $0x208] sm:$0x1] %vm1409_vm12, %v1268_v15  ;;  %v2104_v7 = vor.u32 %v2103_v19, %v2099_v14  ;;  %v2089_v17 = vshll.u32 %v1709_v49, 16 }
 0x153   : > { %1461 = vst [vmem:[#allocation2 + $0x1f0] sm:$0xff] %v16247_v30  ;;  %1462 = vst.msk [vmem:[#allocation2 + $0x1f8] sm:$0xff] %vm281_vm2, %v1269_v33  ;;  %v2094_v42 = vshll.u32 %v1711_v18, 16  ;;  %vm993_vm0 = vcmp.gt.f32.partialorder %v895_v23, 0.0  ;;  %v1057_v37 = vmul.f32 0.01, %v895_v23  ;;  %v899_v53 = vadd.f32 %v16220_v20, %v16030_v57 }
 0x154   : > { %vm994_vm1 = vcmp.gt.f32.partialorder %v897_v26, 0.0  ;;  %v1058_v46 = vmul.f32 0.01, %v897_v26  ;;  %v16258_v21 = vsel %vm1917_vm5, %v2104_v7, %v2108_v61  ;;  %v2091_v59 = vrot.slane %v2089_v17, 1  ;;  %v1644_v14 = vld [vmem:[#allocation2 + $0x1a8] sm:$0x1] }
 0x155   : > { %21186 = vst [vmem:[#allocation19_spill] sm:$0xff] %v16258_v21  ;;  %v2096_v1 = vrot.slane %v2094_v42, 1  ;;  %v901_v31 = vadd.f32 %v900_v35, %v16033_v58  ;;  %12851 = vmatprep.mubr.msk.bf16.mxu1 %vm281_vm2, %v16258_v21  ;;  %v1121_v3 = vsel %vm993_vm0, %v895_v23, %v1057_v37  ;;  %vm995_vm3 = vcmp.gt.f32.partialorder %v899_v53, 0.0  ;;  %v1643_v62 = vld [vmem:[#allocation2 + $0x1a0] sm:$0x1]  ;;  %v16265_v16 = vpop.f32.mrb[48].mxu0 }
 0x156   : > { %v1122_v63 = vsel %vm994_vm1, %v897_v26, %v1058_v46  ;;  %v1059_v6 = vmul.f32 0.01, %v899_v53  ;;  %v2092_v20 = vor.u32 %v2091_v59, %v2087_v40  ;;  %v1270_v13 = vrot.slane %v1121_v3, 7  ;;  %v16268_v33 = vpop.f32.mrb[49].mxu0 }
 0x157   : > { %v1271_v15 = vrot.slane %v1122_v63, 7  ;;  %vm996_vm4 = vcmp.gt.f32.partialorder %v901_v31, 0.0  ;;  %v1060_v19 = vmul.f32 0.01, %v901_v31  ;;  %v1714_v35 = vpack.c.bf16 %v16261_v28, %v1642_v43  ;;  %v16275_v7 = vpop.f32.mrb[50].mxu0 }
 0x158   : > { %v1123_v49 = vsel %vm995_vm3, %v899_v53, %v1059_v6  ;;  %v1716_v18 = vpack.c.bf16 %v1644_v14, %v1644_v14  ;;  %v16271_v61 = vsel %vm1917_vm5, %v2092_v20, %v2096_v1  ;;  %1465 = vst [vmem:[#allocation2 + $0x210] sm:$0xfe] %v1270_v13  ;;  %v1713_v26 = vpack.c.bf16 %v16191_v60, %v1641_v47  ;;  %v16278_v46 = vpop.f32.mrb[51].mxu0  ;;  %v1506_v1 = vld [vmem:[#allocation2 + $0x38] sm:$0xff] }
 0x159   : > { %21187 = vst [vmem:[#allocation20_spill] sm:$0xff] %v16271_v61  ;;  %1466 = vst.msk [vmem:[#allocation2 + $0x218] sm:$0xfe] %vm1404_vm8, %v1271_v15  ;;  %v1272_v23 = vrot.slane %v1123_v49, 7  ;;  %v1715_v40 = vpack.c.bf16 %v1643_v62, %v1643_v62  ;;  %2366 = vmatmul.mubr.bf16.gmra.mrb[28].mxu1 %v16271_v61  ;;  %v1124_v17 = vsel %vm996_vm4, %v901_v31, %v1060_v19  ;;  %v3274_v42 = vshrl.u32 %v1714_v35, 16 }
 0x15a   : > { %v3276_v43 = vshll.u32 %v1714_v35, 16  ;;  %v3281_v37 = vshll.u32 %v1716_v18, 16  ;;  %v1274_v59 = vrot.slane %v1124_v17, 7  ;;  %12872 = vmatprep.mubr.msk.bf16.mxu1 %vm281_vm2, %v1574_v44  ;;  %v3262_v60 = vshrl.u32 %v1713_v26, 16  ;;  %v14958_v49 = vld [vmem:[%s20954_s3 + $0x154] ss:$8 sps:$4 sm:$0xff]  }
 0x15b   : > { %v16281_v53 = vsel %vm1209_vm10, %v1270_v13, %v1272_v23  ;;  %1469 = vst [vmem:[#allocation2 + $0x230] sm:$0x1] %v1272_v23  ;;  %v3264_v47 = vshll.u32 %v1713_v26, 16  ;;  %v3269_v3 = vshll.u32 %v1715_v40, 16  ;;  %v16289_v63 = vpack.c.bf16 %v16076_v4, %v1506_v1  ;;  %v1646_v19 = vld [vmem:[#allocation2 + $0x1b8] sm:$0xfe] }
 0x15c   : > { %1467 = vst [vmem:[#allocation2 + $0x220] sm:$0xff] %v16281_v53  ;;  %v3278_v31 = vrot.slane %v3276_v43, 1  ;;  %v3283_v14 = vrot.slane %v3281_v37, 1  ;;  %v1275_v6 = vsel %vm1209_vm10, %v1271_v15, %v1274_v59  ;;  %1470 = vst.msk [vmem:[#allocation2 + $0x238] sm:$0x1] %vm1409_vm12, %v1274_v59  ;;  %v905_v44 = vadd.f32 %v16236_v8, %v16030_v57  ;;  %v16311_v23 = vld [vmem:[#allocation2 + $0x1c8] sm:$0xff] }
 0x15d   : > { %21188 = vst [vmem:[#allocation21_spill] sm:$0xff] %v16289_v63  ;;  %v3266_v29 = vrot.slane %v3264_v47, 1  ;;  %v907_v62 = vadd.f32 %v16239_v12, %v16033_v58  ;;  %1468 = vst.msk [vmem:[#allocation2 + $0x228] sm:$0xff] %vm281_vm2, %v1275_v6  ;;  %v3271_v4 = vrot.slane %v3269_v3, 1  ;;  %v909_v13 = vadd.f32 %v16244_v27, %v16030_v57  ;;  %v1648_v35 = vld [vmem:[#allocation2 + $0x1d8] sm:$0x1] }
 0x15e   : > { %v3279_v20 = vor.u32 %v3278_v31, %v3274_v42  ;;  %v911_v15 = vadd.f32 %v16251_v41, %v16033_v58  ;;  %v14965_v8 = vld [vmem:[%s20954_s3] ss:$8 sps:$4 sm:$0xff]   ;;  %vm997_vm6 = vcmp.gt.f32.partialorder %v905_v44, 0.0  ;;  %v1061_v18 = vmul.f32 0.01, %v905_v44  ;;  %v16313_v27 = vpop.f32.mrb[52].mxu0 }
 0x15f   : > { %v3267_v12 = vor.u32 %v3266_v29, %v3262_v60  ;;  %vm998_vm7 = vcmp.gt.f32.partialorder %v907_v62, 0.0  ;;  %v14973_v41 = vld [vmem:[%s20954_s3 + $0x14] ss:$8 sps:$4 sm:$0xff]   ;;  %v1062_v40 = vmul.f32 0.01, %v907_v62  ;;  %vm999_vm9 = vcmp.gt.f32.partialorder %v909_v13, 0.0 }
 0x160   : > { %v16319_v26 = vsel %vm1917_vm5, %v3279_v20, %v3283_v14  ;;  %v1063_v17 = vmul.f32 0.01, %v909_v13  ;;  %v16321_v42 = vpop.f32.mrb[53].mxu0  ;;  %v1125_v37 = vsel %vm997_vm6, %v905_v44, %v1061_v18  ;;  %vm1000_vm11 = vcmp.gt.f32.partialorder %v911_v15, 0.0  ;;  %v1645_v60 = vld [vmem:[#allocation2 + $0x1b0] sm:$0xfe] }
 0x161   : > { %21189 = vst [vmem:[#allocation22_spill] sm:$0xff] %v16319_v26  ;;  %13256 = vmatprep.mubr.msk.bf16.mxu0 %vm281_vm2, %v16319_v26  ;;  %v16326_v43 = vsel %vm1917_vm5, %v3267_v12, %v3271_v4  ;;  %v1064_v59 = vmul.f32 0.01, %v911_v15  ;;  %v16328_v47 = vpop.f32.mrb[54].mxu0  ;;  %2533 = vmatmul.mubr.bf16.vlgmr.msra.gmra.mrb[0].mxu1 %v1573_v51  ;;  %v1276_v1 = vrot.slane %v1125_v37, 7  ;;  %v1126_v31 = vsel %vm998_vm7, %v907_v62, %v1062_v40  ;;  %v1510_v12 = vld [vmem:[#allocation2 + $0x68] sm:$0xff] }
 0x162   : > { %21190 = vst [vmem:[#allocation23_spill] sm:$0xff] %v16326_v43  ;;  %5336 = vmatmul.mubr.bf16.vlgmr.msra.gmra.mrb[64].mxu0 %v16326_v43  ;;  %v1127_v14 = vsel %vm999_vm9, %v909_v13, %v1063_v17  ;;  %v1718_v3 = vpack.c.bf16 %v16311_v23, %v1646_v19  ;;  %v1647_v6 = vld [vmem:[#allocation2 + $0x1d0] sm:$0x1]  ;;  %v16336_v29 = vpop.f32.mrb[55].mxu0  ;;  %2848 = vmatpush1.bf16.msra.mxu1 %v14953_v45  ;;  %v1277_v44 = vrot.slane %v1126_v31, 7 }
 0x163   : > { %12873 = vmatprep.mubr.msk.bf16.mxu1 %vm281_vm2, %v16289_v63  ;;  %v1278_v20 = vrot.slane %v1127_v14, 7  ;;  %v1128_v34 = vsel %vm1000_vm11, %v911_v15, %v1064_v59  ;;  %v1720_v51 = vpack.c.bf16 %v1648_v35, %v1648_v35  ;;  %v14961_v62 = vld [vmem:[%s20954_s3 + $0x164] ss:$8 sps:$4 sm:$0xff]   ;;  %1471 = vst [vmem:[#allocation2 + $0x240] sm:$0xfe] %v1276_v1  ;;  %2849 = vmatprep.subr.bf16.mxu1 %v14958_v49 }
 0x164   : > { %v1280_v4 = vrot.slane %v1128_v34, 7  ;;  %v4117_v45 = vshrl.u32 %v1718_v3, 16  ;;  %v4119_v13 = vshll.u32 %v1718_v3, 16  ;;  %v1717_v19 = vpack.c.bf16 %v16215_v5, %v1645_v60  ;;  %5535 = vmatpush1.bf16.msra.mxu0 %v14965_v8  ;;  %v14971_v15 = vld [vmem:[%s20954_s3 + $0x10] ss:$8 sps:$4 sm:$0xff]  }
 0x165   : > { %1472 = vst.msk [vmem:[#allocation2 + $0x248] sm:$0xfe] %vm1404_vm8, %v1277_v44  ;;  %v16353_v35 = vsel %vm1209_vm10, %v1276_v1, %v1278_v20  ;;  %1475 = vst [vmem:[#allocation2 + $0x260] sm:$0x1] %v1278_v20  ;;  %v4124_v18 = vshll.u32 %v1720_v51, 16  ;;  %v1719_v40 = vpack.c.bf16 %v1647_v6, %v1647_v6  ;;  %v16356_v49 = vpack.c.bf16 %v16094_v48, %v1510_v12  ;;  %v16377_v3 = vpop.f32.mrb[56].mxu0 }
 0x166   : > { %5536 = vmatprep.subr.bf16.mxu0 %v14973_v41  ;;  %v14979_v5 = vld [vmem:[%s20954_s3 + $0x24] ss:$8 sps:$4 sm:$0xff]   ;;  %1473 = vst [vmem:[#allocation2 + $0x250] sm:$0xff] %v16353_v35  ;;  %v1281_v8 = vsel %vm1209_vm10, %v1277_v44, %v1280_v4  ;;  %1476 = vst.msk [vmem:[#allocation2 + $0x268] sm:$0x1] %vm1409_vm12, %v1280_v4  ;;  %v4121_v17 = vrot.slane %v4119_v13, 1  ;;  %2850 = vmatpush1.bf16.msra.mxu1 %v14956_v50  ;;  %v915_v1 = vadd.f32 %v16265_v16, %v16030_v57 }
 0x167   : > { %21191 = vst [vmem:[#allocation24_spill] sm:$0xff] %v16356_v49  ;;  %v4105_v37 = vshrl.u32 %v1717_v19, 16  ;;  %v4107_v59 = vshll.u32 %v1717_v19, 16  ;;  %v14959_v60 = vld [vmem:[%s20954_s3 + $0x160] ss:$8 sps:$4 sm:$0xff]   ;;  %1474 = vst.msk [vmem:[#allocation2 + $0x258] sm:$0xff] %vm281_vm2, %v1281_v8  ;;  %v917_v31 = vadd.f32 %v16268_v33, %v16033_v58  ;;  %v919_v34 = vadd.f32 %v16275_v7, %v16030_v57  ;;  %2851 = vmatprep.subr.bf16.mxu1 %v14961_v62 }
 0x168   : > { %v4126_v48 = vrot.slane %v4124_v18, 1  ;;  %v4112_v41 = vshll.u32 %v1719_v40, 16  ;;  %v16375_v14 = vld [vmem:[%s20954_s3 + $0x174] ss:$8 sps:$4 sm:$0xff]   ;;  %v14977_v6 = vld [vmem:[%s20954_s3 + $0x20] ss:$8 sps:$4 sm:$0xff]   ;;  %v4122_v44 = vor.u32 %v4121_v17, %v4117_v45  ;;  %v921_v16 = vadd.f32 %v16278_v46, %v16033_v58  ;;  %5537 = vmatpush1.bf16.msra.mxu0 %v14971_v15 }
 0x169   : > { %v4109_v20 = vrot.slane %v4107_v59, 1  ;;  %v16386_v33 = vld [vmem:[#allocation2 + $0x1f8] sm:$0xff]  ;;  %v1650_v50 = vld [vmem:[#allocation2 + $0x1e8] sm:$0xfe]  ;;  %v16388_v51 = vpop.f32.mrb[57].mxu0  ;;  %vm1001_vm13 = vcmp.gt.f32.partialorder %v915_v1, 0.0  ;;  %5538 = vmatprep.subr.bf16.mxu0 %v14979_v5  ;;  %2543 = vmatmul.mubr.bf16.gmra.mrb[4].mxu1 %v16065_v52 }
 0x16a   : > { %v14982_v4 = vld [vmem:[%s20954_s3 + $0x34] ss:$8 sps:$4 sm:$0xff]   ;;  %v4114_v13 = vrot.slane %v4112_v41, 1  ;;  %v1065_v45 = vmul.f32 0.01, %v915_v1  ;;  %vm1002_vm14 = vcmp.gt.f32.partialorder %v917_v31, 0.0  ;;  %v16396_v7 = vsel %vm1917_vm5, %v4122_v44, %v4126_v48  ;;  %12874 = vmatprep.mubr.msk.bf16.mxu1 %vm281_vm2, %v16356_v49  ;;  %2852 = vmatpush1.bf16.msra.mxu1 %v14959_v60 }
 0x16b   : > { %v16393_v19 = vpop.f32.mrb[58].mxu0  ;;  %21192 = vst [vmem:[#allocation25_spill] sm:$0xff] %v16396_v7  ;;  %v4110_v46 = vor.u32 %v4109_v20, %v4105_v37  ;;  %v1066_v62 = vmul.f32 0.01, %v917_v31  ;;  %vm1003_vm15 = vcmp.gt.f32.partialorder %v919_v34, 0.0  ;;  %13257 = vmatprep.mubr.msk.bf16.mxu0 %vm281_vm2, %v16396_v7  ;;  %vm1004_vm0 = vcmp.gt.f32.partialorder %v921_v16, 0.0  ;;  %2853 = vmatprep.subr.bf16.mxu1 %v16375_v14 }
 0x16c   : > { %v1652_v12 = vld [vmem:[#allocation2 + $0x208] sm:$0x1]  ;;  %v16402_v15 = vld [vmem:[%s20954_s3 + $0x170] ss:$8 sps:$4 sm:$0xff]   ;;  %v16404_v18 = vpop.f32.mrb[59].mxu0  ;;  %v1129_v5 = vsel %vm1001_vm13, %v915_v1, %v1065_v45  ;;  %v1722_v41 = vpack.c.bf16 %v16386_v33, %v1650_v50  ;;  %v1509_v44 = vld [vmem:[#allocation2 + $0x60] sm:$0xff]  ;;  %5539 = vmatpush1.bf16.msra.mxu0 %v14977_v6 }
 0x16d   : > { %v14980_v40 = vld [vmem:[%s20954_s3 + $0x30] ss:$8 sps:$4 sm:$0xff]   ;;  %v1067_v8 = vmul.f32 0.01, %v919_v34  ;;  %v1068_v17 = vmul.f32 0.01, %v921_v16  ;;  %v16415_v37 = vsel %vm1917_vm5, %v4110_v46, %v4114_v13  ;;  %v1130_v48 = vsel %vm1002_vm14, %v917_v31, %v1066_v62  ;;  %5540 = vmatprep.subr.bf16.mxu0 %v14982_v4 }
 0x16e   : > { %21193 = vst [vmem:[#allocation26_spill] sm:$0xff] %v16415_v37  ;;  %v1282_v59 = vrot.slane %v1129_v5, 7  ;;  %v1649_v20 = vld [vmem:[#allocation2 + $0x1e0] sm:$0xfe]  ;;  %v1651_v2 = vld [vmem:[#allocation2 + $0x200] sm:$0x1]  ;;  %5346 = vmatmul.mubr.bf16.gmra.mrb[68].mxu0 %v16415_v37  ;;  %v1724_v54 = vpack.c.bf16 %v1652_v12, %v1652_v12  ;;  %2854 = vmatpush1.bf16.msra.mxu1 %v16402_v15 }
 0x16f   : > { %v1283_v56 = vrot.slane %v1130_v48, 7  ;;  %v1131_v1 = vsel %vm1003_vm15, %v919_v34, %v1067_v8  ;;  %v1132_v45 = vsel %vm1004_vm0, %v921_v16, %v1068_v17  ;;  %v16425_v31 = vld [vmem:[%s20954_s3 + $0x184] ss:$8 sps:$4 sm:$0xff]   ;;  %v5028_v13 = vshrl.u32 %v1722_v41, 16  ;;  %v16431_v16 = vld [vmem:[#allocation2 + $0x70] sm:$0xff]  ;;  %v1514_v8 = vld [vmem:[#allocation2 + $0x98] sm:$0xff] }
 0x170   : > { %v14988_v60 = vld [vmem:[%s20954_s3 + $0x44] ss:$8 sps:$4 sm:$0xff]   ;;  %1477 = vst [vmem:[#allocation2 + $0x270] sm:$0xfe] %v1282_v59  ;;  %v1284_v6 = vrot.slane %v1131_v1, 7  ;;  %v1286_v50 = vrot.slane %v1132_v45, 7  ;;  %v16434_v62 = vpack.c.bf16 %v16431_v16, %v1509_v44  ;;  %v1721_v12 = vpack.c.bf16 %v16247_v30, %v1649_v20  ;;  %5541 = vmatpush1.bf16.msra.mxu0 %v14980_v40  ;;  %2855 = vmatprep.subr.bf16.mxu1 %v16425_v31 }
 0x171   : > { %v5030_v46 = vshll.u32 %v1722_v41, 16  ;;  %1478 = vst.msk [vmem:[#allocation2 + $0x278] sm:$0xfe] %vm1404_vm8, %v1283_v56  ;;  %v5035_v34 = vshll.u32 %v1724_v54, 16  ;;  %v1723_v5 = vpack.c.bf16 %v1651_v2, %v1651_v2  ;;  %v16440_v17 = vld [vmem:[%s20954_s3 + $0x180] ss:$8 sps:$4 sm:$0xff]   ;;  %5542 = vmatprep.subr.bf16.mxu0 %v14988_v60 }
 0x172   : > { %21194 = vst [vmem:[#allocation27_spill] sm:$0xff] %v16434_v62  ;;  %v16443_v48 = vsel %vm1209_vm10, %v1282_v59, %v1284_v6  ;;  %1481 = vst [vmem:[#allocation2 + $0x290] sm:$0x1] %v1284_v6  ;;  %v1287_v54 = vsel %vm1209_vm10, %v1283_v56, %v1286_v50  ;;  %v16447_v41 = vld [vmem:[#allocation2 + $0xa8] sm:$0xff]  ;;  %v1654_v44 = vld [vmem:[#allocation2 + $0x218] sm:$0xfe]  ;;  %2553 = vmatmul.mubr.bf16.gmra.mrb[8].mxu1 %v16434_v62 }
 0x173   : > { %1482 = vst.msk [vmem:[#allocation2 + $0x298] sm:$0x1] %vm1409_vm12, %v1286_v50  ;;  %v5032_v4 = vrot.slane %v5030_v46, 1  ;;  %v16450_v30 = vpack.c.bf16 %v16447_v41, %v1514_v8  ;;  %v16453_v2 = vld [vmem:[#allocation2 + $0x228] sm:$0xff]  ;;  %1479 = vst [vmem:[#allocation2 + $0x280] sm:$0xff] %v16443_v48  ;;  %v5037_v56 = vrot.slane %v5035_v34, 1  ;;  %v925_v50 = vadd.f32 %v16313_v27, %v16030_v57  ;;  %2856 = vmatpush1.bf16.msra.mxu1 %v16440_v17 }
 0x174   : > { %v14986_v59 = vld [vmem:[%s20954_s3 + $0x40] ss:$8 sps:$4 sm:$0xff]   ;;  %1480 = vst.msk [vmem:[#allocation2 + $0x288] sm:$0xff] %vm281_vm2, %v1287_v54  ;;  %v5016_v20 = vshrl.u32 %v1721_v12, 16  ;;  %v5018_v1 = vshll.u32 %v1721_v12, 16  ;;  %v5023_v45 = vshll.u32 %v1723_v5, 16  ;;  %v927_v46 = vadd.f32 %v16321_v42, %v16033_v58 }
 0x175   : > { %21195 = vst [vmem:[#allocation28_spill] sm:$0xff] %v16450_v30  ;;  %v16464_v6 = vld [vmem:[%s20954_s3 + $0x194] ss:$8 sps:$4 sm:$0xff]   ;;  %v5033_v40 = vor.u32 %v5032_v4, %v5028_v13  ;;  %v929_v34 = vadd.f32 %v16328_v47, %v16030_v57  ;;  %v16476_v12 = vld [vmem:[%s20954_s3 + $0x190] ss:$8 sps:$4 sm:$0xff]   ;;  %12875 = vmatprep.mubr.msk.bf16.mxu1 %vm281_vm2, %v16450_v30  ;;  %v931_v27 = vadd.f32 %v16336_v29, %v16033_v58  ;;  %vm1005_vm1 = vcmp.gt.f32.partialorder %v925_v50, 0.0 }
 0x176   : > { %v14994_v60 = vld [vmem:[%s20954_s3 + $0x54] ss:$8 sps:$4 sm:$0xff]   ;;  %v5020_v13 = vrot.slane %v5018_v1, 1  ;;  %v5025_v5 = vrot.slane %v5023_v45, 1  ;;  %v1656_v42 = vld [vmem:[#allocation2 + $0x238] sm:$0x1]  ;;  %v16486_v47 = vpack.c.bf16 %v16453_v2, %v1654_v44  ;;  %5543 = vmatpush1.bf16.msra.mxu0 %v14986_v59  ;;  %2857 = vmatprep.subr.bf16.mxu1 %v16464_v6 }
 0x177   : > { %v16491_v8 = vld [vmem:[%s20954_s3 + $0x1a4] ss:$8 sps:$4 sm:$0xff]   ;;  %v16494_v54 = vsel %vm1917_vm5, %v5033_v40, %v5037_v56  ;;  %v1069_v4 = vmul.f32 0.01, %v925_v50  ;;  %vm1006_vm3 = vcmp.gt.f32.partialorder %v927_v46, 0.0  ;;  %vm1007_vm4 = vcmp.gt.f32.partialorder %v929_v34, 0.0  ;;  %5544 = vmatprep.subr.bf16.mxu0 %v14994_v60  ;;  %2858 = vmatpush1.bf16.msra.mxu1 %v16476_v12 }
 0x178   : > { %21196 = vst [vmem:[#allocation29_spill] sm:$0xff] %v16494_v54  ;;  %v14992_v29 = vld [vmem:[%s20954_s3 + $0x50] ss:$8 sps:$4 sm:$0xff]   ;;  %13258 = vmatprep.mubr.msk.bf16.mxu0 %vm281_vm2, %v16494_v54  ;;  %v5021_v44 = vor.u32 %v5020_v13, %v5016_v20  ;;  %v1070_v1 = vmul.f32 0.01, %v927_v46  ;;  %vm1008_vm6 = vcmp.gt.f32.partialorder %v931_v27, 0.0  ;;  %v1728_v37 = vpack.c.bf16 %v1656_v42, %v1656_v42  ;;  %2859 = vmatprep.subr.bf16.mxu1 %v16491_v8 }
 0x179   : > { %v1071_v45 = vmul.f32 0.01, %v929_v34  ;;  %v1133_v56 = vsel %vm1005_vm1, %v925_v50, %v1069_v4  ;;  %v1072_v40 = vmul.f32 0.01, %v931_v27  ;;  %v1513_v7 = vld [vmem:[#allocation2 + $0x90] sm:$0xff]  ;;  %v5052_v60 = vshrl.u32 %v16486_v47, 16 }
 0x17a   : > { %v16506_v59 = vld [vmem:[%s20954_s3 + $0x1a0] ss:$8 sps:$4 sm:$0xff]   ;;  %v14997_v20 = vld [vmem:[%s20954_s3 + $0x64] ss:$8 sps:$4 sm:$0xff]   ;;  %v16512_v13 = vsel %vm1917_vm5, %v5021_v44, %v5025_v5  ;;  %v1288_v54 = vrot.slane %v1133_v56, 7  ;;  %v1134_v50 = vsel %vm1006_vm3, %v927_v46, %v1070_v1  ;;  %v5059_v44 = vshll.u32 %v1728_v37, 16  ;;  %5545 = vmatpush1.bf16.msra.mxu0 %v14992_v29 }
 0x17b   : > { %21197 = vst [vmem:[#allocation30_spill] sm:$0xff] %v16512_v13  ;;  %v1135_v4 = vsel %vm1007_vm4, %v929_v34, %v1071_v45  ;;  %v1653_v43 = vld [vmem:[#allocation2 + $0x210] sm:$0xfe]  ;;  %v1655_v42 = vld [vmem:[#allocation2 + $0x230] sm:$0x1]  ;;  %5356 = vmatmul.mubr.bf16.gmra.mrb[72].mxu0 %v16512_v13  ;;  %v1289_v26 = vrot.slane %v1134_v50, 7  ;;  %v1136_v21 = vsel %vm1008_vm6, %v931_v27, %v1072_v40  ;;  %5546 = vmatprep.subr.bf16.mxu0 %v14997_v20 }
 0x17c   : > { %v1290_v61 = vrot.slane %v1135_v4, 7  ;;  %v16522_v5 = vld [vmem:[%s20954_s3 + $0x1b4] ss:$8 sps:$4 sm:$0xff]   ;;  %1483 = vst [vmem:[#allocation2 + $0x2a0] sm:$0xfe] %v1288_v54  ;;  %v1292_v46 = vrot.slane %v1136_v21, 7  ;;  %v1725_v37 = vpack.c.bf16 %v16281_v53, %v1653_v43  ;;  %v935_v50 = vadd.f32 %v16377_v3, %v16030_v57  ;;  %2860 = vmatpush1.bf16.msra.mxu1 %v16506_v59 }
 0x17d   : > { %v5054_v34 = vshll.u32 %v16486_v47, 16  ;;  %v16525_v1 = vld [vmem:[#allocation2 + $0xa0] sm:$0xff]  ;;  %v1518_v27 = vld [vmem:[#allocation2 + $0xc8] sm:$0xff]  ;;  %1484 = vst.msk [vmem:[#allocation2 + $0x2a8] sm:$0xfe] %vm1404_vm8, %v1289_v26  ;;  %v1727_v47 = vpack.c.bf16 %v1655_v42, %v1655_v42  ;;  %v16539_v40 = vld [vmem:[#allocation2 + $0xd8] sm:$0xff]  ;;  %v937_v3 = vadd.f32 %v16388_v51, %v16033_v58  ;;  %2861 = vmatprep.subr.bf16.mxu1 %v16522_v5 }
 0x17e   : > { %v16528_v45 = vpack.c.bf16 %v16525_v1, %v1513_v7  ;;  %v14995_v56 = vld [vmem:[%s20954_s3 + $0x60] ss:$8 sps:$4 sm:$0xff]   ;;  %v16536_v21 = vsel %vm1209_vm10, %v1288_v54, %v1290_v61  ;;  %1487 = vst [vmem:[#allocation2 + $0x2c0] sm:$0x1] %v1290_v61  ;;  %v16542_v7 = vpack.c.bf16 %v16539_v40, %v1518_v27  ;;  %v16547_v29 = vld [vmem:[%s20954_s3 + $0x1b0] ss:$8 sps:$4 sm:$0xff]   ;;  %v1293_v61 = vsel %vm1209_vm10, %v1289_v26, %v1292_v46 }
 0x17f   : > { %v15003_v54 = vld [vmem:[%s20954_s3 + $0x74] ss:$8 sps:$4 sm:$0xff]   ;;  %1485 = vst [vmem:[#allocation2 + $0x2b0] sm:$0xff] %v16536_v21  ;;  %1488 = vst.msk [vmem:[#allocation2 + $0x2c8] sm:$0x1] %vm1409_vm12, %v1292_v46  ;;  %v5056_v53 = vrot.slane %v5054_v34, 1  ;;  %5547 = vmatpush1.bf16.msra.mxu0 %v14995_v56 }
 0x180   : > { %21198 = vst [vmem:[#allocation31_spill] sm:$0xff] %v16528_v45  ;;  %21199 = vst [vmem:[#allocation32_spill] sm:$0xff] %v16542_v7  ;;  %v5061_v43 = vrot.slane %v5059_v44, 1  ;;  %2563 = vmatmul.mubr.bf16.gmra.mrb[12].mxu1 %v16528_v45  ;;  %v16561_v20 = vld [vmem:[%s20954_s3 + $0x1c4] ss:$8 sps:$4 sm:$0xff]   ;;  %v5040_v26 = vshrl.u32 %v1725_v37, 16  ;;  %5548 = vmatprep.subr.bf16.mxu0 %v15003_v54  ;;  %v941_v54 = vadd.f32 %v16404_v18, %v16033_v58 }
 0x181   : > { %v15001_v4 = vld [vmem:[%s20954_s3 + $0x70] ss:$8 sps:$4 sm:$0xff]   ;;  %1486 = vst.msk [vmem:[#allocation2 + $0x2b8] sm:$0xff] %vm281_vm2, %v1293_v61  ;;  %v5042_v42 = vshll.u32 %v1725_v37, 16  ;;  %v5047_v46 = vshll.u32 %v1727_v47, 16  ;;  %12876 = vmatprep.mubr.msk.bf16.mxu1 %vm281_vm2, %v16542_v7  ;;  %v5057_v27 = vor.u32 %v5056_v53, %v5052_v60  ;;  %vm1009_vm7 = vcmp.gt.f32.partialorder %v935_v50, 0.0  ;;  %2862 = vmatpush1.bf16.msra.mxu1 %v16547_v29 }
 0x182   : > { %v1658_v34 = vld [vmem:[#allocation2 + $0x248] sm:$0xfe]  ;;  %v1073_v13 = vmul.f32 0.01, %v935_v50  ;;  %v939_v37 = vadd.f32 %v16393_v19, %v16030_v57  ;;  %v1660_v47 = vld [vmem:[#allocation2 + $0x268] sm:$0x1]  ;;  %2863 = vmatprep.subr.bf16.mxu1 %v16561_v20 }
 0x183   : > { %v15006_v44 = vld [vmem:[%s20954_s3 + $0x84] ss:$8 sps:$4 sm:$0xff]   ;;  %v5044_v61 = vrot.slane %v5042_v42, 1  ;;  %v5049_v39 = vrot.slane %v5047_v46, 1  ;;  %vm1010_vm9 = vcmp.gt.f32.partialorder %v937_v3, 0.0  ;;  %v16578_v36 = vld [vmem:[#allocation2 + $0x258] sm:$0xff]  ;;  %v16581_v32 = vsel %vm1917_vm5, %v5057_v27, %v5061_v43  ;;  %5549 = vmatpush1.bf16.msra.mxu0 %v15001_v4 }
 0x184   : > { %v1074_v51 = vmul.f32 0.01, %v937_v3  ;;  %21200 = vst [vmem:[#allocation33_spill] sm:$0xff] %v16581_v32  ;;  %v1137_v60 = vsel %vm1009_vm7, %v935_v50, %v1073_v13  ;;  %vm1011_vm11 = vcmp.gt.f32.partialorder %v939_v37, 0.0  ;;  %v1075_v53 = vmul.f32 0.01, %v939_v37  ;;  %13259 = vmatprep.mubr.msk.bf16.mxu0 %vm281_vm2, %v16581_v32  ;;  %5550 = vmatprep.subr.bf16.mxu0 %v15006_v44 }
 0x185   : > { %v16586_v19 = vld [vmem:[%s20954_s3 + $0x1c0] ss:$8 sps:$4 sm:$0xff]   ;;  %v5045_v56 = vor.u32 %v5044_v61, %v5040_v26  ;;  %v1294_v42 = vrot.slane %v1137_v60, 7  ;;  %v16599_v43 = vld [vmem:[%s20954_s3 + $0x1d4] ss:$8 sps:$4 sm:$0xff]   ;;  %v1730_v26 = vpack.c.bf16 %v16578_v36, %v1658_v34  ;;  %vm1012_vm13 = vcmp.gt.f32.partialorder %v941_v54, 0.0 }
 0x186   : > { %v1138_v46 = vsel %vm1010_vm9, %v937_v3, %v1074_v51  ;;  %v15004_v13 = vld [vmem:[%s20954_s3 + $0x80] ss:$8 sps:$4 sm:$0xff]   ;;  %v1139_v27 = vsel %vm1011_vm11, %v939_v37, %v1075_v53  ;;  %v1732_v3 = vpack.c.bf16 %v1660_v47, %v1660_v47  ;;  %v1076_v32 = vmul.f32 0.01, %v941_v54  ;;  %v16609_v37 = vld [vmem:[%s20954_s3 + $0x1d0] ss:$8 sps:$4 sm:$0xff]   ;;  %2864 = vmatpush1.bf16.msra.mxu1 %v16586_v19 }
 0x187   : > { %v1295_v50 = vrot.slane %v1138_v46, 7  ;;  %v1657_v61 = vld [vmem:[#allocation2 + $0x240] sm:$0xfe]  ;;  %v1659_v51 = vld [vmem:[#allocation2 + $0x260] sm:$0x1]  ;;  %v16604_v18 = vsel %vm1917_vm5, %v5045_v56, %v5049_v39  ;;  %v1296_v60 = vrot.slane %v1139_v27, 7  ;;  %2865 = vmatprep.subr.bf16.mxu1 %v16599_v43  ;;  %5551 = vmatpush1.bf16.msra.mxu0 %v15004_v13 }
 0x188   : > { %21201 = vst [vmem:[#allocation34_spill] sm:$0xff] %v16604_v18  ;;  %1489 = vst [vmem:[#allocation2 + $0x2d0] sm:$0xfe] %v1294_v42  ;;  %5366 = vmatmul.mubr.bf16.gmra.mrb[76].mxu0 %v16604_v18  ;;  %v5076_v34 = vshrl.u32 %v1730_v26, 16  ;;  %v5078_v4 = vshll.u32 %v1730_v26, 16  ;;  %v5083_v47 = vshll.u32 %v1732_v3, 16  ;;  %v1140_v27 = vsel %vm1012_vm13, %v941_v54, %v1076_v32 }
 0x189   : > { %1490 = vst.msk [vmem:[#allocation2 + $0x2d8] sm:$0xfe] %vm1404_vm8, %v1295_v50  ;;  %v16613_v39 = vld [vmem:[#allocation2 + $0xd0] sm:$0xff]  ;;  %v16618_v56 = vld [vmem:[#allocation2 + $0x288] sm:$0xff]  ;;  %v1662_v44 = vld [vmem:[#allocation2 + $0x278] sm:$0xfe]  ;;  %v16621_v46 = vsel %vm1209_vm10, %v1294_v42, %v1296_v60  ;;  %v1729_v18 = vpack.c.bf16 %v16353_v35, %v1657_v61  ;;  %v1731_v9 = vpack.c.bf16 %v1659_v51, %v1659_v51 }
 0x18a   : > { %v16616_v53 = vpack.c.bf16 %v16613_v39, %v1517_v25  ;;  %21203 = vst [vmem:[#allocation36_spill] sm:$0xff] %v16621_v46  ;;  %1493 = vst [vmem:[#allocation2 + $0x2f0] sm:$0x1] %v1296_v60  ;;  %v1664_v22 = vld [vmem:[#allocation2 + $0x298] sm:$0x1]  ;;  %v1298_v32 = vrot.slane %v1140_v27, 7  ;;  %v1734_v55 = vpack.c.bf16 %v16618_v56, %v1662_v44  ;;  %2866 = vmatpush1.bf16.msra.mxu1 %v16609_v37 }
 0x18b   : > { %v15010_v25 = vld [vmem:[%s20954_s3 + $0x90] ss:$8 sps:$4 sm:$0xff]   ;;  %v15012_v26 = vld [vmem:[%s20954_s3 + $0x94] ss:$8 sps:$4 sm:$0xff]   ;;  %v16635_v42 = vld [vmem:[%s20954_s3 + $0x1e4] ss:$8 sps:$4 sm:$0xff]  }
 0x18c   : > { %21202 = vst [vmem:[#allocation35_spill] sm:$0xff] %v16616_v53  ;;  %1491 = vst [vmem:[#allocation2 + $0x2e0] sm:$0xff] %v16621_v46  ;;  %v5080_v35 = vrot.slane %v5078_v4, 1  ;;  %v5085_v54 = vrot.slane %v5083_v47, 1  ;;  %2573 = vmatmul.mubr.bf16.gmra.mrb[16].mxu1 %v16616_v53  ;;  %v16639_v3 = vld [vmem:[#allocation2 + $0x108] sm:$0xff]  ;;  %v5064_v60 = vshrl.u32 %v1729_v18, 16  ;;  %v1299_v4 = vsel %vm1209_vm10, %v1295_v50, %v1298_v32  ;;  %5552 = vmatprep.subr.bf16.mxu0 %v15012_v26 }
 0x18d   : > { %v16642_v61 = vpack.c.bf16 %v16639_v3, %v1522_v38  ;;  %v1661_v51 = vld [vmem:[#allocation2 + $0x270] sm:$0xfe]  ;;  %v5066_v11 = vshll.u32 %v1729_v18, 16  ;;  %v5071_v24 = vshll.u32 %v1731_v9, 16  ;;  %v1663_v0 = vld [vmem:[#allocation2 + $0x290] sm:$0x1]  ;;  %v1736_v38 = vpack.c.bf16 %v1664_v22, %v1664_v22  ;;  %3116 = vmatprep.subr.bf16.mxu1 %v16635_v42  ;;  %5553 = vmatpush1.bf16.msra.mxu0 %v15010_v25 }
 0x18e   : > { %1494 = vst.msk [vmem:[#allocation2 + $0x2f8] sm:$0x1] %vm1409_vm12, %v1298_v32  ;;  %v5081_v47 = vor.u32 %v5080_v35, %v5076_v34  ;;  %v16650_v27 = vld [vmem:[#allocation2 + $0x2b8] sm:$0xff]  ;;  %v1666_v53 = vld [vmem:[#allocation2 + $0x2a8] sm:$0xfe]  ;;  %v5100_v44 = vshrl.u32 %v1734_v55, 16  ;;  %v1733_v32 = vpack.c.bf16 %v16443_v48, %v1661_v51  ;;  %v1735_v35 = vpack.c.bf16 %v1663_v0, %v1663_v0 }
 0x18f   : > { %21204 = vst [vmem:[#allocation37_spill] sm:$0xff] %v16642_v61  ;;  %12877 = vmatprep.mubr.msk.bf16.mxu1 %vm281_vm2, %v16642_v61  ;;  %v15027_v9 = vld [vmem:[%s20954_s3 + $0x144] ss:$8 sps:$4 sm:$0xff]   ;;  %1492 = vst.msk [vmem:[#allocation2 + $0x2e8] sm:$0xff] %vm281_vm2, %v1299_v4  ;;  %v5068_v18 = vrot.slane %v5066_v11, 1  ;;  %v5073_v13 = vrot.slane %v5071_v24, 1 }
 0x190   : > { %v5102_v50 = vshll.u32 %v1734_v55, 16  ;;  %v16658_v34 = vsel %vm1917_vm5, %v5081_v47, %v5085_v54  ;;  %v5107_v22 = vshll.u32 %v1736_v38, 16  ;;  %v1668_v61 = vld [vmem:[#allocation2 + $0x2c8] sm:$0x1]  ;;  %v16664_v4 = vld [vmem:[#allocation2 + $0x100] sm:$0xff]  ;;  %v1738_v54 = vpack.c.bf16 %v16650_v27, %v1666_v53  ;;  %5851 = vmatprep.subr.bf16.mxu0 %v15027_v9 }
 0x191   : > { %21205 = vst [vmem:[#allocation38_spill] sm:$0xff] %v16658_v34  ;;  %13260 = vmatprep.mubr.msk.bf16.mxu0 %vm281_vm2, %v16658_v34  ;;  %v5069_v11 = vor.u32 %v5068_v18, %v5064_v60  ;;  %v16667_v55 = vpack.c.bf16 %v16664_v4, %v1521_v10  ;;  %v1526_v26 = vld [vmem:[#allocation2 + $0x128] sm:$0xff]  ;;  %v1665_v47 = vld [vmem:[#allocation2 + $0x2a0] sm:$0xfe]  ;;  %v5088_v0 = vshrl.u32 %v1733_v32, 16  ;;  %v5090_v38 = vshll.u32 %v1733_v32, 16 }
 0x192   : > { %v5104_v24 = vrot.slane %v5102_v50, 1  ;;  %v5109_v51 = vrot.slane %v5107_v22, 1  ;;  %v5095_v7 = vshll.u32 %v1735_v35, 16  ;;  %v1667_v45 = vld [vmem:[#allocation2 + $0x2c0] sm:$0x1]  ;;  %v16673_v18 = vld [vmem:[#allocation2 + $0x138] sm:$0xff]  ;;  %v1740_v50 = vpack.c.bf16 %v1668_v61, %v1668_v61 }
 0x193   : > { %21206 = vst [vmem:[#allocation39_spill] sm:$0xff] %v16667_v55  ;;  %v16671_v34 = vsel %vm1917_vm5, %v5069_v11, %v5073_v13  ;;  %v16676_v10 = vpack.c.bf16 %v16673_v18, %v1526_v26  ;;  %v5092_v53 = vrot.slane %v5090_v38, 1  ;;  %v5124_v22 = vshrl.u32 %v1738_v54, 16  ;;  %v1670_v61 = vld [vmem:[#allocation2 + $0x2d8] sm:$0xfe] }
 0x194   : > { %21207 = vst [vmem:[#allocation40_spill] sm:$0xff] %v16671_v34  ;;  %v5105_v60 = vor.u32 %v5104_v24, %v5100_v44  ;;  %5376 = vmatmul.mubr.bf16.gmra.mrb[80].mxu0 %v16671_v34  ;;  %2583 = vmatmul.mubr.bf16.gmra.mrb[20].mxu1 %v16667_v55  ;;  %v5097_v25 = vrot.slane %v5095_v7, 1  ;;  %v5126_v32 = vshll.u32 %v1738_v54, 16  ;;  %v5131_v13 = vshll.u32 %v1740_v50, 16  ;;  %v1525_v44 = vld [vmem:[#allocation2 + $0x120] sm:$0xff] }
 0x195   : > { %21208 = vst [vmem:[#allocation41_spill] sm:$0xff] %v16676_v10  ;;  %12878 = vmatprep.mubr.msk.bf16.mxu1 %vm281_vm2, %v16676_v10  ;;  %v1737_v35 = vpack.c.bf16 %v16536_v21, %v1665_v47  ;;  %v1739_v11 = vpack.c.bf16 %v1667_v45, %v1667_v45  ;;  %v1672_v24 = vld [vmem:[#allocation2 + $0x2f8] sm:$0x1]  ;;  %v5093_v26 = vor.u32 %v5092_v53, %v5088_v0  ;;  %v16690_v10 = vld [vmem:[#allocation2 + $0x130] sm:$0xff]  ;;  %vm2645_vm14 = vcmask 1046528  }
 0x196   : > { %v16681_v9 = vsel %vm1917_vm5, %v5105_v60, %v5109_v51  ;;  %v5128_v7 = vrot.slane %v5126_v32, 1  ;;  %v16688_v38 = vld [vmem:[#allocation2 + $0x2e8] sm:$0xff]  ;;  %v1744_v54 = vpack.c.bf16 %v1672_v24, %v1672_v24  ;;  %v1669_v51 = vld [vmem:[#allocation2 + $0x2d0] sm:$0xfe]  ;;  %v5133_v60 = vrot.slane %v5131_v13, 1 }
 0x197   : > { %21209 = vst [vmem:[#allocation42_spill] sm:$0xff] %v16681_v9  ;;  %13261 = vmatprep.mubr.msk.bf16.mxu0 %vm281_vm2, %v16681_v9  ;;  %21210 = vst [vmem:[#allocation43_spill] sm:$0xff] %v16688_v38  ;;  %v5114_v34 = vshll.u32 %v1737_v35, 16  ;;  %v16693_v50 = vpack.c.bf16 %v16690_v10, %v1525_v44  ;;  %v5112_v45 = vshrl.u32 %v1737_v35, 16  ;;  %v1742_v47 = vpack.c.bf16 %v16688_v38, %v1670_v61  ;;  %v1671_v30 = vld [vmem:[#allocation2 + $0x2f0] sm:$0x1] }
 0x198   : > { %v5129_v55 = vor.u32 %v5128_v7, %v5124_v22  ;;  %v16697_v9 = vsel %vm1917_vm5, %v5093_v26, %v5097_v25  ;;  %v5119_v53 = vshll.u32 %v1739_v11, 16  ;;  %v1741_v32 = vpack.c.bf16 %v16621_v46, %v1669_v51  ;;  %v1754_v24 = vld [vmem:[#allocation2 + $0x8] sm:$0xfc]  ;;  %v1756_v13 = vld [vmem:[#allocation2 + $0x28] sm:$0x3]  ;;  %v1530_v7 = vld [vmem:[#allocation2 + $0x158] sm:$0xff] }
 0x199   : > { %21211 = vst [vmem:[#allocation44_spill] sm:$0xff] %v16693_v50  ;;  %21212 = vst [vmem:[#allocation45_spill] sm:$0xff] %v16697_v9  ;;  %v5116_v0 = vrot.slane %v5114_v34, 1  ;;  %v5148_v62 = vshrl.u32 %v1742_v47, 16  ;;  %v5150_v44 = vshll.u32 %v1742_v47, 16  ;;  %v5155_v49 = vshll.u32 %v1744_v54, 16 }
 0x19a   : > { %v16701_v22 = vsel %vm1917_vm5, %v5129_v55, %v5133_v60  ;;  %v16703_v35 = vld [vmem:[#allocation2 + $0x168] sm:$0xff]  ;;  %v1743_v25 = vpack.c.bf16 %v1671_v30, %v1671_v30  ;;  %v5138_v11 = vshll.u32 %v1741_v32, 16  ;;  %v15393_v26 = vld [vmem:[#allocation2 + $0x18] sm:$0xff]  ;;  %v1828_v55 = vpack.c.bf16 %v1756_v13, %v1756_v13  ;;  %v1753_v47 = vld [vmem:[#allocation2] sm:$0xfc] }
 0x19b   : > { %21213 = vst [vmem:[#allocation46_spill] sm:$0xff] %v16701_v22  ;;  %v16706_v61 = vpack.c.bf16 %v16703_v35, %v1530_v7  ;;  %v5152_v34 = vrot.slane %v5150_v44, 1  ;;  %v1826_v51 = vpack.c.bf16 %v15393_v26, %v1754_v24  ;;  %v5117_v60 = vor.u32 %v5116_v0, %v5112_v45  ;;  %v1755_v46 = vld [vmem:[#allocation2 + $0x20] sm:$0x3]  ;;  %v15394_v13 = vld [vmem:[#allocation2 + $0x10] sm:$0xff] }
 0x19c   : > { %5386 = vmatmul.mubr.bf16.gmra.mrb[84].mxu0 %v16697_v9  ;;  %2593 = vmatmul.mubr.bf16.gmra.mrb[24].mxu1 %v16693_v50  ;;  %v5121_v54 = vrot.slane %v5119_v53, 1  ;;  %v5157_v30 = vrot.slane %v5155_v49, 1  ;;  %v2650_v9 = vrot.slane %v1828_v55, 1  ;;  %v1529_v50 = vld [vmem:[#allocation2 + $0x150] sm:$0xff]  ;;  %v5136_v44 = vshrl.u32 %v1741_v32, 16  ;;  %v16720_v26 = vld [vmem:[#allocation2 + $0x160] sm:$0xff] }
 0x19d   : > { %13262 = vmatprep.mubr.msk.bf16.mxu0 %vm281_vm2, %v16701_v22  ;;  %12879 = vmatprep.mubr.msk.bf16.mxu1 %vm281_vm2, %v16706_v61  ;;  %v5153_v7 = vor.u32 %v5152_v34, %v5148_v62  ;;  %v2649_v52 = vrot.slane %v1826_v51, 1  ;;  %v5140_v63 = vrot.slane %v5138_v11, 1  ;;  %v5143_v38 = vshll.u32 %v1743_v25, 16  ;;  %v1760_v32 = vld [vmem:[#allocation2 + $0x58] sm:$0x3] }
 0x19e   : > { %v16715_v24 = vsel %vm1917_vm5, %v5117_v60, %v5121_v54  ;;  %v1825_v45 = vpack.c.bf16 %v15394_v13, %v1753_v47  ;;  %v1827_v0 = vpack.c.bf16 %v1755_v46, %v1755_v46  ;;  %v16723_v49 = vpack.c.bf16 %v16720_v26, %v1529_v50  ;;  %v1758_v11 = vld [vmem:[#allocation2 + $0x38] sm:$0xfc]  ;;  %v1534_v46 = vld [vmem:[#allocation2 + $0x188] sm:$0xff] }
 0x19f   : > { %21214 = vst [vmem:[#allocation47_spill] sm:$0xff] %v16715_v24  ;;  %v16718_v53 = vsel %vm1917_vm5, %v5153_v7, %v5157_v30  ;;  %v2651_v62 = vsel %vm2645_vm14, %v2649_v52, %v2650_v9  ;;  %v5141_v25 = vor.u32 %v5140_v63, %v5136_v44  ;;  %v5145_v34 = vrot.slane %v5143_v38, 1  ;;  %v15396_v50 = vld [vmem:[#allocation2 + $0x48] sm:$0xff]  ;;  %v1759_v9 = vld [vmem:[#allocation2 + $0x50] sm:$0x3] }
 0x1a0   : > { %21215 = vst [vmem:[#allocation48_spill] sm:$0xff] %v16718_v53  ;;  %v2646_v51 = vrot.slane %v1825_v45, 1  ;;  %v2647_v55 = vrot.slane %v1827_v0, 1  ;;  %v1830_v60 = vpack.c.bf16 %v15396_v50, %v1758_v11  ;;  %v1832_v54 = vpack.c.bf16 %v1760_v32, %v1760_v32  ;;  %v16734_v52 = vld [vmem:[%s20954_s3 + $0x1e0] ss:$8 sps:$4 sm:$0xff]   ;;  %v15397_v11 = vld [vmem:[#allocation2 + $0x78] sm:$0xff] }
 0x1a1   : > { %v16737_v63 = vpack.c.bf16 %v16261_v28, %v1534_v46  ;;  %v16742_v38 = vld [vmem:[%s20954_s3 + $0x1f4] ss:$8 sps:$4 sm:$0xff]   ;;  %v1764_v47 = vld [vmem:[#allocation2 + $0x88] sm:$0x3]  ;;  %v16745_v7 = vsel %vm1917_vm5, %v5141_v25, %v5145_v34  ;;  %v1831_v0 = vpack.c.bf16 %v1759_v9, %v1759_v9  ;;  %v1533_v28 = vld [vmem:[#allocation2 + $0x180] sm:$0xff] }
 0x1a2   : > { %21216 = vst [vmem:[#allocation49_spill] sm:$0xff] %v16745_v7  ;;  %v2648_v30 = vsel %vm2645_vm14, %v2646_v51, %v2647_v55  ;;  %v2655_v44 = vrot.slane %v1830_v60, 1  ;;  %v2656_v13 = vrot.slane %v1832_v54, 1  ;;  %v1757_v45 = vld [vmem:[#allocation2 + $0x30] sm:$0xfc]  ;;  %v1836_v25 = vpack.c.bf16 %v1764_v47, %v1764_v47  ;;  %v1538_v51 = vld [vmem:[#allocation2 + $0x1b8] sm:$0xff] }
 0x1a3   : > { %v16752_v32 = vld [vmem:[%s20954_s3 + $0x1f0] ss:$8 sps:$4 sm:$0xff]   ;;  %v15398_v55 = vld [vmem:[#allocation2 + $0x40] sm:$0xff]  ;;  %v2653_v9 = vrot.slane %v1831_v0, 1 }
 0x1a4   : > { %5396 = vmatmul.mubr.bf16.gmra.mrb[88].mxu0 %v16715_v24  ;;  %2603 = vmatmul.mubr.bf16.gmra.mrb[28].mxu1 %v16723_v49  ;;  %v16758_v34 = vsel %vm2645_vm14, %v2655_v44, %v2656_v13  ;;  %v1829_v50 = vpack.c.bf16 %v15398_v55, %v1757_v45  ;;  %v16763_v60 = vld [vmem:[%s20954_s3 + $0x204] ss:$8 sps:$4 sm:$0xff]   ;;  %v1763_v54 = vld [vmem:[#allocation2 + $0x80] sm:$0x3]  ;;  %v1768_v47 = vld [vmem:[#allocation2 + $0xb8] sm:$0x3]  ;;  %v16780_v55 = vpack.c.bf16 %v16311_v23, %v1538_v51 }
 0x1a5   : > { %13263 = vmatprep.mubr.msk.bf16.mxu0 %vm281_vm2, %v16718_v53  ;;  %12920 = vmatprep.mubr.msk.bf16.mxu1 %vm281_vm2, %v2651_v62  ;;  %v1762_v62 = vld [vmem:[#allocation2 + $0x68] sm:$0xfc]  ;;  %21217 = vst [vmem:[#allocation50_spill] sm:$0xff] %v16758_v34  ;;  %v2662_v45 = vrot.slane %v1836_v25, 1  ;;  %v1835_v53 = vpack.c.bf16 %v1763_v54, %v1763_v54  ;;  %v15033_v23 = vld [vmem:[%s20954_s3 + $0x154] ss:$8 sps:$4 sm:$0xff]   ;;  %v1840_v24 = vpack.c.bf16 %v1768_v47, %v1768_v47 }
 0x1a6   : > { %v1834_v46 = vpack.c.bf16 %v15397_v11, %v1762_v62  ;;  %v16776_v62 = vld [vmem:[%s20954_s3 + $0x200] ss:$8 sps:$4 sm:$0xff]   ;;  %21218 = vst [vmem:[#allocation51_spill] sm:$0xff] %v16780_v55  ;;  %v2652_v0 = vrot.slane %v1829_v50, 1  ;;  %v15039_v47 = vld [vmem:[%s20954_s3 + $0x164] ss:$8 sps:$4 sm:$0xff]  }
 0x1a7   : > { %v1761_v11 = vld [vmem:[#allocation2 + $0x60] sm:$0xfc]  ;;  %v2668_v22 = vrot.slane %v1840_v24, 1 }
 0x1a8   : > { %v2661_v13 = vrot.slane %v1834_v46, 1  ;;  %v15025_v46 = vld [vmem:[%s20954_s3 + $0x140] ss:$8 sps:$4 sm:$0xff]   ;;  %v16792_v25 = vsel %vm2645_vm14, %v2652_v0, %v2653_v9  ;;  %v1537_v9 = vld [vmem:[#allocation2 + $0x1b0] sm:$0xff]  ;;  %v1833_v54 = vpack.c.bf16 %v16431_v16, %v1761_v11  ;;  %v16821_v16 = vld [vmem:[%s20954_s3 + $0x224] ss:$8 sps:$4 sm:$0xff]  }
 0x1a9   : > { %21219 = vst [vmem:[#allocation52_spill] sm:$0xff] %v16792_v25  ;;  %v1542_v0 = vld [vmem:[#allocation2 + $0x1e8] sm:$0xff] }
 0x1aa   : > { %v16800_v51 = vsel %vm2645_vm14, %v2661_v13, %v2662_v45  ;;  %v16812_v13 = vld [vmem:[%s20954_s3 + $0x210] ss:$8 sps:$4 sm:$0xff]   ;;  %v16826_v45 = vld [vmem:[#allocation2 + $0x1c0] sm:$0xff] }
 0x1ab   : > { %21220 = vst [vmem:[#allocation53_spill] sm:$0xff] %v16800_v51  ;;  %v16829_v11 = vpack.c.bf16 %v16826_v45, %v1537_v9  ;;  %v1770_v9 = vld [vmem:[#allocation2 + $0xc8] sm:$0xfc] }
 0x1ac   : > { %5406 = vmatmul.mubr.bf16.gmra.mrb[92].mxu0 %v16745_v7  ;;  %2880 = vmatmul.mubr.bf16.vlgmr.msra.gmra.mrb[0].mxu1 %v2648_v30  ;;  %v16768_v30 = vld [vmem:[#allocation2 + $0x190] sm:$0xff]  ;;  %v1766_v7 = vld [vmem:[#allocation2 + $0x98] sm:$0xfc] }
 0x1ad   : > { %13284 = vmatprep.mubr.msk.bf16.mxu0 %vm281_vm2, %v16737_v63  ;;  %3117 = vmatpush1.bf16.msra.mxu1 %v16734_v52  ;;  %v16771_v44 = vpack.c.bf16 %v16768_v30, %v1533_v28  ;;  %v16785_v28 = vld [vmem:[%s20954_s3 + $0x214] ss:$8 sps:$4 sm:$0xff]   ;;  %v1838_v50 = vpack.c.bf16 %v16447_v41, %v1766_v7  ;;  %v15031_v41 = vld [vmem:[%s20954_s3 + $0x150] ss:$8 sps:$4 sm:$0xff]   ;;  %v2659_v7 = vrot.slane %v1835_v53, 1 }
 0x1ae   : > { %12921 = vmatprep.mubr.msk.bf16.mxu1 %vm281_vm2, %v16758_v34  ;;  %3118 = vmatprep.subr.bf16.mxu1 %v16742_v38  ;;  %v1767_v53 = vld [vmem:[#allocation2 + $0xb0] sm:$0x3]  ;;  %v1772_v34 = vld [vmem:[#allocation2 + $0xe8] sm:$0x3] }
 0x1b1   : > { %3119 = vmatpush1.bf16.msra.mxu1 %v16752_v32 }
 0x1b2   : > { %3120 = vmatprep.subr.bf16.mxu1 %v16763_v60 }
 0x1b4   : > { %5567 = vmatmul.mubr.bf16.vlgmr.msra.gmra.mrb[64].mxu0 %v16771_v44  ;;  %2890 = vmatmul.mubr.bf16.gmra.mrb[4].mxu1 %v16792_v25  ;;  %v2658_v25 = vrot.slane %v1833_v54, 1  ;;  %v16850_v54 = vld [vmem:[%s20954_s3 + $0x234] ss:$8 sps:$4 sm:$0xff]  }
 0x1b5   : > { %13285 = vmatprep.mubr.msk.bf16.mxu0 %vm281_vm2, %v16780_v55  ;;  %12922 = vmatprep.mubr.msk.bf16.mxu1 %vm281_vm2, %v16800_v51  ;;  %v16832_v51 = vpack.c.bf16 %v16386_v33, %v1542_v0  ;;  %v16838_v55 = vld [vmem:[%s20954_s3 + $0x220] ss:$8 sps:$4 sm:$0xff]   ;;  %v1839_v33 = vpack.c.bf16 %v1767_v53, %v1767_v53 }
 0x1b6   : > { %3121 = vmatpush1.bf16.msra.mxu1 %v16776_v62  ;;  %5852 = vmatpush1.bf16.msra.mxu0 %v15025_v46  ;;  %v2667_v46 = vrot.slane %v1838_v50, 1  ;;  %v15037_v50 = vld [vmem:[%s20954_s3 + $0x160] ss:$8 sps:$4 sm:$0xff]   ;;  %v16844_v24 = vsel %vm2645_vm14, %v2658_v25, %v2659_v7  ;;  %v1842_v25 = vpack.c.bf16 %v16539_v40, %v1770_v9 }
 0x1b7   : > { %3122 = vmatprep.subr.bf16.mxu1 %v16785_v28  ;;  %5853 = vmatprep.subr.bf16.mxu0 %v15033_v23  ;;  %21221 = vst [vmem:[#allocation54_spill] sm:$0xff] %v16832_v51  ;;  %v1765_v23 = vld [vmem:[#allocation2 + $0x90] sm:$0xfc]  ;;  %21222 = vst [vmem:[#allocation55_spill] sm:$0xff] %v16844_v24  ;;  %v1541_v7 = vld [vmem:[#allocation2 + $0x1e0] sm:$0xff]  ;;  %v2665_v40 = vrot.slane %v1839_v33, 1 }
 0x1b8   : > { %v16855_v0 = vsel %vm2645_vm14, %v2667_v46, %v2668_v22  ;;  %v1837_v53 = vpack.c.bf16 %v16525_v1, %v1765_v23  ;;  %v16867_v22 = vld [vmem:[%s20954_s3 + $0x230] ss:$8 sps:$4 sm:$0xff]   ;;  %v2673_v23 = vrot.slane %v1842_v25, 1 }
 0x1b9   : > { %21223 = vst [vmem:[#allocation56_spill] sm:$0xff] %v16855_v0  ;;  %v16876_v1 = vld [vmem:[#allocation2 + $0x1f0] sm:$0xff] }
 0x1ba   : > { %3123 = vmatpush1.bf16.msra.mxu1 %v16812_v13  ;;  %5854 = vmatpush1.bf16.msra.mxu0 %v15031_v41  ;;  %v1844_v41 = vpack.c.bf16 %v1772_v34, %v1772_v34  ;;  %v16874_v34 = vld [vmem:[%s20954_s3 + $0x244] ss:$8 sps:$4 sm:$0xff]   ;;  %v16879_v46 = vpack.c.bf16 %v16876_v1, %v1541_v7  ;;  %v2664_v33 = vrot.slane %v1837_v53, 1 }
 0x1bb   : > { %3124 = vmatprep.subr.bf16.mxu1 %v16821_v16  ;;  %5855 = vmatprep.subr.bf16.mxu0 %v15039_v47  ;;  %v1546_v47 = vld [vmem:[#allocation2 + $0x218] sm:$0xff] }
 0x1bc   : > { %5577 = vmatmul.mubr.bf16.gmra.mrb[68].mxu0 %v16829_v11  ;;  %2900 = vmatmul.mubr.bf16.gmra.mrb[8].mxu1 %v16844_v24  ;;  %v2674_v9 = vrot.slane %v1844_v41, 1  ;;  %v1776_v24 = vld [vmem:[#allocation2 + $0x118] sm:$0x3]  ;;  %v16892_v7 = vsel %vm2645_vm14, %v2664_v33, %v2665_v40  ;;  %v1774_v41 = vld [vmem:[#allocation2 + $0xf8] sm:$0xfc]  ;;  %v1550_v40 = vld [vmem:[#allocation2 + $0x248] sm:$0xff] }
 0x1bd   : > { %13286 = vmatprep.mubr.msk.bf16.mxu0 %vm281_vm2, %v16832_v51  ;;  %12923 = vmatprep.mubr.msk.bf16.mxu1 %vm281_vm2, %v16855_v0  ;;  %v1771_v0 = vld [vmem:[#allocation2 + $0xe0] sm:$0x3]  ;;  %v1769_v51 = vld [vmem:[#allocation2 + $0xc0] sm:$0xfc]  ;;  %21225 = vst [vmem:[#allocation58_spill] sm:$0xff] %v16892_v7  ;;  %v1846_v53 = vpack.c.bf16 %v16639_v3, %v1774_v41  ;;  %v16932_v41 = vpack.c.bf16 %v16578_v36, %v1550_v40 }
 0x1be   : > { %3125 = vmatpush1.bf16.msra.mxu1 %v16838_v55  ;;  %5856 = vmatpush1.bf16.msra.mxu0 %v15037_v50  ;;  %v16882_v50 = vpack.c.bf16 %v16453_v2, %v1546_v47  ;;  %v1843_v25 = vpack.c.bf16 %v1771_v0, %v1771_v0  ;;  %v16899_v2 = vld [vmem:[%s20954_s3 + $0x254] ss:$8 sps:$4 sm:$0xff]   ;;  %v1848_v0 = vpack.c.bf16 %v1776_v24, %v1776_v24  ;;  %v16924_v24 = vld [vmem:[%s20954_s3 + $0x264] ss:$8 sps:$4 sm:$0xff]   ;;  %v1775_v33 = vld [vmem:[#allocation2 + $0x110] sm:$0x3] }
 0x1bf   : > { %3126 = vmatprep.subr.bf16.mxu1 %v16850_v54  ;;  %5857 = vmatprep.subr.bf16.mxu0 %v16375_v14  ;;  %v16889_v14 = vld [vmem:[%s20954_s3 + $0x240] ss:$8 sps:$4 sm:$0xff]   ;;  %v1545_v47 = vld [vmem:[#allocation2 + $0x210] sm:$0xff]  ;;  %21228 = vst [vmem:[#allocation61_spill] sm:$0xff] %v16932_v41 }
 0x1c0   : > { %21224 = vst [vmem:[#allocation57_spill] sm:$0xff] %v16882_v50  ;;  %v2671_v3 = vrot.slane %v1843_v25, 1  ;;  %v16949_v36 = vld [vmem:[%s20954_s3 + $0x274] ss:$8 sps:$4 sm:$0xff]  }
 0x1c2   : > { %3127 = vmatpush1.bf16.msra.mxu1 %v16867_v22  ;;  %5858 = vmatpush1.bf16.msra.mxu0 %v16402_v15  ;;  %v16904_v15 = vsel %vm2645_vm14, %v2673_v23, %v2674_v9  ;;  %v16917_v23 = vld [vmem:[%s20954_s3 + $0x250] ss:$8 sps:$4 sm:$0xff]   ;;  %v2680_v9 = vrot.slane %v1848_v0, 1  ;;  %v1778_v0 = vld [vmem:[#allocation2 + $0x128] sm:$0xfc] }
 0x1c3   : > { %3128 = vmatprep.subr.bf16.mxu1 %v16874_v34  ;;  %5859 = vmatprep.subr.bf16.mxu0 %v16425_v31  ;;  %21226 = vst [vmem:[#allocation59_spill] sm:$0xff] %v16904_v15  ;;  %v1841_v31 = vpack.c.bf16 %v16613_v39, %v1769_v51  ;;  %v16926_v39 = vld [vmem:[#allocation2 + $0x220] sm:$0xff] }
 0x1c4   : > { %5587 = vmatmul.mubr.bf16.gmra.mrb[72].mxu0 %v16879_v46  ;;  %2910 = vmatmul.mubr.bf16.gmra.mrb[12].mxu1 %v16892_v7  ;;  %v16929_v51 = vpack.c.bf16 %v16926_v39, %v1545_v47  ;;  %v1773_v7 = vld [vmem:[#allocation2 + $0xf0] sm:$0xfc] }
 0x1c5   : > { %13287 = vmatprep.mubr.msk.bf16.mxu0 %vm281_vm2, %v16882_v50  ;;  %12924 = vmatprep.mubr.msk.bf16.mxu1 %vm281_vm2, %v16904_v15  ;;  %v2670_v25 = vrot.slane %v1841_v31, 1  ;;  %v1780_v15 = vld [vmem:[#allocation2 + $0x148] sm:$0x3]  ;;  %v1850_v31 = vpack.c.bf16 %v16673_v18, %v1778_v0  ;;  %v1553_v50 = vld [vmem:[#allocation2 + $0x270] sm:$0xff] }
 0x1c6   : > { %3129 = vmatpush1.bf16.msra.mxu1 %v16889_v14  ;;  %5860 = vmatpush1.bf16.msra.mxu0 %v16440_v17  ;;  %21227 = vst [vmem:[#allocation60_spill] sm:$0xff] %v16929_v51  ;;  %v2679_v17 = vrot.slane %v1846_v53, 1  ;;  %v1847_v53 = vpack.c.bf16 %v1775_v33, %v1775_v33  ;;  %v1852_v40 = vpack.c.bf16 %v1780_v15, %v1780_v15  ;;  %v1554_v33 = vld [vmem:[#allocation2 + $0x278] sm:$0xff]  ;;  %v1779_v15 = vld [vmem:[#allocation2 + $0x140] sm:$0x3] }
 0x1c7   : > { %3130 = vmatprep.subr.bf16.mxu1 %v16899_v2  ;;  %5861 = vmatprep.subr.bf16.mxu0 %v16464_v6  ;;  %v16939_v6 = vld [vmem:[%s20954_s3 + $0x260] ss:$8 sps:$4 sm:$0xff]   ;;  %v16942_v47 = vsel %vm2645_vm14, %v2670_v25, %v2671_v3  ;;  %v1845_v3 = vpack.c.bf16 %v16664_v4, %v1773_v7  ;;  %v16974_v4 = vld [vmem:[%s20954_s3 + $0x284] ss:$8 sps:$4 sm:$0xff]   ;;  %v16976_v7 = vld [vmem:[#allocation2 + $0x250] sm:$0xff]  ;;  %v16982_v0 = vpack.c.bf16 %v16618_v56, %v1554_v33 }
 0x1c8   : > { %21229 = vst [vmem:[#allocation62_spill] sm:$0xff] %v16942_v47  ;;  %v2677_v18 = vrot.slane %v1847_v53, 1  ;;  %v2686_v25 = vrot.slane %v1852_v40, 1  ;;  %v944_v40 = vpop.f32.mrb[60].mxu0 }
 0x1c9   : > { %21231 = vst [vmem:[#allocation64_spill] sm:$0xff] %v16982_v0  ;;  %v2676_v53 = vrot.slane %v1845_v3, 1  ;;  %v17004_v3 = vpack.c.bf16 %v16443_v48, %v1553_v50  ;;  %v1783_v48 = vld [vmem:[#allocation2 + $0x170] sm:$0x3] }
 0x1ca   : > { %3131 = vmatpush1.bf16.msra.mxu1 %v16917_v23  ;;  %5862 = vmatpush1.bf16.msra.mxu0 %v16476_v12  ;;  %v16954_v12 = vsel %vm2645_vm14, %v2679_v17, %v2680_v9  ;;  %v16967_v17 = vld [vmem:[%s20954_s3 + $0x270] ss:$8 sps:$4 sm:$0xff]   ;;  %v2685_v9 = vrot.slane %v1850_v31, 1 }
 0x1cb   : > { %5863 = vmatprep.subr.bf16.mxu0 %v16491_v8  ;;  %3132 = vmatprep.subr.bf16.mxu1 %v16924_v24  ;;  %21230 = vst [vmem:[#allocation63_spill] sm:$0xff] %v16954_v12  ;;  %v1549_v8 = vld [vmem:[#allocation2 + $0x240] sm:$0xff]  ;;  %21234 = vst [vmem:[#allocation67_spill] sm:$0xff] %v17004_v3 }
 0x1cc   : > { %5597 = vmatmul.mubr.bf16.gmra.mrb[76].mxu0 %v16929_v51  ;;  %2920 = vmatmul.mubr.bf16.gmra.mrb[16].mxu1 %v16942_v47  ;;  %v1851_v47 = vpack.c.bf16 %v1779_v15, %v1779_v15  ;;  %v16987_v51 = vsel %vm2645_vm14, %v2676_v53, %v2677_v18  ;;  %v16995_v56 = vsel %vm2645_vm14, %v2685_v9, %v2686_v25 }
 0x1cd   : > { %13288 = vmatprep.mubr.msk.bf16.mxu0 %vm281_vm2, %v16932_v41  ;;  %12925 = vmatprep.mubr.msk.bf16.mxu1 %vm281_vm2, %v16954_v12  ;;  %v1784_v12 = vld [vmem:[#allocation2 + $0x178] sm:$0x3]  ;;  %v1782_v41 = vld [vmem:[#allocation2 + $0x158] sm:$0xfc]  ;;  %21232 = vst [vmem:[#allocation65_spill] sm:$0xff] %v16987_v51  ;;  %21233 = vst [vmem:[#allocation66_spill] sm:$0xff] %v16995_v56 }
 0x1ce   : > { %5864 = vmatpush1.bf16.msra.mxu0 %v16506_v59  ;;  %3133 = vmatpush1.bf16.msra.mxu1 %v16939_v6  ;;  %v16979_v59 = vpack.c.bf16 %v16976_v7, %v1549_v8  ;;  %v1558_v8 = vld [vmem:[#allocation2 + $0x2a8] sm:$0xff]  ;;  %v1854_v31 = vpack.c.bf16 %v16703_v35, %v1782_v41  ;;  %v946_v41 = vpop.f32.mrb[61].mxu0  ;;  %v2683_v18 = vrot.slane %v1851_v47, 1 }
 0x1cf   : > { %5865 = vmatprep.subr.bf16.mxu0 %v16522_v5  ;;  %3134 = vmatprep.subr.bf16.mxu1 %v16949_v36  ;;  %v1777_v5 = vld [vmem:[#allocation2 + $0x120] sm:$0xfc]  ;;  %v17007_v33 = vpack.c.bf16 %v16650_v27, %v1558_v8  ;;  %v948_v15 = vpop.f32.mrb[62].mxu0 }
 0x1d0   : > { %v1849_v35 = vpack.c.bf16 %v16690_v10, %v1777_v5  ;;  %v2691_v9 = vrot.slane %v1854_v31, 1  ;;  %v949_v25 = vadd.f32 %v948_v15, %v16030_v57  ;;  %v950_v53 = vpop.f32.mrb[63].mxu0 }
 0x1d1   : > { %21235 = vst [vmem:[#allocation68_spill] sm:$0xff] %v17007_v33  ;;  %v951_v27 = vadd.f32 %v950_v53, %v16033_v58 }
 0x1d2   : > { %5866 = vmatpush1.bf16.msra.mxu0 %v16547_v29  ;;  %3135 = vmatpush1.bf16.msra.mxu1 %v16967_v17  ;;  %v1856_v29 = vpack.c.bf16 %v1784_v12, %v1784_v12  ;;  %v947_v12 = vadd.f32 %v946_v41, %v16033_v58  ;;  %v2682_v47 = vrot.slane %v1849_v35, 1  ;;  %vm1015_vm1 = vcmp.gt.f32.partialorder %v949_v25, 0.0 }
 0x1d3   : > { %5867 = vmatprep.subr.bf16.mxu0 %v16561_v20  ;;  %3410 = vmatprep.subr.bf16.mxu1 %v16974_v4  ;;  %v945_v20 = vadd.f32 %v944_v40, %v16030_v57  ;;  %v1781_v40 = vld [vmem:[#allocation2 + $0x150] sm:$0xfc]  ;;  %vm1016_vm3 = vcmp.gt.f32.partialorder %v951_v27, 0.0  ;;  %v1080_v41 = vmul.f32 0.01, %v951_v27 }
 0x1d4   : > { %5607 = vmatmul.mubr.bf16.gmra.mrb[80].mxu0 %v16979_v59  ;;  %2930 = vmatmul.mubr.bf16.gmra.mrb[20].mxu1 %v16987_v51  ;;  %v2692_v5 = vrot.slane %v1856_v29, 1  ;;  %vm1014_vm0 = vcmp.gt.f32.partialorder %v947_v12, 0.0  ;;  %v1078_v50 = vmul.f32 0.01, %v947_v12  ;;  %v17016_v57 = vsel %vm2645_vm14, %v2682_v47, %v2683_v18 }
 0x1d5   : > { %13289 = vmatprep.mubr.msk.bf16.mxu0 %vm281_vm2, %v16982_v0  ;;  %12926 = vmatprep.mubr.msk.bf16.mxu1 %vm281_vm2, %v16995_v56  ;;  %vm1013_vm15 = vcmp.gt.f32.partialorder %v945_v20, 0.0  ;;  %v1077_v10 = vmul.f32 0.01, %v945_v20  ;;  %v1855_v29 = vpack.c.bf16 %v1783_v48, %v1783_v48  ;;  %v1144_v35 = vsel %vm1016_vm3, %v951_v27, %v1080_v41  ;;  %v15404_v27 = vld [vmem:[#allocation2 + $0x198] sm:$0xff]  ;;  %v1785_v41 = vld [vmem:[#allocation2 + $0x180] sm:$0xfc] }
 0x1d6   : > { %5868 = vmatpush1.bf16.msra.mxu0 %v16586_v19  ;;  %v1079_v19 = vmul.f32 0.01, %v949_v25  ;;  %v17022_v58 = vsel %vm2645_vm14, %v2691_v9, %v2692_v5  ;;  %v1304_v18 = vrot.slane %v1144_v35, 7  ;;  %v21242_v35 = vld [vmem:[#allocation36_spill] sm:$0xff] }
 0x1d7   : > { %5869 = vmatprep.subr.bf16.mxu0 %v16599_v43  ;;  %v1141_v8 = vsel %vm1013_vm15, %v945_v20, %v1077_v10  ;;  %v1142_v43 = vsel %vm1014_vm0, %v947_v12, %v1078_v50  ;;  %21236 = vst [vmem:[#allocation69_spill] sm:$0xff] %v17022_v58  ;;  %v1557_v20 = vld [vmem:[#allocation2 + $0x2a0] sm:$0xff]  ;;  %v1562_v12 = vld [vmem:[#allocation2 + $0x2d8] sm:$0xff]  ;;  %v2689_v9 = vrot.slane %v1855_v29, 1 }
 0x1d8   : > { %v1300_v31 = vrot.slane %v1141_v8, 7  ;;  %v1301_v15 = vrot.slane %v1142_v43, 7  ;;  %v1143_v56 = vsel %vm1015_vm1, %v949_v25, %v1079_v19  ;;  %v1788_v25 = vld [vmem:[#allocation2 + $0x1a8] sm:$0x3]  ;;  %1500 = vst.msk [vmem:[#allocation2 + $0x328] sm:$0x1] %vm1409_vm12, %v1304_v18  ;;  %v17037_v5 = vpack.c.bf16 %v16536_v21, %v1557_v20 }
 0x1d9   : > { %v1860_v8 = vpack.c.bf16 %v1788_v25, %v1788_v25  ;;  %v1561_v21 = vld [vmem:[#allocation2 + $0x2d0] sm:$0xff]  ;;  %v1787_v29 = vld [vmem:[#allocation2 + $0x1a0] sm:$0x3]  ;;  %v15405_v25 = vld [vmem:[#allocation2 + $0x1c8] sm:$0xff] }
 0x1da   : > { %5870 = vmatpush1.bf16.msra.mxu0 %v16609_v37  ;;  %1495 = vst [vmem:[#allocation2 + $0x300] sm:$0xfe] %v1300_v31  ;;  %v1302_v37 = vrot.slane %v1143_v56, 7  ;;  %1496 = vst.msk [vmem:[#allocation2 + $0x308] sm:$0xfe] %vm1404_vm8, %v1301_v15  ;;  %v1305_v53 = vsel %vm1209_vm10, %v1301_v15, %v1304_v18  ;;  %v17053_v20 = vpack.c.bf16 %v21242_v35, %v1561_v21  ;;  %v21246_v21 = vld [vmem:[#allocation24_spill] sm:$0xff] }
 0x1db   : > { %6119 = vmatprep.subr.bf16.mxu0 %v16635_v42  ;;  %v1853_v42 = vpack.c.bf16 %v16720_v26, %v1781_v40  ;;  %v1786_v56 = vld [vmem:[#allocation2 + $0x188] sm:$0xfc]  ;;  %21237 = vst [vmem:[#allocation70_spill] sm:$0xff] %v17037_v5  ;;  %1498 = vst.msk [vmem:[#allocation2 + $0x318] sm:$0xff] %vm281_vm2, %v1305_v53  ;;  %v21238_v26 = vld [vmem:[#allocation43_spill] sm:$0xff]  ;;  %v3563_v43 = vrot.slane %v1860_v8, 1  ;;  %v1857_v18 = vpack.c.bf16 %v16768_v30, %v1785_v41 }
 0x1dc   : > { %5617 = vmatmul.mubr.bf16.gmra.mrb[84].mxu0 %v17004_v3  ;;  %2940 = vmatmul.mubr.bf16.gmra.mrb[24].mxu1 %v17016_v57  ;;  %v17031_v10 = vsel %vm1209_vm10, %v1300_v31, %v1302_v37  ;;  %1499 = vst [vmem:[#allocation2 + $0x320] sm:$0x1] %v1302_v37  ;;  %v17041_v48 = vpack.c.bf16 %v21238_v26, %v1562_v12  ;;  %v21241_v40 = vld [vmem:[#allocation21_spill] sm:$0xff]  ;;  %v1790_v15 = vld [vmem:[#allocation2 + $0x1b8] sm:$0xfc] }
 0x1dd   : > { %13290 = vmatprep.mubr.msk.bf16.mxu0 %vm281_vm2, %v17007_v33  ;;  %12927 = vmatprep.mubr.msk.bf16.mxu1 %vm281_vm2, %v17022_v58  ;;  %1497 = vst [vmem:[#allocation2 + $0x310] sm:$0xff] %v17031_v10  ;;  %v2688_v50 = vrot.slane %v1853_v42, 1  ;;  %v1858_v47 = vpack.c.bf16 %v15404_v27, %v1786_v56  ;;  %v1792_v37 = vld [vmem:[#allocation2 + $0x1d8] sm:$0x3]  ;;  %21243 = vst [vmem:[#allocation21_spill] sm:$0xff] %v17053_v20  ;;  %v1859_v12 = vpack.c.bf16 %v1787_v29, %v1787_v29 }
 0x1de   : > { %21239 = vst [vmem:[#allocation43_spill] sm:$0xff] %v17041_v48  ;;  %v17058_v42 = vld [vmem:[%s20954_s3 + $0x280] ss:$8 sps:$4 sm:$0xff]   ;;  %v17067_v56 = vld [vmem:[%s20954_s3 + $0x294] ss:$8 sps:$4 sm:$0xff]   ;;  %v1862_v53 = vpack.c.bf16 %v15405_v25, %v1790_v15  ;;  %v1864_v26 = vpack.c.bf16 %v1792_v37, %v1792_v37  ;;  %v3559_v30 = vrot.slane %v1857_v18, 1 }
 0x1df   : > { %v17044_v19 = vsel %vm2645_vm14, %v2688_v50, %v2689_v9  ;;  %v3562_v31 = vrot.slane %v1858_v47, 1  ;;  %v21245_v50 = vld [vmem:[#allocation6_spill] sm:$0xff]  ;;  %v3560_v27 = vrot.slane %v1859_v12, 1  ;;  %v17085_v41 = vld [vmem:[%s20954_s3 + $0x2a4] ss:$8 sps:$4 sm:$0xff]  }
 0x1e0   : > { %21240 = vst [vmem:[#allocation71_spill] sm:$0xff] %v17044_v19  ;;  %v17077_v47 = vld [vmem:[%s20954_s3 + $0x290] ss:$8 sps:$4 sm:$0xff]   ;;  %v1794_v29 = vld [vmem:[#allocation2 + $0x1e8] sm:$0xfc] }
 0x1e1   : > { %v17062_v9 = vsel %vm2645_vm14, %v3562_v31, %v3563_v43  ;;  %v1789_v8 = vld [vmem:[#allocation2 + $0x1b0] sm:$0xfc]  ;;  %v4406_v31 = vrot.slane %v1864_v26, 1  ;;  %v1791_v43 = vld [vmem:[#allocation2 + $0x1d0] sm:$0x3]  ;;  %v17088_v37 = vsel %vm2645_vm14, %v3559_v30, %v3560_v27 }
 0x1e2   : > { %21244 = vst [vmem:[#allocation36_spill] sm:$0xff] %v17062_v9  ;;  %v1796_v15 = vld [vmem:[#allocation2 + $0x208] sm:$0x3]  ;;  %21247 = vst [vmem:[#allocation6_spill] sm:$0xff] %v17088_v37  ;;  %v1861_v35 = vpack.c.bf16 %v16826_v45, %v1789_v8  ;;  %v1863_v18 = vpack.c.bf16 %v1791_v43, %v1791_v43  ;;  %v17104_v30 = vld [vmem:[%s20954_s3 + $0x2b4] ss:$8 sps:$4 sm:$0xff]  }
 0x1e3   : > { %v17098_v25 = vld [vmem:[%s20954_s3 + $0x2a0] ss:$8 sps:$4 sm:$0xff]   ;;  %v21249_v45 = vld [vmem:[#allocation27_spill] sm:$0xff] }
 0x1e4   : > { %5627 = vmatmul.mubr.bf16.gmra.mrb[88].mxu0 %v17037_v5  ;;  %2950 = vmatmul.mubr.bf16.gmra.mrb[28].mxu1 %v17044_v19  ;;  %v4402_v27 = vrot.slane %v1861_v35, 1  ;;  %v4403_v8 = vrot.slane %v1863_v18, 1  ;;  %v1798_v35 = vld [vmem:[#allocation2 + $0x218] sm:$0xfc]  ;;  %v1800_v18 = vld [vmem:[#allocation2 + $0x238] sm:$0x3] }
 0x1e5   : > { %13291 = vmatprep.mubr.msk.bf16.mxu0 %vm281_vm2, %v17041_v48  ;;  %12968 = vmatprep.mubr.msk.bf16.mxu1 %vm281_vm2, %v21241_v40  ;;  %v4405_v40 = vrot.slane %v1862_v53, 1  ;;  %v15406_v53 = vld [vmem:[#allocation2 + $0x1f8] sm:$0xff] }
 0x1e6   : > { %v1866_v26 = vpack.c.bf16 %v15406_v53, %v1794_v29  ;;  %v17116_v53 = vld [vmem:[%s20954_s3 + $0x2b0] ss:$8 sps:$4 sm:$0xff]  }
 0x1e7   : > { %v17093_v12 = vsel %vm2645_vm14, %v4405_v40, %v4406_v31  ;;  %v21250_v40 = vld [vmem:[#allocation28_spill] sm:$0xff] }
 0x1e8   : > { %21248 = vst [vmem:[#allocation72_spill] sm:$0xff] %v17093_v12  ;;  %v1793_v31 = vld [vmem:[#allocation2 + $0x1e0] sm:$0xfc]  ;;  %v5674_v43 = vrot.slane %v1866_v26, 1  ;;  %v17127_v26 = vsel %vm2645_vm14, %v4402_v27, %v4403_v8 }
 0x1ec   : > { %5637 = vmatmul.mubr.bf16.gmra.mrb[92].mxu0 %v17053_v20  ;;  %3149 = vmatmul.mubr.bf16.vlgmr.msra.gmra.mrb[0].mxu1 %v21245_v50  ;;  %v1868_v50 = vpack.c.bf16 %v1796_v15, %v1796_v15  ;;  %v1795_v15 = vld [vmem:[#allocation2 + $0x200] sm:$0x3] }
 0x1ed   : > { %13332 = vmatprep.mubr.msk.bf16.mxu0 %vm281_vm2, %v17062_v9  ;;  %3411 = vmatpush1.bf16.msra.mxu1 %v17058_v42  ;;  %v17137_v9 = vld [vmem:[%s20954_s3 + $0x2c0] ss:$8 sps:$4 sm:$0xff]  }
 0x1ee   : > { %12969 = vmatprep.mubr.msk.bf16.mxu1 %vm281_vm2, %v21246_v21  ;;  %3412 = vmatprep.subr.bf16.mxu1 %v17067_v56  ;;  %v5675_v29 = vrot.slane %v1868_v50, 1  ;;  %v1865_v50 = vpack.c.bf16 %v16876_v1, %v1793_v31  ;;  %v21252_v1 = vld [vmem:[#allocation31_spill] sm:$0xff]  ;;  %v21253_v31 = vld [vmem:[#allocation32_spill] sm:$0xff] }
 0x1f0   : > { %v5671_v27 = vrot.slane %v1865_v50, 1 }
 0x1f1   : > { %3413 = vmatpush1.bf16.msra.mxu1 %v17077_v47 }
 0x1f2   : > { %3414 = vmatprep.subr.bf16.mxu1 %v17085_v41 }
 0x1f4   : > { %5884 = vmatmul.mubr.bf16.vlgmr.msra.gmra.mrb[64].mxu0 %v17088_v37  ;;  %3159 = vmatmul.mubr.bf16.gmra.mrb[4].mxu1 %v21249_v45  ;;  %v17131_v45 = vsel %vm2645_vm14, %v5674_v43, %v5675_v29  ;;  %v1872_v37 = vpack.c.bf16 %v1800_v18, %v1800_v18 }
 0x1f5   : > { %13333 = vmatprep.mubr.msk.bf16.mxu0 %vm281_vm2, %v17093_v12  ;;  %12970 = vmatprep.mubr.msk.bf16.mxu1 %vm281_vm2, %v21250_v40  ;;  %v17123_v40 = vld [vmem:[%s20954_s3 + $0x2c4] ss:$8 sps:$4 sm:$0xff]   ;;  %v1867_v12 = vpack.c.bf16 %v1795_v15, %v1795_v15  ;;  %21251 = vst [vmem:[#allocation73_spill] sm:$0xff] %v17131_v45  ;;  %v1799_v15 = vld [vmem:[#allocation2 + $0x230] sm:$0x3] }
 0x1f6   : > { %3415 = vmatpush1.bf16.msra.mxu1 %v17098_v25  ;;  %6120 = vmatpush1.bf16.msra.mxu0 %v16734_v52  ;;  %v15407_v52 = vld [vmem:[#allocation2 + $0x228] sm:$0xff]  ;;  %v5681_v29 = vrot.slane %v1872_v37, 1  ;;  %v1871_v50 = vpack.c.bf16 %v1799_v15, %v1799_v15  ;;  %v1803_v15 = vld [vmem:[#allocation2 + $0x260] sm:$0x3] }
 0x1f7   : > { %3416 = vmatprep.subr.bf16.mxu1 %v17104_v30  ;;  %6121 = vmatprep.subr.bf16.mxu0 %v16742_v38  ;;  %v1870_v21 = vpack.c.bf16 %v15407_v52, %v1798_v35  ;;  %v17144_v38 = vld [vmem:[%s20954_s3 + $0x2d4] ss:$8 sps:$4 sm:$0xff]   ;;  %v5672_v8 = vrot.slane %v1867_v12, 1  ;;  %v1802_v35 = vld [vmem:[#allocation2 + $0x248] sm:$0xfc] }
 0x1f8   : > { %v1804_v12 = vld [vmem:[#allocation2 + $0x268] sm:$0x3] }
 0x1f9   : > { %v5680_v43 = vrot.slane %v1870_v21, 1  ;;  %v17165_v21 = vld [vmem:[%s20954_s3 + $0x2e4] ss:$8 sps:$4 sm:$0xff]   ;;  %v17168_v37 = vsel %vm2645_vm14, %v5671_v27, %v5672_v8  ;;  %v21255_v27 = vld [vmem:[#allocation35_spill] sm:$0xff]  ;;  %v5678_v8 = vrot.slane %v1871_v50, 1 }
 0x1fa   : > { %3417 = vmatpush1.bf16.msra.mxu1 %v17116_v53  ;;  %6122 = vmatpush1.bf16.msra.mxu0 %v16752_v32  ;;  %v1797_v32 = vld [vmem:[#allocation2 + $0x210] sm:$0xfc] }
 0x1fb   : > { %3418 = vmatprep.subr.bf16.mxu1 %v17123_v40  ;;  %6123 = vmatprep.subr.bf16.mxu0 %v16763_v60  ;;  %v17157_v60 = vld [vmem:[%s20954_s3 + $0x2d0] ss:$8 sps:$4 sm:$0xff]   ;;  %v1869_v18 = vpack.c.bf16 %v16926_v39, %v1797_v32  ;;  %v17172_v52 = vsel %vm2645_vm14, %v5680_v43, %v5681_v29  ;;  %v17186_v39 = vld [vmem:[%s20954_s3 + $0x2f4] ss:$8 sps:$4 sm:$0xff]   ;;  %v21256_v32 = vld [vmem:[#allocation37_spill] sm:$0xff] }
 0x1fc   : > { %5894 = vmatmul.mubr.bf16.gmra.mrb[68].mxu0 %v17127_v26  ;;  %3169 = vmatmul.mubr.bf16.gmra.mrb[8].mxu1 %v21252_v1  ;;  %21254 = vst [vmem:[#allocation31_spill] sm:$0xff] %v17172_v52  ;;  %v1801_v43 = vld [vmem:[#allocation2 + $0x240] sm:$0xfc] }
 0x1fd   : > { %13334 = vmatprep.mubr.msk.bf16.mxu0 %vm281_vm2, %v17131_v45  ;;  %12971 = vmatprep.mubr.msk.bf16.mxu1 %vm281_vm2, %v21253_v31  ;;  %v1876_v45 = vpack.c.bf16 %v1804_v12, %v1804_v12  ;;  %v1806_v12 = vld [vmem:[#allocation2 + $0x278] sm:$0xfc] }
 0x1fe   : > { %3419 = vmatpush1.bf16.msra.mxu1 %v17137_v9  ;;  %6124 = vmatpush1.bf16.msra.mxu0 %v16776_v62  ;;  %v15408_v62 = vld [vmem:[#allocation2 + $0x258] sm:$0xff] }
 0x1ff   : > { %3420 = vmatprep.subr.bf16.mxu1 %v17144_v38  ;;  %6125 = vmatprep.subr.bf16.mxu0 %v16785_v28  ;;  %v1874_v31 = vpack.c.bf16 %v15408_v62, %v1802_v35  ;;  %v17179_v28 = vld [vmem:[%s20954_s3 + $0x2e0] ss:$8 sps:$4 sm:$0xff]   ;;  %v17199_v35 = vld [vmem:[%s20954_s3 + $0x2f0] ss:$8 sps:$4 sm:$0xff]  }
 0x200   : > { %v1808_v62 = vld [vmem:[#allocation2 + $0x298] sm:$0x3] }
 0x201   : > { %v5686_v29 = vrot.slane %v1874_v31, 1 }
 0x202   : > { %3421 = vmatpush1.bf16.msra.mxu1 %v17157_v60  ;;  %6126 = vmatpush1.bf16.msra.mxu0 %v16812_v13  ;;  %v5677_v13 = vrot.slane %v1869_v18, 1  ;;  %v1875_v18 = vpack.c.bf16 %v1803_v15, %v1803_v15  ;;  %v17240_v15 = vld [vmem:[%s20954_s3 + $0x310] ss:$8 sps:$4 sm:$0xff]  }
 0x203   : > { %3422 = vmatprep.subr.bf16.mxu1 %v17165_v21  ;;  %6127 = vmatprep.subr.bf16.mxu0 %v16821_v16  ;;  %v5687_v16 = vrot.slane %v1876_v45, 1  ;;  %v17206_v45 = vld [vmem:[%s20954_s3 + $0x304] ss:$8 sps:$4 sm:$0xff]  }
 0x204   : > { %5904 = vmatmul.mubr.bf16.gmra.mrb[72].mxu0 %v17168_v37  ;;  %3179 = vmatmul.mubr.bf16.gmra.mrb[12].mxu1 %v21255_v27  ;;  %v17209_v31 = vsel %vm2645_vm14, %v5677_v13, %v5678_v8  ;;  %v1880_v27 = vpack.c.bf16 %v1808_v62, %v1808_v62  ;;  %v21259_v13 = vld [vmem:[#allocation39_spill] sm:$0xff]  ;;  %v5684_v8 = vrot.slane %v1875_v18, 1  ;;  %v1812_v62 = vld [vmem:[#allocation2 + $0x2c8] sm:$0x3] }
 0x205   : > { %13335 = vmatprep.mubr.msk.bf16.mxu0 %vm281_vm2, %v17172_v52  ;;  %12972 = vmatprep.mubr.msk.bf16.mxu1 %vm281_vm2, %v21256_v32  ;;  %21257 = vst [vmem:[#allocation74_spill] sm:$0xff] %v17209_v31  ;;  %v17213_v50 = vsel %vm2645_vm14, %v5686_v29, %v5687_v16  ;;  %v15409_v32 = vld [vmem:[#allocation2 + $0x288] sm:$0xff]  ;;  %v1807_v16 = vld [vmem:[#allocation2 + $0x290] sm:$0x3] }
 0x206   : > { %3423 = vmatpush1.bf16.msra.mxu1 %v17179_v28  ;;  %6128 = vmatpush1.bf16.msra.mxu0 %v16838_v55  ;;  %v1873_v55 = vpack.c.bf16 %v16976_v7, %v1801_v43  ;;  %21258 = vst [vmem:[#allocation75_spill] sm:$0xff] %v17213_v50  ;;  %v1878_v52 = vpack.c.bf16 %v15409_v32, %v1806_v12  ;;  %v17227_v7 = vld [vmem:[%s20954_s3 + $0x314] ss:$8 sps:$4 sm:$0xff]   ;;  %v21260_v32 = vld [vmem:[#allocation41_spill] sm:$0xff]  ;;  %v5693_v29 = vrot.slane %v1880_v27, 1  ;;  %v15410_v27 = vld [vmem:[#allocation2 + $0x280] sm:$0xff] }
 0x207   : > { %3424 = vmatprep.subr.bf16.mxu1 %v17186_v39  ;;  %6129 = vmatprep.subr.bf16.mxu0 %v16850_v54  ;;  %v17220_v54 = vld [vmem:[%s20954_s3 + $0x300] ss:$8 sps:$4 sm:$0xff]   ;;  %v1879_v18 = vpack.c.bf16 %v1807_v16, %v1807_v16 }
 0x208   : > { %v5692_v43 = vrot.slane %v1878_v52, 1  ;;  %v1810_v12 = vld [vmem:[#allocation2 + $0x2a8] sm:$0xfc] }
 0x209   : > { %v17247_v52 = vld [vmem:[%s20954_s3 + $0x324] ss:$8 sps:$4 sm:$0xff]  }
 0x20a   : > { %3425 = vmatpush1.bf16.msra.mxu1 %v17199_v35  ;;  %6130 = vmatpush1.bf16.msra.mxu0 %v16867_v22  ;;  %v5683_v22 = vrot.slane %v1873_v55, 1 }
 0x20b   : > { %6131 = vmatprep.subr.bf16.mxu0 %v16874_v34  ;;  %3426 = vmatprep.subr.bf16.mxu1 %v17206_v45  ;;  %v1805_v34 = vld [vmem:[#allocation2 + $0x270] sm:$0xfc] }
 0x20c   : > { %5914 = vmatmul.mubr.bf16.gmra.mrb[76].mxu0 %v17209_v31  ;;  %3189 = vmatmul.mubr.bf16.gmra.mrb[16].mxu1 %v21259_v13  ;;  %v1877_v55 = vpack.c.bf16 %v15410_v27, %v1805_v34  ;;  %v1884_v31 = vpack.c.bf16 %v1812_v62, %v1812_v62  ;;  %v1809_v34 = vld [vmem:[#allocation2 + $0x2a0] sm:$0xfc] }
 0x20d   : > { %13336 = vmatprep.mubr.msk.bf16.mxu0 %vm281_vm2, %v17213_v50  ;;  %12973 = vmatprep.mubr.msk.bf16.mxu1 %vm281_vm2, %v21260_v32  ;;  %v17253_v32 = vsel %vm2645_vm14, %v5692_v43, %v5693_v29  ;;  %v15411_v50 = vld [vmem:[#allocation2 + $0x2b8] sm:$0xff]  ;;  %v1811_v43 = vld [vmem:[#allocation2 + $0x2c0] sm:$0x3] }
 0x20e   : > { %6132 = vmatpush1.bf16.msra.mxu0 %v16889_v14  ;;  %3427 = vmatpush1.bf16.msra.mxu1 %v17220_v54  ;;  %v17250_v14 = vsel %vm2645_vm14, %v5683_v22, %v5684_v8  ;;  %v1882_v13 = vpack.c.bf16 %v15411_v50, %v1810_v12  ;;  %v5689_v22 = vrot.slane %v1877_v55, 1  ;;  %v5690_v8 = vrot.slane %v1879_v18, 1  ;;  %v1816_v29 = vld [vmem:[#allocation2 + $0x2f8] sm:$0x3]  ;;  %v15412_v12 = vld [vmem:[#allocation2 + $0x2b0] sm:$0xff]  ;;  %v15413_v18 = vld [vmem:[#allocation2 + $0x2e8] sm:$0xff] }
 0x20f   : > { %6133 = vmatprep.subr.bf16.mxu0 %v16899_v2  ;;  %3428 = vmatprep.subr.bf16.mxu1 %v17227_v7  ;;  %v21261_v2 = vld [vmem:[#allocation44_spill] sm:$0xff]  ;;  %v1881_v62 = vpack.c.bf16 %v15412_v12, %v1809_v34  ;;  %v1883_v27 = vpack.c.bf16 %v1811_v43, %v1811_v43 }
 0x210   : > { %v5698_v50 = vrot.slane %v1882_v13, 1  ;;  %v17268_v16 = vsel %vm2645_vm14, %v5689_v22, %v5690_v8 }
 0x212   : > { %6134 = vmatpush1.bf16.msra.mxu0 %v16917_v23  ;;  %3429 = vmatpush1.bf16.msra.mxu1 %v17240_v15  ;;  %v5699_v23 = vrot.slane %v1884_v31, 1  ;;  %v1888_v31 = vpack.c.bf16 %v1816_v29, %v1816_v29 }
 0x213   : > { %6135 = vmatprep.subr.bf16.mxu0 %v16924_v24  ;;  %3690 = vmatprep.subr.bf16.mxu1 %v17247_v52  ;;  %v1814_v24 = vld [vmem:[#allocation2 + $0x2d8] sm:$0xfc] }
 0x214   : > { %5924 = vmatmul.mubr.bf16.gmra.mrb[80].mxu0 %v17250_v14  ;;  %3199 = vmatmul.mubr.bf16.gmra.mrb[20].mxu1 %v21261_v2  ;;  %v17271_v55 = vsel %vm2645_vm14, %v5698_v50, %v5699_v23  ;;  %v1886_v13 = vpack.c.bf16 %v15413_v18, %v1814_v24  ;;  %v5705_v8 = vrot.slane %v1888_v31, 1  ;;  %v1813_v50 = vld [vmem:[#allocation2 + $0x2d0] sm:$0xfc]  ;;  %v1815_v23 = vld [vmem:[#allocation2 + $0x2f0] sm:$0x3]  ;;  %v21263_v31 = vld [vmem:[#allocation8_spill] sm:$0xff] }
 0x215   : > { %13337 = vmatprep.mubr.msk.bf16.mxu0 %vm281_vm2, %v17253_v32  ;;  %12974 = vmatprep.mubr.msk.bf16.mxu1 %vm281_vm2, %v16706_v61  ;;  %v1887_v43 = vpack.c.bf16 %v1815_v23, %v1815_v23  ;;  %v17299_v18 = vld [vmem:[%s20954_s3 + $0x320] ss:$8 sps:$4 sm:$0xff]   ;;  %v17334_v23 = vld [vmem:[%s20954_s3 + $0x354] ss:$8 sps:$4 sm:$0xff]  }
 0x216   : > { %6136 = vmatpush1.bf16.msra.mxu0 %v16939_v6  ;;  %v5695_v6 = vrot.slane %v1881_v62, 1  ;;  %v5704_v22 = vrot.slane %v1886_v13, 1  ;;  %v21262_v62 = vld [vmem:[#allocation7_spill] sm:$0xff] }
 0x217   : > { %6137 = vmatprep.subr.bf16.mxu0 %v16949_v36  ;;  %v5696_v36 = vrot.slane %v1883_v27, 1  ;;  %v5702_v12 = vrot.slane %v1887_v43, 1  ;;  %v17304_v13 = vld [vmem:[%s20954_s3 + $0x334] ss:$8 sps:$4 sm:$0xff]  }
 0x218   : > { %v17285_v24 = vsel %vm2645_vm14, %v5704_v22, %v5705_v8  ;;  %v21265_v22 = vld [vmem:[#allocation9_spill] sm:$0xff]  ;;  %v21268_v43 = vld [vmem:[#allocation11_spill] sm:$0xff] }
 0x219   : > { %v17322_v8 = vld [vmem:[%s20954_s3 + $0x344] ss:$8 sps:$4 sm:$0xff]  }
 0x21a   : > { %6138 = vmatpush1.bf16.msra.mxu0 %v16967_v17  ;;  %v17282_v17 = vsel %vm2645_vm14, %v5695_v6, %v5696_v36  ;;  %v21264_v6 = vld [vmem:[#allocation51_spill] sm:$0xff] }
 0x21b   : > { %6412 = vmatprep.subr.bf16.mxu0 %v16974_v4  ;;  %v15414_v4 = vld [vmem:[#allocation2 + $0x2e0] sm:$0xff]  ;;  %v17314_v36 = vld [vmem:[%s20954_s3 + $0x330] ss:$8 sps:$4 sm:$0xff]  }
 0x21c   : > { %5934 = vmatmul.mubr.bf16.gmra.mrb[84].mxu0 %v17268_v16  ;;  %3209 = vmatmul.mubr.bf16.gmra.mrb[24].mxu1 %v16723_v49  ;;  %v1885_v34 = vpack.c.bf16 %v15414_v4, %v1813_v50  ;;  %v17328_v50 = vld [vmem:[%s20954_s3 + $0x340] ss:$8 sps:$4 sm:$0xff]   ;;  %v21266_v4 = vld [vmem:[#allocation10_spill] sm:$0xff] }
 0x21d   : > { %13338 = vmatprep.mubr.msk.bf16.mxu0 %vm281_vm2, %v17271_v55  ;;  %12975 = vmatprep.mubr.msk.bf16.mxu1 %vm281_vm2, %v16737_v63 }
 0x21e   : > { %v5701_v29 = vrot.slane %v1885_v34, 1  ;;  %v21267_v34 = vld [vmem:[#allocation54_spill] sm:$0xff] }
 0x220   : > { %v17294_v27 = vsel %vm2645_vm14, %v5701_v29, %v5702_v12  ;;  %v17346_v29 = vld [vmem:[%s20954_s3 + $0x350] ss:$8 sps:$4 sm:$0xff]   ;;  %v17353_v12 = vld [vmem:[%s20954_s3 + $0x364] ss:$8 sps:$4 sm:$0xff]  }
 0x224   : > { %5944 = vmatmul.mubr.bf16.gmra.mrb[88].mxu0 %v17282_v17  ;;  %3219 = vmatmul.mubr.bf16.gmra.mrb[28].mxu1 %v16771_v44 }
 0x225   : > { %13339 = vmatprep.mubr.msk.bf16.mxu0 %vm281_vm2, %v17285_v24  ;;  %13016 = vmatprep.mubr.msk.bf16.mxu1 %vm281_vm2, %v21262_v62  ;;  %v17360_v62 = vld [vmem:[%s20954_s3 + $0x360] ss:$8 sps:$4 sm:$0xff]  }
 0x22c   : > { %5954 = vmatmul.mubr.bf16.gmra.mrb[92].mxu0 %v17294_v27  ;;  %3443 = vmatmul.mubr.bf16.vlgmr.msra.gmra.mrb[0].mxu1 %v21263_v31  ;;  %v21270_v31 = vld [vmem:[#allocation57_spill] sm:$0xff] }
 0x22d   : > { %13380 = vmatprep.mubr.msk.bf16.mxu0 %vm281_vm2, %v21264_v6  ;;  %3691 = vmatpush1.bf16.msra.mxu1 %v17299_v18 }
 0x22e   : > { %13017 = vmatprep.mubr.msk.bf16.mxu1 %vm281_vm2, %v21265_v22  ;;  %3692 = vmatprep.subr.bf16.mxu1 %v17304_v13 }
 0x231   : > { %3693 = vmatpush1.bf16.msra.mxu1 %v17314_v36 }
 0x232   : > { %3694 = vmatprep.subr.bf16.mxu1 %v17322_v8 }
 0x234   : > { %6152 = vmatmul.mubr.bf16.vlgmr.msra.gmra.mrb[64].mxu0 %v16829_v11  ;;  %3453 = vmatmul.mubr.bf16.gmra.mrb[4].mxu1 %v21266_v4 }
 0x235   : > { %13381 = vmatprep.mubr.msk.bf16.mxu0 %vm281_vm2, %v21267_v34  ;;  %13018 = vmatprep.mubr.msk.bf16.mxu1 %vm281_vm2, %v21268_v43  ;;  %v21271_v43 = vld [vmem:[#allocation13_spill] sm:$0xff] }
 0x236   : > { %3695 = vmatpush1.bf16.msra.mxu1 %v17328_v50  ;;  %6413 = vmatpush1.bf16.msra.mxu0 %v17058_v42  ;;  %v17367_v42 = vld [vmem:[%s20954_s3 + $0x374] ss:$8 sps:$4 sm:$0xff]  }
 0x237   : > { %3696 = vmatprep.subr.bf16.mxu1 %v17334_v23  ;;  %6414 = vmatprep.subr.bf16.mxu0 %v17067_v56  ;;  %v21269_v56 = vld [vmem:[#allocation12_spill] sm:$0xff] }
 0x23a   : > { %3697 = vmatpush1.bf16.msra.mxu1 %v17346_v29  ;;  %6415 = vmatpush1.bf16.msra.mxu0 %v17077_v47  ;;  %v17380_v47 = vld [vmem:[%s20954_s3 + $0x370] ss:$8 sps:$4 sm:$0xff]  }
 0x23b   : > { %3698 = vmatprep.subr.bf16.mxu1 %v17353_v12  ;;  %6416 = vmatprep.subr.bf16.mxu0 %v17085_v41  ;;  %v17388_v41 = vld [vmem:[%s20954_s3 + $0x384] ss:$8 sps:$4 sm:$0xff]  }
 0x23c   : > { %6162 = vmatmul.mubr.bf16.gmra.mrb[68].mxu0 %v16879_v46  ;;  %3463 = vmatmul.mubr.bf16.gmra.mrb[8].mxu1 %v21269_v56  ;;  %v21274_v56 = vld [vmem:[#allocation61_spill] sm:$0xff] }
 0x23d   : > { %13382 = vmatprep.mubr.msk.bf16.mxu0 %vm281_vm2, %v21270_v31  ;;  %13019 = vmatprep.mubr.msk.bf16.mxu1 %vm281_vm2, %v21271_v43  ;;  %v17395_v43 = vld [vmem:[%s20954_s3 + $0x380] ss:$8 sps:$4 sm:$0xff]   ;;  %v21273_v31 = vld [vmem:[#allocation14_spill] sm:$0xff] }
 0x23e   : > { %3699 = vmatpush1.bf16.msra.mxu1 %v17360_v62  ;;  %6417 = vmatpush1.bf16.msra.mxu0 %v17098_v25  ;;  %v17402_v25 = vld [vmem:[%s20954_s3 + $0x394] ss:$8 sps:$4 sm:$0xff]  }
 0x23f   : > { %3700 = vmatprep.subr.bf16.mxu1 %v17367_v42  ;;  %6418 = vmatprep.subr.bf16.mxu0 %v17104_v30  ;;  %v21272_v30 = vld [vmem:[#allocation60_spill] sm:$0xff] }
 0x242   : > { %3701 = vmatpush1.bf16.msra.mxu1 %v17380_v47  ;;  %6419 = vmatpush1.bf16.msra.mxu0 %v17116_v53  ;;  %v21275_v53 = vld [vmem:[#allocation15_spill] sm:$0xff] }
 0x243   : > { %3702 = vmatprep.subr.bf16.mxu1 %v17388_v41  ;;  %6420 = vmatprep.subr.bf16.mxu0 %v17123_v40  ;;  %v17415_v40 = vld [vmem:[%s20954_s3 + $0x390] ss:$8 sps:$4 sm:$0xff]  }
 0x244   : > { %6172 = vmatmul.mubr.bf16.gmra.mrb[72].mxu0 %v21272_v30  ;;  %3473 = vmatmul.mubr.bf16.gmra.mrb[12].mxu1 %v21273_v31 }
 0x245   : > { %13383 = vmatprep.mubr.msk.bf16.mxu0 %vm281_vm2, %v21274_v56  ;;  %13020 = vmatprep.mubr.msk.bf16.mxu1 %vm281_vm2, %v21275_v53  ;;  %v17422_v56 = vld [vmem:[%s20954_s3 + $0x3a4] ss:$8 sps:$4 sm:$0xff]  }
 0x246   : > { %3703 = vmatpush1.bf16.msra.mxu1 %v17395_v43  ;;  %6421 = vmatpush1.bf16.msra.mxu0 %v17137_v9  ;;  %v17429_v9 = vld [vmem:[%s20954_s3 + $0x3a0] ss:$8 sps:$4 sm:$0xff]  }
 0x247   : > { %3704 = vmatprep.subr.bf16.mxu1 %v17402_v25  ;;  %6422 = vmatprep.subr.bf16.mxu0 %v17144_v38  ;;  %v17436_v38 = vld [vmem:[%s20954_s3 + $0x3b4] ss:$8 sps:$4 sm:$0xff]   ;;  %v21276_v53 = vld [vmem:[#allocation16_spill] sm:$0xff] }
 0x24a   : > { %3705 = vmatpush1.bf16.msra.mxu1 %v17415_v40  ;;  %6423 = vmatpush1.bf16.msra.mxu0 %v17157_v60  ;;  %v21277_v60 = vld [vmem:[#allocation17_spill] sm:$0xff] }
 0x24b   : > { %6424 = vmatprep.subr.bf16.mxu0 %v17165_v21  ;;  %3706 = vmatprep.subr.bf16.mxu1 %v17422_v56  ;;  %v17449_v21 = vld [vmem:[%s20954_s3 + $0x3b0] ss:$8 sps:$4 sm:$0xff]  }
 0x24c   : > { %6182 = vmatmul.mubr.bf16.gmra.mrb[76].mxu0 %v16979_v59  ;;  %3483 = vmatmul.mubr.bf16.gmra.mrb[16].mxu1 %v21276_v53  ;;  %v1675_v53 = vld [vmem:[#allocation2 + $0x320] sm:$0x1] }
 0x24d   : > { %13384 = vmatprep.mubr.msk.bf16.mxu0 %vm281_vm2, %v16982_v0  ;;  %13021 = vmatprep.mubr.msk.bf16.mxu1 %vm281_vm2, %v21277_v60  ;;  %v17456_v0 = vld [vmem:[%s20954_s3 + $0x3c4] ss:$8 sps:$4 sm:$0xff]  }
 0x24e   : > { %6425 = vmatpush1.bf16.msra.mxu0 %v17179_v28  ;;  %3707 = vmatpush1.bf16.msra.mxu1 %v17429_v9  ;;  %v21278_v28 = vld [vmem:[#allocation18_spill] sm:$0xff] }
 0x24f   : > { %6426 = vmatprep.subr.bf16.mxu0 %v17186_v39  ;;  %3708 = vmatprep.subr.bf16.mxu1 %v17436_v38  ;;  %v21279_v39 = vld [vmem:[#allocation19_spill] sm:$0xff] }
 0x252   : > { %6427 = vmatpush1.bf16.msra.mxu0 %v17199_v35  ;;  %3709 = vmatpush1.bf16.msra.mxu1 %v17449_v21  ;;  %v21280_v35 = vld [vmem:[#allocation20_spill] sm:$0xff] }
 0x253   : > { %6428 = vmatprep.subr.bf16.mxu0 %v17206_v45  ;;  %3959 = vmatprep.subr.bf16.mxu1 %v17456_v0  ;;  %v21281_v45 = vld [vmem:[#allocation22_spill] sm:$0xff] }
 0x254   : > { %6192 = vmatmul.mubr.bf16.gmra.mrb[80].mxu0 %v17004_v3  ;;  %3493 = vmatmul.mubr.bf16.gmra.mrb[20].mxu1 %v21278_v28  ;;  %v17542_v28 = vld [vmem:[%s20954_s3 + $0x3f0] ss:$8 sps:$4 sm:$0xff]  }
 0x255   : > { %13385 = vmatprep.mubr.msk.bf16.mxu0 %vm281_vm2, %v17007_v33  ;;  %13022 = vmatprep.mubr.msk.bf16.mxu1 %vm281_vm2, %v21279_v39  ;;  %v1566_v33 = vld [vmem:[#allocation2 + $0x308] sm:$0xff]  ;;  %v17478_v39 = vld [vmem:[#allocation2 + $0x318] sm:$0xff] }
 0x256   : > { %6429 = vmatpush1.bf16.msra.mxu0 %v17220_v54  ;;  %v17481_v54 = vpack.c.bf16 %v17478_v39, %v1566_v33  ;;  %v17500_v33 = vld [vmem:[%s20954_s3 + $0x3d4] ss:$8 sps:$4 sm:$0xff]  }
 0x257   : > { %6430 = vmatprep.subr.bf16.mxu0 %v17227_v7  ;;  %v21283_v7 = vld [vmem:[#allocation23_spill] sm:$0xff] }
 0x258   : > { %21282 = vst [vmem:[#allocation44_spill] sm:$0xff] %v17481_v54  ;;  %v21296_v3 = vld [vmem:[#allocation59_spill] sm:$0xff] }
 0x25a   : > { %6431 = vmatpush1.bf16.msra.mxu0 %v17240_v15  ;;  %v1565_v15 = vld [vmem:[#allocation2 + $0x300] sm:$0xff] }
 0x25b   : > { %6691 = vmatprep.subr.bf16.mxu0 %v17247_v52  ;;  %v21284_v52 = vld [vmem:[#allocation50_spill] sm:$0xff] }
 0x25c   : > { %6202 = vmatmul.mubr.bf16.gmra.mrb[84].mxu0 %v17037_v5  ;;  %3503 = vmatmul.mubr.bf16.gmra.mrb[24].mxu1 %v21280_v35  ;;  %v21291_v35 = vld [vmem:[#allocation29_spill] sm:$0xff]  ;;  %v21292_v5 = vld [vmem:[#allocation56_spill] sm:$0xff] }
 0x25d   : > { %13386 = vmatprep.mubr.msk.bf16.mxu0 %vm281_vm2, %v17041_v48  ;;  %13023 = vmatprep.mubr.msk.bf16.mxu1 %vm281_vm2, %v21281_v45  ;;  %v17490_v48 = vpack.c.bf16 %v17031_v10, %v1565_v15  ;;  %v17495_v45 = vld [vmem:[%s20954_s3 + $0x3c0] ss:$8 sps:$4 sm:$0xff]   ;;  %v17510_v15 = vld [vmem:[%s20954_s3 + $0x3d0] ss:$8 sps:$4 sm:$0xff]  }
 0x25f   : > { %21285 = vst [vmem:[#allocation7_spill] sm:$0xff] %v17490_v48 }
 0x264   : > { %6212 = vmatmul.mubr.bf16.gmra.mrb[88].mxu0 %v17053_v20  ;;  %3513 = vmatmul.mubr.bf16.gmra.mrb[28].mxu1 %v21283_v7  ;;  %v21287_v7 = vld [vmem:[#allocation25_spill] sm:$0xff]  ;;  %v21290_v20 = vld [vmem:[#allocation55_spill] sm:$0xff] }
 0x265   : > { %13387 = vmatprep.mubr.msk.bf16.mxu0 %vm281_vm2, %v17481_v54  ;;  %13064 = vmatprep.mubr.msk.bf16.mxu1 %vm281_vm2, %v21284_v52  ;;  %v21286_v54 = vld [vmem:[#allocation52_spill] sm:$0xff]  ;;  %v21288_v52 = vld [vmem:[#allocation53_spill] sm:$0xff] }
 0x26c   : > { %6222 = vmatmul.mubr.bf16.gmra.mrb[92].mxu0 %v17490_v48  ;;  %3723 = vmatmul.mubr.bf16.vlgmr.msra.gmra.mrb[0].mxu1 %v21286_v54  ;;  %v17518_v48 = vld [vmem:[%s20954_s3 + $0x3e4] ss:$8 sps:$4 sm:$0xff]   ;;  %v17524_v54 = vld [vmem:[%s20954_s3 + $0x3e0] ss:$8 sps:$4 sm:$0xff]  }
 0x26d   : > { %13428 = vmatprep.mubr.msk.bf16.mxu0 %vm281_vm2, %v21287_v7  ;;  %3960 = vmatpush1.bf16.msra.mxu1 %v17495_v45  ;;  %v21289_v7 = vld [vmem:[#allocation26_spill] sm:$0xff] }
 0x26e   : > { %13065 = vmatprep.mubr.msk.bf16.mxu1 %vm281_vm2, %v21288_v52  ;;  %3961 = vmatprep.subr.bf16.mxu1 %v17500_v33  ;;  %v17530_v52 = vld [vmem:[%s20954_s3 + $0x3f4] ss:$8 sps:$4 sm:$0xff]  }
 0x271   : > { %3962 = vmatpush1.bf16.msra.mxu1 %v17510_v15 }
 0x272   : > { %3963 = vmatprep.subr.bf16.mxu1 %v17518_v48 }
 0x274   : > { %6445 = vmatmul.mubr.bf16.vlgmr.msra.gmra.mrb[64].mxu0 %v21289_v7  ;;  %3733 = vmatmul.mubr.bf16.gmra.mrb[4].mxu1 %v21290_v20  ;;  %v17549_v20 = vld [vmem:[%s20954_s3 + $0x404] ss:$8 sps:$4 sm:$0xff]  }
 0x275   : > { %13429 = vmatprep.mubr.msk.bf16.mxu0 %vm281_vm2, %v21291_v35  ;;  %13066 = vmatprep.mubr.msk.bf16.mxu1 %vm281_vm2, %v21292_v5  ;;  %v17556_v5 = vld [vmem:[%s20954_s3 + $0x400] ss:$8 sps:$4 sm:$0xff]   ;;  %v21293_v35 = vld [vmem:[#allocation30_spill] sm:$0xff] }
 0x276   : > { %3964 = vmatpush1.bf16.msra.mxu1 %v17524_v54  ;;  %6692 = vmatpush1.bf16.msra.mxu0 %v17299_v18  ;;  %v17563_v18 = vld [vmem:[%s20954_s3 + $0x414] ss:$8 sps:$4 sm:$0xff]   ;;  %v21295_v7 = vld [vmem:[#allocation33_spill] sm:$0xff] }
 0x277   : > { %3965 = vmatprep.subr.bf16.mxu1 %v17530_v52  ;;  %6693 = vmatprep.subr.bf16.mxu0 %v17304_v13  ;;  %v21294_v13 = vld [vmem:[#allocation58_spill] sm:$0xff] }
 0x27a   : > { %3966 = vmatpush1.bf16.msra.mxu1 %v17542_v28  ;;  %6694 = vmatpush1.bf16.msra.mxu0 %v17314_v36  ;;  %v17576_v36 = vld [vmem:[%s20954_s3 + $0x410] ss:$8 sps:$4 sm:$0xff]  }
 0x27b   : > { %3967 = vmatprep.subr.bf16.mxu1 %v17549_v20  ;;  %6695 = vmatprep.subr.bf16.mxu0 %v17322_v8  ;;  %v17584_v8 = vld [vmem:[%s20954_s3 + $0x424] ss:$8 sps:$4 sm:$0xff]  }
 0x27c   : > { %6455 = vmatmul.mubr.bf16.gmra.mrb[68].mxu0 %v21293_v35  ;;  %3743 = vmatmul.mubr.bf16.gmra.mrb[8].mxu1 %v21294_v13  ;;  %v21299_v13 = vld [vmem:[#allocation38_spill] sm:$0xff] }
 0x27d   : > { %13430 = vmatprep.mubr.msk.bf16.mxu0 %vm281_vm2, %v21295_v7  ;;  %13067 = vmatprep.mubr.msk.bf16.mxu1 %vm281_vm2, %v21296_v3  ;;  %v17591_v3 = vld [vmem:[%s20954_s3 + $0x420] ss:$8 sps:$4 sm:$0xff]   ;;  %v21298_v7 = vld [vmem:[#allocation62_spill] sm:$0xff] }
 0x27e   : > { %3968 = vmatpush1.bf16.msra.mxu1 %v17556_v5  ;;  %6696 = vmatpush1.bf16.msra.mxu0 %v17328_v50  ;;  %v17598_v50 = vld [vmem:[%s20954_s3 + $0x434] ss:$8 sps:$4 sm:$0xff]  }
 0x27f   : > { %3969 = vmatprep.subr.bf16.mxu1 %v17563_v18  ;;  %6697 = vmatprep.subr.bf16.mxu0 %v17334_v23  ;;  %v21297_v23 = vld [vmem:[#allocation34_spill] sm:$0xff] }
 0x282   : > { %3970 = vmatpush1.bf16.msra.mxu1 %v17576_v36  ;;  %6698 = vmatpush1.bf16.msra.mxu0 %v17346_v29  ;;  %v21300_v29 = vld [vmem:[#allocation63_spill] sm:$0xff] }
 0x283   : > { %3971 = vmatprep.subr.bf16.mxu1 %v17584_v8  ;;  %6699 = vmatprep.subr.bf16.mxu0 %v17353_v12  ;;  %v17611_v12 = vld [vmem:[%s20954_s3 + $0x430] ss:$8 sps:$4 sm:$0xff]  }
 0x284   : > { %6465 = vmatmul.mubr.bf16.gmra.mrb[72].mxu0 %v21297_v23  ;;  %3753 = vmatmul.mubr.bf16.gmra.mrb[12].mxu1 %v21298_v7  ;;  %v21302_v7 = vld [vmem:[#allocation42_spill] sm:$0xff] }
 0x285   : > { %13431 = vmatprep.mubr.msk.bf16.mxu0 %vm281_vm2, %v21299_v13  ;;  %13068 = vmatprep.mubr.msk.bf16.mxu1 %vm281_vm2, %v21300_v29  ;;  %v17618_v13 = vld [vmem:[%s20954_s3 + $0x444] ss:$8 sps:$4 sm:$0xff]  }
 0x286   : > { %3972 = vmatpush1.bf16.msra.mxu1 %v17591_v3  ;;  %6700 = vmatpush1.bf16.msra.mxu0 %v17360_v62  ;;  %v17625_v62 = vld [vmem:[%s20954_s3 + $0x440] ss:$8 sps:$4 sm:$0xff]  }
 0x287   : > { %3973 = vmatprep.subr.bf16.mxu1 %v17598_v50  ;;  %6701 = vmatprep.subr.bf16.mxu0 %v17367_v42  ;;  %v17632_v42 = vld [vmem:[%s20954_s3 + $0x454] ss:$8 sps:$4 sm:$0xff]   ;;  %v21301_v29 = vld [vmem:[#allocation40_spill] sm:$0xff] }
 0x28a   : > { %3974 = vmatpush1.bf16.msra.mxu1 %v17611_v12  ;;  %6702 = vmatpush1.bf16.msra.mxu0 %v17380_v47  ;;  %v21303_v47 = vld [vmem:[#allocation66_spill] sm:$0xff] }
 0x28b   : > { %6703 = vmatprep.subr.bf16.mxu0 %v17388_v41  ;;  %3975 = vmatprep.subr.bf16.mxu1 %v17618_v13  ;;  %v17645_v41 = vld [vmem:[%s20954_s3 + $0x450] ss:$8 sps:$4 sm:$0xff]  }
 0x28c   : > { %6475 = vmatmul.mubr.bf16.gmra.mrb[76].mxu0 %v21301_v29  ;;  %3763 = vmatmul.mubr.bf16.gmra.mrb[16].mxu1 %v16987_v51  ;;  %v1674_v29 = vld [vmem:[#allocation2 + $0x308] sm:$0xfe]  ;;  %v21305_v51 = vld [vmem:[#allocation46_spill] sm:$0xff] }
 0x28d   : > { %13432 = vmatprep.mubr.msk.bf16.mxu0 %vm281_vm2, %v21302_v7  ;;  %13069 = vmatprep.mubr.msk.bf16.mxu1 %vm281_vm2, %v21303_v47  ;;  %v17652_v7 = vld [vmem:[%s20954_s3 + $0x464] ss:$8 sps:$4 sm:$0xff]   ;;  %v1676_v47 = vld [vmem:[#allocation2 + $0x328] sm:$0x1] }
 0x28e   : > { %6704 = vmatpush1.bf16.msra.mxu0 %v17395_v43  ;;  %3976 = vmatpush1.bf16.msra.mxu1 %v17625_v62  ;;  %v1746_v43 = vpack.c.bf16 %v17478_v39, %v1674_v29  ;;  %v1748_v23 = vpack.c.bf16 %v1676_v47, %v1676_v47  ;;  %v21307_v47 = vld [vmem:[#allocation48_spill] sm:$0xff] }
 0x28f   : > { %6705 = vmatprep.subr.bf16.mxu0 %v17402_v25  ;;  %3977 = vmatprep.subr.bf16.mxu1 %v17632_v42  ;;  %v21304_v25 = vld [vmem:[#allocation45_spill] sm:$0xff] }
 0x290   : > { %v6279_v29 = vshll.u32 %v1746_v43, 16  ;;  %v6277_v35 = vshrl.u32 %v1746_v43, 16 }
 0x292   : > { %6706 = vmatpush1.bf16.msra.mxu0 %v17415_v40  ;;  %3978 = vmatpush1.bf16.msra.mxu1 %v17645_v41  ;;  %v1673_v40 = vld [vmem:[#allocation2 + $0x300] sm:$0xfe]  ;;  %v6281_v60 = vrot.slane %v6279_v29, 1 }
 0x293   : > { %6707 = vmatprep.subr.bf16.mxu0 %v17422_v56  ;;  %4253 = vmatprep.subr.bf16.mxu1 %v17652_v7  ;;  %v1745_v56 = vpack.c.bf16 %v17031_v10, %v1673_v40 }
 0x294   : > { %6485 = vmatmul.mubr.bf16.gmra.mrb[80].mxu0 %v21304_v25  ;;  %3773 = vmatmul.mubr.bf16.gmra.mrb[20].mxu1 %v17016_v57  ;;  %v6284_v25 = vshll.u32 %v1748_v23, 16  ;;  %v6282_v43 = vor.u32 %v6281_v60, %v6277_v35  ;;  %v17691_v60 = vld [vmem:[%s20954_s3 + $0x460] ss:$8 sps:$4 sm:$0xff]   ;;  %v17696_v35 = vld [vmem:[%s20954_s3 + $0x474] ss:$8 sps:$4 sm:$0xff]  }
 0x295   : > { %13433 = vmatprep.mubr.msk.bf16.mxu0 %vm281_vm2, %v21305_v51  ;;  %13070 = vmatprep.mubr.msk.bf16.mxu1 %vm281_vm2, %v17022_v58  ;;  %v21306_v51 = vld [vmem:[#allocation47_spill] sm:$0xff]  ;;  %v6267_v10 = vshll.u32 %v1745_v56, 16  ;;  %v6265_v23 = vshrl.u32 %v1745_v56, 16  ;;  %v21314_v56 = vld [vmem:[#allocation28_spill] sm:$0xff] }
 0x296   : > { %6708 = vmatpush1.bf16.msra.mxu0 %v17429_v9  ;;  %v21308_v9 = vld [vmem:[#allocation36_spill] sm:$0xff]  ;;  %v6286_v40 = vrot.slane %v6284_v25, 1  ;;  %v21312_v25 = vld [vmem:[#allocation27_spill] sm:$0xff] }
 0x297   : > { %6709 = vmatprep.subr.bf16.mxu0 %v17436_v38  ;;  %v1747_v38 = vpack.c.bf16 %v1675_v53, %v1675_v53  ;;  %v6269_v29 = vrot.slane %v6267_v10, 1  ;;  %v21315_v10 = vld [vmem:[#allocation73_spill] sm:$0xff] }
 0x299   : > { %v6272_v58 = vshll.u32 %v1747_v38, 16  ;;  %v17726_v38 = vld [vmem:[%s20954_s3 + $0x494] ss:$8 sps:$4 sm:$0xff]  }
 0x29a   : > { %6710 = vmatpush1.bf16.msra.mxu0 %v17449_v21  ;;  %v17677_v21 = vsel %vm1917_vm5, %v6282_v43, %v6286_v40  ;;  %v21316_v43 = vld [vmem:[#allocation32_spill] sm:$0xff]  ;;  %v17738_v40 = vld [vmem:[%s20954_s3 + $0x490] ss:$8 sps:$4 sm:$0xff]  }
 0x29b   : > { %6959 = vmatprep.subr.bf16.mxu0 %v17456_v0  ;;  %v21309_v0 = vld [vmem:[#allocation49_spill] sm:$0xff] }
 0x29c   : > { %6495 = vmatmul.mubr.bf16.gmra.mrb[84].mxu0 %v21306_v51  ;;  %3783 = vmatmul.mubr.bf16.gmra.mrb[24].mxu1 %v17044_v19  ;;  %v21310_v51 = vld [vmem:[#allocation6_spill] sm:$0xff]  ;;  %v6274_v19 = vrot.slane %v6272_v58, 1  ;;  %v21313_v58 = vld [vmem:[#allocation72_spill] sm:$0xff] }
 0x29d   : > { %13434 = vmatprep.mubr.msk.bf16.mxu0 %vm281_vm2, %v21307_v47  ;;  %13071 = vmatprep.mubr.msk.bf16.mxu1 %vm281_vm2, %v21308_v9  ;;  %v6270_v47 = vor.u32 %v6269_v29, %v6265_v23  ;;  %v21311_v9 = vld [vmem:[#allocation24_spill] sm:$0xff]  ;;  %v21318_v29 = vld [vmem:[#allocation31_spill] sm:$0xff] }
 0x29e   : > { %v17752_v23 = vld [vmem:[%s20954_s3 + $0x4a0] ss:$8 sps:$4 sm:$0xff]  }
 0x29f   : > { %v17686_v53 = vsel %vm1917_vm5, %v6270_v47, %v6274_v19  ;;  %v17706_v19 = vld [vmem:[%s20954_s3 + $0x470] ss:$8 sps:$4 sm:$0xff]   ;;  %v17714_v47 = vld [vmem:[%s20954_s3 + $0x484] ss:$8 sps:$4 sm:$0xff]  }
 0x2a4   : > { %6505 = vmatmul.mubr.bf16.gmra.mrb[88].mxu0 %v21309_v0  ;;  %3793 = vmatmul.mubr.bf16.gmra.mrb[28].mxu1 %v21310_v51 }
 0x2a5   : > { %13435 = vmatprep.mubr.msk.bf16.mxu0 %vm281_vm2, %v17677_v21  ;;  %13112 = vmatprep.mubr.msk.bf16.mxu1 %vm281_vm2, %v21311_v9  ;;  %v17720_v9 = vld [vmem:[%s20954_s3 + $0x480] ss:$8 sps:$4 sm:$0xff]  }
 0x2ac   : > { %6515 = vmatmul.mubr.bf16.gmra.mrb[92].mxu0 %v17686_v53  ;;  %3992 = vmatmul.mubr.bf16.vlgmr.msra.gmra.mrb[0].mxu1 %v21312_v25  ;;  %v21319_v25 = vld [vmem:[#allocation37_spill] sm:$0xff] }
 0x2ad   : > { %13476 = vmatprep.mubr.msk.bf16.mxu0 %vm281_vm2, %v21313_v58  ;;  %4254 = vmatpush1.bf16.msra.mxu1 %v17691_v60 }
 0x2ae   : > { %13113 = vmatprep.mubr.msk.bf16.mxu1 %vm281_vm2, %v21314_v56  ;;  %4255 = vmatprep.subr.bf16.mxu1 %v17696_v35  ;;  %v17787_v56 = vld [vmem:[%s20954_s3 + $0x4c0] ss:$8 sps:$4 sm:$0xff]  }
 0x2b1   : > { %4256 = vmatpush1.bf16.msra.mxu1 %v17706_v19 }
 0x2b2   : > { %4257 = vmatprep.subr.bf16.mxu1 %v17714_v47 }
 0x2b4   : > { %6724 = vmatmul.mubr.bf16.vlgmr.msra.gmra.mrb[64].mxu0 %v17127_v26  ;;  %4002 = vmatmul.mubr.bf16.gmra.mrb[4].mxu1 %v21252_v1  ;;  %v17745_v1 = vld [vmem:[%s20954_s3 + $0x4a4] ss:$8 sps:$4 sm:$0xff]  }
 0x2b5   : > { %13477 = vmatprep.mubr.msk.bf16.mxu0 %vm281_vm2, %v21315_v10  ;;  %13114 = vmatprep.mubr.msk.bf16.mxu1 %vm281_vm2, %v21316_v43  ;;  %v21321_v43 = vld [vmem:[#allocation39_spill] sm:$0xff] }
 0x2b6   : > { %4258 = vmatpush1.bf16.msra.mxu1 %v17720_v9  ;;  %6960 = vmatpush1.bf16.msra.mxu0 %v17495_v45  ;;  %v17759_v45 = vld [vmem:[%s20954_s3 + $0x4b4] ss:$8 sps:$4 sm:$0xff]  }
 0x2b7   : > { %4259 = vmatprep.subr.bf16.mxu1 %v17726_v38  ;;  %6961 = vmatprep.subr.bf16.mxu0 %v17500_v33  ;;  %v21317_v33 = vld [vmem:[#allocation35_spill] sm:$0xff] }
 0x2ba   : > { %4260 = vmatpush1.bf16.msra.mxu1 %v17738_v40  ;;  %6962 = vmatpush1.bf16.msra.mxu0 %v17510_v15  ;;  %v17772_v15 = vld [vmem:[%s20954_s3 + $0x4b0] ss:$8 sps:$4 sm:$0xff]  }
 0x2bb   : > { %4261 = vmatprep.subr.bf16.mxu1 %v17745_v1  ;;  %6963 = vmatprep.subr.bf16.mxu0 %v17518_v48  ;;  %v17780_v48 = vld [vmem:[%s20954_s3 + $0x4c4] ss:$8 sps:$4 sm:$0xff]  }
 0x2bc   : > { %6734 = vmatmul.mubr.bf16.gmra.mrb[68].mxu0 %v17168_v37  ;;  %4012 = vmatmul.mubr.bf16.gmra.mrb[8].mxu1 %v21317_v33  ;;  %v21322_v33 = vld [vmem:[#allocation75_spill] sm:$0xff] }
 0x2bd   : > { %13478 = vmatprep.mubr.msk.bf16.mxu0 %vm281_vm2, %v21318_v29  ;;  %13115 = vmatprep.mubr.msk.bf16.mxu1 %vm281_vm2, %v21319_v25  ;;  %v17814_v25 = vld [vmem:[%s20954_s3 + $0x4e4] ss:$8 sps:$4 sm:$0xff]  }
 0x2be   : > { %4262 = vmatpush1.bf16.msra.mxu1 %v17752_v23  ;;  %6964 = vmatpush1.bf16.msra.mxu0 %v17524_v54  ;;  %v21320_v54 = vld [vmem:[#allocation74_spill] sm:$0xff] }
 0x2bf   : > { %4263 = vmatprep.subr.bf16.mxu1 %v17759_v45  ;;  %6965 = vmatprep.subr.bf16.mxu0 %v17530_v52  ;;  %v17794_v52 = vld [vmem:[%s20954_s3 + $0x4d4] ss:$8 sps:$4 sm:$0xff]  }
 0x2c2   : > { %4264 = vmatpush1.bf16.msra.mxu1 %v17772_v15  ;;  %6966 = vmatpush1.bf16.msra.mxu0 %v17542_v28  ;;  %v21323_v28 = vld [vmem:[#allocation41_spill] sm:$0xff] }
 0x2c3   : > { %4265 = vmatprep.subr.bf16.mxu1 %v17780_v48  ;;  %6967 = vmatprep.subr.bf16.mxu0 %v17549_v20  ;;  %v17807_v20 = vld [vmem:[%s20954_s3 + $0x4d0] ss:$8 sps:$4 sm:$0xff]  }
 0x2c4   : > { %6744 = vmatmul.mubr.bf16.gmra.mrb[72].mxu0 %v21320_v54  ;;  %4022 = vmatmul.mubr.bf16.gmra.mrb[12].mxu1 %v21321_v43  ;;  %v17886_v43 = vld [vmem:[%s20954_s3 + $0x500] ss:$8 sps:$4 sm:$0xff]  }
 0x2c5   : > { %13479 = vmatprep.mubr.msk.bf16.mxu0 %vm281_vm2, %v21322_v33  ;;  %13116 = vmatprep.mubr.msk.bf16.mxu1 %vm281_vm2, %v21323_v28  ;;  %v21324_v28 = vld [vmem:[#allocation11_spill] sm:$0xff] }
 0x2c6   : > { %4266 = vmatpush1.bf16.msra.mxu1 %v17787_v56  ;;  %6968 = vmatpush1.bf16.msra.mxu0 %v17556_v5  ;;  %v17821_v5 = vld [vmem:[%s20954_s3 + $0x4e0] ss:$8 sps:$4 sm:$0xff]  }
 0x2c7   : > { %4267 = vmatprep.subr.bf16.mxu1 %v17794_v52  ;;  %6969 = vmatprep.subr.bf16.mxu0 %v17563_v18  ;;  %v17828_v18 = vld [vmem:[%s20954_s3 + $0x4f4] ss:$8 sps:$4 sm:$0xff]  }
 0x2ca   : > { %4268 = vmatpush1.bf16.msra.mxu1 %v17807_v20  ;;  %6970 = vmatpush1.bf16.msra.mxu0 %v17576_v36  ;;  %v17841_v36 = vld [vmem:[%s20954_s3 + $0x4f0] ss:$8 sps:$4 sm:$0xff]  }
 0x2cb   : > { %6971 = vmatprep.subr.bf16.mxu0 %v17584_v8  ;;  %4269 = vmatprep.subr.bf16.mxu1 %v17814_v25 }
 0x2cc   : > { %6754 = vmatmul.mubr.bf16.gmra.mrb[76].mxu0 %v17250_v14  ;;  %4032 = vmatmul.mubr.bf16.gmra.mrb[16].mxu1 %v21261_v2  ;;  %v17848_v2 = vld [vmem:[%s20954_s3 + $0x504] ss:$8 sps:$4 sm:$0xff]  }
 0x2cd   : > { %13480 = vmatprep.mubr.msk.bf16.mxu0 %vm281_vm2, %v17253_v32  ;;  %13117 = vmatprep.mubr.msk.bf16.mxu1 %vm281_vm2, %v16706_v61  ;;  %v1818_v61 = vld [vmem:[#allocation2 + $0x308] sm:$0xfc] }
 0x2ce   : > { %6972 = vmatpush1.bf16.msra.mxu0 %v17591_v3  ;;  %4270 = vmatpush1.bf16.msra.mxu1 %v17821_v5  ;;  %v1820_v3 = vld [vmem:[#allocation2 + $0x328] sm:$0x3] }
 0x2cf   : > { %6973 = vmatprep.subr.bf16.mxu0 %v17598_v50  ;;  %4271 = vmatprep.subr.bf16.mxu1 %v17828_v18  ;;  %v1892_v8 = vpack.c.bf16 %v1820_v3, %v1820_v3  ;;  %v1817_v50 = vld [vmem:[#allocation2 + $0x300] sm:$0xfc] }
 0x2d0   : > { %v21325_v3 = vld [vmem:[#allocation12_spill] sm:$0xff] }
 0x2d2   : > { %6974 = vmatpush1.bf16.msra.mxu0 %v17611_v12  ;;  %4272 = vmatpush1.bf16.msra.mxu1 %v17841_v36  ;;  %v1819_v12 = vld [vmem:[#allocation2 + $0x320] sm:$0x3] }
 0x2d3   : > { %6975 = vmatprep.subr.bf16.mxu0 %v17618_v13  ;;  %4533 = vmatprep.subr.bf16.mxu1 %v17848_v2  ;;  %v1890_v13 = vpack.c.bf16 %v17478_v39, %v1818_v61  ;;  %v15415_v39 = vld [vmem:[#allocation2 + $0x310] sm:$0xff]  ;;  %v17909_v61 = vld [vmem:[%s20954_s3 + $0x524] ss:$8 sps:$4 sm:$0xff]  }
 0x2d4   : > { %6764 = vmatmul.mubr.bf16.gmra.mrb[80].mxu0 %v17268_v16  ;;  %4042 = vmatmul.mubr.bf16.gmra.mrb[20].mxu1 %v16723_v49 }
 0x2d5   : > { %13481 = vmatprep.mubr.msk.bf16.mxu0 %vm281_vm2, %v17271_v55  ;;  %13118 = vmatprep.mubr.msk.bf16.mxu1 %vm281_vm2, %v16737_v63  ;;  %v6564_v49 = vrot.slane %v1890_v13, 1  ;;  %v6565_v63 = vrot.slane %v1892_v8, 1  ;;  %v21326_v13 = vld [vmem:[#allocation57_spill] sm:$0xff] }
 0x2d6   : > { %6976 = vmatpush1.bf16.msra.mxu0 %v17625_v62  ;;  %v1889_v62 = vpack.c.bf16 %v15415_v39, %v1817_v50  ;;  %v21327_v8 = vld [vmem:[#allocation13_spill] sm:$0xff]  ;;  %v21329_v50 = vld [vmem:[#allocation15_spill] sm:$0xff]  ;;  %v21334_v39 = vld [vmem:[#allocation18_spill] sm:$0xff] }
 0x2d7   : > { %6977 = vmatprep.subr.bf16.mxu0 %v17632_v42  ;;  %v1891_v42 = vpack.c.bf16 %v1819_v12, %v1819_v12  ;;  %v21333_v12 = vld [vmem:[#allocation67_spill] sm:$0xff] }
 0x2da   : > { %6978 = vmatpush1.bf16.msra.mxu0 %v17645_v41  ;;  %v17872_v41 = vsel %vm2645_vm14, %v6564_v49, %v6565_v63  ;;  %v17933_v49 = vld [vmem:[%s20954_s3 + $0x530] ss:$8 sps:$4 sm:$0xff]   ;;  %v17947_v63 = vld [vmem:[%s20954_s3 + $0x540] ss:$8 sps:$4 sm:$0xff]  }
 0x2db   : > { %7252 = vmatprep.subr.bf16.mxu0 %v17652_v7  ;;  %v6562_v7 = vrot.slane %v1891_v42, 1  ;;  %v21337_v42 = vmov 0  }
 0x2dc   : > { %6774 = vmatmul.mubr.bf16.gmra.mrb[84].mxu0 %v17282_v17  ;;  %4052 = vmatmul.mubr.bf16.gmra.mrb[24].mxu1 %v16771_v44  ;;  %v6561_v44 = vrot.slane %v1889_v62, 1  ;;  %v21335_v62 = vld [vmem:[#allocation68_spill] sm:$0xff] }
 0x2dd   : > { %13482 = vmatprep.mubr.msk.bf16.mxu0 %vm281_vm2, %v17285_v24  ;;  %13119 = vmatprep.mubr.msk.bf16.mxu1 %vm281_vm2, %v21264_v6 }
 0x2de   : > { %v17881_v6 = vsel %vm2645_vm14, %v6561_v44, %v6562_v7  ;;  %v21339_v44 = vld [vmem:[#allocation20_spill] sm:$0xff]  ;;  %v21340_v7 = vld [vmem:[#allocation43_spill] sm:$0xff] }
 0x2e4   : > { %6784 = vmatmul.mubr.bf16.gmra.mrb[88].mxu0 %v17294_v27  ;;  %4062 = vmatmul.mubr.bf16.gmra.mrb[28].mxu1 %v16829_v11  ;;  %v17891_v11 = vld [vmem:[%s20954_s3 + $0x514] ss:$8 sps:$4 sm:$0xff]  }
 0x2e5   : > { %13483 = vmatprep.mubr.msk.bf16.mxu0 %vm281_vm2, %v17872_v41  ;;  %13160 = vmatprep.mubr.msk.bf16.mxu1 %vm281_vm2, %v21265_v22  ;;  %v17901_v22 = vld [vmem:[%s20954_s3 + $0x510] ss:$8 sps:$4 sm:$0xff]  }
 0x2ec   : > { %6794 = vmatmul.mubr.bf16.gmra.mrb[92].mxu0 %v17881_v6  ;;  %4286 = vmatmul.mubr.bf16.vlgmr.msra.gmra.mrb[0].mxu1 %v21266_v4  ;;  %v17915_v4 = vld [vmem:[%s20954_s3 + $0x520] ss:$8 sps:$4 sm:$0xff]  }
 0x2ed   : > { %13524 = vmatprep.mubr.msk.bf16.mxu0 %vm281_vm2, %v21267_v34  ;;  %4534 = vmatpush1.bf16.msra.mxu1 %v17886_v43  ;;  %v17921_v34 = vld [vmem:[%s20954_s3 + $0x534] ss:$8 sps:$4 sm:$0xff]  }
 0x2ee   : > { %13161 = vmatprep.mubr.msk.bf16.mxu1 %vm281_vm2, %v21324_v28  ;;  %4535 = vmatprep.subr.bf16.mxu1 %v17891_v11  ;;  %v21341_v28 = vld [vmem:[#allocation22_spill] sm:$0xff] }
 0x2f1   : > { %4536 = vmatpush1.bf16.msra.mxu1 %v17901_v22 }
 0x2f2   : > { %4537 = vmatprep.subr.bf16.mxu1 %v17909_v61 }
 0x2f4   : > { %6992 = vmatmul.mubr.bf16.vlgmr.msra.gmra.mrb[64].mxu0 %v16879_v46  ;;  %4296 = vmatmul.mubr.bf16.gmra.mrb[4].mxu1 %v21325_v3  ;;  %v17940_v46 = vld [vmem:[%s20954_s3 + $0x544] ss:$8 sps:$4 sm:$0xff]  }
 0x2f5   : > { %13525 = vmatprep.mubr.msk.bf16.mxu0 %vm281_vm2, %v21326_v13  ;;  %13162 = vmatprep.mubr.msk.bf16.mxu1 %vm281_vm2, %v21327_v8  ;;  %v21345_v3 = vld [vmem:[#allocation25_spill] sm:$0xff]  ;;  %v1570_v13 = vld [vmem:[#allocation2 + $0x338] sm:$0xff] }
 0x2f6   : > { %4538 = vmatpush1.bf16.msra.mxu1 %v17915_v4  ;;  %7253 = vmatpush1.bf16.msra.mxu0 %v17691_v60  ;;  %v17954_v60 = vld [vmem:[%s20954_s3 + $0x554] ss:$8 sps:$4 sm:$0xff]   ;;  %v18060_v8 = vld [vmem:[#allocation2 + $0x348] sm:$0xff] }
 0x2f7   : > { %4539 = vmatprep.subr.bf16.mxu1 %v17921_v34  ;;  %7254 = vmatprep.subr.bf16.mxu0 %v17696_v35  ;;  %v21328_v35 = vld [vmem:[#allocation61_spill] sm:$0xff] }
 0x2fa   : > { %4540 = vmatpush1.bf16.msra.mxu1 %v17933_v49  ;;  %7255 = vmatpush1.bf16.msra.mxu0 %v17706_v19  ;;  %v17967_v19 = vld [vmem:[%s20954_s3 + $0x550] ss:$8 sps:$4 sm:$0xff]  }
 0x2fb   : > { %4541 = vmatprep.subr.bf16.mxu1 %v17940_v46  ;;  %7256 = vmatprep.subr.bf16.mxu0 %v17714_v47  ;;  %v17989_v47 = vld [vmem:[%s20954_s3 + $0x574] ss:$8 sps:$4 sm:$0xff]  }
 0x2fc   : > { %7002 = vmatmul.mubr.bf16.gmra.mrb[68].mxu0 %v21272_v30  ;;  %4306 = vmatmul.mubr.bf16.gmra.mrb[8].mxu1 %v21273_v31  ;;  %v17975_v31 = vld [vmem:[%s20954_s3 + $0x564] ss:$8 sps:$4 sm:$0xff]   ;;  %v17982_v30 = vld [vmem:[%s20954_s3 + $0x560] ss:$8 sps:$4 sm:$0xff]  }
 0x2fd   : > { %13526 = vmatprep.mubr.msk.bf16.mxu0 %vm281_vm2, %v21328_v35  ;;  %13163 = vmatprep.mubr.msk.bf16.mxu1 %vm281_vm2, %v21329_v50  ;;  %v21348_v35 = vld [vmem:[#allocation53_spill] sm:$0xff]  ;;  %v18068_v50 = vld [vmem:[#allocation2 + $0x10] sm:$0xff] }
 0x2fe   : > { %4542 = vmatpush1.bf16.msra.mxu1 %v17947_v63  ;;  %7257 = vmatpush1.bf16.msra.mxu0 %v17720_v9  ;;  %v21330_v9 = vld [vmem:[#allocation16_spill] sm:$0xff] }
 0x2ff   : > { %4543 = vmatprep.subr.bf16.mxu1 %v17954_v60  ;;  %7258 = vmatprep.subr.bf16.mxu0 %v17726_v38  ;;  %v21331_v38 = vld [vmem:[#allocation64_spill] sm:$0xff] }
 0x302   : > { %4544 = vmatpush1.bf16.msra.mxu1 %v17967_v19  ;;  %7259 = vmatpush1.bf16.msra.mxu0 %v17738_v40  ;;  %v21332_v40 = vld [vmem:[#allocation17_spill] sm:$0xff] }
 0x303   : > { %4545 = vmatprep.subr.bf16.mxu1 %v17975_v31  ;;  %7260 = vmatprep.subr.bf16.mxu0 %v17745_v1  ;;  %v18002_v1 = vld [vmem:[%s20954_s3 + $0x570] ss:$8 sps:$4 sm:$0xff]  }
 0x304   : > { %7012 = vmatmul.mubr.bf16.gmra.mrb[72].mxu0 %v16979_v59  ;;  %4316 = vmatmul.mubr.bf16.gmra.mrb[12].mxu1 %v21330_v9  ;;  %v18009_v59 = vld [vmem:[%s20954_s3 + $0x584] ss:$8 sps:$4 sm:$0xff]  }
 0x305   : > { %13527 = vmatprep.mubr.msk.bf16.mxu0 %vm281_vm2, %v21331_v38  ;;  %13164 = vmatprep.mubr.msk.bf16.mxu1 %vm281_vm2, %v21332_v40  ;;  %v21349_v38 = vld [vmem:[#allocation55_spill] sm:$0xff]  ;;  %v15202_v40 = vld [vmem:[%s20956_s5 + $0x50] sm:$0xff]  }
 0x306   : > { %4546 = vmatpush1.bf16.msra.mxu1 %v17982_v30  ;;  %7261 = vmatpush1.bf16.msra.mxu0 %v17752_v23  ;;  %v18016_v23 = vld [vmem:[%s20954_s3 + $0x580] ss:$8 sps:$4 sm:$0xff]  }
 0x307   : > { %4547 = vmatprep.subr.bf16.mxu1 %v17989_v47  ;;  %7262 = vmatprep.subr.bf16.mxu0 %v17759_v45  ;;  %v18023_v45 = vld [vmem:[%s20954_s3 + $0x594] ss:$8 sps:$4 sm:$0xff]  }
 0x30a   : > { %4548 = vmatpush1.bf16.msra.mxu1 %v18002_v1  ;;  %7263 = vmatpush1.bf16.msra.mxu0 %v17772_v15  ;;  %v21336_v15 = vld [vmem:[#allocation19_spill] sm:$0xff] }
 0x30b   : > { %7264 = vmatprep.subr.bf16.mxu0 %v17780_v48  ;;  %4549 = vmatprep.subr.bf16.mxu1 %v18009_v59  ;;  %v18036_v48 = vld [vmem:[%s20954_s3 + $0x590] ss:$8 sps:$4 sm:$0xff]  }
 0x30c   : > { %7022 = vmatmul.mubr.bf16.gmra.mrb[76].mxu0 %v21333_v12  ;;  %4326 = vmatmul.mubr.bf16.gmra.mrb[16].mxu1 %v21334_v39  ;;  %v21350_v12 = vld [vmem:[#allocation29_spill] sm:$0xff]  ;;  %v21351_v39 = vld [vmem:[#allocation56_spill] sm:$0xff] }
 0x30d   : > { %13528 = vmatprep.mubr.msk.bf16.mxu0 %vm281_vm2, %v21335_v62  ;;  %13165 = vmatprep.mubr.msk.bf16.mxu1 %vm281_vm2, %v21336_v15  ;;  %v15203_v62 = vld [vmem:[%s20956_s5 + $0x58] sm:$0xff]   ;;  %v15204_v15 = vld [vmem:[%s20956_s5 + $0x60] sm:$0xff]  }
 0x30e   : > { %7265 = vmatpush1.bf16.msra.mxu0 %v17787_v56  ;;  %4550 = vmatpush1.bf16.msra.mxu1 %v18016_v23  ;;  %v21338_v56 = vld [vmem:[#allocation70_spill] sm:$0xff] }
 0x30f   : > { %7266 = vmatprep.subr.bf16.mxu0 %v17794_v52  ;;  %4551 = vmatprep.subr.bf16.mxu1 %v18023_v45  ;;  %v21342_v52 = vld [vmem:[#allocation21_spill] sm:$0xff] }
 0x312   : > { %7267 = vmatpush1.bf16.msra.mxu0 %v17807_v20  ;;  %4552 = vmatpush1.bf16.msra.mxu1 %v18036_v48  ;;  %v21343_v20 = vld [vmem:[#allocation23_spill] sm:$0xff] }
 0x313   : > { %7268 = vmatprep.subr.bf16.mxu0 %v17814_v25  ;;  %8714 = vmatprep.subr.bf16.mxu1 %v21337_v42  ;;  %v21344_v25 = vld [vmem:[#allocation44_spill] sm:$0xff] }
 0x314   : > { %7032 = vmatmul.mubr.bf16.gmra.mrb[80].mxu0 %v21338_v56  ;;  %4336 = vmatmul.mubr.bf16.gmra.mrb[20].mxu1 %v21339_v44  ;;  %v21352_v56 = vld [vmem:[#allocation30_spill] sm:$0xff] }
 0x315   : > { %13529 = vmatprep.mubr.msk.bf16.mxu0 %vm281_vm2, %v21340_v7  ;;  %13166 = vmatprep.mubr.msk.bf16.mxu1 %vm281_vm2, %v21341_v28  ;;  %v21353_v44 = vld [vmem:[#allocation58_spill] sm:$0xff]  ;;  %v21354_v7 = vld [vmem:[#allocation33_spill] sm:$0xff]  ;;  %v21355_v28 = vld [vmem:[#allocation59_spill] sm:$0xff] }
 0x316   : > { %7269 = vmatpush1.bf16.msra.mxu0 %v17821_v5  ;;  %v1608_v5 = vpack.c.bf16 %v18060_v8, %v1570_v13  ;;  %v21361_v13 = vld [vmem:[#allocation65_spill] sm:$0xff] }
 0x317   : > { %7270 = vmatprep.subr.bf16.mxu0 %v17828_v18  ;;  %v21346_v18 = vld [vmem:[#allocation7_spill] sm:$0xff] }
 0x31a   : > { %7271 = vmatpush1.bf16.msra.mxu0 %v17841_v36  ;;  %v21347_v36 = vld [vmem:[#allocation26_spill] sm:$0xff] }
 0x31b   : > { %7531 = vmatprep.subr.bf16.mxu0 %v17848_v2  ;;  %v1569_v2 = vld [vmem:[#allocation2 + $0x330] sm:$0xff] }
 0x31c   : > { %7042 = vmatmul.mubr.bf16.gmra.mrb[84].mxu0 %v21342_v52  ;;  %4346 = vmatmul.mubr.bf16.gmra.mrb[24].mxu1 %v21343_v20  ;;  %v1607_v9 = vpack.c.bf16 %v18068_v50, %v1569_v2  ;;  %v15205_v52 = vld [vmem:[%s20956_s5 + $0x68] sm:$0xff]   ;;  %v15208_v20 = vld [vmem:[%s20956_s5 + $0x70] sm:$0xff]   ;;  %v21370_v2 = vld [vmem:[#allocation36_spill] sm:$0xff] }
 0x31d   : > { %13530 = vmatprep.mubr.msk.bf16.mxu0 %vm281_vm2, %v21344_v25  ;;  %13167 = vmatprep.mubr.msk.bf16.mxu1 %vm281_vm2, %v21345_v3  ;;  %v21357_v25 = vld [vmem:[#allocation62_spill] sm:$0xff] }
 0x31e   : > { %v21358_v3 = vld [vmem:[#allocation38_spill] sm:$0xff] }
 0x324   : > { %7052 = vmatmul.mubr.bf16.gmra.mrb[88].mxu0 %v21346_v18  ;;  %4356 = vmatmul.mubr.bf16.gmra.mrb[28].mxu1 %v21347_v36  ;;  %v21366_v18 = vld [vmem:[#allocation69_spill] sm:$0xff]  ;;  %v21369_v36 = vld [vmem:[#allocation48_spill] sm:$0xff] }
 0x325   : > { %13531 = vmatprep.mubr.msk.bf16.mxu0 %vm281_vm2, %v1608_v5  ;;  %13208 = vmatprep.mubr.msk.bf16.mxu1 %vm281_vm2, %v21348_v35  ;;  %v21362_v5 = vld [vmem:[#allocation42_spill] sm:$0xff] }
 0x32c   : > { %7062 = vmatmul.mubr.bf16.gmra.mrb[92].mxu0 %v1607_v9  ;;  %4566 = vmatmul.mubr.bf16.vlgmr.msra.gmra.mrb[0].mxu1 %v21349_v38 }
 0x32d   : > { %13572 = vmatprep.mubr.msk.bf16.mxu0 %vm281_vm2, %v21350_v12  ;;  %13209 = vmatprep.mubr.msk.bf16.mxu1 %vm281_vm2, %v21351_v39 }
 0x32e   : > { %8715 = vmatpush1.bf16.msra.mxu1 %v15202_v40  ;;  %v1679_v40 = vld [vmem:[#allocation2 + $0x350] sm:$0x1] }
 0x32f   : > { %8716 = vmatprep.subr.bf16.mxu1 %v21337_v42 }
 0x332   : > { %8717 = vmatpush1.bf16.msra.mxu1 %v15203_v62 }
 0x333   : > { %8718 = vmatprep.subr.bf16.mxu1 %v21337_v42 }
 0x334   : > { %7285 = vmatmul.mubr.bf16.vlgmr.msra.gmra.mrb[64].mxu0 %v21352_v56  ;;  %4576 = vmatmul.mubr.bf16.gmra.mrb[4].mxu1 %v21353_v44  ;;  %v1822_v44 = vld [vmem:[#allocation2 + $0x338] sm:$0xfc] }
 0x335   : > { %13573 = vmatprep.mubr.msk.bf16.mxu0 %vm281_vm2, %v21354_v7  ;;  %13210 = vmatprep.mubr.msk.bf16.mxu1 %vm281_vm2, %v21355_v28  ;;  %v1824_v7 = vld [vmem:[#allocation2 + $0x358] sm:$0x3] }
 0x336   : > { %7532 = vmatpush1.bf16.msra.mxu0 %v17886_v43  ;;  %8719 = vmatpush1.bf16.msra.mxu1 %v15204_v15  ;;  %v21356_v43 = vld [vmem:[#allocation34_spill] sm:$0xff]  ;;  %v15221_v28 = vld [vmem:[%s20956_s5 + $0x98] sm:$0xff]  }
 0x337   : > { %7533 = vmatprep.subr.bf16.mxu0 %v17891_v11  ;;  %8720 = vmatprep.subr.bf16.mxu1 %v21337_v42  ;;  %v21359_v11 = vld [vmem:[#allocation63_spill] sm:$0xff] }
 0x33a   : > { %7534 = vmatpush1.bf16.msra.mxu0 %v17901_v22  ;;  %8721 = vmatpush1.bf16.msra.mxu1 %v15205_v52  ;;  %v15210_v22 = vld [vmem:[%s20956_s5 + $0x78] sm:$0xff]   ;;  %v1896_v52 = vpack.c.bf16 %v1824_v7, %v1824_v7  ;;  %v15234_v7 = vld [vmem:[%s20956_s5 + $0x168] sm:$0xff]  }
 0x33b   : > { %7535 = vmatprep.subr.bf16.mxu0 %v17909_v61  ;;  %8722 = vmatprep.subr.bf16.mxu1 %v21337_v42  ;;  %v15213_v61 = vld [vmem:[%s20956_s5 + $0x80] sm:$0xff]  }
 0x33c   : > { %7295 = vmatmul.mubr.bf16.gmra.mrb[68].mxu0 %v21356_v43  ;;  %4586 = vmatmul.mubr.bf16.gmra.mrb[8].mxu1 %v21357_v25  ;;  %v8104_v43 = vld [vmem:[#allocation3 + $0x28] sm:$0x1] }
 0x33d   : > { %13574 = vmatprep.mubr.msk.bf16.mxu0 %vm281_vm2, %v21358_v3  ;;  %13211 = vmatprep.mubr.msk.bf16.mxu1 %vm281_vm2, %v21359_v11  ;;  %v8176_v3 = vpack.c.bf16 %v8104_v43, %v8104_v43  ;;  %v8101_v11 = vld [vmem:[#allocation3] sm:$0xfe] }
 0x33e   : > { %7536 = vmatpush1.bf16.msra.mxu0 %v17915_v4  ;;  %8723 = vmatpush1.bf16.msra.mxu1 %v15208_v20  ;;  %v21360_v4 = vld [vmem:[#allocation40_spill] sm:$0xff]  ;;  %v8102_v20 = vld [vmem:[#allocation3 + $0x8] sm:$0xfe] }
 0x33f   : > { %7537 = vmatprep.subr.bf16.mxu0 %v17921_v34  ;;  %8724 = vmatprep.subr.bf16.mxu1 %v21337_v42  ;;  %v21363_v34 = vld [vmem:[#allocation66_spill] sm:$0xff]  ;;  %v15239_v43 = vld [vmem:[%s20956_s5 + $0x180] sm:$0xff]  }
 0x342   : > { %7538 = vmatpush1.bf16.msra.mxu0 %v17933_v49  ;;  %8725 = vmatpush1.bf16.msra.mxu1 %v15210_v22  ;;  %v21364_v49 = vld [vmem:[#allocation45_spill] sm:$0xff]  ;;  %v8103_v22 = vld [vmem:[#allocation3 + $0x20] sm:$0x1] }
 0x343   : > { %7539 = vmatprep.subr.bf16.mxu0 %v17940_v46  ;;  %8726 = vmatprep.subr.bf16.mxu1 %v21337_v42  ;;  %v21365_v46 = vld [vmem:[#allocation46_spill] sm:$0xff] }
 0x344   : > { %7305 = vmatmul.mubr.bf16.gmra.mrb[72].mxu0 %v21360_v4  ;;  %4596 = vmatmul.mubr.bf16.gmra.mrb[12].mxu1 %v21361_v13 }
 0x345   : > { %13575 = vmatprep.mubr.msk.bf16.mxu0 %vm281_vm2, %v21362_v5  ;;  %13212 = vmatprep.mubr.msk.bf16.mxu1 %vm281_vm2, %v21363_v34  ;;  %v8429_v5 = vshll.u32 %v8176_v3, 16  ;;  %v15241_v3 = vld [vmem:[%s20956_s5 + $0x48] sm:$0xff]  }
 0x346   : > { %7540 = vmatpush1.bf16.msra.mxu0 %v17947_v63  ;;  %8727 = vmatpush1.bf16.msra.mxu1 %v15213_v61  ;;  %v1678_v63 = vld [vmem:[#allocation2 + $0x338] sm:$0xfe]  ;;  %v8173_v61 = vpack.c.bf16 %v18068_v50, %v8101_v11  ;;  %v4678_v11 = vld [vmem:[%s20955_s4] sm:$0x3] }
 0x347   : > { %7541 = vmatprep.subr.bf16.mxu0 %v17954_v60  ;;  %8728 = vmatprep.subr.bf16.mxu1 %v21337_v42  ;;  %v1750_v60 = vpack.c.bf16 %v18060_v8, %v1678_v63  ;;  %v8175_v63 = vpack.c.bf16 %v8103_v22, %v8103_v22  ;;  %v21371_v22 = vld [vmem:[#allocation4_spill] sm:$0xff] }
 0x349   : > { %v7119_v35 = vshll.u32 %v1750_v60, 16 }
 0x34a   : > { %7542 = vmatpush1.bf16.msra.mxu0 %v17967_v19  ;;  %v1680_v19 = vld [vmem:[#allocation2 + $0x358] sm:$0x1] }
 0x34b   : > { %7543 = vmatprep.subr.bf16.mxu0 %v17975_v31  ;;  %v21367_v31 = vld [vmem:[#allocation47_spill] sm:$0xff]  ;;  %v7121_v9 = vrot.slane %v7119_v35, 1 }
 0x34c   : > { %7315 = vmatmul.mubr.bf16.gmra.mrb[76].mxu0 %v21364_v49  ;;  %4606 = vmatmul.mubr.bf16.gmra.mrb[16].mxu1 %v17016_v57  ;;  %v21368_v57 = vld [vmem:[#allocation71_spill] sm:$0xff]  ;;  %v7405_v49 = vrot.slane %v1896_v52, 1 }
 0x34d   : > { %13576 = vmatprep.mubr.msk.bf16.mxu0 %vm281_vm2, %v21365_v46  ;;  %13213 = vmatprep.mubr.msk.bf16.mxu1 %vm281_vm2, %v21366_v18  ;;  %v1823_v46 = vld [vmem:[#allocation2 + $0x350] sm:$0x3]  ;;  %v8246_v18 = vld [vmem:[#allocation3 + $0x8] sm:$0xfc]  ;;  %v15237_v52 = vld [vmem:[%s20956_s5 + $0x178] sm:$0xff]  }
 0x34e   : > { %7544 = vmatpush1.bf16.msra.mxu0 %v17982_v30  ;;  %v1677_v30 = vld [vmem:[#allocation2 + $0x330] sm:$0xfe] }
 0x34f   : > { %7545 = vmatprep.subr.bf16.mxu0 %v17989_v47  ;;  %v1752_v47 = vpack.c.bf16 %v1680_v19, %v1680_v19 }
 0x351   : > { %v7124_v38 = vshll.u32 %v1752_v47, 16 }
 0x352   : > { %7546 = vmatpush1.bf16.msra.mxu0 %v18002_v1  ;;  %v1749_v1 = vpack.c.bf16 %v18068_v50, %v1677_v30  ;;  %v1895_v30 = vpack.c.bf16 %v1823_v46, %v1823_v46 }
 0x353   : > { %7547 = vmatprep.subr.bf16.mxu0 %v18009_v59  ;;  %v7117_v59 = vshrl.u32 %v1750_v60, 16  ;;  %v7126_v39 = vrot.slane %v7124_v38, 1  ;;  %v8248_v60 = vld [vmem:[#allocation3 + $0x28] sm:$0x3] }
 0x354   : > { %7325 = vmatmul.mubr.bf16.gmra.mrb[80].mxu0 %v21367_v31  ;;  %4616 = vmatmul.mubr.bf16.gmra.mrb[20].mxu1 %v21368_v57  ;;  %v7105_v62 = vshrl.u32 %v1749_v1, 16  ;;  %v8431_v31 = vrot.slane %v8429_v5, 1  ;;  %v8410_v57 = vshrl.u32 %v8173_v61, 16 }
 0x355   : > { %13577 = vmatprep.mubr.msk.bf16.mxu0 %vm281_vm2, %v21369_v36  ;;  %13214 = vmatprep.mubr.msk.bf16.mxu1 %vm281_vm2, %v21370_v2  ;;  %v7122_v12 = vor.u32 %v7121_v9, %v7117_v59  ;;  %v8417_v36 = vshll.u32 %v8175_v63, 16  ;;  %v8320_v59 = vpack.c.bf16 %v8248_v60, %v8248_v60 }
 0x356   : > { %7548 = vmatpush1.bf16.msra.mxu0 %v18016_v23  ;;  %v1751_v23 = vpack.c.bf16 %v1679_v40, %v1679_v40 }
 0x357   : > { %7549 = vmatprep.subr.bf16.mxu0 %v18023_v45  ;;  %v7107_v45 = vshll.u32 %v1749_v1, 16  ;;  %v8419_v9 = vrot.slane %v8417_v36, 1 }
 0x358   : > { %v7112_v56 = vshll.u32 %v1751_v23, 16  ;;  %v15222_v23 = vld [vmem:[%s20956_s5] sm:$0xff]  }
 0x359   : > { %v7109_v15 = vrot.slane %v7107_v45, 1 }
 0x35a   : > { %7550 = vmatpush1.bf16.msra.mxu0 %v18036_v48  ;;  %v7127_v48 = vsel %vm1917_vm5, %v7122_v12, %v7126_v39  ;;  %v7402_v12 = vrot.slane %v1895_v30, 1 }
 0x35b   : > { %9185 = vmatprep.subr.bf16.mxu0 %v21337_v42 }
 0x35c   : > { %7335 = vmatmul.mubr.bf16.gmra.mrb[84].mxu0 %v21309_v0  ;;  %4626 = vmatmul.mubr.bf16.gmra.mrb[24].mxu1 %v21310_v51  ;;  %v7110_v51 = vor.u32 %v7109_v15, %v7105_v62  ;;  %v9028_v15 = vrot.slane %v8320_v59, 1 }
 0x35d   : > { %13578 = vmatprep.mubr.msk.bf16.mxu0 %vm281_vm2, %v17677_v21  ;;  %13215 = vmatprep.mubr.msk.bf16.mxu1 %vm281_vm2, %v21313_v58  ;;  %v7114_v21 = vrot.slane %v7112_v56, 1  ;;  %v15206_v58 = vld [vmem:[%s20956_s5 + $0xa0] sm:$0xff]  }
 0x35e   : > { %v8245_v56 = vld [vmem:[#allocation3] sm:$0xfc] }
 0x35f   : > { %v7115_v0 = vsel %vm1917_vm5, %v7110_v51, %v7114_v21  ;;  %v15223_v51 = vld [vmem:[%s20956_s5 + $0x8] sm:$0xff]   ;;  %v8317_v21 = vpack.c.bf16 %v18068_v50, %v8245_v56 }
 0x364   : > { %7345 = vmatmul.mubr.bf16.gmra.mrb[88].mxu0 %v17686_v53  ;;  %4636 = vmatmul.mubr.bf16.gmra.mrb[28].mxu1 %v17127_v26  ;;  %v15207_v26 = vld [vmem:[%s20956_s5 + $0xa8] sm:$0xff]   ;;  %v15209_v53 = vld [vmem:[%s20956_s5 + $0xb0] sm:$0xff]  }
 0x365   : > { %13579 = vmatprep.mubr.msk.bf16.mxu0 %vm281_vm2, %v7127_v48  ;;  %v8247_v48 = vld [vmem:[#allocation3 + $0x20] sm:$0x3] }
 0x36c   : > { %7355 = vmatmul.mubr.bf16.gmra.mrb[92].mxu0 %v7115_v0  ;;  %v8319_v0 = vpack.c.bf16 %v8247_v48, %v8247_v48 }
 0x36d   : > { %13620 = vmatprep.mubr.msk.bf16.mxu0 %vm281_vm2, %v21315_v10  ;;  %v15212_v10 = vld [vmem:[%s20956_s5 + $0xc0] sm:$0xff]  }
 0x374   : > { %7564 = vmatmul.mubr.bf16.vlgmr.msra.gmra.mrb[64].mxu0 %v17168_v37  ;;  %v15211_v37 = vld [vmem:[%s20956_s5 + $0xb8] sm:$0xff]  }
 0x375   : > { %13621 = vmatprep.mubr.msk.bf16.mxu0 %vm281_vm2, %v21318_v29  ;;  %9186 = vmatpush1.bf16.msra.mxu0 %v15206_v58  ;;  %v15214_v29 = vld [vmem:[%s20956_s5 + $0xc8] sm:$0xff]  }
 0x376   : > { %9187 = vmatprep.subr.bf16.mxu0 %v21337_v42 }
 0x379   : > { %9188 = vmatpush1.bf16.msra.mxu0 %v15207_v26  ;;  %v9024_v26 = vrot.slane %v8317_v21, 1 }
 0x37a   : > { %9189 = vmatprep.subr.bf16.mxu0 %v21337_v42 }
 0x37c   : > { %7574 = vmatmul.mubr.bf16.gmra.mrb[68].mxu0 %v21320_v54  ;;  %v15215_v54 = vld [vmem:[%s20956_s5 + $0x88] sm:$0xff]  }
 0x37d   : > { %13622 = vmatprep.mubr.msk.bf16.mxu0 %vm281_vm2, %v21322_v33  ;;  %9190 = vmatpush1.bf16.msra.mxu0 %v15209_v53  ;;  %v15218_v33 = vld [vmem:[%s20956_s5 + $0x90] sm:$0xff]   ;;  %v9025_v53 = vrot.slane %v8319_v0, 1 }
 0x37e   : > { %9191 = vmatprep.subr.bf16.mxu0 %v21337_v42  ;;  %8729 = vmatpush1.bf16.msra.mxu1 %v15215_v54  ;;  %v15227_v54 = vld [vmem:[%s20956_s5 + $0x148] sm:$0xff]  }
 0x37f   : > { %8730 = vmatprep.subr.bf16.mxu1 %v21337_v42 }
 0x381   : > { %9192 = vmatpush1.bf16.msra.mxu0 %v15211_v37  ;;  %v15224_v37 = vld [vmem:[%s20956_s5 + $0x10] sm:$0xff]  }
 0x382   : > { %9193 = vmatprep.subr.bf16.mxu0 %v21337_v42  ;;  %8731 = vmatpush1.bf16.msra.mxu1 %v15218_v33  ;;  %v15230_v33 = vld [vmem:[%s20956_s5 + $0x28] sm:$0xff]  }
 0x383   : > { %8732 = vmatprep.subr.bf16.mxu1 %v21337_v42 }
 0x384   : > { %7584 = vmatmul.mubr.bf16.gmra.mrb[72].mxu0 %v17250_v14  ;;  %v15216_v14 = vld [vmem:[%s20956_s5 + $0xd0] sm:$0xff]  }
 0x385   : > { %13623 = vmatprep.mubr.msk.bf16.mxu0 %vm281_vm2, %v17253_v32  ;;  %9194 = vmatpush1.bf16.msra.mxu0 %v15212_v10  ;;  %v15217_v32 = vld [vmem:[%s20956_s5 + $0xd8] sm:$0xff]   ;;  %v9026_v10 = vsel %vm2645_vm14, %v9024_v26, %v9025_v53 }
 0x386   : > { %9195 = vmatprep.subr.bf16.mxu0 %v21337_v42  ;;  %8733 = vmatpush1.bf16.msra.mxu1 %v15221_v28  ;;  %v15235_v28 = vld [vmem:[%s20956_s5 + $0x38] sm:$0xff]  }
 0x387   : > { %8895 = vmatprep.subr.bf16.mxu1 %v21337_v42 }
 0x389   : > { %9196 = vmatpush1.bf16.msra.mxu0 %v15214_v29  ;;  %v15226_v29 = vld [vmem:[%s20956_s5 + $0x140] sm:$0xff]  }
 0x38a   : > { %9197 = vmatprep.subr.bf16.mxu0 %v21337_v42 }
 0x38c   : > { %7594 = vmatmul.mubr.bf16.gmra.mrb[76].mxu0 %v17268_v16  ;;  %v15219_v16 = vld [vmem:[%s20956_s5 + $0xe0] sm:$0xff]  }
 0x38d   : > { %13624 = vmatprep.mubr.msk.bf16.mxu0 %vm281_vm2, %v17271_v55  ;;  %9198 = vmatpush1.bf16.msra.mxu0 %v15216_v14  ;;  %v15220_v55 = vld [vmem:[%s20956_s5 + $0xe8] sm:$0xff]   ;;  %v15228_v14 = vld [vmem:[%s20956_s5 + $0x20] sm:$0xff]  }
 0x38e   : > { %9199 = vmatprep.subr.bf16.mxu0 %v21337_v42 }
 0x391   : > { %9200 = vmatpush1.bf16.msra.mxu0 %v15217_v32  ;;  %v15229_v32 = vld [vmem:[%s20956_s5 + $0x150] sm:$0xff]  }
 0x392   : > { %9201 = vmatprep.subr.bf16.mxu0 %v21337_v42 }
 0x394   : > { %7604 = vmatmul.mubr.bf16.gmra.mrb[80].mxu0 %v17282_v17  ;;  %v18234_v17 = vld [vmem:[#allocation3 + $0x18] sm:$0xff] }
 0x395   : > { %13625 = vmatprep.mubr.msk.bf16.mxu0 %vm281_vm2, %v17285_v24  ;;  %9202 = vmatpush1.bf16.msra.mxu0 %v15219_v16  ;;  %v1894_v24 = vpack.c.bf16 %v18060_v8, %v1822_v44  ;;  %v8174_v25 = vpack.c.bf16 %v18234_v17, %v8102_v20  ;;  %v1821_v8 = vld [vmem:[#allocation2 + $0x330] sm:$0xfc]  ;;  %v8318_v1 = vpack.c.bf16 %v18234_v17, %v8246_v18  ;;  %v15231_v16 = vld [vmem:[%s20956_s5 + $0x158] sm:$0xff]   ;;  %v15238_v20 = vld [vmem:[%s20956_s5 + $0x40] sm:$0xff]  }
 0x396   : > { %9203 = vmatprep.subr.bf16.mxu0 %v21337_v42  ;;  %v1893_v2 = vpack.c.bf16 %v18068_v50, %v1821_v8  ;;  %v15225_v50 = vld [vmem:[%s20956_s5 + $0x18] sm:$0xff]   ;;  %v15233_v44 = vld [vmem:[%s20956_s5 + $0x30] sm:$0xff]   ;;  %v21372_v8 = vld [vmem:[#allocation5_spill] sm:$0xff] }
 0x397   : > { %v8422_v4 = vshrl.u32 %v8174_v25, 16  ;;  %v8424_v13 = vshll.u32 %v8174_v25, 16  ;;  %v7404_v34 = vrot.slane %v1894_v24, 1  ;;  %v9027_v62 = vrot.slane %v8318_v1, 1  ;;  %v15236_v24 = vld [vmem:[%s20956_s5 + $0x170] sm:$0xff]   ;;  %v15240_v25 = vld [vmem:[%s20956_s5 + $0x188] sm:$0xff]  }
 0x398   : > { %v7401_v45 = vrot.slane %v1893_v2, 1 }
 0x399   : > { %9204 = vmatpush1.bf16.msra.mxu0 %v15220_v55  ;;  %v8426_v19 = vrot.slane %v8424_v13, 1  ;;  %v7406_v35 = vsel %vm2645_vm14, %v7404_v34, %v7405_v49  ;;  %v9029_v58 = vsel %vm2645_vm14, %v9027_v62, %v9028_v15  ;;  %v15232_v55 = vld [vmem:[%s20956_s5 + $0x160] sm:$0xff]  }
 0x39a   : > { %9604 = vmatprep.subr.bf16.mxu0 %v21337_v42 }
 0x39b   : > { %v8427_v47 = vor.u32 %v8426_v19, %v8422_v4  ;;  %v18344_v4 = vrot.slane %v4678_v11, %v21372_v8 }
 0x39c   : > { %7614 = vmatmul.mubr.bf16.gmra.mrb[84].mxu0 %v17294_v27  ;;  %v8412_v27 = vshll.u32 %v8173_v61, 16  ;;  %v18341_v61 = vrot.slane %v4678_v11, %v21371_v22 }
 0x39d   : > { %13626 = vmatprep.mubr.msk.bf16.mxu0 %vm281_vm2, %v17872_v41  ;;  %v8432_v38 = vsel %vm1917_vm5, %v8427_v47, %v8431_v31 }
 0x39e   : > { %v8414_v41 = vrot.slane %v8412_v27, 1  ;;  %13658 = vmatprep.mubr.msk.bf16.mxu1 %vm281_vm2, %v8432_v38 }
 0x3a0   : > { %v8415_v40 = vor.u32 %v8414_v41, %v8410_v57 }
 0x3a2   : > { %v8420_v39 = vsel %vm1917_vm5, %v8415_v40, %v8419_v9 }
 0x3a3   : > { %8747 = vmatmul.mubr.bf16.vlgmr.msra.gmra.mrb[32].mxu1 %v8420_v39 }
 0x3a4   : > { %7624 = vmatmul.mubr.bf16.gmra.mrb[88].mxu0 %v17881_v6  ;;  %8896 = vmatpush1.bf16.msra.mxu1 %v15222_v23  ;;  %v7403_v6 = vsel %vm2645_vm14, %v7401_v45, %v7402_v12 }
 0x3a5   : > { %13627 = vmatprep.mubr.msk.bf16.mxu0 %vm281_vm2, %v7406_v35  ;;  %8897 = vmatprep.subr.bf16.mxu1 %v21337_v42 }
 0x3a8   : > { %8898 = vmatpush1.bf16.msra.mxu1 %v15223_v51 }
 0x3a9   : > { %8899 = vmatprep.subr.bf16.mxu1 %v21337_v42 }
 0x3ac   : > { %7634 = vmatmul.mubr.bf16.gmra.mrb[92].mxu0 %v7403_v6  ;;  %8900 = vmatpush1.bf16.msra.mxu1 %v15224_v37  ;;  %v7676_v6 = vld [vmem:[%s20955_s4] sm:$0x3]  ;;  %v18362_v37 = vld [vmem:[#allocation3 + $0x8] sm:$0xff] }
 0x3ad   : > { %13714 = vmatprep.mubr.msk.bf16.mxu0 %vm281_vm2, %v9029_v58  ;;  %8901 = vmatprep.subr.bf16.mxu1 %v21337_v42 }
 0x3b0   : > { %8902 = vmatpush1.bf16.msra.mxu1 %v15225_v50 }
 0x3b1   : > { %8903 = vmatprep.subr.bf16.mxu1 %v21337_v42 }
 0x3b4   : > { %9218 = vmatmul.mubr.bf16.vlgmr.msra.gmra.mrb[96].mxu0 %v9026_v10  ;;  %8904 = vmatpush1.bf16.msra.mxu1 %v15228_v14  ;;  %v18365_v14 = vrot.slane %v7676_v6, %v21371_v22 }
 0x3b5   : > { %9605 = vmatpush1.bf16.msra.mxu0 %v15226_v29  ;;  %8905 = vmatprep.subr.bf16.mxu1 %v21337_v42 }
 0x3b6   : > { %9606 = vmatprep.subr.bf16.mxu0 %v21337_v42 }
 0x3b8   : > { %8906 = vmatpush1.bf16.msra.mxu1 %v15230_v33 }
 0x3b9   : > { %9607 = vmatpush1.bf16.msra.mxu0 %v15227_v54  ;;  %8907 = vmatprep.subr.bf16.mxu1 %v21337_v42 }
 0x3ba   : > { %9608 = vmatprep.subr.bf16.mxu0 %v21337_v42 }
 0x3bc   : > { %8908 = vmatpush1.bf16.msra.mxu1 %v15233_v44  ;;  %v18368_v44 = vrot.slane %v7676_v6, %v21372_v8 }
 0x3bd   : > { %9609 = vmatpush1.bf16.msra.mxu0 %v15229_v32  ;;  %8909 = vmatprep.subr.bf16.mxu1 %v21337_v42 }
 0x3be   : > { %9610 = vmatprep.subr.bf16.mxu0 %v21337_v42 }
 0x3c0   : > { %8910 = vmatpush1.bf16.msra.mxu1 %v15235_v28 }
 0x3c1   : > { %9611 = vmatpush1.bf16.msra.mxu0 %v15231_v16  ;;  %8911 = vmatprep.subr.bf16.mxu1 %v21337_v42 }
 0x3c2   : > { %9612 = vmatprep.subr.bf16.mxu0 %v21337_v42 }
 0x3c4   : > { %8912 = vmatpush1.bf16.msra.mxu1 %v15238_v20 }
 0x3c5   : > { %9613 = vmatpush1.bf16.msra.mxu0 %v15232_v55  ;;  %8913 = vmatprep.subr.bf16.mxu1 %v21337_v42 }
 0x3c6   : > { %9614 = vmatprep.subr.bf16.mxu0 %v21337_v42 }
 0x3c8   : > { %8914 = vmatpush1.bf16.msra.mxu1 %v15241_v3 }
 0x3c9   : > { %9615 = vmatpush1.bf16.msra.mxu0 %v15234_v7  ;;  %9382 = vmatprep.subr.bf16.mxu1 %v21337_v42 }
 0x3ca   : > { %9616 = vmatprep.subr.bf16.mxu0 %v21337_v42 }
 0x3cd   : > { %9617 = vmatpush1.bf16.msra.mxu0 %v15236_v24 }
 0x3ce   : > { %9618 = vmatprep.subr.bf16.mxu0 %v21337_v42 }
 0x3d1   : > { %9619 = vmatpush1.bf16.msra.mxu0 %v15237_v52 }
 0x3d2   : > { %9620 = vmatprep.subr.bf16.mxu0 %v21337_v42 }
 0x3d5   : > { %9621 = vmatpush1.bf16.msra.mxu0 %v15239_v43 }
 0x3d6   : > { %9622 = vmatprep.subr.bf16.mxu0 %v21337_v42 }
 0x3d9   : > { %9623 = vmatpush1.bf16.msra.mxu0 %v15240_v25 }
 0x3da   : > { %10009 = vmatprep.subr.bf16.mxu0 %v21337_v42 }
 0x3ff   : > { %v4567_v13 = vpop.f32.mrb[0].mxu1 }
 0x400   : > { %v4690_v5 = vadd.f32 %v18341_v61, %v4567_v13  ;;  %v4569_v34 = vpop.f32.mrb[1].mxu1 }
 0x401   : > { %v4691_v49 = vadd.f32 %v18344_v4, %v4569_v34  ;;  %v4571_v46 = vpop.f32.mrb[2].mxu1 }
 0x402   : > { %vm4722_vm4 = vcmp.gt.f32.partialorder %v4690_v5, 0.0  ;;  %v4754_v18 = vmul.f32 0.01, %v4690_v5  ;;  %v4692_v63 = vadd.f32 %v18341_v61, %v4571_v46  ;;  %v4573_v60 = vpop.f32.mrb[3].mxu1 }
 0x403   : > { %vm4723_vm6 = vcmp.gt.f32.partialorder %v4691_v49, 0.0  ;;  %v4755_v19 = vmul.f32 0.01, %v4691_v49  ;;  %v4693_v31 = vadd.f32 %v18344_v4, %v4573_v60 }
 0x404   : > { %v4786_v57 = vsel %vm4722_vm4, %v4690_v5, %v4754_v18  ;;  %vm4724_vm7 = vcmp.gt.f32.partialorder %v4692_v63, 0.0  ;;  %v4756_v27 = vmul.f32 0.01, %v4692_v63 }
 0x405   : > { %v4850_v36 = vrot.slane %v4786_v57, 7  ;;  %v4787_v2 = vsel %vm4723_vm6, %v4691_v49, %v4755_v19  ;;  %vm4725_vm9 = vcmp.gt.f32.partialorder %v4693_v31, 0.0  ;;  %v4757_v30 = vmul.f32 0.01, %v4693_v31 }
 0x406   : > { %v4851_v47 = vrot.slane %v4787_v2, 7  ;;  %v4788_v41 = vsel %vm4724_vm7, %v4692_v63, %v4756_v27 }
 0x407   : > { %4947 = vst [vmem:[#allocation3 + $0x30] sm:$0xfe] %v4850_v36  ;;  %v4852_v35 = vrot.slane %v4788_v41, 7  ;;  %v4789_v1 = vsel %vm4725_vm9, %v4693_v31, %v4757_v30  ;;  %v4577_v59 = vpop.f32.mrb[4].mxu1 }
 0x408   : > { %4948 = vst.msk [vmem:[#allocation3 + $0x38] sm:$0xfe] %vm1404_vm8, %v4851_v47  ;;  %v4854_v9 = vrot.slane %v4789_v1, 7  ;;  %v4694_v38 = vadd.f32 %v18341_v61, %v4577_v59  ;;  %v4579_v40 = vpop.f32.mrb[5].mxu1 }
 0x409   : > { %v4853_v23 = vsel %vm1209_vm10, %v4850_v36, %v4852_v35  ;;  %4951 = vst [vmem:[#allocation3 + $0x50] sm:$0x1] %v4852_v35  ;;  %v4695_v45 = vadd.f32 %v18344_v4, %v4579_v40  ;;  %v4581_v12 = vpop.f32.mrb[6].mxu1 }
 0x40a   : > { %4949 = vst [vmem:[#allocation3 + $0x40] sm:$0xff] %v4853_v23  ;;  %v4855_v39 = vsel %vm1209_vm10, %v4851_v47, %v4854_v9  ;;  %4952 = vst.msk [vmem:[#allocation3 + $0x58] sm:$0x1] %vm1409_vm12, %v4854_v9  ;;  %vm4726_vm11 = vcmp.gt.f32.partialorder %v4694_v38, 0.0  ;;  %v4758_v62 = vmul.f32 0.01, %v4694_v38  ;;  %v4696_v15 = vadd.f32 %v18341_v61, %v4581_v12 }
 0x40b   : > { %v4583_v56 = vpop.f32.mrb[7].mxu1  ;;  %4950 = vst.msk [vmem:[#allocation3 + $0x48] sm:$0xff] %vm281_vm2, %v4855_v39  ;;  %vm4727_vm13 = vcmp.gt.f32.partialorder %v4695_v45, 0.0  ;;  %v4759_v48 = vmul.f32 0.01, %v4695_v45 }
 0x40c   : > { %v4697_v51 = vadd.f32 %v18344_v4, %v4583_v56  ;;  %v4790_v21 = vsel %vm4726_vm11, %v4694_v38, %v4758_v62  ;;  %vm4728_vm15 = vcmp.gt.f32.partialorder %v4696_v15, 0.0  ;;  %v4760_v0 = vmul.f32 0.01, %v4696_v15 }
 0x40d   : > { %v4856_v58 = vrot.slane %v4790_v21, 7  ;;  %v4791_v26 = vsel %vm4727_vm13, %v4695_v45, %v4759_v48 }
 0x40e   : > { %vm4729_vm0 = vcmp.gt.f32.partialorder %v4697_v51, 0.0  ;;  %v4761_v53 = vmul.f32 0.01, %v4697_v51  ;;  %v4857_v10 = vrot.slane %v4791_v26, 7  ;;  %v4792_v50 = vsel %vm4728_vm15, %v4696_v15, %v4760_v0  ;;  %v8249_v29 = vld [vmem:[#allocation3 + $0x30] sm:$0xfc] }
 0x40f   : > { %v8105_v54 = vld [vmem:[#allocation3 + $0x30] sm:$0xfe]  ;;  %4953 = vst [vmem:[#allocation3 + $0x60] sm:$0xfe] %v4856_v58  ;;  %v4858_v32 = vrot.slane %v4792_v50, 7  ;;  %v4587_v16 = vpop.f32.mrb[8].mxu1  ;;  %v8321_v55 = vpack.c.bf16 %v4853_v23, %v8249_v29 }
 0x410   : > { %v4793_v33 = vsel %vm4729_vm0, %v4697_v51, %v4761_v53  ;;  %4954 = vst.msk [vmem:[#allocation3 + $0x68] sm:$0xfe] %vm1404_vm8, %v4857_v10  ;;  %v4698_v28 = vadd.f32 %v18341_v61, %v4587_v16  ;;  %v4589_v24 = vpop.f32.mrb[9].mxu1  ;;  %v8251_v52 = vld [vmem:[#allocation3 + $0x50] sm:$0x3]  ;;  %v18372_v20 = vpack.c.bf16 %v4853_v23, %v8105_v54 }
 0x411   : > { %v4860_v7 = vrot.slane %v4793_v33, 7  ;;  %v18377_v25 = vsel %vm1209_vm10, %v4856_v58, %v4858_v32  ;;  %4957 = vst [vmem:[#allocation3 + $0x80] sm:$0x1] %v4858_v32  ;;  %v4699_v3 = vadd.f32 %v18344_v4, %v4589_v24  ;;  %v4591_v11 = vpop.f32.mrb[10].mxu1  ;;  %v8250_v22 = vld [vmem:[#allocation3 + $0x38] sm:$0xfc]  ;;  %v8323_v13 = vpack.c.bf16 %v8251_v52, %v8251_v52 }
 0x412   : > { %v8252_v8 = vld [vmem:[#allocation3 + $0x58] sm:$0x3]  ;;  %v9030_v5 = vrot.slane %v8321_v55, 1  ;;  %4955 = vst [vmem:[#allocation3 + $0x70] sm:$0xff] %v18377_v25  ;;  %vm4730_vm1 = vcmp.gt.f32.partialorder %v4698_v28, 0.0  ;;  %v4700_v46 = vadd.f32 %v18341_v61, %v4591_v11  ;;  %v4593_v18 = vpop.f32.mrb[11].mxu1 }
 0x413   : > { %v4861_v34 = vsel %vm1209_vm10, %v4857_v10, %v4860_v7  ;;  %4958 = vst.msk [vmem:[#allocation3 + $0x88] sm:$0x1] %vm1409_vm12, %v4860_v7  ;;  %v4762_v49 = vmul.f32 0.01, %v4698_v28  ;;  %v8000_v63 = vld [vmem:[#allocation3 + $0x48] sm:$0xff]  ;;  %vm4731_vm3 = vcmp.gt.f32.partialorder %v4699_v3, 0.0  ;;  %v4701_v19 = vadd.f32 %v18344_v4, %v4593_v18 }
 0x414   : > { %4956 = vst.msk [vmem:[#allocation3 + $0x78] sm:$0xff] %vm281_vm2, %v4861_v34  ;;  %v4763_v60 = vmul.f32 0.01, %v4699_v3  ;;  %v8322_v31 = vpack.c.bf16 %v8000_v63, %v8250_v22  ;;  %vm4732_vm4 = vcmp.gt.f32.partialorder %v4700_v46, 0.0  ;;  %v4764_v27 = vmul.f32 0.01, %v4700_v46 }
 0x415   : > { %v4794_v57 = vsel %vm4730_vm1, %v4698_v28, %v4762_v49  ;;  %v8324_v36 = vpack.c.bf16 %v8252_v8, %v8252_v8  ;;  %vm4733_vm6 = vcmp.gt.f32.partialorder %v4701_v19, 0.0  ;;  %v4765_v47 = vmul.f32 0.01, %v4701_v19  ;;  %v8108_v41 = vld [vmem:[#allocation3 + $0x58] sm:$0x1] }
 0x416   : > { %v4862_v2 = vrot.slane %v4794_v57, 7  ;;  %v4795_v30 = vsel %vm4731_vm3, %v4699_v3, %v4763_v60  ;;  %v4796_v1 = vsel %vm4732_vm4, %v4700_v46, %v4764_v27  ;;  %v9033_v59 = vrot.slane %v8322_v31, 1  ;;  %v8106_v38 = vld [vmem:[#allocation3 + $0x38] sm:$0xfe]  ;;  %v8107_v28 = vld [vmem:[#allocation3 + $0x50] sm:$0x1] }
 0x417   : > { %v4863_v35 = vrot.slane %v4795_v30, 7  ;;  %v9034_v9 = vrot.slane %v8324_v36, 1  ;;  %v4864_v40 = vrot.slane %v4796_v1, 7  ;;  %v4797_v23 = vsel %vm4733_vm6, %v4701_v19, %v4765_v47  ;;  %v4597_v45 = vpop.f32.mrb[12].mxu1  ;;  %v8254_v36 = vld [vmem:[#allocation3 + $0x68] sm:$0xfc] }
 0x418   : > { %4959 = vst [vmem:[#allocation3 + $0x90] sm:$0xfe] %v4862_v2  ;;  %v9031_v12 = vrot.slane %v8323_v13, 1  ;;  %v8178_v39 = vpack.c.bf16 %v8000_v63, %v8106_v38  ;;  %v4866_v62 = vrot.slane %v4797_v23, 7  ;;  %v4702_v15 = vadd.f32 %v18341_v61, %v4597_v45  ;;  %v4599_v56 = vpop.f32.mrb[13].mxu1 }
 0x419   : > { %4960 = vst.msk [vmem:[#allocation3 + $0x98] sm:$0xfe] %vm1404_vm8, %v4863_v35  ;;  %v18389_v48 = vsel %vm2645_vm14, %v9033_v59, %v9034_v9  ;;  %v8180_v51 = vpack.c.bf16 %v8108_v41, %v8108_v41  ;;  %v18392_v6 = vsel %vm1209_vm10, %v4862_v2, %v4864_v40  ;;  %4963 = vst [vmem:[#allocation3 + $0xb0] sm:$0x1] %v4864_v40  ;;  %v4601_v0 = vpop.f32.mrb[14].mxu1  ;;  %v8434_v18 = vshrl.u32 %v18372_v20, 16 }
 0x41a   : > { %v4703_v21 = vadd.f32 %v18344_v4, %v4599_v56  ;;  %13715 = vmatprep.mubr.msk.bf16.mxu0 %vm281_vm2, %v18389_v48  ;;  %v18398_v58 = vsel %vm2645_vm14, %v9030_v5, %v9031_v12  ;;  %v8446_v26 = vshrl.u32 %v8178_v39, 16  ;;  %4961 = vst [vmem:[#allocation3 + $0xa0] sm:$0xff] %v18392_v6  ;;  %v4867_v53 = vsel %vm1209_vm10, %v4863_v35, %v4866_v62  ;;  %v4603_v29 = vpop.f32.mrb[15].mxu1  ;;  %v8256_v41 = vld [vmem:[#allocation3 + $0x88] sm:$0x3] }
 0x41b   : > { %4964 = vst.msk [vmem:[#allocation3 + $0xb8] sm:$0x1] %vm1409_vm12, %v4866_v62  ;;  %vm4734_vm7 = vcmp.gt.f32.partialorder %v4702_v15, 0.0  ;;  %v4766_v10 = vmul.f32 0.01, %v4702_v15  ;;  %v4704_v50 = vadd.f32 %v18341_v61, %v4601_v0  ;;  %9226 = vmatmul.mubr.bf16.gmra.mrb[100].mxu0 %v18398_v58  ;;  %v4705_v32 = vadd.f32 %v18344_v4, %v4603_v29  ;;  %v8004_v5 = vld [vmem:[#allocation3 + $0x78] sm:$0xff] }
 0x41c   : > { %4962 = vst.msk [vmem:[#allocation3 + $0xa8] sm:$0xff] %vm281_vm2, %v4867_v53  ;;  %vm4735_vm9 = vcmp.gt.f32.partialorder %v4703_v21, 0.0  ;;  %v4767_v54 = vmul.f32 0.01, %v4703_v21  ;;  %v8448_v33 = vshll.u32 %v8178_v39, 16  ;;  %v8453_v7 = vshll.u32 %v8180_v51, 16 }
 0x41d   : > { %v4798_v16 = vsel %vm4734_vm7, %v4702_v15, %v4766_v10  ;;  %vm4736_vm11 = vcmp.gt.f32.partialorder %v4704_v50, 0.0  ;;  %v4768_v55 = vmul.f32 0.01, %v4704_v50  ;;  %vm4737_vm13 = vcmp.gt.f32.partialorder %v4705_v32, 0.0  ;;  %v8253_v59 = vld [vmem:[#allocation3 + $0x60] sm:$0xfc] }
 0x41e   : > { %v4868_v24 = vrot.slane %v4798_v16, 7  ;;  %v4799_v52 = vsel %vm4735_vm9, %v4703_v21, %v4767_v54  ;;  %v4769_v3 = vmul.f32 0.01, %v4705_v32  ;;  %v8450_v8 = vrot.slane %v8448_v33, 1  ;;  %v8255_v40 = vld [vmem:[#allocation3 + $0x80] sm:$0x3] }
 0x41f   : > { %v4869_v11 = vrot.slane %v4799_v52, 7  ;;  %v4800_v22 = vsel %vm4736_vm11, %v4704_v50, %v4768_v55  ;;  %v8455_v13 = vrot.slane %v8453_v7, 1  ;;  %v8179_v46 = vpack.c.bf16 %v8107_v28, %v8107_v28  ;;  %v4607_v63 = vpop.f32.mrb[16].mxu1  ;;  %v8110_v10 = vld [vmem:[#allocation3 + $0x68] sm:$0xfe] }
 0x420   : > { %4965 = vst [vmem:[#allocation3 + $0xc0] sm:$0xfe] %v4868_v24  ;;  %v4870_v34 = vrot.slane %v4800_v22, 7  ;;  %v4801_v49 = vsel %vm4737_vm13, %v4705_v32, %v4769_v3  ;;  %v8451_v19 = vor.u32 %v8450_v8, %v8446_v26  ;;  %v8436_v31 = vshll.u32 %v18372_v20, 16  ;;  %v4609_v27 = vpop.f32.mrb[17].mxu1 }
 0x421   : > { %4966 = vst.msk [vmem:[#allocation3 + $0xc8] sm:$0xfe] %vm1404_vm8, %v4869_v11  ;;  %v4872_v60 = vrot.slane %v4801_v49, 7  ;;  %v4706_v57 = vadd.f32 %v18341_v61, %v4607_v63  ;;  %v8441_v30 = vshll.u32 %v8179_v46, 16  ;;  %v4707_v47 = vadd.f32 %v18344_v4, %v4609_v27  ;;  %v4611_v1 = vpop.f32.mrb[18].mxu1 }
 0x422   : > { %v18412_v2 = vsel %vm1209_vm10, %v4868_v24, %v4870_v34  ;;  %4969 = vst [vmem:[#allocation3 + $0xe0] sm:$0x1] %v4870_v34  ;;  %v8326_v35 = vpack.c.bf16 %v8004_v5, %v8254_v36  ;;  %v18419_v20 = vsel %vm1917_vm5, %v8451_v19, %v8455_v13  ;;  %v8438_v38 = vrot.slane %v8436_v31, 1  ;;  %v4613_v23 = vpop.f32.mrb[19].mxu1  ;;  %v8112_v50 = vld [vmem:[#allocation3 + $0x88] sm:$0x1] }
 0x423   : > { %4967 = vst [vmem:[#allocation3 + $0xd0] sm:$0xff] %v18412_v2  ;;  %v4873_v9 = vsel %vm1209_vm10, %v4869_v11, %v4872_v60  ;;  %4970 = vst.msk [vmem:[#allocation3 + $0xe8] sm:$0x1] %vm1409_vm12, %v4872_v60  ;;  %vm4738_vm15 = vcmp.gt.f32.partialorder %v4706_v57, 0.0  ;;  %13659 = vmatprep.mubr.msk.bf16.mxu1 %vm281_vm2, %v18419_v20  ;;  %v8443_v45 = vrot.slane %v8441_v30, 1  ;;  %vm4739_vm0 = vcmp.gt.f32.partialorder %v4707_v47, 0.0 }
 0x424   : > { %4968 = vst.msk [vmem:[#allocation3 + $0xd8] sm:$0xff] %vm281_vm2, %v4873_v9  ;;  %v4770_v12 = vmul.f32 0.01, %v4706_v57  ;;  %v4771_v39 = vmul.f32 0.01, %v4707_v47  ;;  %v8439_v62 = vor.u32 %v8438_v38, %v8434_v18  ;;  %v8328_v15 = vpack.c.bf16 %v8256_v41, %v8256_v41 }
 0x425   : > { %v9039_v56 = vrot.slane %v8326_v35, 1  ;;  %v4708_v51 = vadd.f32 %v18341_v61, %v4611_v1  ;;  %v8325_v26 = vpack.c.bf16 %v18377_v25, %v8253_v59  ;;  %v8327_v53 = vpack.c.bf16 %v8255_v40, %v8255_v40  ;;  %v8109_v29 = vld [vmem:[#allocation3 + $0x60] sm:$0xfe]  ;;  %v8111_v55 = vld [vmem:[#allocation3 + $0x80] sm:$0x1]  ;;  %v8008_v1 = vld [vmem:[#allocation3 + $0xa8] sm:$0xff] }
 0x426   : > { %v4802_v21 = vsel %vm4738_vm15, %v4706_v57, %v4770_v12  ;;  %v4803_v0 = vsel %vm4739_vm0, %v4707_v47, %v4771_v39  ;;  %v18427_v54 = vsel %vm1917_vm5, %v8439_v62, %v8443_v45  ;;  %v9040_v16 = vrot.slane %v8328_v15, 1  ;;  %v8258_v62 = vld [vmem:[#allocation3 + $0x98] sm:$0xfc] }
 0x427   : > { %v4874_v32 = vrot.slane %v4802_v21, 7  ;;  %v4875_v33 = vrot.slane %v4803_v0, 7  ;;  %8755 = vmatmul.mubr.bf16.gmra.mrb[36].mxu1 %v18427_v54  ;;  %vm4740_vm1 = vcmp.gt.f32.partialorder %v4708_v51, 0.0  ;;  %v4772_v7 = vmul.f32 0.01, %v4708_v51  ;;  %v4617_v52 = vpop.f32.mrb[20].mxu1 }
 0x428   : > { %v9036_v28 = vrot.slane %v8325_v26, 1  ;;  %v9037_v24 = vrot.slane %v8327_v53, 1  ;;  %v18432_v3 = vsel %vm2645_vm14, %v9039_v56, %v9040_v16  ;;  %v4709_v11 = vadd.f32 %v18344_v4, %v4613_v23  ;;  %v4619_v13 = vpop.f32.mrb[21].mxu1  ;;  %v8260_v23 = vld [vmem:[#allocation3 + $0xb8] sm:$0x3] }
 0x429   : > { %4971 = vst [vmem:[#allocation3 + $0xf0] sm:$0xfe] %v4874_v32  ;;  %4972 = vst.msk [vmem:[#allocation3 + $0xf8] sm:$0xfe] %vm1404_vm8, %v4875_v33  ;;  %v8182_v22 = vpack.c.bf16 %v8004_v5, %v8110_v10  ;;  %v8184_v8 = vpack.c.bf16 %v8112_v50, %v8112_v50  ;;  %13716 = vmatprep.mubr.msk.bf16.mxu0 %vm281_vm2, %v18432_v3  ;;  %v4804_v34 = vsel %vm4740_vm1, %v4708_v51, %v4772_v7  ;;  %v4621_v63 = vpop.f32.mrb[22].mxu1 }
 0x42a   : > { %v18438_v49 = vsel %vm2645_vm14, %v9036_v28, %v9037_v24  ;;  %v8181_v46 = vpack.c.bf16 %v18377_v25, %v8109_v29  ;;  %v8183_v18 = vpack.c.bf16 %v8111_v55, %v8111_v55  ;;  %v4876_v60 = vrot.slane %v4804_v34, 7  ;;  %v4623_v5 = vpop.f32.mrb[23].mxu1  ;;  %v8257_v0 = vld [vmem:[#allocation3 + $0x90] sm:$0xfc]  ;;  %v8259_v29 = vld [vmem:[#allocation3 + $0xb0] sm:$0x3] }
 0x42b   : > { %9234 = vmatmul.mubr.bf16.gmra.mrb[104].mxu0 %v18438_v49  ;;  %vm4741_vm3 = vcmp.gt.f32.partialorder %v4709_v11, 0.0  ;;  %v4773_v19 = vmul.f32 0.01, %v4709_v11  ;;  %v8470_v31 = vshrl.u32 %v8182_v22, 16  ;;  %v8472_v57 = vshll.u32 %v8182_v22, 16 }
 0x42c   : > { %v8477_v27 = vshll.u32 %v8184_v8, 16  ;;  %v8458_v36 = vshrl.u32 %v8181_v46, 16  ;;  %v8460_v30 = vshll.u32 %v8181_v46, 16  ;;  %v18443_v47 = vsel %vm1209_vm10, %v4874_v32, %v4876_v60  ;;  %4975 = vst [vmem:[#allocation3 + $0x110] sm:$0x1] %v4876_v60 }
 0x42d   : > { %v4805_v41 = vsel %vm4741_vm3, %v4709_v11, %v4773_v19  ;;  %v8465_v35 = vshll.u32 %v8183_v18, 16  ;;  %v4710_v25 = vadd.f32 %v18341_v61, %v4617_v52  ;;  %4973 = vst [vmem:[#allocation3 + $0x100] sm:$0xff] %v18443_v47  ;;  %v8474_v9 = vrot.slane %v8472_v57, 1  ;;  %v8114_v8 = vld [vmem:[#allocation3 + $0x98] sm:$0xfe] }
 0x42e   : > { %v4878_v59 = vrot.slane %v4805_v41, 7  ;;  %v8479_v38 = vrot.slane %v8477_v27, 1  ;;  %v8462_v40 = vrot.slane %v8460_v30, 1  ;;  %v4711_v39 = vadd.f32 %v18344_v4, %v4619_v13  ;;  %v8116_v13 = vld [vmem:[#allocation3 + $0xb8] sm:$0x1] }
 0x42f   : > { %v8467_v45 = vrot.slane %v8465_v35, 1  ;;  %vm4742_vm4 = vcmp.gt.f32.partialorder %v4710_v25, 0.0  ;;  %v4774_v12 = vmul.f32 0.01, %v4710_v25  ;;  %v8475_v56 = vor.u32 %v8474_v9, %v8470_v31  ;;  %v4627_v26 = vpop.f32.mrb[24].mxu1 }
 0x430   : > { %v4879_v15 = vsel %vm1209_vm10, %v4875_v33, %v4878_v59  ;;  %4976 = vst.msk [vmem:[#allocation3 + $0x118] sm:$0x1] %vm1409_vm12, %v4878_v59  ;;  %v8463_v51 = vor.u32 %v8462_v40, %v8458_v36  ;;  %v8330_v21 = vpack.c.bf16 %v8008_v1, %v8258_v62  ;;  %vm4743_vm6 = vcmp.gt.f32.partialorder %v4711_v39, 0.0  ;;  %v4629_v32 = vpop.f32.mrb[25].mxu1  ;;  %v8113_v31 = vld [vmem:[#allocation3 + $0x90] sm:$0xfe] }
 0x431   : > { %4974 = vst.msk [vmem:[#allocation3 + $0x108] sm:$0xff] %vm281_vm2, %v4879_v15  ;;  %v4806_v53 = vsel %vm4742_vm4, %v4710_v25, %v4774_v12  ;;  %v4775_v10 = vmul.f32 0.01, %v4711_v39  ;;  %v8332_v50 = vpack.c.bf16 %v8260_v23, %v8260_v23  ;;  %v18452_v16 = vsel %vm1917_vm5, %v8475_v56, %v8479_v38  ;;  %v18457_v28 = vpop.f32.mrb[26].mxu1  ;;  %v8115_v35 = vld [vmem:[#allocation3 + $0xb0] sm:$0x1] }
 0x432   : > { %v18455_v33 = vsel %vm1917_vm5, %v8463_v51, %v8467_v45  ;;  %v4880_v55 = vrot.slane %v4806_v53, 7  ;;  %v9045_v7 = vrot.slane %v8330_v21, 1  ;;  %13660 = vmatprep.mubr.msk.bf16.mxu1 %vm281_vm2, %v18452_v16  ;;  %v4712_v11 = vadd.f32 %v18341_v61, %v4621_v63  ;;  %v18463_v34 = vpop.f32.mrb[27].mxu1  ;;  %v8012_v56 = vld [vmem:[#allocation3 + $0xd8] sm:$0xff] }
 0x433   : > { %v4807_v24 = vsel %vm4743_vm6, %v4711_v39, %v4775_v10  ;;  %v9046_v52 = vrot.slane %v8332_v50, 1  ;;  %v8329_v22 = vpack.c.bf16 %v18392_v6, %v8257_v0  ;;  %8763 = vmatmul.mubr.bf16.gmra.mrb[40].mxu1 %v18455_v33  ;;  %v8331_v18 = vpack.c.bf16 %v8259_v29, %v8259_v29 }
 0x434   : > { %4977 = vst [vmem:[#allocation3 + $0x120] sm:$0xfe] %v4880_v55  ;;  %v4881_v46 = vrot.slane %v4807_v24, 7  ;;  %v4713_v60 = vadd.f32 %v18344_v4, %v4623_v5  ;;  %v8186_v19 = vpack.c.bf16 %v8008_v1, %v8114_v8  ;;  %vm4744_vm7 = vcmp.gt.f32.partialorder %v4712_v11, 0.0 }
 0x435   : > { %v18468_v57 = vsel %vm2645_vm14, %v9045_v7, %v9046_v52  ;;  %v4776_v63 = vmul.f32 0.01, %v4712_v11  ;;  %v9042_v27 = vrot.slane %v8329_v22, 1  ;;  %v9043_v36 = vrot.slane %v8331_v18, 1  ;;  %v8262_v52 = vld [vmem:[#allocation3 + $0xc8] sm:$0xfc] }
 0x436   : > { %4978 = vst.msk [vmem:[#allocation3 + $0x128] sm:$0xfe] %vm1404_vm8, %v4881_v46  ;;  %13717 = vmatprep.mubr.msk.bf16.mxu0 %vm281_vm2, %v18468_v57  ;;  %vm4745_vm9 = vcmp.gt.f32.partialorder %v4713_v60, 0.0  ;;  %v4777_v30 = vmul.f32 0.01, %v4713_v60  ;;  %v8188_v41 = vpack.c.bf16 %v8116_v13, %v8116_v13  ;;  %v8494_v5 = vshrl.u32 %v8186_v19, 16 }
 0x437   : > { %v4808_v25 = vsel %vm4744_vm7, %v4712_v11, %v4776_v63  ;;  %v8496_v1 = vshll.u32 %v8186_v19, 16  ;;  %v8185_v59 = vpack.c.bf16 %v18392_v6, %v8113_v31  ;;  %v18475_v38 = vsel %vm2645_vm14, %v9042_v27, %v9043_v36  ;;  %v18477_v45 = vpop.f32.mrb[28].mxu1  ;;  %v8261_v13 = vld [vmem:[#allocation3 + $0xc0] sm:$0xfc]  ;;  %v8263_v19 = vld [vmem:[#allocation3 + $0xe0] sm:$0x3] }
 0x438   : > { %v4882_v9 = vrot.slane %v4808_v25, 7  ;;  %v4809_v40 = vsel %vm4745_vm9, %v4713_v60, %v4777_v30  ;;  %v8501_v23 = vshll.u32 %v8188_v41, 16  ;;  %9242 = vmatmul.mubr.bf16.gmra.mrb[108].mxu0 %v18475_v38  ;;  %v8187_v62 = vpack.c.bf16 %v8115_v35, %v8115_v35  ;;  %v18480_v51 = vpop.f32.mrb[29].mxu1  ;;  %v8120_v25 = vld [vmem:[#allocation3 + $0xe8] sm:$0x1] }
 0x439   : > { %v4884_v12 = vrot.slane %v4809_v40, 7  ;;  %v8498_v39 = vrot.slane %v8496_v1, 1  ;;  %v8482_v15 = vshrl.u32 %v8185_v59, 16  ;;  %v8484_v0 = vshll.u32 %v8185_v59, 16  ;;  %v18486_v10 = vpop.f32.mrb[30].mxu1 }
 0x43a   : > { %v18483_v21 = vsel %vm1209_vm10, %v4880_v55, %v4882_v9  ;;  %4981 = vst [vmem:[#allocation3 + $0x140] sm:$0x1] %v4882_v9  ;;  %v8503_v6 = vrot.slane %v8501_v23, 1  ;;  %v4714_v53 = vadd.f32 %v18341_v61, %v4627_v26  ;;  %v8489_v7 = vshll.u32 %v8187_v62, 16  ;;  %v8264_v55 = vld [vmem:[#allocation3 + $0xe8] sm:$0x3] }
 0x43b   : > { %4979 = vst [vmem:[#allocation3 + $0x130] sm:$0xff] %v18483_v21  ;;  %v4885_v50 = vsel %vm1209_vm10, %v4881_v46, %v4884_v12  ;;  %4982 = vst.msk [vmem:[#allocation3 + $0x148] sm:$0x1] %vm1409_vm12, %v4884_v12  ;;  %v8499_v29 = vor.u32 %v8498_v39, %v8494_v5  ;;  %v4715_v24 = vadd.f32 %v18344_v4, %v4629_v32  ;;  %v18492_v11 = vpop.f32.mrb[31].mxu1  ;;  %v8486_v22 = vrot.slane %v8484_v0, 1 }
 0x43c   : > { %4980 = vst.msk [vmem:[#allocation3 + $0x138] sm:$0xff] %vm281_vm2, %v4885_v50  ;;  %vm4746_vm11 = vcmp.gt.f32.partialorder %v4714_v53, 0.0  ;;  %v4778_v26 = vmul.f32 0.01, %v4714_v53  ;;  %v8334_v8 = vpack.c.bf16 %v8012_v56, %v8262_v52  ;;  %v8491_v46 = vrot.slane %v8489_v7, 1 }
 0x43d   : > { %v18496_v18 = vsel %vm1917_vm5, %v8499_v29, %v8503_v6  ;;  %vm4747_vm13 = vcmp.gt.f32.partialorder %v4715_v24, 0.0  ;;  %v4779_v60 = vmul.f32 0.01, %v4715_v24  ;;  %v8487_v32 = vor.u32 %v8486_v22, %v8482_v15  ;;  %v8117_v40 = vld [vmem:[#allocation3 + $0xc0] sm:$0xfe] }
 0x43e   : > { %13661 = vmatprep.mubr.msk.bf16.mxu1 %vm281_vm2, %v18496_v18  ;;  %v4810_v31 = vsel %vm4746_vm11, %v4714_v53, %v4778_v26  ;;  %v8336_v63 = vpack.c.bf16 %v8264_v55, %v8264_v55  ;;  %v9051_v27 = vrot.slane %v8334_v8, 1  ;;  %v4716_v41 = vadd.f32 %v18341_v61, %v18457_v28  ;;  %v8118_v28 = vld [vmem:[#allocation3 + $0xc8] sm:$0xfe]  ;;  %v8119_v53 = vld [vmem:[#allocation3 + $0xe0] sm:$0x1] }
 0x43f   : > { %v4886_v36 = vrot.slane %v4810_v31, 7  ;;  %v4811_v30 = vsel %vm4747_vm13, %v4715_v24, %v4779_v60  ;;  %v8333_v35 = vpack.c.bf16 %v18412_v2, %v8261_v13  ;;  %v18504_v5 = vsel %vm1917_vm5, %v8487_v32, %v8491_v46  ;;  %v8016_v13 = vld [vmem:[#allocation3 + $0x108] sm:$0xff] }
 0x440   : > { %v4887_v1 = vrot.slane %v4811_v30, 7  ;;  %v9052_v59 = vrot.slane %v8336_v63, 1  ;;  %v8335_v9 = vpack.c.bf16 %v8263_v19, %v8263_v19  ;;  %8771 = vmatmul.mubr.bf16.gmra.mrb[44].mxu1 %v18504_v5  ;;  %vm4748_vm15 = vcmp.gt.f32.partialorder %v4716_v41, 0.0  ;;  %v8266_v30 = vld [vmem:[#allocation3 + $0xf8] sm:$0xfc] }
 0x441   : > { %4983 = vst [vmem:[#allocation3 + $0x150] sm:$0xfe] %v4886_v36  ;;  %v4780_v23 = vmul.f32 0.01, %v4716_v41  ;;  %v9048_v12 = vrot.slane %v8333_v35, 1  ;;  %v4717_v39 = vadd.f32 %v18344_v4, %v18463_v34  ;;  %v8190_v6 = vpack.c.bf16 %v8012_v56, %v8118_v28 }
 0x442   : > { %4984 = vst.msk [vmem:[#allocation3 + $0x158] sm:$0xfe] %vm1404_vm8, %v4887_v1  ;;  %v18511_v62 = vsel %vm2645_vm14, %v9051_v27, %v9052_v59  ;;  %v9049_v15 = vrot.slane %v8335_v9, 1  ;;  %v8192_v0 = vpack.c.bf16 %v8120_v25, %v8120_v25  ;;  %v8189_v7 = vpack.c.bf16 %v18412_v2, %v8117_v40  ;;  %v8265_v9 = vld [vmem:[#allocation3 + $0xf0] sm:$0xfc] }
 0x443   : > { %13718 = vmatprep.mubr.msk.bf16.mxu0 %vm281_vm2, %v18511_v62  ;;  %v4812_v50 = vsel %vm4748_vm15, %v4716_v41, %v4780_v23  ;;  %vm4749_vm0 = vcmp.gt.f32.partialorder %v4717_v39, 0.0  ;;  %v4781_v29 = vmul.f32 0.01, %v4717_v39  ;;  %v8518_v52 = vshrl.u32 %v8190_v6, 16  ;;  %v8268_v41 = vld [vmem:[#allocation3 + $0x118] sm:$0x3] }
 0x444   : > { %v4888_v24 = vrot.slane %v4812_v50, 7  ;;  %v18517_v34 = vsel %vm2645_vm14, %v9048_v12, %v9049_v15  ;;  %v8520_v55 = vshll.u32 %v8190_v6, 16  ;;  %v8525_v56 = vshll.u32 %v8192_v0, 16  ;;  %v8267_v15 = vld [vmem:[#allocation3 + $0x110] sm:$0x3] }
 0x445   : > { %9250 = vmatmul.mubr.bf16.gmra.mrb[112].mxu0 %v18517_v34  ;;  %v4813_v22 = vsel %vm4749_vm0, %v4717_v39, %v4781_v29  ;;  %v8191_v26 = vpack.c.bf16 %v8119_v53, %v8119_v53  ;;  %v8506_v8 = vshrl.u32 %v8189_v7, 16  ;;  %v8508_v2 = vshll.u32 %v8189_v7, 16 }
 0x446   : > { %v18521_v46 = vsel %vm1209_vm10, %v4886_v36, %v4888_v24  ;;  %4987 = vst [vmem:[#allocation3 + $0x170] sm:$0x1] %v4888_v24  ;;  %v4890_v60 = vrot.slane %v4813_v22, 7  ;;  %v8522_v19 = vrot.slane %v8520_v55, 1  ;;  %v8527_v32 = vrot.slane %v8525_v56, 1 }
 0x447   : > { %4985 = vst [vmem:[#allocation3 + $0x160] sm:$0xff] %v18521_v46  ;;  %v8513_v31 = vshll.u32 %v8191_v26, 16  ;;  %v4718_v63 = vadd.f32 %v18341_v61, %v18477_v45  ;;  %v4719_v27 = vadd.f32 %v18344_v4, %v18480_v51  ;;  %v8510_v25 = vrot.slane %v8508_v2, 1  ;;  %v18530_v40 = vpop.f32.mrb[64].mxu0  ;;  %v8124_v56 = vld [vmem:[#allocation3 + $0x118] sm:$0x1] }
 0x448   : > { %v4891_v35 = vsel %vm1209_vm10, %v4887_v1, %v4890_v60  ;;  %4988 = vst.msk [vmem:[#allocation3 + $0x178] sm:$0x1] %vm1409_vm12, %v4890_v60  ;;  %v8523_v36 = vor.u32 %v8522_v19, %v8518_v52  ;;  %v8338_v59 = vpack.c.bf16 %v8016_v13, %v8266_v30  ;;  %v18533_v12 = vpop.f32.mrb[65].mxu0  ;;  %v8340_v28 = vpack.c.bf16 %v8268_v41, %v8268_v41  ;;  %v8121_v26 = vld [vmem:[#allocation3 + $0xf0] sm:$0xfe] }
 0x449   : > { %4986 = vst.msk [vmem:[#allocation3 + $0x168] sm:$0xff] %vm281_vm2, %v4891_v35  ;;  %v8515_v23 = vrot.slane %v8513_v31, 1  ;;  %vm4750_vm1 = vcmp.gt.f32.partialorder %v4718_v63, 0.0  ;;  %v4782_v45 = vmul.f32 0.01, %v4718_v63  ;;  %vm4751_vm3 = vcmp.gt.f32.partialorder %v4719_v27, 0.0 }
 0x44a   : > { %v18536_v51 = vsel %vm1917_vm5, %v8523_v36, %v8527_v32  ;;  %v8511_v1 = vor.u32 %v8510_v25, %v8506_v8  ;;  %v4783_v39 = vmul.f32 0.01, %v4719_v27  ;;  %v18538_v6 = vpop.f32.mrb[66].mxu0  ;;  %v9057_v53 = vrot.slane %v8338_v59, 1 }
 0x44b   : > { %13662 = vmatprep.mubr.msk.bf16.mxu1 %vm281_vm2, %v18536_v51  ;;  %v4814_v0 = vsel %vm4750_vm1, %v4718_v63, %v4782_v45  ;;  %v4720_v50 = vadd.f32 %v18341_v61, %v18486_v10  ;;  %v8337_v29 = vpack.c.bf16 %v18443_v47, %v8265_v9  ;;  %v18545_v7 = vpop.f32.mrb[67].mxu0  ;;  %v9058_v22 = vrot.slane %v8340_v28, 1  ;;  %v8122_v61 = vld [vmem:[#allocation3 + $0xf8] sm:$0xfe]  ;;  %v8123_v63 = vld [vmem:[#allocation3 + $0x110] sm:$0x1] }
 0x44c   : > { %v18548_v24 = vsel %vm1917_vm5, %v8511_v1, %v8515_v23  ;;  %v4892_v52 = vrot.slane %v4814_v0, 7  ;;  %v4815_v55 = vsel %vm4751_vm3, %v4719_v27, %v4783_v39  ;;  %v8339_v19 = vpack.c.bf16 %v8267_v15, %v8267_v15  ;;  %v18566_v45 = vld [vmem:[#allocation3 + $0x138] sm:$0xff]  ;;  %v8270_v1 = vld [vmem:[#allocation3 + $0x128] sm:$0xfc] }
 0x44d   : > { %8779 = vmatmul.mubr.bf16.gmra.mrb[48].mxu1 %v18548_v24  ;;  %v4893_v8 = vrot.slane %v4815_v55, 7  ;;  %vm4752_vm4 = vcmp.gt.f32.partialorder %v4720_v50, 0.0  ;;  %v4784_v60 = vmul.f32 0.01, %v4720_v50  ;;  %v18553_v10 = vsel %vm2645_vm14, %v9057_v53, %v9058_v22  ;;  %v8272_v53 = vld [vmem:[#allocation3 + $0x148] sm:$0x3] }
 0x44e   : > { %4989 = vst [vmem:[#allocation3 + $0x180] sm:$0xfe] %v4892_v52  ;;  %v9054_v2 = vrot.slane %v8337_v29, 1  ;;  %v4721_v32 = vadd.f32 %v18344_v4, %v18492_v11  ;;  %v8194_v31 = vpack.c.bf16 %v8016_v13, %v8122_v61  ;;  %13719 = vmatprep.mubr.msk.bf16.mxu0 %vm281_vm2, %v18553_v10  ;;  %v9055_v30 = vrot.slane %v8339_v19, 1 }
 0x44f   : > { %4990 = vst.msk [vmem:[#allocation3 + $0x188] sm:$0xfe] %vm1404_vm8, %v4893_v8  ;;  %v4816_v27 = vsel %vm4752_vm4, %v4720_v50, %v4784_v60  ;;  %v8196_v41 = vpack.c.bf16 %v8124_v56, %v8124_v56  ;;  %v8193_v35 = vpack.c.bf16 %v18443_v47, %v8121_v26  ;;  %v18561_v9 = vpop.f32.mrb[68].mxu0  ;;  %v8195_v23 = vpack.c.bf16 %v8123_v63, %v8123_v63 }
 0x450   : > { %v4894_v36 = vrot.slane %v4816_v27, 7  ;;  %vm4753_vm6 = vcmp.gt.f32.partialorder %v4721_v32, 0.0  ;;  %v4785_v25 = vmul.f32 0.01, %v4721_v32  ;;  %v8542_v59 = vshrl.u32 %v8194_v31, 16  ;;  %v18568_v39 = vpop.f32.mrb[69].mxu0 }
 0x451   : > { %v18564_v4 = vsel %vm2645_vm14, %v9054_v2, %v9055_v30  ;;  %v8544_v11 = vshll.u32 %v8194_v31, 16  ;;  %v8549_v13 = vshll.u32 %v8196_v41, 16  ;;  %v8530_v15 = vshrl.u32 %v8193_v35, 16  ;;  %v18572_v50 = vpop.f32.mrb[70].mxu0  ;;  %v8269_v27 = vld [vmem:[#allocation3 + $0x120] sm:$0xfc] }
 0x452   : > { %v4895_v28 = vsel %vm1209_vm10, %v4892_v52, %v4894_v36  ;;  %4993 = vst [vmem:[#allocation3 + $0x1a0] sm:$0x1] %v4894_v36  ;;  %9258 = vmatmul.mubr.bf16.gmra.mrb[116].mxu0 %v18564_v4  ;;  %v4817_v47 = vsel %vm4753_vm6, %v4721_v32, %v4785_v25  ;;  %v8532_v0 = vshll.u32 %v8193_v35, 16  ;;  %v8537_v56 = vshll.u32 %v8195_v23, 16  ;;  %v18574_v26 = vpop.f32.mrb[71].mxu0 }
 0x453   : > { %4991 = vst [vmem:[#allocation3 + $0x190] sm:$0xff] %v4895_v28  ;;  %v4896_v29 = vrot.slane %v4817_v47, 7  ;;  %v8546_v55 = vrot.slane %v8544_v11, 1  ;;  %v8551_v22 = vrot.slane %v8549_v13, 1  ;;  %v7688_v52 = vadd.f32 %v18365_v14, %v18530_v40  ;;  %v8271_v40 = vld [vmem:[#allocation3 + $0x140] sm:$0x3] }
 0x454   : > { %v8534_v60 = vrot.slane %v8532_v0, 1  ;;  %v7689_v19 = vadd.f32 %v18368_v44, %v18533_v12  ;;  %v8342_v61 = vpack.c.bf16 %v18566_v45, %v8270_v1  ;;  %v8539_v31 = vrot.slane %v8537_v56, 1  ;;  %v8128_v23 = vld [vmem:[#allocation3 + $0x148] sm:$0x1]  ;;  %v8125_v1 = vld [vmem:[#allocation3 + $0x120] sm:$0xfe] }
 0x455   : > { %v4897_v2 = vsel %vm1209_vm10, %v4893_v8, %v4896_v29  ;;  %4994 = vst.msk [vmem:[#allocation3 + $0x1a8] sm:$0x1] %vm1409_vm12, %v4896_v29  ;;  %v8547_v32 = vor.u32 %v8546_v55, %v8542_v59  ;;  %v8344_v63 = vpack.c.bf16 %v8272_v53, %v8272_v53  ;;  %vm7720_vm7 = vcmp.gt.f32.partialorder %v7688_v52, 0.0  ;;  %v8126_v29 = vld [vmem:[#allocation3 + $0x128] sm:$0xfe] }
 0x456   : > { %4992 = vst.msk [vmem:[#allocation3 + $0x198] sm:$0xff] %vm281_vm2, %v4897_v2  ;;  %v8535_v30 = vor.u32 %v8534_v60, %v8530_v15  ;;  %v7752_v41 = vmul.f32 0.01, %v7688_v52  ;;  %vm7721_vm9 = vcmp.gt.f32.partialorder %v7689_v19, 0.0  ;;  %v7753_v12 = vmul.f32 0.01, %v7689_v19 }
 0x457   : > { %v18585_v35 = vsel %vm1917_vm5, %v8547_v32, %v8551_v22  ;;  %v9063_v36 = vrot.slane %v8342_v61, 1  ;;  %v9064_v25 = vrot.slane %v8344_v63, 1  ;;  %v7690_v11 = vadd.f32 %v18365_v14, %v18538_v6  ;;  %v18595_v28 = vpop.f32.mrb[72].mxu0  ;;  %v8127_v55 = vld [vmem:[#allocation3 + $0x140] sm:$0x1] }
 0x458   : > { %13663 = vmatprep.mubr.msk.bf16.mxu1 %vm281_vm2, %v18585_v35  ;;  %v18590_v8 = vsel %vm1917_vm5, %v8535_v30, %v8539_v31  ;;  %v7784_v59 = vsel %vm7720_vm7, %v7688_v52, %v7752_v41  ;;  %v8341_v13 = vpack.c.bf16 %v18483_v21, %v8269_v27  ;;  %v7785_v15 = vsel %vm7721_vm9, %v7689_v19, %v7753_v12  ;;  %v18602_v22 = vpop.f32.mrb[73].mxu0 }
 0x459   : > { %8787 = vmatmul.mubr.bf16.gmra.mrb[52].mxu1 %v18590_v8  ;;  %v7848_v47 = vrot.slane %v7784_v59, 7  ;;  %v18600_v0 = vsel %vm2645_vm14, %v9063_v36, %v9064_v25  ;;  %v8343_v53 = vpack.c.bf16 %v8271_v40, %v8271_v40  ;;  %v7849_v6 = vrot.slane %v7785_v15, 7  ;;  %v18606_v52 = vpop.f32.mrb[74].mxu0  ;;  %v18622_v15 = vld [vmem:[#allocation3 + $0x168] sm:$0xff] }
 0x45a   : > { %21373 = vst [vmem:[#allocation8_spill] sm:$0xff] %v18600_v0  ;;  %13720 = vmatprep.mubr.msk.bf16.mxu0 %vm281_vm2, %v18600_v0  ;;  %vm7722_vm11 = vcmp.gt.f32.partialorder %v7690_v11, 0.0  ;;  %v7754_v56 = vmul.f32 0.01, %v7690_v11  ;;  %v9060_v60 = vrot.slane %v8341_v13, 1  ;;  %v7691_v19 = vadd.f32 %v18368_v44, %v18545_v7  ;;  %v18611_v31 = vpop.f32.mrb[75].mxu0 }
 0x45b   : > { %7945 = vst [vmem:[#allocation3 + $0x1b0] sm:$0xfe] %v7848_v47  ;;  %v9061_v61 = vrot.slane %v8343_v53, 1  ;;  %v8198_v2 = vpack.c.bf16 %v18566_v45, %v8126_v29  ;;  %v8200_v32 = vpack.c.bf16 %v8128_v23, %v8128_v23  ;;  %7946 = vst.msk [vmem:[#allocation3 + $0x1b8] sm:$0xfe] %vm1404_vm8, %v7849_v6  ;;  %v8197_v27 = vpack.c.bf16 %v18483_v21, %v8125_v1 }
 0x45c   : > { %v7786_v63 = vsel %vm7722_vm11, %v7690_v11, %v7754_v56  ;;  %v8199_v30 = vpack.c.bf16 %v8127_v55, %v8127_v55  ;;  %v7692_v41 = vadd.f32 %v18365_v14, %v18561_v9  ;;  %vm7723_vm13 = vcmp.gt.f32.partialorder %v7691_v19, 0.0  ;;  %v8274_v9 = vld [vmem:[#allocation3 + $0x158] sm:$0xfc]  ;;  %v8276_v53 = vld [vmem:[#allocation3 + $0x178] sm:$0x3] }
 0x45d   : > { %v7850_v40 = vrot.slane %v7786_v63, 7  ;;  %v18618_v12 = vsel %vm2645_vm14, %v9060_v60, %v9061_v61  ;;  %v7755_v7 = vmul.f32 0.01, %v7691_v19  ;;  %v8566_v36 = vshrl.u32 %v8198_v2, 16 }
 0x45e   : > { %21374 = vst [vmem:[#allocation51_spill] sm:$0xff] %v18618_v12  ;;  %9266 = vmatmul.mubr.bf16.gmra.mrb[120].mxu0 %v18618_v12  ;;  %v8568_v25 = vshll.u32 %v8198_v2, 16  ;;  %v8573_v59 = vshll.u32 %v8200_v32, 16  ;;  %v8554_v13 = vshrl.u32 %v8197_v27, 16  ;;  %v8556_v23 = vshll.u32 %v8197_v27, 16 }
 0x45f   : > { %v7851_v11 = vsel %vm1209_vm10, %v7848_v47, %v7850_v40  ;;  %7949 = vst [vmem:[#allocation3 + $0x1d0] sm:$0x1] %v7850_v40  ;;  %v7787_v21 = vsel %vm7723_vm13, %v7691_v19, %v7755_v7  ;;  %v8561_v1 = vshll.u32 %v8199_v30, 16  ;;  %vm7724_vm15 = vcmp.gt.f32.partialorder %v7692_v41, 0.0  ;;  %v18624_v60 = vpop.f32.mrb[76].mxu0 }
 0x460   : > { %7947 = vst [vmem:[#allocation3 + $0x1c0] sm:$0xff] %v7851_v11  ;;  %v7852_v29 = vrot.slane %v7787_v21, 7  ;;  %v8570_v55 = vrot.slane %v8568_v25, 1  ;;  %v8575_v56 = vrot.slane %v8573_v59, 1  ;;  %v8558_v61 = vrot.slane %v8556_v23, 1  ;;  %v18628_v19 = vpop.f32.mrb[77].mxu0 }
 0x461   : > { %v8563_v2 = vrot.slane %v8561_v1, 1  ;;  %v7756_v32 = vmul.f32 0.01, %v7692_v41  ;;  %v7693_v47 = vadd.f32 %v18368_v44, %v18568_v39  ;;  %v8346_v30 = vpack.c.bf16 %v18622_v15, %v8274_v9  ;;  %v8273_v7 = vld [vmem:[#allocation3 + $0x150] sm:$0xfc]  ;;  %v18633_v25 = vpop.f32.mrb[78].mxu0 }
 0x462   : > { %v7853_v63 = vsel %vm1209_vm10, %v7849_v6, %v7852_v29  ;;  %7950 = vst.msk [vmem:[#allocation3 + $0x1d8] sm:$0x1] %vm1409_vm12, %v7852_v29  ;;  %v8571_v27 = vor.u32 %v8570_v55, %v8566_v36  ;;  %v8348_v40 = vpack.c.bf16 %v8276_v53, %v8276_v53  ;;  %v8559_v59 = vor.u32 %v8558_v61, %v8554_v13  ;;  %v8275_v21 = vld [vmem:[#allocation3 + $0x170] sm:$0x3]  ;;  %v18637_v23 = vpop.f32.mrb[79].mxu0 }
 0x463   : > { %7948 = vst.msk [vmem:[#allocation3 + $0x1c8] sm:$0xff] %vm281_vm2, %v7853_v63  ;;  %v7788_v11 = vsel %vm7724_vm15, %v7692_v41, %v7756_v32  ;;  %vm7725_vm0 = vcmp.gt.f32.partialorder %v7693_v47, 0.0  ;;  %v7757_v39 = vmul.f32 0.01, %v7693_v47  ;;  %v9069_v1 = vrot.slane %v8346_v30, 1 }
 0x464   : > { %v18640_v6 = vsel %vm1917_vm5, %v8571_v27, %v8575_v56  ;;  %v7854_v36 = vrot.slane %v7788_v11, 7  ;;  %v9070_v9 = vrot.slane %v8348_v40, 1  ;;  %v18645_v53 = vsel %vm1917_vm5, %v8559_v59, %v8563_v2  ;;  %v8132_v55 = vld [vmem:[#allocation3 + $0x178] sm:$0x1]  ;;  %v8130_v2 = vld [vmem:[#allocation3 + $0x158] sm:$0xfe] }
 0x465   : > { %13664 = vmatprep.mubr.msk.bf16.mxu1 %vm281_vm2, %v18640_v6  ;;  %v7789_v13 = vsel %vm7725_vm0, %v7693_v47, %v7757_v39  ;;  %v7694_v41 = vadd.f32 %v18365_v14, %v18572_v50  ;;  %v8345_v29 = vpack.c.bf16 %v18521_v46, %v8273_v7  ;;  %v8347_v32 = vpack.c.bf16 %v8275_v21, %v8275_v21  ;;  %v8129_v27 = vld [vmem:[#allocation3 + $0x150] sm:$0xfe]  ;;  %v8131_v40 = vld [vmem:[#allocation3 + $0x170] sm:$0x1] }
 0x466   : > { %8795 = vmatmul.mubr.bf16.gmra.mrb[56].mxu1 %v18645_v53  ;;  %7951 = vst [vmem:[#allocation3 + $0x1e0] sm:$0xfe] %v7854_v36  ;;  %v7855_v56 = vrot.slane %v7789_v13, 7  ;;  %v18652_v61 = vsel %vm2645_vm14, %v9069_v1, %v9070_v9  ;;  %v7695_v63 = vadd.f32 %v18368_v44, %v18574_v26  ;;  %v8202_v30 = vpack.c.bf16 %v18622_v15, %v8130_v2 }
 0x467   : > { %21375 = vst [vmem:[#allocation9_spill] sm:$0xff] %v18652_v61  ;;  %13721 = vmatprep.mubr.msk.bf16.mxu0 %vm281_vm2, %v18652_v61  ;;  %vm7726_vm1 = vcmp.gt.f32.partialorder %v7694_v41, 0.0  ;;  %v7758_v50 = vmul.f32 0.01, %v7694_v41  ;;  %v9066_v47 = vrot.slane %v8345_v29, 1  ;;  %v9067_v7 = vrot.slane %v8347_v32, 1 }
 0x468   : > { %7952 = vst.msk [vmem:[#allocation3 + $0x1e8] sm:$0xfe] %vm1404_vm8, %v7855_v56  ;;  %vm7727_vm3 = vcmp.gt.f32.partialorder %v7695_v63, 0.0  ;;  %v7759_v59 = vmul.f32 0.01, %v7695_v63  ;;  %v8204_v11 = vpack.c.bf16 %v8132_v55, %v8132_v55  ;;  %v18660_v39 = vpop.f32.mrb[80].mxu0  ;;  %v8201_v9 = vpack.c.bf16 %v18521_v46, %v8129_v27 }
 0x469   : > { %v7790_v26 = vsel %vm7726_vm1, %v7694_v41, %v7758_v50  ;;  %v8590_v21 = vshrl.u32 %v8202_v30, 16  ;;  %v8592_v1 = vshll.u32 %v8202_v30, 16  ;;  %v18663_v13 = vpop.f32.mrb[81].mxu0  ;;  %v18666_v29 = vsel %vm2645_vm14, %v9066_v47, %v9067_v7 }
 0x46a   : > { %v7856_v43 = vrot.slane %v7790_v26, 7  ;;  %v7791_v2 = vsel %vm7727_vm3, %v7695_v63, %v7759_v59  ;;  %v8597_v61 = vshll.u32 %v8204_v11, 16  ;;  %v18668_v12 = vpop.f32.mrb[82].mxu0  ;;  %9274 = vmatmul.mubr.bf16.gmra.mrb[124].mxu0 %v18666_v29  ;;  %v8203_v0 = vpack.c.bf16 %v8131_v40, %v8131_v40 }
 0x46b   : > { %v7858_v55 = vrot.slane %v7791_v2, 7  ;;  %v8594_v32 = vrot.slane %v8592_v1, 1  ;;  %v8578_v41 = vshrl.u32 %v8201_v9, 16  ;;  %v18671_v50 = vpop.f32.mrb[83].mxu0  ;;  %13790 = vmatprep.mubr.msk.bf16.mxu0 %vm281_vm2, %v18419_v20  ;;  %v8580_v47 = vshll.u32 %v8201_v9, 16  ;;  %v18696_v2 = vld [vmem:[#allocation2 + $0x10] sm:$0xff] }
 0x46c   : > { %v7857_v46 = vsel %vm1209_vm10, %v7854_v36, %v7856_v43  ;;  %7955 = vst [vmem:[#allocation3 + $0x200] sm:$0x1] %v7856_v43  ;;  %v8599_v27 = vrot.slane %v8597_v61, 1  ;;  %v7696_v63 = vadd.f32 %v18365_v14, %v18595_v28  ;;  %v8585_v7 = vshll.u32 %v8203_v0, 16  ;;  %v18685_v61 = vld [vmem:[#allocation3] sm:$0xff] }
 0x46d   : > { %7953 = vst [vmem:[#allocation3 + $0x1f0] sm:$0xff] %v7857_v46  ;;  %v7859_v30 = vsel %vm1209_vm10, %v7855_v56, %v7858_v55  ;;  %7956 = vst.msk [vmem:[#allocation3 + $0x208] sm:$0x1] %vm1409_vm12, %v7858_v55  ;;  %v8595_v40 = vor.u32 %v8594_v32, %v8590_v21  ;;  %v7697_v59 = vadd.f32 %v18368_v44, %v18602_v22  ;;  %v8582_v43 = vrot.slane %v8580_v47, 1 }
 0x46e   : > { %7954 = vst.msk [vmem:[#allocation3 + $0x1f8] sm:$0xff] %vm281_vm2, %v7859_v30  ;;  %vm7728_vm4 = vcmp.gt.f32.partialorder %v7696_v63, 0.0  ;;  %v7760_v20 = vmul.f32 0.01, %v7696_v63  ;;  %v7698_v36 = vadd.f32 %v18365_v14, %v18606_v52  ;;  %v8587_v56 = vrot.slane %v8585_v7, 1 }
 0x46f   : > { %v18688_v28 = vsel %vm1917_vm5, %v8595_v40, %v8599_v27  ;;  %vm7729_vm6 = vcmp.gt.f32.partialorder %v7697_v59, 0.0  ;;  %v7761_v11 = vmul.f32 0.01, %v7697_v59  ;;  %v8583_v0 = vor.u32 %v8582_v43, %v8578_v41  ;;  %v18692_v21 = vpop.f32.mrb[84].mxu0  ;;  %v15246_v41 = vld [vmem:[%s20956_s5 + $0x1e0] sm:$0xff]  }
 0x470   : > { %13665 = vmatprep.mubr.msk.bf16.mxu1 %vm281_vm2, %v18688_v28  ;;  %v7792_v22 = vsel %vm7728_vm4, %v7696_v63, %v7760_v20  ;;  %vm7730_vm7 = vcmp.gt.f32.partialorder %v7698_v36, 0.0  ;;  %v7762_v26 = vmul.f32 0.01, %v7698_v36  ;;  %v7699_v52 = vadd.f32 %v18368_v44, %v18611_v31  ;;  %v18700_v32 = vpop.f32.mrb[85].mxu0 }
 0x471   : > { %v7860_v1 = vrot.slane %v7792_v22, 7  ;;  %v7793_v9 = vsel %vm7729_vm6, %v7697_v59, %v7761_v11  ;;  %v8065_v55 = vpack.c.bf16 %v18696_v2, %v18685_v61  ;;  %v18706_v46 = vsel %vm1917_vm5, %v8583_v0, %v8587_v56  ;;  %v18710_v31 = vpop.f32.mrb[86].mxu0  ;;  %v7997_v11 = vld [vmem:[#allocation3 + $0x30] sm:$0xff]  ;;  %v8002_v2 = vld [vmem:[#allocation3 + $0x68] sm:$0xff] }
 0x472   : > { %v7861_v27 = vrot.slane %v7793_v9, 7  ;;  %v7794_v47 = vsel %vm7730_vm7, %v7698_v36, %v7762_v26  ;;  %v7700_v63 = vadd.f32 %v18365_v14, %v18624_v60  ;;  %8803 = vmatmul.mubr.bf16.gmra.mrb[60].mxu1 %v18706_v46  ;;  %9637 = vmatmul.mubr.bf16.vlgmr.msra.gmra.mrb[128].mxu0 %v18427_v54  ;;  %vm7731_vm9 = vcmp.gt.f32.partialorder %v7699_v52, 0.0  ;;  %v18716_v59 = vpop.f32.mrb[87].mxu0  ;;  %v15242_v9 = vld [vmem:[%s20956_s5 + $0xf0] sm:$0xff]  }
 0x473   : > { %7957 = vst [vmem:[#allocation3 + $0x210] sm:$0xfe] %v7860_v1  ;;  %v7862_v30 = vrot.slane %v7794_v47, 7  ;;  %v7763_v40 = vmul.f32 0.01, %v7699_v52  ;;  %v7701_v7 = vadd.f32 %v18368_v44, %v18628_v19  ;;  %13791 = vmatprep.mubr.msk.bf16.mxu0 %vm281_vm2, %v18452_v16  ;;  %v21376_v60 = vpack.c.bf16 %v18234_v17, %v18362_v37  ;;  %10010 = vmatpush1.bf16.msra.mxu0 %v15246_v41  ;;  %v15247_v17 = vld [vmem:[%s20956_s5 + $0x1e8] sm:$0xff]  }
 0x474   : > { %7958 = vst.msk [vmem:[#allocation3 + $0x218] sm:$0xfe] %vm1404_vm8, %v7861_v27  ;;  %vm7732_vm11 = vcmp.gt.f32.partialorder %v7700_v63, 0.0  ;;  %v7764_v43 = vmul.f32 0.01, %v7700_v63  ;;  %v7702_v54 = vadd.f32 %v18365_v14, %v18633_v25  ;;  %v7703_v19 = vadd.f32 %v18368_v44, %v18637_v23  ;;  %10011 = vmatprep.subr.bf16.mxu0 %v21337_v42  ;;  %v15418_v47 = vld [vmem:[#allocation3 + $0x40] sm:$0xff] }
 0x475   : > { %13676 = vmatprep.mubr.msk.bf16.mxu1 %vm281_vm2, %v21376_v60  ;;  %v7863_v20 = vsel %vm1209_vm10, %v7860_v1, %v7862_v30  ;;  %7961 = vst [vmem:[#allocation3 + $0x230] sm:$0x1] %v7862_v30  ;;  %v7795_v36 = vsel %vm7731_vm9, %v7699_v52, %v7763_v40  ;;  %vm7733_vm13 = vcmp.gt.f32.partialorder %v7701_v7, 0.0  ;;  %v7765_v56 = vmul.f32 0.01, %v7701_v7  ;;  %v7998_v40 = vld [vmem:[#allocation3 + $0x38] sm:$0xff] }
 0x476   : > { %7959 = vst [vmem:[#allocation3 + $0x220] sm:$0xff] %v7863_v20  ;;  %v7864_v37 = vrot.slane %v7795_v36, 7  ;;  %v7796_v0 = vsel %vm7732_vm11, %v7700_v63, %v7764_v43  ;;  %vm7734_vm15 = vcmp.gt.f32.partialorder %v7702_v54, 0.0  ;;  %v7766_v25 = vmul.f32 0.01, %v7702_v54 }
 0x477   : > { %v7866_v23 = vrot.slane %v7796_v0, 7  ;;  %v7797_v22 = vsel %vm7733_vm13, %v7701_v7, %v7765_v56  ;;  %vm7735_vm0 = vcmp.gt.f32.partialorder %v7703_v19, 0.0  ;;  %v7767_v26 = vmul.f32 0.01, %v7703_v19  ;;  %v18741_v30 = vpop.f32.mrb[88].mxu0  ;;  %10012 = vmatpush1.bf16.msra.mxu0 %v15247_v17 }
 0x478   : > { %v7865_v1 = vsel %vm1209_vm10, %v7861_v27, %v7864_v37  ;;  %7962 = vst.msk [vmem:[#allocation3 + $0x238] sm:$0x1] %vm1409_vm12, %v7864_v37  ;;  %v7867_v52 = vrot.slane %v7797_v22, 7  ;;  %v7798_v41 = vsel %vm7734_vm15, %v7702_v54, %v7766_v25  ;;  %v18739_v63 = vpack.c.bf16 %v15418_v47, %v7997_v11  ;;  %v18748_v20 = vpop.f32.mrb[89].mxu0  ;;  %v15419_v54 = vld [vmem:[#allocation3 + $0x48] sm:$0xff]  ;;  %10013 = vmatprep.subr.bf16.mxu0 %v21337_v42  ;;  %v15420_v25 = vld [vmem:[#allocation3 + $0x78] sm:$0xff] }
 0x479   : > { %7960 = vst.msk [vmem:[#allocation3 + $0x228] sm:$0xff] %vm281_vm2, %v7865_v1  ;;  %7963 = vst [vmem:[#allocation3 + $0x240] sm:$0xfe] %v7866_v23  ;;  %v7868_v7 = vrot.slane %v7798_v41, 7  ;;  %v7799_v60 = vsel %vm7735_vm0, %v7703_v19, %v7767_v26  ;;  %v7704_v27 = vadd.f32 %v18365_v14, %v18660_v39  ;;  %v7705_v43 = vadd.f32 %v18368_v44, %v18663_v13  ;;  %v18757_v37 = vpop.f32.mrb[90].mxu0  ;;  %v15249_v39 = vld [vmem:[%s20956_s5 + $0x1f0] sm:$0xff]  }
 0x47a   : > { %v18750_v36 = vpack.c.bf16 %v15419_v54, %v7998_v40  ;;  %7964 = vst.msk [vmem:[#allocation3 + $0x248] sm:$0xfe] %vm1404_vm8, %v7867_v52  ;;  %v7870_v56 = vrot.slane %v7799_v60, 7  ;;  %v7706_v11 = vadd.f32 %v18365_v14, %v18668_v12  ;;  %v7707_v19 = vadd.f32 %v18368_v44, %v18671_v50  ;;  %8928 = vmatmul.mubr.bf16.vlgmr.msra.gmra.mrb[64].mxu1 %v8065_v55  ;;  %v15243_v12 = vld [vmem:[%s20956_s5 + $0xf8] sm:$0xff]   ;;  %v18771_v17 = vpop.f32.mrb[91].mxu0 }
 0x47b   : > { %v7869_v13 = vsel %vm1209_vm10, %v7866_v23, %v7868_v7  ;;  %7967 = vst [vmem:[#allocation3 + $0x260] sm:$0x1] %v7868_v7  ;;  %9645 = vmatmul.mubr.bf16.gmra.mrb[132].mxu0 %v18455_v33  ;;  %vm7736_vm1 = vcmp.gt.f32.partialorder %v7704_v27, 0.0  ;;  %v7768_v50 = vmul.f32 0.01, %v7704_v27  ;;  %vm7737_vm3 = vcmp.gt.f32.partialorder %v7705_v43, 0.0  ;;  %9383 = vmatpush1.bf16.msra.mxu1 %v15242_v9 }
 0x47c   : > { %13677 = vmatprep.mubr.msk.bf16.mxu1 %vm281_vm2, %v18750_v36  ;;  %7965 = vst [vmem:[#allocation3 + $0x250] sm:$0xff] %v7869_v13  ;;  %v7871_v61 = vsel %vm1209_vm10, %v7867_v52, %v7870_v56  ;;  %7968 = vst.msk [vmem:[#allocation3 + $0x268] sm:$0x1] %vm1409_vm12, %v7870_v56  ;;  %v7769_v55 = vmul.f32 0.01, %v7705_v43  ;;  %vm7738_vm4 = vcmp.gt.f32.partialorder %v7706_v11, 0.0  ;;  %13792 = vmatprep.mubr.msk.bf16.mxu0 %vm281_vm2, %v18496_v18 }
 0x47d   : > { %v7770_v0 = vmul.f32 0.01, %v7706_v11  ;;  %7966 = vst.msk [vmem:[#allocation3 + $0x258] sm:$0xff] %vm281_vm2, %v7871_v61  ;;  %9384 = vmatprep.subr.bf16.mxu1 %v21337_v42  ;;  %v18781_v23 = vpack.c.bf16 %v15420_v25, %v8002_v2  ;;  %v7800_v22 = vsel %vm7736_vm1, %v7704_v27, %v7768_v50  ;;  %vm7739_vm6 = vcmp.gt.f32.partialorder %v7707_v19, 0.0  ;;  %10014 = vmatpush1.bf16.msra.mxu0 %v15249_v39  ;;  %v15251_v47 = vld [vmem:[%s20956_s5 + $0x1f8] sm:$0xff]  }
 0x47e   : > { %v7771_v26 = vmul.f32 0.01, %v7707_v19  ;;  %v7872_v1 = vrot.slane %v7800_v22, 7  ;;  %v7801_v9 = vsel %vm7737_vm3, %v7705_v43, %v7769_v55  ;;  %v7708_v41 = vadd.f32 %v18365_v14, %v18692_v21  ;;  %10015 = vmatprep.subr.bf16.mxu0 %v21337_v42  ;;  %v15244_v21 = vld [vmem:[%s20956_s5 + $0x100] sm:$0xff]  }
 0x47f   : > { %v7802_v52 = vsel %vm7738_vm4, %v7706_v11, %v7770_v0  ;;  %v7873_v40 = vrot.slane %v7801_v9, 7  ;;  %v7709_v27 = vadd.f32 %v18368_v44, %v18700_v32  ;;  %9385 = vmatpush1.bf16.msra.mxu1 %v15243_v12  ;;  %v7710_v56 = vadd.f32 %v18365_v14, %v18710_v31  ;;  %v18798_v11 = vpop.f32.mrb[92].mxu0  ;;  %v8001_v31 = vld [vmem:[#allocation3 + $0x60] sm:$0xff]  ;;  %v15245_v9 = vld [vmem:[%s20956_s5 + $0x108] sm:$0xff]  }
 0x480   : > { %v7874_v7 = vrot.slane %v7802_v52, 7  ;;  %v7803_v60 = vsel %vm7739_vm6, %v7707_v19, %v7771_v26  ;;  %7969 = vst [vmem:[#allocation3 + $0x270] sm:$0xfe] %v7872_v1  ;;  %vm7740_vm7 = vcmp.gt.f32.partialorder %v7708_v41, 0.0  ;;  %v7772_v54 = vmul.f32 0.01, %v7708_v41  ;;  %9386 = vmatprep.subr.bf16.mxu1 %v21337_v42 }
 0x481   : > { %v7876_v43 = vrot.slane %v7803_v60, 7  ;;  %7970 = vst.msk [vmem:[#allocation3 + $0x278] sm:$0xfe] %vm1404_vm8, %v7873_v40  ;;  %vm7741_vm9 = vcmp.gt.f32.partialorder %v7709_v27, 0.0  ;;  %v7773_v19 = vmul.f32 0.01, %v7709_v27  ;;  %v7711_v39 = vadd.f32 %v18368_v44, %v18716_v59  ;;  %10016 = vmatpush1.bf16.msra.mxu0 %v15251_v47 }
 0x482   : > { %v7875_v32 = vsel %vm1209_vm10, %v7872_v1, %v7874_v7  ;;  %7973 = vst [vmem:[#allocation3 + $0x290] sm:$0x1] %v7874_v7  ;;  %v18805_v13 = vpop.f32.mrb[93].mxu0  ;;  %v7804_v50 = vsel %vm7740_vm7, %v7708_v41, %v7772_v54  ;;  %vm7742_vm11 = vcmp.gt.f32.partialorder %v7710_v56, 0.0  ;;  %v7774_v61 = vmul.f32 0.01, %v7710_v56  ;;  %8936 = vmatmul.mubr.bf16.gmra.mrb[68].mxu1 %v18739_v63  ;;  %10017 = vmatprep.subr.bf16.mxu0 %v21337_v42 }
 0x483   : > { %7971 = vst [vmem:[#allocation3 + $0x280] sm:$0xff] %v7875_v32  ;;  %v7877_v12 = vsel %vm1209_vm10, %v7873_v40, %v7876_v43  ;;  %7974 = vst.msk [vmem:[#allocation3 + $0x298] sm:$0x1] %vm1409_vm12, %v7876_v43  ;;  %v18810_v2 = vpop.f32.mrb[94].mxu0  ;;  %9653 = vmatmul.mubr.bf16.gmra.mrb[136].mxu0 %v18504_v5  ;;  %v7878_v59 = vrot.slane %v7804_v50, 7  ;;  %v7805_v55 = vsel %vm7741_vm9, %v7709_v27, %v7773_v19  ;;  %vm7743_vm13 = vcmp.gt.f32.partialorder %v7711_v39, 0.0 }
 0x484   : > { %7972 = vst.msk [vmem:[#allocation3 + $0x288] sm:$0xff] %vm281_vm2, %v7877_v12  ;;  %v7775_v0 = vmul.f32 0.01, %v7711_v39  ;;  %v18816_v25 = vpop.f32.mrb[95].mxu0  ;;  %v15252_v22 = vld [vmem:[%s20956_s5 + $0x200] sm:$0xff]   ;;  %13678 = vmatprep.mubr.msk.bf16.mxu1 %vm281_vm2, %v18781_v23  ;;  %9387 = vmatpush1.bf16.msra.mxu1 %v15244_v21  ;;  %v7879_v26 = vrot.slane %v7805_v55, 7  ;;  %v7806_v1 = vsel %vm7742_vm11, %v7710_v56, %v7774_v61  ;;  %v7712_v47 = vadd.f32 %v18365_v14, %v18741_v30 }
 0x485   : > { %13793 = vmatprep.mubr.msk.bf16.mxu0 %vm281_vm2, %v18536_v51  ;;  %7975 = vst [vmem:[#allocation3 + $0x2a0] sm:$0xfe] %v7878_v59  ;;  %9388 = vmatprep.subr.bf16.mxu1 %v21337_v42  ;;  %v7880_v52 = vrot.slane %v7806_v1, 7  ;;  %v7713_v40 = vadd.f32 %v18368_v44, %v18748_v20  ;;  %v18834_v7 = vpop.f32.mrb[32].mxu1  ;;  %v15421_v60 = vld [vmem:[#allocation3 + $0x70] sm:$0xff]  ;;  %v7714_v21 = vadd.f32 %v18365_v14, %v18757_v37  ;;  %v8006_v32 = vld [vmem:[#allocation3 + $0x98] sm:$0xff] }
 0x486   : > { %v7807_v41 = vsel %vm7743_vm13, %v7711_v39, %v7775_v0  ;;  %v18836_v27 = vpack.c.bf16 %v15421_v60, %v8001_v31  ;;  %7976 = vst.msk [vmem:[#allocation3 + $0x2a8] sm:$0xfe] %vm1404_vm8, %v7879_v26  ;;  %v7715_v54 = vadd.f32 %v18368_v44, %v18771_v17  ;;  %v8750_v30 = vpop.f32.mrb[33].mxu1  ;;  %vm7744_vm15 = vcmp.gt.f32.partialorder %v7712_v47, 0.0  ;;  %10018 = vmatpush1.bf16.msra.mxu0 %v15252_v22  ;;  %v15422_v39 = vld [vmem:[#allocation3 + $0xa8] sm:$0xff]  ;;  %v15248_v50 = vld [vmem:[%s20956_s5 + $0x110] sm:$0xff]  }
 0x487   : > { %v7882_v43 = vrot.slane %v7807_v41, 7  ;;  %v7881_v56 = vsel %vm1209_vm10, %v7878_v59, %v7880_v52  ;;  %7979 = vst [vmem:[#allocation3 + $0x2c0] sm:$0x1] %v7880_v52  ;;  %v7776_v20 = vmul.f32 0.01, %v7712_v47  ;;  %vm7745_vm0 = vcmp.gt.f32.partialorder %v7713_v40, 0.0  ;;  %10019 = vmatprep.subr.bf16.mxu0 %v21337_v42 }
 0x488   : > { %7977 = vst [vmem:[#allocation3 + $0x2b0] sm:$0xff] %v7881_v56  ;;  %9389 = vmatpush1.bf16.msra.mxu1 %v15245_v9  ;;  %v7777_v37 = vmul.f32 0.01, %v7713_v40  ;;  %vm7746_vm1 = vcmp.gt.f32.partialorder %v7714_v21, 0.0  ;;  %v7778_v17 = vmul.f32 0.01, %v7714_v21  ;;  %v18848_v12 = vpack.c.bf16 %v15422_v39, %v8006_v32 }
 0x489   : > { %v7883_v19 = vsel %vm1209_vm10, %v7879_v26, %v7882_v43  ;;  %7980 = vst.msk [vmem:[#allocation3 + $0x2c8] sm:$0x1] %vm1409_vm12, %v7882_v43  ;;  %9390 = vmatprep.subr.bf16.mxu1 %v21337_v42  ;;  %v7808_v31 = vsel %vm7744_vm15, %v7712_v47, %v7776_v20  ;;  %vm7747_vm3 = vcmp.gt.f32.partialorder %v7715_v54, 0.0  ;;  %v7779_v61 = vmul.f32 0.01, %v7715_v54  ;;  %v15254_v59 = vld [vmem:[%s20956_s5 + $0x208] sm:$0xff]  }
 0x48a   : > { %7978 = vst.msk [vmem:[#allocation3 + $0x2b8] sm:$0xff] %vm281_vm2, %v7883_v19  ;;  %v7884_v55 = vrot.slane %v7808_v31, 7  ;;  %v7809_v0 = vsel %vm7745_vm0, %v7713_v40, %v7777_v37  ;;  %v7810_v22 = vsel %vm7746_vm1, %v7714_v21, %v7778_v17  ;;  %v7716_v26 = vadd.f32 %v18365_v14, %v18798_v11  ;;  %8944 = vmatmul.mubr.bf16.gmra.mrb[72].mxu1 %v18836_v27  ;;  %v15250_v41 = vld [vmem:[%s20956_s5 + $0x118] sm:$0xff]   ;;  %v18875_v43 = vpop.f32.mrb[34].mxu1  ;;  %v18877_v21 = vpop.f32.mrb[96].mxu0  ;;  %v8005_v20 = vld [vmem:[#allocation3 + $0x90] sm:$0xff] }
 0x48b   : > { %9661 = vmatmul.mubr.bf16.gmra.mrb[140].mxu0 %v18548_v24  ;;  %v7885_v1 = vrot.slane %v7809_v0, 7  ;;  %v7886_v9 = vrot.slane %v7810_v22, 7  ;;  %v7811_v52 = vsel %vm7747_vm3, %v7715_v54, %v7779_v61  ;;  %v7717_v47 = vadd.f32 %v18368_v44, %v18805_v13  ;;  %13679 = vmatprep.mubr.msk.bf16.mxu1 %vm281_vm2, %v18848_v12  ;;  %v9221_v56 = vpop.f32.mrb[97].mxu0  ;;  %v8010_v22 = vld [vmem:[#allocation3 + $0xc8] sm:$0xff] }
 0x48c   : > { %13794 = vmatprep.mubr.msk.bf16.mxu0 %vm281_vm2, %v18585_v35  ;;  %7981 = vst [vmem:[#allocation3 + $0x2d0] sm:$0xfe] %v7884_v55  ;;  %v7888_v11 = vrot.slane %v7811_v52, 7  ;;  %vm7748_vm4 = vcmp.gt.f32.partialorder %v7716_v26, 0.0  ;;  %v7780_v40 = vmul.f32 0.01, %v7716_v26  ;;  %v7718_v60 = vadd.f32 %v18365_v14, %v18810_v2  ;;  %9391 = vmatpush1.bf16.msra.mxu1 %v15248_v50 }
 0x48d   : > { %7982 = vst.msk [vmem:[#allocation3 + $0x2d8] sm:$0xfe] %vm1404_vm8, %v7885_v1  ;;  %v7887_v13 = vsel %vm1209_vm10, %v7884_v55, %v7886_v9  ;;  %7985 = vst [vmem:[#allocation3 + $0x2f0] sm:$0x1] %v7886_v9  ;;  %vm7749_vm6 = vcmp.gt.f32.partialorder %v7717_v47, 0.0  ;;  %v7719_v30 = vadd.f32 %v18368_v44, %v18816_v25  ;;  %10020 = vmatpush1.bf16.msra.mxu0 %v15254_v59  ;;  %v15256_v14 = vld [vmem:[%s20956_s5 + $0x210] sm:$0xff]   ;;  %9392 = vmatprep.subr.bf16.mxu1 %v21337_v42 }
 0x48e   : > { %v7781_v54 = vmul.f32 0.01, %v7717_v47  ;;  %v8753_v2 = vpop.f32.mrb[35].mxu1  ;;  %7983 = vst [vmem:[#allocation3 + $0x2e0] sm:$0xff] %v7887_v13  ;;  %v7889_v32 = vsel %vm1209_vm10, %v7885_v1, %v7888_v11  ;;  %7986 = vst.msk [vmem:[#allocation3 + $0x2f8] sm:$0x1] %vm1409_vm12, %v7888_v11  ;;  %v7812_v19 = vsel %vm7748_vm4, %v7716_v26, %v7780_v40  ;;  %10021 = vmatprep.subr.bf16.mxu0 %v21337_v42 }
 0x48f   : > { %vm7750_vm7 = vcmp.gt.f32.partialorder %v7718_v60, 0.0  ;;  %v7782_v37 = vmul.f32 0.01, %v7718_v60  ;;  %v18891_v44 = vpop.f32.mrb[98].mxu0  ;;  %7984 = vst.msk [vmem:[#allocation3 + $0x2e8] sm:$0xff] %vm281_vm2, %v7889_v32  ;;  %v7890_v25 = vrot.slane %v7812_v19, 7 }
 0x490   : > { %v7813_v17 = vsel %vm7749_vm6, %v7717_v47, %v7781_v54  ;;  %vm7751_vm9 = vcmp.gt.f32.partialorder %v7719_v30, 0.0  ;;  %v7783_v39 = vmul.f32 0.01, %v7719_v30  ;;  %v9224_v31 = vpop.f32.mrb[99].mxu0  ;;  %v18895_v59 = vld [vmem:[#allocation3 + $0x198] sm:$0xff]  ;;  %v15423_v55 = vld [vmem:[#allocation3 + $0xa0] sm:$0xff]  ;;  %9393 = vmatpush1.bf16.msra.mxu1 %v15250_v41 }
 0x491   : > { %v7891_v50 = vrot.slane %v7813_v17, 7  ;;  %v7814_v61 = vsel %vm7750_vm7, %v7718_v60, %v7782_v37  ;;  %v18897_v0 = vpack.c.bf16 %v15423_v55, %v8005_v20  ;;  %7987 = vst [vmem:[#allocation3 + $0x300] sm:$0xfe] %v7890_v25  ;;  %v15253_v9 = vld [vmem:[%s20956_s5 + $0x120] sm:$0xff]   ;;  %10022 = vmatpush1.bf16.msra.mxu0 %v15256_v14  ;;  %v15257_v52 = vld [vmem:[%s20956_s5 + $0x218] sm:$0xff]   ;;  %9394 = vmatprep.subr.bf16.mxu1 %v21337_v42  ;;  %v18929_v32 = vld [vmem:[#allocation3 + $0x190] sm:$0xff] }
 0x492   : > { %v7892_v26 = vrot.slane %v7814_v61, 7  ;;  %v7815_v1 = vsel %vm7751_vm9, %v7719_v30, %v7783_v39  ;;  %v15424_v47 = vld [vmem:[#allocation3 + $0xd8] sm:$0xff]  ;;  %v8134_v41 = vld [vmem:[#allocation3 + $0x188] sm:$0xfe]  ;;  %10023 = vmatprep.subr.bf16.mxu0 %v21337_v42  ;;  %v15259_v14 = vld [vmem:[%s20956_s5 + $0x220] sm:$0xff]  }
 0x493   : > { %v18905_v11 = vpack.c.bf16 %v15424_v47, %v8010_v22  ;;  %7988 = vst.msk [vmem:[#allocation3 + $0x308] sm:$0xfe] %vm1404_vm8, %v7891_v50  ;;  %v7894_v40 = vrot.slane %v7815_v1, 7  ;;  %8952 = vmatmul.mubr.bf16.gmra.mrb[76].mxu1 %v18897_v0  ;;  %9669 = vmatmul.mubr.bf16.gmra.mrb[144].mxu0 %v18590_v8  ;;  %v8206_v13 = vpack.c.bf16 %v18895_v59, %v8134_v41  ;;  %v15255_v30 = vld [vmem:[%s20956_s5 + $0x128] sm:$0xff]   ;;  %v8009_v2 = vld [vmem:[#allocation3 + $0xc0] sm:$0xff]  ;;  %v15258_v19 = vld [vmem:[%s20956_s5 + $0x130] sm:$0xff]  }
 0x494   : > { %v7893_v60 = vsel %vm1209_vm10, %v7890_v25, %v7892_v26  ;;  %7991 = vst [vmem:[#allocation3 + $0x320] sm:$0x1] %v7892_v26  ;;  %13795 = vmatprep.mubr.msk.bf16.mxu0 %vm281_vm2, %v18640_v6  ;;  %9395 = vmatpush1.bf16.msra.mxu1 %v15253_v9  ;;  %v8136_v56 = vld [vmem:[#allocation3 + $0x1a8] sm:$0x1]  ;;  %v15425_v37 = vld [vmem:[#allocation3 + $0xd0] sm:$0xff]  ;;  %v8014_v17 = vld [vmem:[#allocation3 + $0xf8] sm:$0xff] }
 0x495   : > { %13680 = vmatprep.mubr.msk.bf16.mxu1 %vm281_vm2, %v18905_v11  ;;  %7989 = vst [vmem:[#allocation3 + $0x310] sm:$0xff] %v7893_v60  ;;  %v7895_v54 = vsel %vm1209_vm10, %v7891_v50, %v7894_v40  ;;  %7992 = vst.msk [vmem:[#allocation3 + $0x328] sm:$0x1] %vm1409_vm12, %v7894_v40  ;;  %10024 = vmatpush1.bf16.msra.mxu0 %v15257_v52  ;;  %v9510_v20 = vshll.u32 %v8206_v13, 16  ;;  %v18934_v25 = vpack.c.bf16 %v15425_v37, %v8009_v2  ;;  %v8133_v31 = vld [vmem:[#allocation3 + $0x180] sm:$0xfe] }
 0x496   : > { %7990 = vst.msk [vmem:[#allocation3 + $0x318] sm:$0xff] %vm281_vm2, %v7895_v54  ;;  %9396 = vmatprep.subr.bf16.mxu1 %v21337_v42  ;;  %10025 = vmatprep.subr.bf16.mxu0 %v21337_v42  ;;  %v8208_v39 = vpack.c.bf16 %v8136_v56, %v8136_v56  ;;  %v15260_v50 = vld [vmem:[%s20956_s5 + $0x228] sm:$0xff]   ;;  %v8205_v22 = vpack.c.bf16 %v18929_v32, %v8133_v31  ;;  %v9508_v1 = vshrl.u32 %v8206_v13, 16  ;;  %v8135_v52 = vld [vmem:[#allocation3 + $0x1a0] sm:$0x1]  ;;  %v15261_v47 = vld [vmem:[%s20956_s5 + $0x138] sm:$0xff]  }
 0x497   : > { %v15426_v61 = vld [vmem:[#allocation3 + $0x108] sm:$0xff]  ;;  %v9512_v26 = vrot.slane %v9510_v20, 1  ;;  %v8013_v40 = vld [vmem:[#allocation3 + $0xf0] sm:$0xff]  ;;  %v8207_v54 = vpack.c.bf16 %v8135_v52, %v8135_v52  ;;  %v15429_v52 = vld [vmem:[#allocation3 + $0x160] sm:$0xff]  ;;  %vm10575_vm8 = vcmask 39936  }
 0x498   : > { %9397 = vmatpush1.bf16.msra.mxu1 %v15255_v30  ;;  %v18939_v55 = vpack.c.bf16 %v15426_v61, %v8014_v17  ;;  %v9515_v9 = vshll.u32 %v8208_v39, 16  ;;  %v9498_v41 = vshll.u32 %v8205_v22, 16  ;;  %v15427_v30 = vld [vmem:[#allocation3 + $0x100] sm:$0xff]  ;;  %v8018_v13 = vld [vmem:[#allocation3 + $0x128] sm:$0xff]  ;;  %v9496_v37 = vshrl.u32 %v8205_v22, 16  ;;  %v8021_v22 = vld [vmem:[#allocation3 + $0x150] sm:$0xff] }
 0x499   : > { %10026 = vmatpush1.bf16.msra.mxu0 %v15259_v14  ;;  %9398 = vmatprep.subr.bf16.mxu1 %v21337_v42  ;;  %v9513_v60 = vor.u32 %v9512_v26, %v9508_v1  ;;  %v18955_v14 = vpack.c.bf16 %v15427_v30, %v8013_v40  ;;  %v18958_v56 = vpack.c.bf16 %v18566_v45, %v8018_v13  ;;  %v9503_v17 = vshll.u32 %v8207_v54, 16  ;;  %v8017_v45 = vld [vmem:[#allocation3 + $0x120] sm:$0xff]  ;;  %v8022_v26 = vld [vmem:[#allocation3 + $0x158] sm:$0xff]  ;;  %v15267_v40 = vld [vmem:[%s20956_s5 + $0x288] sm:$0xff]  }
 0x49a   : > { %10027 = vmatprep.subr.bf16.mxu0 %v21337_v42  ;;  %v9517_v2 = vrot.slane %v9515_v9, 1  ;;  %v9500_v20 = vrot.slane %v9498_v41, 1  ;;  %v18973_v1 = vpack.c.bf16 %v18622_v15, %v8022_v26  ;;  %v15266_v15 = vld [vmem:[%s20956_s5 + $0x280] sm:$0xff]   ;;  %v15262_v41 = vld [vmem:[%s20956_s5 + $0x190] sm:$0xff]   ;;  %v15265_v30 = vld [vmem:[%s20956_s5 + $0x1a8] sm:$0xff]  }
 0x49b   : > { %8960 = vmatmul.mubr.bf16.gmra.mrb[80].mxu1 %v18934_v25  ;;  %9677 = vmatmul.mubr.bf16.gmra.mrb[148].mxu0 %v18645_v53  ;;  %v9505_v31 = vrot.slane %v9503_v17, 1  ;;  %v15272_v54 = vld [vmem:[%s20956_s5 + $0x2a0] sm:$0xff]   ;;  %v15270_v13 = vld [vmem:[%s20956_s5 + $0x1b8] sm:$0xff]   ;;  %v15280_v17 = vld [vmem:[%s20956_s5 + $0x2c8] sm:$0xff]  }
 0x49c   : > { %13681 = vmatprep.mubr.msk.bf16.mxu1 %vm281_vm2, %v18939_v55  ;;  %13796 = vmatprep.mubr.msk.bf16.mxu0 %vm281_vm2, %v18688_v28  ;;  %v9501_v39 = vor.u32 %v9500_v20, %v9496_v37  ;;  %v15275_v20 = vld [vmem:[%s20956_s5 + $0x1c8] sm:$0xff]   ;;  %v15279_v37 = vld [vmem:[%s20956_s5 + $0x2c0] sm:$0xff]  }
 0x49d   : > { %9399 = vmatpush1.bf16.msra.mxu1 %v15258_v19  ;;  %10028 = vmatpush1.bf16.msra.mxu0 %v15260_v50  ;;  %v18964_v19 = vsel %vm1917_vm5, %v9513_v60, %v9517_v2  ;;  %v15428_v50 = vld [vmem:[#allocation3 + $0x130] sm:$0xff]  ;;  %v15263_v60 = vld [vmem:[%s20956_s5 + $0x198] sm:$0xff]  }
 0x49e   : > { %9400 = vmatprep.subr.bf16.mxu1 %v21337_v42  ;;  %10439 = vmatprep.subr.bf16.mxu0 %v21337_v42  ;;  %v18970_v61 = vpack.c.bf16 %v15428_v50, %v8017_v45  ;;  %v18976_v9 = vsel %vm1917_vm5, %v9501_v39, %v9505_v31  ;;  %v15276_v2 = vld [vmem:[%s20956_s5 + $0x2b0] sm:$0xff]   ;;  %v15281_v39 = vld [vmem:[%s20956_s5 + $0x1d8] sm:$0xff]   ;;  %v19104_v31 = vld [vmem:[#allocation3 + $0x1c8] sm:$0xff] }
 0x4a1   : > { %9401 = vmatpush1.bf16.msra.mxu1 %v15261_v47  ;;  %v18984_v47 = vpack.c.bf16 %v15429_v52, %v8021_v22  ;;  %v19119_v22 = vld [vmem:[#allocation3 + $0x1c0] sm:$0xff]  ;;  %v8029_v52 = vld [vmem:[#allocation3 + $0x1b0] sm:$0xff] }
 0x4a2   : > { %9812 = vmatprep.subr.bf16.mxu1 %v21337_v42 }
 0x4a3   : > { %8968 = vmatmul.mubr.bf16.gmra.mrb[84].mxu1 %v18955_v14  ;;  %9685 = vmatmul.mubr.bf16.gmra.mrb[152].mxu0 %v18706_v46 }
 0x4a4   : > { %13682 = vmatprep.mubr.msk.bf16.mxu1 %vm281_vm2, %v18958_v56  ;;  %13797 = vmatprep.mubr.msk.bf16.mxu0 %vm281_vm2, %v18964_v19 }
 0x4ab   : > { %8976 = vmatmul.mubr.bf16.gmra.mrb[88].mxu1 %v18970_v61  ;;  %9693 = vmatmul.mubr.bf16.gmra.mrb[156].mxu0 %v18976_v9 }
 0x4ac   : > { %13683 = vmatprep.mubr.msk.bf16.mxu1 %vm281_vm2, %v18973_v1  ;;  %13866 = vmatprep.mubr.msk.bf16.mxu0 %vm281_vm2, %v18781_v23 }
 0x4b3   : > { %8984 = vmatmul.mubr.bf16.gmra.mrb[92].mxu1 %v18984_v47  ;;  %10042 = vmatmul.mubr.bf16.vlgmr.msra.gmra.mrb[160].mxu0 %v18836_v27 }
 0x4b4   : > { %13752 = vmatprep.mubr.msk.bf16.mxu1 %vm281_vm2, %v18750_v36  ;;  %13867 = vmatprep.mubr.msk.bf16.mxu0 %vm281_vm2, %v18848_v12  ;;  %v15269_v36 = vld [vmem:[%s20956_s5 + $0x290] sm:$0xff]  }
 0x4b5   : > { %10440 = vmatpush1.bf16.msra.mxu0 %v15266_v15  ;;  %v19122_v15 = vpack.c.bf16 %v19119_v22, %v8029_v52 }
 0x4b6   : > { %10441 = vmatprep.subr.bf16.mxu0 %v21337_v42 }
 0x4b9   : > { %10442 = vmatpush1.bf16.msra.mxu0 %v15267_v40 }
 0x4ba   : > { %10443 = vmatprep.subr.bf16.mxu0 %v21337_v42 }
 0x4bb   : > { %9415 = vmatmul.mubr.bf16.vlgmr.msra.gmra.mrb[96].mxu1 %v18739_v63  ;;  %10050 = vmatmul.mubr.bf16.gmra.mrb[164].mxu0 %v18897_v0  ;;  %v15271_v63 = vld [vmem:[%s20956_s5 + $0x298] sm:$0xff]  }
 0x4bc   : > { %9813 = vmatpush1.bf16.msra.mxu1 %v15262_v41  ;;  %13753 = vmatprep.mubr.msk.bf16.mxu1 %vm281_vm2, %v18781_v23  ;;  %v15264_v23 = vld [vmem:[%s20956_s5 + $0x1a0] sm:$0xff]  }
 0x4bd   : > { %13868 = vmatprep.mubr.msk.bf16.mxu0 %vm281_vm2, %v18905_v11  ;;  %9814 = vmatprep.subr.bf16.mxu1 %v21337_v42  ;;  %v15286_v41 = vld [vmem:[%s20956_s5] sm:$0xff]  }
 0x4be   : > { %10444 = vmatpush1.bf16.msra.mxu0 %v15269_v36 }
 0x4bf   : > { %10445 = vmatprep.subr.bf16.mxu0 %v21337_v42 }
 0x4c0   : > { %9815 = vmatpush1.bf16.msra.mxu1 %v15263_v60  ;;  %v15282_v60 = vld [vmem:[%s20956_s5 + $0x230] sm:$0xff]  }
 0x4c1   : > { %9816 = vmatprep.subr.bf16.mxu1 %v21337_v42 }
 0x4c2   : > { %10446 = vmatpush1.bf16.msra.mxu0 %v15271_v63 }
 0x4c3   : > { %9423 = vmatmul.mubr.bf16.gmra.mrb[100].mxu1 %v18836_v27  ;;  %10058 = vmatmul.mubr.bf16.gmra.mrb[168].mxu0 %v18934_v25  ;;  %v15268_v27 = vld [vmem:[%s20956_s5 + $0x1b0] sm:$0xff]  }
 0x4c4   : > { %13754 = vmatprep.mubr.msk.bf16.mxu1 %vm281_vm2, %v18848_v12  ;;  %9817 = vmatpush1.bf16.msra.mxu1 %v15264_v23  ;;  %v15274_v12 = vld [vmem:[%s20956_s5 + $0x2a8] sm:$0xff]   ;;  %v15283_v23 = vld [vmem:[%s20956_s5 + $0x238] sm:$0xff]  }
 0x4c5   : > { %13869 = vmatprep.mubr.msk.bf16.mxu0 %vm281_vm2, %v18939_v55  ;;  %9818 = vmatprep.subr.bf16.mxu1 %v21337_v42 }
 0x4c6   : > { %10447 = vmatprep.subr.bf16.mxu0 %v21337_v42 }
 0x4c7   : > { %10448 = vmatpush1.bf16.msra.mxu0 %v15272_v54 }
 0x4c8   : > { %9819 = vmatpush1.bf16.msra.mxu1 %v15265_v30  ;;  %10449 = vmatprep.subr.bf16.mxu0 %v21337_v42 }
 0x4c9   : > { %9820 = vmatprep.subr.bf16.mxu1 %v21337_v42 }
 0x4cb   : > { %9431 = vmatmul.mubr.bf16.gmra.mrb[104].mxu1 %v18897_v0  ;;  %10066 = vmatmul.mubr.bf16.gmra.mrb[172].mxu0 %v18955_v14  ;;  %v15273_v0 = vld [vmem:[%s20956_s5 + $0x1c0] sm:$0xff]  }
 0x4cc   : > { %13755 = vmatprep.mubr.msk.bf16.mxu1 %vm281_vm2, %v18905_v11  ;;  %13870 = vmatprep.mubr.msk.bf16.mxu0 %vm281_vm2, %v18958_v56  ;;  %v15277_v11 = vld [vmem:[%s20956_s5 + $0x2b8] sm:$0xff]  }
 0x4cd   : > { %9821 = vmatpush1.bf16.msra.mxu1 %v15268_v27  ;;  %10450 = vmatpush1.bf16.msra.mxu0 %v15274_v12 }
 0x4ce   : > { %9822 = vmatprep.subr.bf16.mxu1 %v21337_v42  ;;  %10451 = vmatprep.subr.bf16.mxu0 %v21337_v42 }
 0x4d1   : > { %9823 = vmatpush1.bf16.msra.mxu1 %v15270_v13  ;;  %10452 = vmatpush1.bf16.msra.mxu0 %v15276_v2  ;;  %v15284_v13 = vld [vmem:[%s20956_s5 + $0x240] sm:$0xff]  }
 0x4d2   : > { %9824 = vmatprep.subr.bf16.mxu1 %v21337_v42  ;;  %10453 = vmatprep.subr.bf16.mxu0 %v21337_v42 }
 0x4d3   : > { %9439 = vmatmul.mubr.bf16.gmra.mrb[108].mxu1 %v18934_v25  ;;  %10074 = vmatmul.mubr.bf16.gmra.mrb[176].mxu0 %v18970_v61  ;;  %v8026_v25 = vld [vmem:[#allocation3 + $0x188] sm:$0xff] }
 0x4d4   : > { %13756 = vmatprep.mubr.msk.bf16.mxu1 %vm281_vm2, %v18939_v55  ;;  %13871 = vmatprep.mubr.msk.bf16.mxu0 %vm281_vm2, %v18973_v1  ;;  %v15278_v55 = vld [vmem:[%s20956_s5 + $0x1d0] sm:$0xff]   ;;  %v19089_v45 = vpack.c.bf16 %v18895_v59, %v8026_v25 }
 0x4d5   : > { %9825 = vmatpush1.bf16.msra.mxu1 %v15273_v0  ;;  %10454 = vmatpush1.bf16.msra.mxu0 %v15277_v11  ;;  %v15292_v11 = vld [vmem:[%s20956_s5 + $0x20] sm:$0xff]  }
 0x4d6   : > { %9826 = vmatprep.subr.bf16.mxu1 %v21337_v42  ;;  %10455 = vmatprep.subr.bf16.mxu0 %v21337_v42 }
 0x4d9   : > { %9827 = vmatpush1.bf16.msra.mxu1 %v15275_v20  ;;  %10456 = vmatpush1.bf16.msra.mxu0 %v15279_v37  ;;  %v15285_v20 = vld [vmem:[%s20956_s5 + $0x248] sm:$0xff]  }
 0x4da   : > { %9828 = vmatprep.subr.bf16.mxu1 %v21337_v42  ;;  %10457 = vmatprep.subr.bf16.mxu0 %v21337_v42 }
 0x4db   : > { %9447 = vmatmul.mubr.bf16.gmra.mrb[112].mxu1 %v18955_v14  ;;  %10082 = vmatmul.mubr.bf16.gmra.mrb[180].mxu0 %v18984_v47  ;;  %v8025_v14 = vld [vmem:[#allocation3 + $0x180] sm:$0xff] }
 0x4dc   : > { %13757 = vmatprep.mubr.msk.bf16.mxu1 %vm281_vm2, %v18958_v56  ;;  %13872 = vmatprep.mubr.msk.bf16.mxu0 %vm281_vm2, %v19089_v45  ;;  %v19107_v50 = vpack.c.bf16 %v18929_v32, %v8025_v14  ;;  %v8030_v56 = vld [vmem:[#allocation3 + $0x1b8] sm:$0xff] }
 0x4dd   : > { %9829 = vmatpush1.bf16.msra.mxu1 %v15278_v55  ;;  %10458 = vmatpush1.bf16.msra.mxu0 %v15280_v17  ;;  %v19110_v26 = vpack.c.bf16 %v19104_v31, %v8030_v56  ;;  %v15294_v55 = vld [vmem:[%s20956_s5 + $0x28] sm:$0xff]   ;;  %v15290_v56 = vld [vmem:[%s20956_s5 + $0x258] sm:$0xff]  }
 0x4de   : > { %9830 = vmatprep.subr.bf16.mxu1 %v21337_v42  ;;  %11035 = vmatprep.subr.bf16.mxu0 %v21337_v42 }
 0x4e1   : > { %9831 = vmatpush1.bf16.msra.mxu1 %v15281_v39  ;;  %v21377_v39 = vld [vmem:[#allocation8_spill] sm:$0xff] }
 0x4e2   : > { %10231 = vmatprep.subr.bf16.mxu1 %v21337_v42 }
 0x4e3   : > { %9455 = vmatmul.mubr.bf16.gmra.mrb[116].mxu1 %v18970_v61  ;;  %10090 = vmatmul.mubr.bf16.gmra.mrb[184].mxu0 %v19107_v50 }
 0x4e4   : > { %13758 = vmatprep.mubr.msk.bf16.mxu1 %vm281_vm2, %v18973_v1  ;;  %13873 = vmatprep.mubr.msk.bf16.mxu0 %vm281_vm2, %v19110_v26 }
 0x4eb   : > { %9463 = vmatmul.mubr.bf16.gmra.mrb[120].mxu1 %v18984_v47  ;;  %10098 = vmatmul.mubr.bf16.gmra.mrb[188].mxu0 %v19122_v15  ;;  %v15287_v47 = vld [vmem:[%s20956_s5 + $0x8] sm:$0xff]  }
 0x4ec   : > { %13759 = vmatprep.mubr.msk.bf16.mxu1 %vm281_vm2, %v19089_v45  ;;  %13942 = vmatprep.mubr.msk.bf16.mxu0 %vm281_vm2, %v18432_v3 }
 0x4ee   : > { %v19130_v61 = vpop.f32.mrb[100].mxu0 }
 0x4ef   : > { %v9229_v1 = vpop.f32.mrb[101].mxu0 }
 0x4f0   : > { %v19132_v40 = vpop.f32.mrb[102].mxu0 }
 0x4f1   : > { %v9232_v36 = vpop.f32.mrb[103].mxu0 }
 0x4f2   : > { %v15293_v36 = vld [vmem:[%s20956_s5 + $0x260] sm:$0xff]  }
 0x4f3   : > { %9471 = vmatmul.mubr.bf16.gmra.mrb[124].mxu1 %v19107_v50  ;;  %10472 = vmatmul.mubr.bf16.vlgmr.msra.gmra.mrb[192].mxu0 %v18438_v49 }
 0x4f4   : > { %13828 = vmatprep.mubr.msk.bf16.mxu1 %vm281_vm2, %v18389_v48  ;;  %13943 = vmatprep.mubr.msk.bf16.mxu0 %vm281_vm2, %v18468_v57  ;;  %v15289_v48 = vld [vmem:[%s20956_s5 + $0x10] sm:$0xff]  }
 0x4f5   : > { %11036 = vmatpush1.bf16.msra.mxu0 %v15286_v41  ;;  %v8280_v41 = vld [vmem:[#allocation3 + $0x1a8] sm:$0x3] }
 0x4f6   : > { %11037 = vmatprep.subr.bf16.mxu0 %v21337_v42 }
 0x4f9   : > { %11038 = vmatpush1.bf16.msra.mxu0 %v15287_v47  ;;  %v15297_v47 = vld [vmem:[%s20956_s5 + $0x38] sm:$0xff]  }
 0x4fa   : > { %11039 = vmatprep.subr.bf16.mxu0 %v21337_v42  ;;  %v19156_v63 = vpop.f32.mrb[36].mxu1 }
 0x4fb   : > { %9845 = vmatmul.mubr.bf16.vlgmr.msra.gmra.mrb[128].mxu1 %v18398_v58  ;;  %10480 = vmatmul.mubr.bf16.gmra.mrb[196].mxu0 %v18475_v38  ;;  %v8758_v54 = vpop.f32.mrb[37].mxu1 }
 0x4fc   : > { %10232 = vmatpush1.bf16.msra.mxu1 %v15282_v60  ;;  %13829 = vmatprep.mubr.msk.bf16.mxu1 %vm281_vm2, %v18432_v3  ;;  %v19166_v30 = vpop.f32.mrb[38].mxu1  ;;  %v15291_v3 = vld [vmem:[%s20956_s5 + $0x18] sm:$0xff]   ;;  %v8278_v60 = vld [vmem:[#allocation3 + $0x188] sm:$0xfc]  ;;  %v8352_v54 = vpack.c.bf16 %v8280_v41, %v8280_v41 }
 0x4fd   : > { %13944 = vmatprep.mubr.msk.bf16.mxu0 %vm281_vm2, %v18511_v62  ;;  %10233 = vmatprep.subr.bf16.mxu1 %v21337_v42  ;;  %v8761_v58 = vpop.f32.mrb[39].mxu1  ;;  %v8282_v41 = vld [vmem:[#allocation3 + $0x1b8] sm:$0xfc] }
 0x4fe   : > { %11040 = vmatpush1.bf16.msra.mxu0 %v15289_v48  ;;  %v19168_v27 = vpop.f32.mrb[104].mxu0  ;;  %v21378_v48 = vld [vmem:[#allocation51_spill] sm:$0xff]  ;;  %v21379_v58 = vld [vmem:[#allocation9_spill] sm:$0xff] }
 0x4ff   : > { %v9237_v12 = vpop.f32.mrb[105].mxu0  ;;  %11041 = vmatprep.subr.bf16.mxu0 %v21337_v42 }
 0x500   : > { %10234 = vmatpush1.bf16.msra.mxu1 %v15283_v23  ;;  %v19177_v2 = vpop.f32.mrb[106].mxu0  ;;  %v8350_v23 = vpack.c.bf16 %v18895_v59, %v8278_v60  ;;  %v8354_v60 = vpack.c.bf16 %v19104_v31, %v8282_v41 }
 0x501   : > { %10235 = vmatprep.subr.bf16.mxu1 %v21337_v42  ;;  %v9240_v0 = vpop.f32.mrb[107].mxu0 }
 0x502   : > { %11042 = vmatpush1.bf16.msra.mxu0 %v15291_v3  ;;  %v9725_v0 = vrot.slane %v8352_v54, 1 }
 0x503   : > { %9853 = vmatmul.mubr.bf16.gmra.mrb[132].mxu1 %v18438_v49  ;;  %10488 = vmatmul.mubr.bf16.gmra.mrb[200].mxu0 %v18517_v34 }
 0x504   : > { %13830 = vmatprep.mubr.msk.bf16.mxu1 %vm281_vm2, %v18468_v57  ;;  %10236 = vmatpush1.bf16.msra.mxu1 %v15284_v13  ;;  %v15288_v57 = vld [vmem:[%s20956_s5 + $0x250] sm:$0xff]   ;;  %v15295_v13 = vld [vmem:[%s20956_s5 + $0x268] sm:$0xff]  }
 0x505   : > { %13945 = vmatprep.mubr.msk.bf16.mxu0 %vm281_vm2, %v18553_v10  ;;  %10237 = vmatprep.subr.bf16.mxu1 %v21337_v42 }
 0x506   : > { %11043 = vmatprep.subr.bf16.mxu0 %v21337_v42  ;;  %v19194_v49 = vpop.f32.mrb[40].mxu1 }
 0x507   : > { %11044 = vmatpush1.bf16.msra.mxu0 %v15292_v11  ;;  %v8766_v37 = vpop.f32.mrb[41].mxu1  ;;  %v8279_v11 = vld [vmem:[#allocation3 + $0x1a0] sm:$0x3] }
 0x508   : > { %10238 = vmatpush1.bf16.msra.mxu1 %v15285_v20  ;;  %11045 = vmatprep.subr.bf16.mxu0 %v21337_v42  ;;  %v19201_v25 = vpop.f32.mrb[42].mxu1  ;;  %v8284_v37 = vld [vmem:[#allocation3 + $0x1d8] sm:$0x3] }
 0x509   : > { %10239 = vmatprep.subr.bf16.mxu1 %v21337_v42  ;;  %v8769_v17 = vpop.f32.mrb[43].mxu1 }
 0x50b   : > { %9861 = vmatmul.mubr.bf16.gmra.mrb[136].mxu1 %v18475_v38  ;;  %10496 = vmatmul.mubr.bf16.gmra.mrb[204].mxu0 %v18564_v4  ;;  %v19212_v14 = vpop.f32.mrb[108].mxu0  ;;  %v15296_v38 = vld [vmem:[%s20956_s5 + $0x30] sm:$0xff]  }
 0x50c   : > { %13831 = vmatprep.mubr.msk.bf16.mxu1 %vm281_vm2, %v18511_v62  ;;  %13946 = vmatprep.mubr.msk.bf16.mxu0 %vm281_vm2, %v21377_v39  ;;  %v9245_v52 = vpop.f32.mrb[109].mxu0 }
 0x50d   : > { %10240 = vmatpush1.bf16.msra.mxu1 %v15288_v57  ;;  %11046 = vmatpush1.bf16.msra.mxu0 %v15294_v55  ;;  %v19221_v1 = vpop.f32.mrb[110].mxu0  ;;  %v8277_v55 = vld [vmem:[#allocation3 + $0x180] sm:$0xfc]  ;;  %v15300_v52 = vld [vmem:[%s20956_s5 + $0x48] sm:$0xff]  }
 0x50e   : > { %10241 = vmatprep.subr.bf16.mxu1 %v21337_v42  ;;  %11047 = vmatprep.subr.bf16.mxu0 %v21337_v42  ;;  %v9248_v62 = vpop.f32.mrb[111].mxu0 }
 0x50f   : > { %v8351_v62 = vpack.c.bf16 %v8279_v11, %v8279_v11  ;;  %v8281_v11 = vld [vmem:[#allocation3 + $0x1b0] sm:$0xfc] }
 0x511   : > { %10242 = vmatpush1.bf16.msra.mxu1 %v15290_v56  ;;  %11048 = vmatpush1.bf16.msra.mxu0 %v15296_v38  ;;  %v15298_v56 = vld [vmem:[%s20956_s5 + $0x270] sm:$0xff]   ;;  %v8349_v38 = vpack.c.bf16 %v18929_v32, %v8277_v55 }
 0x512   : > { %10243 = vmatprep.subr.bf16.mxu1 %v21337_v42  ;;  %11049 = vmatprep.subr.bf16.mxu0 %v21337_v42 }
 0x513   : > { %9869 = vmatmul.mubr.bf16.gmra.mrb[140].mxu1 %v18517_v34  ;;  %10504 = vmatmul.mubr.bf16.gmra.mrb[208].mxu0 %v21378_v48  ;;  %v19239_v3 = vpop.f32.mrb[44].mxu1  ;;  %v15299_v34 = vld [vmem:[%s20956_s5 + $0x40] sm:$0xff]   ;;  %v9721_v32 = vrot.slane %v8349_v38, 1 }
 0x514   : > { %13832 = vmatprep.mubr.msk.bf16.mxu1 %vm281_vm2, %v18553_v10  ;;  %13947 = vmatprep.mubr.msk.bf16.mxu0 %vm281_vm2, %v21379_v58  ;;  %v8774_v12 = vpop.f32.mrb[45].mxu1  ;;  %v9724_v10 = vrot.slane %v8350_v23, 1  ;;  %v8356_v23 = vpack.c.bf16 %v8284_v37, %v8284_v37  ;;  %v8353_v37 = vpack.c.bf16 %v19119_v22, %v8281_v11  ;;  %v19334_v11 = vld [vmem:[#allocation3 + $0x1f8] sm:$0xff] }
 0x515   : > { %10244 = vmatpush1.bf16.msra.mxu1 %v15293_v36  ;;  %11050 = vmatpush1.bf16.msra.mxu0 %v15297_v47  ;;  %v19248_v59 = vpop.f32.mrb[46].mxu1  ;;  %v9722_v12 = vrot.slane %v8351_v62, 1 }
 0x516   : > { %10245 = vmatprep.subr.bf16.mxu1 %v21337_v42  ;;  %11051 = vmatprep.subr.bf16.mxu0 %v21337_v42  ;;  %v8777_v20 = vpop.f32.mrb[47].mxu1  ;;  %v19267_v47 = vsel %vm2645_vm14, %v9724_v10, %v9725_v0  ;;  %v8283_v10 = vld [vmem:[#allocation3 + $0x1d0] sm:$0x3]  ;;  %v10348_v62 = vrot.slane %v8353_v37, 1 }
 0x517   : > { %21380 = vst [vmem:[#allocation10_spill] sm:$0xff] %v19267_v47  ;;  %v19282_v20 = vsel %vm2645_vm14, %v9721_v32, %v9722_v12  ;;  %v8355_v55 = vpack.c.bf16 %v8283_v10, %v8283_v10 }
 0x518   : > { %v19251_v57 = vpop.f32.mrb[112].mxu0  ;;  %21381 = vst [vmem:[#allocation54_spill] sm:$0xff] %v19282_v20 }
 0x519   : > { %10246 = vmatpush1.bf16.msra.mxu1 %v15295_v13  ;;  %v9253_v17 = vpop.f32.mrb[113].mxu0  ;;  %11052 = vmatpush1.bf16.msra.mxu0 %v15299_v34  ;;  %v10351_v13 = vrot.slane %v8354_v60, 1  ;;  %v10352_v34 = vrot.slane %v8356_v23, 1  ;;  %v10349_v41 = vrot.slane %v8355_v55, 1  ;;  %v8034_v55 = vld [vmem:[#allocation3 + $0x1e8] sm:$0xff] }
 0x51a   : > { %v19260_v36 = vpop.f32.mrb[114].mxu0  ;;  %10247 = vmatprep.subr.bf16.mxu1 %v21337_v42  ;;  %11053 = vmatprep.subr.bf16.mxu0 %v21337_v42 }
 0x51b   : > { %9877 = vmatmul.mubr.bf16.gmra.mrb[144].mxu1 %v18564_v4  ;;  %10512 = vmatmul.mubr.bf16.gmra.mrb[212].mxu0 %v18666_v29  ;;  %v9256_v54 = vpop.f32.mrb[115].mxu0  ;;  %v15301_v4 = vld [vmem:[%s20956_s5 + $0x278] sm:$0xff]  }
 0x51c   : > { %13833 = vmatprep.mubr.msk.bf16.mxu1 %vm281_vm2, %v21377_v39  ;;  %13948 = vmatprep.mubr.msk.bf16.mxu0 %vm281_vm2, %v19267_v47  ;;  %v19302_v54 = vsel %vm2645_vm14, %v10348_v62, %v10349_v41  ;;  %v19347_v41 = vpack.c.bf16 %v19334_v11, %v8034_v55  ;;  %v8038_v55 = vld [vmem:[#allocation3 + $0x218] sm:$0xff] }
 0x51d   : > { %10248 = vmatpush1.bf16.msra.mxu1 %v15298_v56  ;;  %11054 = vmatpush1.bf16.msra.mxu0 %v15300_v52  ;;  %v19291_v56 = vsel %vm2645_vm14, %v10351_v13, %v10352_v34  ;;  %21383 = vst [vmem:[#allocation14_spill] sm:$0xff] %v19302_v54 }
 0x51e   : > { %10249 = vmatprep.subr.bf16.mxu1 %v21337_v42  ;;  %11492 = vmatprep.subr.bf16.mxu0 %v21337_v42  ;;  %21382 = vst [vmem:[#allocation60_spill] sm:$0xff] %v19291_v56  ;;  %21385 = vst [vmem:[#allocation52_spill] sm:$0xff] %v19347_v41 }
 0x520   : > { %v19279_v0 = vpop.f32.mrb[48].mxu1 }
 0x521   : > { %v8782_v39 = vpop.f32.mrb[49].mxu1  ;;  %10250 = vmatpush1.bf16.msra.mxu1 %v15301_v4 }
 0x522   : > { %v19285_v17 = vpop.f32.mrb[50].mxu1  ;;  %10860 = vmatprep.subr.bf16.mxu1 %v21337_v42  ;;  %v15307_v39 = vld [vmem:[%s20956_s5 + $0xf8] sm:$0xff]  }
 0x523   : > { %9885 = vmatmul.mubr.bf16.gmra.mrb[148].mxu1 %v21378_v48  ;;  %10520 = vmatmul.mubr.bf16.gmra.mrb[216].mxu0 %v19282_v20  ;;  %v8785_v52 = vpop.f32.mrb[51].mxu1 }
 0x524   : > { %13834 = vmatprep.mubr.msk.bf16.mxu1 %vm281_vm2, %v21379_v58  ;;  %13949 = vmatprep.mubr.msk.bf16.mxu0 %vm281_vm2, %v19291_v56  ;;  %v15309_v52 = vld [vmem:[%s20956_s5 + $0x100] sm:$0xff]  }
 0x525   : > { %v19297_v38 = vpop.f32.mrb[116].mxu0 }
 0x526   : > { %v9261_v60 = vpop.f32.mrb[117].mxu0 }
 0x527   : > { %v19299_v23 = vpop.f32.mrb[118].mxu0 }
 0x528   : > { %v9264_v48 = vpop.f32.mrb[119].mxu0 }
 0x529   : > { %v15303_v48 = vld [vmem:[%s20956_s5 + $0x58] sm:$0xff]  }
 0x52b   : > { %9893 = vmatmul.mubr.bf16.gmra.mrb[152].mxu1 %v18666_v29  ;;  %10528 = vmatmul.mubr.bf16.gmra.mrb[220].mxu0 %v19302_v54  ;;  %v15306_v29 = vld [vmem:[%s20956_s5 + $0xf0] sm:$0xff]  }
 0x52c   : > { %13835 = vmatprep.mubr.msk.bf16.mxu1 %vm281_vm2, %v19267_v47  ;;  %13999 = vmatprep.mubr.msk.bf16.mxu0 %vm281_vm2, %v19089_v45  ;;  %v19310_v58 = vpop.f32.mrb[52].mxu1 }
 0x52d   : > { %v8790_v4 = vpop.f32.mrb[53].mxu1 }
 0x52e   : > { %v19312_v32 = vpop.f32.mrb[54].mxu1  ;;  %v19359_v4 = vld [vmem:[#allocation3 + $0x1f0] sm:$0xff] }
 0x52f   : > { %v8793_v12 = vpop.f32.mrb[55].mxu1 }
 0x530   : > { %v15311_v12 = vld [vmem:[%s20956_s5 + $0x108] sm:$0xff]  }
 0x531   : > { %v19314_v13 = vpop.f32.mrb[120].mxu0 }
 0x532   : > { %v9269_v34 = vpop.f32.mrb[121].mxu0 }
 0x533   : > { %9901 = vmatmul.mubr.bf16.gmra.mrb[156].mxu1 %v19282_v20  ;;  %11068 = vmatmul.mubr.bf16.vlgmr.msra.gmra.mrb[224].mxu0 %v19107_v50  ;;  %v19321_v10 = vpop.f32.mrb[122].mxu0  ;;  %v15302_v50 = vld [vmem:[%s20956_s5 + $0x50] sm:$0xff]   ;;  %v8033_v34 = vld [vmem:[#allocation3 + $0x1e0] sm:$0xff] }
 0x534   : > { %21384 = vst [vmem:[#allocation50_spill] sm:$0xff] %v19321_v10  ;;  %13904 = vmatprep.mubr.msk.bf16.mxu1 %vm281_vm2, %v18452_v16  ;;  %14000 = vmatprep.mubr.msk.bf16.mxu0 %vm281_vm2, %v19110_v26  ;;  %v9272_v45 = vpop.f32.mrb[123].mxu0  ;;  %v8037_v20 = vld [vmem:[#allocation3 + $0x210] sm:$0xff]  ;;  %v8046_v10 = vld [vmem:[#allocation3 + $0x278] sm:$0xff] }
 0x535   : > { %11493 = vmatpush1.bf16.msra.mxu0 %v15306_v29  ;;  %v15304_v45 = vld [vmem:[%s20956_s5 + $0x60] sm:$0xff]  }
 0x536   : > { %11494 = vmatprep.subr.bf16.mxu0 %v21337_v42 }
 0x539   : > { %v19336_v37 = vpop.f32.mrb[56].mxu1  ;;  %11495 = vmatpush1.bf16.msra.mxu0 %v15307_v39  ;;  %v19370_v39 = vld [vmem:[#allocation3 + $0x228] sm:$0xff] }
 0x53a   : > { %v8798_v16 = vpop.f32.mrb[57].mxu1  ;;  %11496 = vmatprep.subr.bf16.mxu0 %v21337_v42 }
 0x53b   : > { %10264 = vmatmul.mubr.bf16.vlgmr.msra.gmra.mrb[160].mxu1 %v18455_v33  ;;  %11076 = vmatmul.mubr.bf16.gmra.mrb[228].mxu0 %v19122_v15  ;;  %v19344_v62 = vpop.f32.mrb[58].mxu1  ;;  %v19374_v16 = vpack.c.bf16 %v19359_v4, %v8033_v34 }
 0x53c   : > { %10861 = vmatpush1.bf16.msra.mxu1 %v15302_v50  ;;  %13905 = vmatprep.mubr.msk.bf16.mxu1 %vm281_vm2, %v18496_v18  ;;  %v8801_v60 = vpop.f32.mrb[59].mxu1 }
 0x53d   : > { %14001 = vmatprep.mubr.msk.bf16.mxu0 %vm281_vm2, %v19347_v41  ;;  %10862 = vmatprep.subr.bf16.mxu1 %v21337_v42  ;;  %v19357_v33 = vpop.f32.mrb[124].mxu0  ;;  %21388 = vst [vmem:[#allocation24_spill] sm:$0xff] %v19374_v16  ;;  %v15312_v60 = vld [vmem:[%s20956_s5 + $0x110] sm:$0xff]  }
 0x53e   : > { %21386 = vst [vmem:[#allocation49_spill] sm:$0xff] %v19357_v33  ;;  %11497 = vmatpush1.bf16.msra.mxu0 %v15309_v52  ;;  %v9277_v18 = vpop.f32.mrb[125].mxu0  ;;  %v19379_v52 = vpack.c.bf16 %v19370_v39, %v8038_v55  ;;  %v8041_v33 = vld [vmem:[#allocation3 + $0x240] sm:$0xff] }
 0x53f   : > { %11498 = vmatprep.subr.bf16.mxu0 %v21337_v42  ;;  %v19365_v29 = vpop.f32.mrb[126].mxu0  ;;  %v19396_v18 = vld [vmem:[#allocation3 + $0x220] sm:$0xff] }
 0x540   : > { %10863 = vmatpush1.bf16.msra.mxu1 %v15303_v48  ;;  %21387 = vst [vmem:[#allocation6_spill] sm:$0xff] %v19365_v29  ;;  %v9280_v50 = vpop.f32.mrb[127].mxu0  ;;  %21389 = vst [vmem:[#allocation27_spill] sm:$0xff] %v19379_v52  ;;  %v15305_v48 = vld [vmem:[%s20956_s5 + $0x68] sm:$0xff]   ;;  %v19407_v56 = vpack.c.bf16 %v19396_v18, %v8037_v20  ;;  %v15316_v20 = vld [vmem:[%s20956_s5 + $0x120] sm:$0xff]  }
 0x541   : > { %10864 = vmatprep.subr.bf16.mxu1 %v21337_v42 }
 0x542   : > { %11499 = vmatpush1.bf16.msra.mxu0 %v15311_v12  ;;  %21394 = vst [vmem:[#allocation35_spill] sm:$0xff] %v19407_v56 }
 0x543   : > { %10272 = vmatmul.mubr.bf16.gmra.mrb[164].mxu1 %v18504_v5  ;;  %11084 = vmatmul.mubr.bf16.gmra.mrb[232].mxu0 %v19374_v16 }
 0x544   : > { %13906 = vmatprep.mubr.msk.bf16.mxu1 %vm281_vm2, %v18536_v51  ;;  %10865 = vmatpush1.bf16.msra.mxu1 %v15304_v45  ;;  %v19399_v45 = vld [vmem:[#allocation3 + $0x258] sm:$0xff] }
 0x545   : > { %14002 = vmatprep.mubr.msk.bf16.mxu0 %vm281_vm2, %v19379_v52  ;;  %10866 = vmatprep.subr.bf16.mxu1 %v21337_v42  ;;  %v19392_v5 = vpop.f32.mrb[60].mxu1  ;;  %v19394_v12 = vpop.f32.mrb[128].mxu0 }
 0x546   : > { %21390 = vst [vmem:[#allocation72_spill] sm:$0xff] %v19392_v5  ;;  %21391 = vst [vmem:[#allocation28_spill] sm:$0xff] %v19394_v12  ;;  %11500 = vmatprep.subr.bf16.mxu0 %v21337_v42  ;;  %v8806_v34 = vpop.f32.mrb[61].mxu1  ;;  %v9640_v51 = vpop.f32.mrb[129].mxu0  ;;  %v8042_v12 = vld [vmem:[#allocation3 + $0x248] sm:$0xff] }
 0x547   : > { %11501 = vmatpush1.bf16.msra.mxu0 %v15312_v60  ;;  %v19401_v50 = vpop.f32.mrb[62].mxu1  ;;  %v19403_v55 = vpop.f32.mrb[130].mxu0  ;;  %v15308_v60 = vld [vmem:[%s20956_s5 + $0x70] sm:$0xff]   ;;  %v15314_v34 = vld [vmem:[%s20956_s5 + $0x118] sm:$0xff]  }
 0x548   : > { %21392 = vst [vmem:[#allocation73_spill] sm:$0xff] %v19401_v50  ;;  %21393 = vst [vmem:[#allocation32_spill] sm:$0xff] %v19403_v55  ;;  %10867 = vmatpush1.bf16.msra.mxu1 %v15305_v48  ;;  %11502 = vmatprep.subr.bf16.mxu0 %v21337_v42  ;;  %v8809_v47 = vpop.f32.mrb[63].mxu1  ;;  %v9643_v54 = vpop.f32.mrb[131].mxu0  ;;  %v19417_v48 = vpack.c.bf16 %v19399_v45, %v8042_v12  ;;  %v19433_v12 = vld [vmem:[#allocation3 + $0x250] sm:$0xff]  ;;  %v19438_v55 = vld [vmem:[#allocation3 + $0x288] sm:$0xff] }
 0x549   : > { %10868 = vmatprep.subr.bf16.mxu1 %v21337_v42  ;;  %v15310_v47 = vld [vmem:[%s20956_s5 + $0x78] sm:$0xff]  }
 0x54a   : > { %21395 = vst [vmem:[#allocation31_spill] sm:$0xff] %v19417_v48 }
 0x54b   : > { %10280 = vmatmul.mubr.bf16.gmra.mrb[168].mxu1 %v18548_v24  ;;  %11092 = vmatmul.mubr.bf16.gmra.mrb[236].mxu0 %v19407_v56 }
 0x54c   : > { %13907 = vmatprep.mubr.msk.bf16.mxu1 %vm281_vm2, %v18585_v35  ;;  %14003 = vmatprep.mubr.msk.bf16.mxu0 %vm281_vm2, %v19417_v48  ;;  %v19444_v48 = vpack.c.bf16 %v19433_v12, %v8041_v33 }
 0x54d   : > { %10869 = vmatpush1.bf16.msra.mxu1 %v15308_v60  ;;  %11503 = vmatpush1.bf16.msra.mxu0 %v15314_v34  ;;  %v8929_v54 = vpop.f32.mrb[64].mxu1 }
 0x54e   : > { %v19431_v24 = vpop.f32.mrb[132].mxu0  ;;  %10870 = vmatprep.subr.bf16.mxu1 %v21337_v42  ;;  %11504 = vmatprep.subr.bf16.mxu0 %v21337_v42  ;;  %v8930_v35 = vadd.f32 %v8929_v54, %v18834_v7  ;;  %v8931_v51 = vpop.f32.mrb[65].mxu1  ;;  %21398 = vst [vmem:[#allocation39_spill] sm:$0xff] %v19444_v48  ;;  %v15313_v7 = vld [vmem:[%s20956_s5 + $0x80] sm:$0xff]   ;;  %v15317_v54 = vld [vmem:[%s20956_s5 + $0x128] sm:$0xff]  }
 0x54f   : > { %21396 = vst [vmem:[#allocation37_spill] sm:$0xff] %v19431_v24  ;;  %v9648_v60 = vpop.f32.mrb[133].mxu0  ;;  %v8932_v34 = vpop.f32.mrb[66].mxu1 }
 0x550   : > { %v19440_v29 = vpop.f32.mrb[134].mxu0  ;;  %v8933_v50 = vadd.f32 %v8932_v34, %v18875_v43  ;;  %v8934_v5 = vpop.f32.mrb[67].mxu1  ;;  %v19453_v51 = vadd.f32 %v18877_v21, %v8930_v35  ;;  %v19456_v43 = vpack.c.bf16 %v19438_v55, %v8046_v10  ;;  %v15315_v21 = vld [vmem:[%s20956_s5 + $0x88] sm:$0xff]   ;;  %v8045_v60 = vld [vmem:[#allocation3 + $0x270] sm:$0xff] }
 0x551   : > { %21397 = vst [vmem:[#allocation74_spill] sm:$0xff] %v19440_v29  ;;  %v9651_v24 = vpop.f32.mrb[135].mxu0  ;;  %10871 = vmatpush1.bf16.msra.mxu1 %v15310_v47  ;;  %11505 = vmatpush1.bf16.msra.mxu0 %v15316_v20  ;;  %v19482_v20 = vld [vmem:[#allocation3 + $0x2b8] sm:$0xff]  ;;  %v8050_v29 = vld [vmem:[#allocation3 + $0x2a8] sm:$0xff] }
 0x552   : > { %21399 = vst [vmem:[#allocation75_spill] sm:$0xff] %v19456_v43  ;;  %10872 = vmatprep.subr.bf16.mxu1 %v21337_v42  ;;  %11506 = vmatprep.subr.bf16.mxu0 %v21337_v42  ;;  %v19463_v33 = vadd.f32 %v18891_v44, %v8933_v50  ;;  %v19477_v44 = vld [vmem:[#allocation3 + $0x280] sm:$0xff] }
 0x553   : > { %10288 = vmatmul.mubr.bf16.gmra.mrb[172].mxu1 %v18590_v8  ;;  %11100 = vmatmul.mubr.bf16.gmra.mrb[240].mxu0 %v19444_v48  ;;  %v15319_v8 = vld [vmem:[%s20956_s5 + $0x130] sm:$0xff]  }
 0x554   : > { %13908 = vmatprep.mubr.msk.bf16.mxu1 %vm281_vm2, %v18640_v6  ;;  %14004 = vmatprep.mubr.msk.bf16.mxu0 %vm281_vm2, %v19456_v43 }
 0x555   : > { %10873 = vmatpush1.bf16.msra.mxu1 %v15313_v7  ;;  %11507 = vmatpush1.bf16.msra.mxu0 %v15317_v54  ;;  %v8937_v10 = vpop.f32.mrb[68].mxu1 }
 0x556   : > { %v19475_v5 = vpop.f32.mrb[136].mxu0  ;;  %10874 = vmatprep.subr.bf16.mxu1 %v21337_v42  ;;  %11508 = vmatprep.subr.bf16.mxu0 %v21337_v42  ;;  %v8938_v6 = vadd.f32 %v8937_v10, %v19156_v63  ;;  %v8939_v50 = vpop.f32.mrb[69].mxu1  ;;  %v15318_v63 = vld [vmem:[%s20956_s5 + $0x90] sm:$0xff]   ;;  %v15320_v10 = vld [vmem:[%s20956_s5 + $0x138] sm:$0xff]  }
 0x557   : > { %21400 = vst [vmem:[#allocation41_spill] sm:$0xff] %v19475_v5  ;;  %v9656_v47 = vpop.f32.mrb[137].mxu0  ;;  %v8940_v24 = vpop.f32.mrb[70].mxu1  ;;  %v19488_v5 = vpack.c.bf16 %v19477_v44, %v8045_v60  ;;  %v19524_v60 = vld [vmem:[#allocation3 + $0x2e8] sm:$0xff] }
 0x558   : > { %v19484_v35 = vpop.f32.mrb[138].mxu0  ;;  %v8941_v34 = vadd.f32 %v8940_v24, %v19166_v30  ;;  %v8942_v7 = vpop.f32.mrb[71].mxu1  ;;  %v19497_v50 = vadd.f32 %v19130_v61, %v8938_v6  ;;  %v19500_v30 = vpack.c.bf16 %v19482_v20, %v8050_v29  ;;  %v8138_v47 = vld [vmem:[#allocation3 + $0x1b8] sm:$0xfe]  ;;  %v19519_v6 = vld [vmem:[#allocation3 + $0x2b0] sm:$0xff] }
 0x559   : > { %21401 = vst [vmem:[#allocation11_spill] sm:$0xff] %v19484_v35  ;;  %v9659_v54 = vpop.f32.mrb[139].mxu0  ;;  %21402 = vst [vmem:[#allocation12_spill] sm:$0xff] %v19488_v5  ;;  %10875 = vmatpush1.bf16.msra.mxu1 %v15315_v21  ;;  %11509 = vmatpush1.bf16.msra.mxu0 %v15319_v8  ;;  %v8210_v21 = vpack.c.bf16 %v19104_v31, %v8138_v47  ;;  %v15321_v61 = vld [vmem:[%s20956_s5 + $0x98] sm:$0xff]  }
 0x55a   : > { %21403 = vst [vmem:[#allocation57_spill] sm:$0xff] %v19497_v50  ;;  %21404 = vst [vmem:[#allocation13_spill] sm:$0xff] %v19500_v30  ;;  %10876 = vmatprep.subr.bf16.mxu1 %v21337_v42  ;;  %11510 = vmatprep.subr.bf16.mxu0 %v21337_v42  ;;  %v19508_v8 = vadd.f32 %v19132_v40, %v8941_v34  ;;  %v8140_v31 = vld [vmem:[#allocation3 + $0x1d8] sm:$0x1] }
 0x55b   : > { %10296 = vmatmul.mubr.bf16.gmra.mrb[176].mxu1 %v18645_v53  ;;  %11108 = vmatmul.mubr.bf16.gmra.mrb[244].mxu0 %v19488_v5  ;;  %v10137_v34 = vshll.u32 %v8210_v21, 16  ;;  %v8054_v50 = vld [vmem:[#allocation3 + $0x2d8] sm:$0xff] }
 0x55c   : > { %21405 = vst [vmem:[#allocation61_spill] sm:$0xff] %v19508_v8  ;;  %13909 = vmatprep.mubr.msk.bf16.mxu1 %vm281_vm2, %v18688_v28  ;;  %14005 = vmatprep.mubr.msk.bf16.mxu0 %vm281_vm2, %v19500_v30  ;;  %v8212_v30 = vpack.c.bf16 %v8140_v31, %v8140_v31  ;;  %v19551_v31 = vld [vmem:[#allocation3 + $0x2e0] sm:$0xff] }
 0x55d   : > { %10877 = vmatpush1.bf16.msra.mxu1 %v15318_v63  ;;  %11511 = vmatpush1.bf16.msra.mxu0 %v15320_v10  ;;  %v8945_v53 = vpop.f32.mrb[72].mxu1  ;;  %v8049_v63 = vld [vmem:[#allocation3 + $0x2a0] sm:$0xff]  ;;  %v8137_v10 = vld [vmem:[#allocation3 + $0x1b0] sm:$0xfe] }
 0x55e   : > { %v19517_v29 = vpop.f32.mrb[140].mxu0  ;;  %10878 = vmatprep.subr.bf16.mxu1 %v21337_v42  ;;  %11920 = vmatprep.subr.bf16.mxu0 %v21337_v42  ;;  %v8946_v28 = vadd.f32 %v8945_v53, %v19194_v49  ;;  %v8947_v40 = vpop.f32.mrb[73].mxu1  ;;  %v19530_v8 = vpack.c.bf16 %v19519_v6, %v8049_v63  ;;  %v8209_v53 = vpack.c.bf16 %v19119_v22, %v8137_v10  ;;  %v10135_v22 = vshrl.u32 %v8210_v21, 16  ;;  %v8053_v10 = vld [vmem:[#allocation3 + $0x2d0] sm:$0xff] }
 0x55f   : > { %21406 = vst [vmem:[#allocation15_spill] sm:$0xff] %v19517_v29  ;;  %v9664_v24 = vpop.f32.mrb[141].mxu0  ;;  %v8948_v7 = vpop.f32.mrb[74].mxu1  ;;  %v19537_v40 = vpack.c.bf16 %v19524_v60, %v8054_v50  ;;  %v8139_v50 = vld [vmem:[#allocation3 + $0x1d0] sm:$0x1] }
 0x560   : > { %v19526_v54 = vpop.f32.mrb[142].mxu0  ;;  %v8949_v47 = vadd.f32 %v8948_v7, %v19201_v25  ;;  %v8950_v29 = vpop.f32.mrb[75].mxu1  ;;  %21408 = vst [vmem:[#allocation64_spill] sm:$0xff] %v19530_v8  ;;  %v19533_v49 = vadd.f32 %v19168_v27, %v8946_v28  ;;  %v10139_v25 = vrot.slane %v10137_v34, 1  ;;  %v10142_v27 = vshll.u32 %v8212_v30, 16 }
 0x561   : > { %21407 = vst [vmem:[#allocation16_spill] sm:$0xff] %v19526_v54  ;;  %v9667_v35 = vpop.f32.mrb[143].mxu0  ;;  %10879 = vmatpush1.bf16.msra.mxu1 %v15321_v61  ;;  %21410 = vst [vmem:[#allocation67_spill] sm:$0xff] %v19537_v40 }
 0x562   : > { %21409 = vst [vmem:[#allocation17_spill] sm:$0xff] %v19533_v49  ;;  %11296 = vmatprep.subr.bf16.mxu1 %v21337_v42  ;;  %v19543_v35 = vadd.f32 %v19177_v2, %v8949_v47  ;;  %v10140_v34 = vor.u32 %v10139_v25, %v10135_v22  ;;  %v8211_v47 = vpack.c.bf16 %v8139_v50, %v8139_v50  ;;  %v10144_v54 = vrot.slane %v10142_v27, 1 }
 0x563   : > { %10304 = vmatmul.mubr.bf16.gmra.mrb[180].mxu1 %v18706_v46  ;;  %11116 = vmatmul.mubr.bf16.gmra.mrb[248].mxu0 %v19530_v8  ;;  %v10125_v46 = vshll.u32 %v8209_v53, 16 }
 0x564   : > { %21411 = vst [vmem:[#allocation18_spill] sm:$0xff] %v19543_v35  ;;  %13910 = vmatprep.mubr.msk.bf16.mxu1 %vm281_vm2, %v18964_v19  ;;  %14006 = vmatprep.mubr.msk.bf16.mxu0 %vm281_vm2, %v19537_v40  ;;  %v19565_v25 = vsel %vm1917_vm5, %v10140_v34, %v10144_v54 }
 0x566   : > { %v8953_v61 = vpop.f32.mrb[76].mxu1  ;;  %v19549_v29 = vpop.f32.mrb[144].mxu0 }
 0x567   : > { %21412 = vst [vmem:[#allocation68_spill] sm:$0xff] %v19549_v29  ;;  %v8954_v28 = vadd.f32 %v8953_v61, %v19239_v3  ;;  %v8955_v24 = vpop.f32.mrb[77].mxu1  ;;  %v9672_v2 = vpop.f32.mrb[145].mxu0  ;;  %v19558_v29 = vpack.c.bf16 %v19551_v31, %v8053_v10  ;;  %v10127_v3 = vrot.slane %v10125_v46, 1 }
 0x568   : > { %v8956_v7 = vpop.f32.mrb[78].mxu1  ;;  %v19554_v63 = vpop.f32.mrb[146].mxu0 }
 0x569   : > { %v8957_v21 = vadd.f32 %v8956_v7, %v19248_v59  ;;  %v8958_v30 = vpop.f32.mrb[79].mxu1  ;;  %v9675_v35 = vpop.f32.mrb[147].mxu0  ;;  %21413 = vst [vmem:[#allocation19_spill] sm:$0xff] %v19558_v29  ;;  %v19561_v49 = vadd.f32 %v19212_v14, %v8954_v28  ;;  %v10123_v59 = vshrl.u32 %v8209_v53, 16  ;;  %v10130_v14 = vshll.u32 %v8211_v47, 16 }
 0x56b   : > { %10312 = vmatmul.mubr.bf16.gmra.mrb[184].mxu1 %v18976_v9  ;;  %11124 = vmatmul.mubr.bf16.gmra.mrb[252].mxu0 %v19558_v29  ;;  %v19569_v22 = vadd.f32 %v19221_v1, %v8957_v21  ;;  %v10128_v50 = vor.u32 %v10127_v3, %v10123_v59  ;;  %v10132_v24 = vrot.slane %v10130_v14, 1  ;;  %v15322_v14 = vld [vmem:[%s20956_s5 + $0xa0] sm:$0xff]  }
 0x56c   : > { %13911 = vmatprep.mubr.msk.bf16.mxu1 %vm281_vm2, %v19565_v25  ;;  %14075 = vmatprep.mubr.msk.bf16.mxu0 %vm281_vm2, %v19110_v26  ;;  %v15326_v26 = vld [vmem:[%s20956_s5 + $0x190] sm:$0xff]  }
 0x56d   : > { %v19588_v10 = vsel %vm1917_vm5, %v10128_v50, %v10132_v24  ;;  %v8141_v50 = vld [vmem:[#allocation3 + $0x1e0] sm:$0xfe] }
 0x56e   : > { %v8961_v35 = vpop.f32.mrb[80].mxu1  ;;  %v19575_v27 = vpop.f32.mrb[148].mxu0  ;;  %21414 = vst [vmem:[#allocation70_spill] sm:$0xff] %v19588_v10 }
 0x56f   : > { %v8962_v54 = vadd.f32 %v8961_v35, %v19279_v0  ;;  %v8963_v61 = vpop.f32.mrb[81].mxu1  ;;  %v9680_v46 = vpop.f32.mrb[149].mxu0  ;;  %v8142_v0 = vld [vmem:[#allocation3 + $0x1e8] sm:$0xfe] }
 0x570   : > { %v8964_v28 = vpop.f32.mrb[82].mxu1  ;;  %v19578_v1 = vpop.f32.mrb[150].mxu0  ;;  %v8214_v47 = vpack.c.bf16 %v19334_v11, %v8142_v0 }
 0x571   : > { %v8965_v2 = vadd.f32 %v8964_v28, %v19285_v17  ;;  %v8966_v34 = vpop.f32.mrb[83].mxu1  ;;  %v9683_v7 = vpop.f32.mrb[151].mxu0  ;;  %v19585_v53 = vadd.f32 %v19251_v57, %v8962_v54  ;;  %v15327_v57 = vld [vmem:[%s20956_s5 + $0x198] sm:$0xff]  }
 0x572   : > { %v10627_v59 = vshll.u32 %v8214_v47, 16  ;;  %v15329_v34 = vld [vmem:[%s20956_s5 + $0x1a0] sm:$0xff]  }
 0x573   : > { %10320 = vmatmul.mubr.bf16.gmra.mrb[188].mxu1 %v19588_v10  ;;  %11525 = vmatmul.mubr.bf16.vlgmr.msra.gmra.mrb[0].mxu0 %v19122_v15  ;;  %v19594_v17 = vadd.f32 %v19260_v36, %v8965_v2  ;;  %v8144_v15 = vld [vmem:[#allocation3 + $0x208] sm:$0x1]  ;;  %v8146_v2 = vld [vmem:[#allocation3 + $0x218] sm:$0xfe] }
 0x574   : > { %13981 = vmatprep.mubr.msk.bf16.mxu1 %vm281_vm2, %v18964_v19  ;;  %14076 = vmatprep.mubr.msk.bf16.mxu0 %vm281_vm2, %v19347_v41  ;;  %v8216_v28 = vpack.c.bf16 %v8144_v15, %v8144_v15  ;;  %v19626_v7 = vpack.c.bf16 %v19370_v39, %v8146_v2  ;;  %v8143_v39 = vld [vmem:[#allocation3 + $0x200] sm:$0x1]  ;;  %v15331_v15 = vld [vmem:[%s20956_s5 + $0x1a8] sm:$0xff]  }
 0x575   : > { %11921 = vmatpush1.bf16.msra.mxu0 %v15326_v26 }
 0x576   : > { %v8969_v21 = vpop.f32.mrb[84].mxu1  ;;  %v19603_v30 = vpop.f32.mrb[152].mxu0  ;;  %11922 = vmatprep.subr.bf16.mxu0 %v21337_v42  ;;  %v10632_v26 = vshll.u32 %v8216_v28, 16 }
 0x577   : > { %v8970_v36 = vadd.f32 %v8969_v21, %v19310_v58  ;;  %v8971_v11 = vpop.f32.mrb[85].mxu1  ;;  %v9688_v3 = vpop.f32.mrb[153].mxu0  ;;  %v19617_v58 = vpack.c.bf16 %v19359_v4, %v8141_v50  ;;  %v15323_v4 = vld [vmem:[%s20956_s5 + $0xa8] sm:$0xff]   ;;  %v8148_v21 = vld [vmem:[#allocation3 + $0x238] sm:$0x1]  ;;  %v15324_v50 = vld [vmem:[%s20956_s5 + $0xb0] sm:$0xff]  }
 0x578   : > { %v8972_v19 = vpop.f32.mrb[86].mxu1  ;;  %v19610_v35 = vpop.f32.mrb[154].mxu0  ;;  %v10634_v28 = vrot.slane %v10632_v26, 1 }
 0x579   : > { %v8973_v54 = vadd.f32 %v8972_v19, %v19312_v32  ;;  %v8974_v61 = vpop.f32.mrb[87].mxu1  ;;  %v9691_v46 = vpop.f32.mrb[155].mxu0  ;;  %11923 = vmatpush1.bf16.msra.mxu0 %v15327_v57  ;;  %v19614_v24 = vadd.f32 %v19297_v38, %v8970_v36  ;;  %v10629_v32 = vrot.slane %v10627_v59, 1 }
 0x57a   : > { %11924 = vmatprep.subr.bf16.mxu0 %v21337_v42  ;;  %v8145_v61 = vld [vmem:[#allocation3 + $0x210] sm:$0xfe] }
 0x57b   : > { %10893 = vmatmul.mubr.bf16.vlgmr.msra.gmra.mrb[192].mxu1 %v18976_v9  ;;  %11533 = vmatmul.mubr.bf16.gmra.mrb[4].mxu0 %v19374_v16  ;;  %v19629_v38 = vadd.f32 %v19299_v23, %v8973_v54  ;;  %v10625_v9 = vshrl.u32 %v8214_v47, 16  ;;  %v10615_v23 = vshll.u32 %v19617_v58, 16  ;;  %v10651_v47 = vshll.u32 %v19626_v7, 16 }
 0x57c   : > { %11297 = vmatpush1.bf16.msra.mxu1 %v15322_v14  ;;  %13982 = vmatprep.mubr.msk.bf16.mxu1 %vm281_vm2, %v19565_v25  ;;  %v8215_v54 = vpack.c.bf16 %v8143_v39, %v8143_v39 }
 0x57d   : > { %14077 = vmatprep.mubr.msk.bf16.mxu0 %vm281_vm2, %v19379_v52  ;;  %11298 = vmatprep.subr.bf16.mxu1 %v21337_v42  ;;  %v10630_v59 = vor.u32 %v10629_v32, %v10625_v9  ;;  %v10617_v9 = vrot.slane %v10615_v23, 1  ;;  %v10613_v23 = vshrl.u32 %v19617_v58, 16 }
 0x57e   : > { %v8977_v0 = vpop.f32.mrb[88].mxu1  ;;  %v19639_v57 = vpop.f32.mrb[156].mxu0  ;;  %11925 = vmatpush1.bf16.msra.mxu0 %v15329_v34  ;;  %v8220_v34 = vpack.c.bf16 %v8148_v21, %v8148_v21 }
 0x57f   : > { %v8978_v36 = vadd.f32 %v8977_v0, %v19336_v37  ;;  %v8979_v11 = vpop.f32.mrb[89].mxu1  ;;  %v9696_v3 = vpop.f32.mrb[157].mxu0  ;;  %11926 = vmatprep.subr.bf16.mxu0 %v21337_v42  ;;  %v8150_v0 = vld [vmem:[#allocation3 + $0x248] sm:$0xfe]  ;;  %v19663_v39 = vsel %vm1917_vm5, %v10630_v59, %v10634_v28  ;;  %v8147_v59 = vld [vmem:[#allocation3 + $0x230] sm:$0x1] }
 0x580   : > { %v8980_v19 = vpop.f32.mrb[90].mxu1  ;;  %11299 = vmatpush1.bf16.msra.mxu1 %v15323_v4  ;;  %v19648_v14 = vpop.f32.mrb[158].mxu0  ;;  %v19659_v4 = vpack.c.bf16 %v19396_v18, %v8145_v61  ;;  %v19667_v26 = vpack.c.bf16 %v19399_v45, %v8150_v0  ;;  %v21415_v18 = vld [vmem:[#allocation50_spill] sm:$0xff]  ;;  %v21416_v45 = vld [vmem:[#allocation31_spill] sm:$0xff]  ;;  %v10649_v11 = vshrl.u32 %v19626_v7, 16  ;;  %v10656_v3 = vshll.u32 %v8220_v34, 16 }
 0x581   : > { %v8981_v46 = vadd.f32 %v8980_v19, %v19344_v62  ;;  %v8982_v37 = vpop.f32.mrb[91].mxu1  ;;  %v9699_v2 = vpop.f32.mrb[159].mxu0  ;;  %11300 = vmatprep.subr.bf16.mxu1 %v21337_v42  ;;  %v19656_v32 = vadd.f32 %v19314_v13, %v8978_v36  ;;  %v10653_v62 = vrot.slane %v10651_v47, 1  ;;  %v15332_v13 = vld [vmem:[%s20956_s5 + $0x1b0] sm:$0xff]   ;;  %v15325_v36 = vld [vmem:[%s20956_s5 + $0xb8] sm:$0xff]   ;;  %v21417_v61 = vld [vmem:[#allocation72_spill] sm:$0xff] }
 0x582   : > { %11927 = vmatpush1.bf16.msra.mxu0 %v15331_v15  ;;  %v10620_v15 = vshll.u32 %v8215_v54, 16  ;;  %v10639_v58 = vshll.u32 %v19659_v4, 16  ;;  %v8152_v54 = vld [vmem:[#allocation3 + $0x268] sm:$0x1]  ;;  %v10675_v7 = vshll.u32 %v19667_v26, 16  ;;  %v10658_v16 = vrot.slane %v10656_v3, 1 }
 0x583   : > { %10901 = vmatmul.mubr.bf16.gmra.mrb[196].mxu1 %v19588_v10  ;;  %11541 = vmatmul.mubr.bf16.gmra.mrb[8].mxu0 %v19407_v56  ;;  %v19673_v21 = vadd.f32 %v21415_v18, %v8981_v46  ;;  %v10654_v2 = vor.u32 %v10653_v62, %v10649_v11  ;;  %v8149_v34 = vld [vmem:[#allocation3 + $0x240] sm:$0xfe] }
 0x584   : > { %13983 = vmatprep.mubr.msk.bf16.mxu1 %vm281_vm2, %v19663_v39  ;;  %11301 = vmatpush1.bf16.msra.mxu1 %v15324_v50  ;;  %v10618_v50 = vor.u32 %v10617_v9, %v10613_v23  ;;  %v10622_v18 = vrot.slane %v10620_v15, 1  ;;  %v8219_v9 = vpack.c.bf16 %v8147_v59, %v8147_v59  ;;  %v21418_v23 = vld [vmem:[#allocation73_spill] sm:$0xff]  ;;  %v15328_v62 = vld [vmem:[%s20956_s5 + $0xc0] sm:$0xff]   ;;  %v19706_v11 = vpack.c.bf16 %v19433_v12, %v8149_v34  ;;  %v8154_v59 = vld [vmem:[#allocation3 + $0x278] sm:$0xfe] }
 0x585   : > { %14078 = vmatprep.mubr.msk.bf16.mxu0 %vm281_vm2, %v21416_v45  ;;  %11302 = vmatprep.subr.bf16.mxu1 %v21337_v42  ;;  %v21419_v15 = vld [vmem:[#allocation49_spill] sm:$0xff]  ;;  %v10641_v3 = vrot.slane %v10639_v58, 1  ;;  %v10637_v12 = vshrl.u32 %v19659_v4, 16 }
 0x586   : > { %v8985_v47 = vpop.f32.mrb[92].mxu1  ;;  %v19685_v19 = vpop.f32.mrb[160].mxu0  ;;  %11928 = vmatprep.subr.bf16.mxu0 %v21337_v42  ;;  %v10663_v4 = vshll.u32 %v19706_v11, 16 }
 0x587   : > { %v8986_v46 = vadd.f32 %v8985_v47, %v21417_v61  ;;  %v8987_v37 = vpop.f32.mrb[93].mxu1  ;;  %v10045_v28 = vpop.f32.mrb[161].mxu0  ;;  %11929 = vmatpush1.bf16.msra.mxu0 %v15332_v13  ;;  %v8224_v61 = vpack.c.bf16 %v8152_v54, %v8152_v54  ;;  %v15334_v13 = vld [vmem:[%s20956_s5 + $0x1b8] sm:$0xff]   ;;  %v19713_v54 = vsel %vm1917_vm5, %v10654_v2, %v10658_v16  ;;  %v10673_v16 = vshrl.u32 %v19667_v26, 16  ;;  %v8151_v2 = vld [vmem:[#allocation3 + $0x260] sm:$0x1] }
 0x588   : > { %v8988_v0 = vpop.f32.mrb[94].mxu1  ;;  %v19691_v45 = vpop.f32.mrb[162].mxu0  ;;  %11303 = vmatpush1.bf16.msra.mxu1 %v15325_v36  ;;  %11930 = vmatprep.subr.bf16.mxu0 %v21337_v42  ;;  %21420 = vst [vmem:[#allocation20_spill] sm:$0xff] %v19713_v54  ;;  %v10677_v37 = vrot.slane %v10675_v7, 1  ;;  %v19717_v28 = vpack.c.bf16 %v19438_v55, %v8154_v59  ;;  %v15330_v55 = vld [vmem:[%s20956_s5 + $0xc8] sm:$0xff]  }
 0x589   : > { %v8989_v56 = vadd.f32 %v8988_v0, %v21418_v23  ;;  %v8990_v52 = vpop.f32.mrb[95].mxu1  ;;  %v10048_v47 = vpop.f32.mrb[163].mxu0  ;;  %11304 = vmatprep.subr.bf16.mxu1 %v21337_v42  ;;  %v19703_v36 = vadd.f32 %v21419_v15, %v8986_v46  ;;  %v21421_v46 = vld [vmem:[#allocation6_spill] sm:$0xff]  ;;  %v10680_v58 = vshll.u32 %v8224_v61, 16  ;;  %v8156_v26 = vld [vmem:[#allocation3 + $0x298] sm:$0x1] }
 0x58a   : > { %v19709_v52 = vsel %vm1917_vm5, %v10618_v50, %v10622_v18  ;;  %v10644_v50 = vshll.u32 %v8219_v9, 16  ;;  %v10642_v18 = vor.u32 %v10641_v3, %v10637_v12  ;;  %v10678_v61 = vor.u32 %v10677_v37, %v10673_v16  ;;  %v15337_v37 = vld [vmem:[%s20956_s5 + $0x1c8] sm:$0xff]  }
 0x58b   : > { %10909 = vmatmul.mubr.bf16.gmra.mrb[200].mxu1 %v19709_v52  ;;  %11549 = vmatmul.mubr.bf16.gmra.mrb[12].mxu0 %v19444_v48  ;;  %v19720_v0 = vadd.f32 %v21421_v46, %v8989_v56  ;;  %v15336_v56 = vld [vmem:[%s20956_s5 + $0x1c0] sm:$0xff]   ;;  %v8223_v3 = vpack.c.bf16 %v8151_v2, %v8151_v2  ;;  %v10682_v48 = vrot.slane %v10680_v58, 1  ;;  %v8228_v10 = vpack.c.bf16 %v8156_v26, %v8156_v26 }
 0x58c   : > { %13984 = vmatprep.mubr.msk.bf16.mxu1 %vm281_vm2, %v19713_v54  ;;  %14079 = vmatprep.mubr.msk.bf16.mxu0 %vm281_vm2, %v19456_v43  ;;  %v10646_v59 = vrot.slane %v10644_v50, 1  ;;  %v21422_v50 = vld [vmem:[#allocation28_spill] sm:$0xff] }
 0x58d   : > { %11305 = vmatpush1.bf16.msra.mxu1 %v15328_v62  ;;  %11931 = vmatpush1.bf16.msra.mxu0 %v15334_v13  ;;  %v10699_v62 = vshll.u32 %v19717_v28, 16  ;;  %v8153_v13 = vld [vmem:[#allocation3 + $0x270] sm:$0xfe]  ;;  %v19763_v58 = vsel %vm1917_vm5, %v10678_v61, %v10682_v48  ;;  %v10668_v26 = vshll.u32 %v8223_v3, 16  ;;  %v10697_v48 = vshrl.u32 %v19717_v28, 16 }
 0x58e   : > { %v9416_v7 = vpop.f32.mrb[96].mxu1  ;;  %v19734_v34 = vpop.f32.mrb[164].mxu0  ;;  %11306 = vmatprep.subr.bf16.mxu1 %v21337_v42  ;;  %11932 = vmatprep.subr.bf16.mxu0 %v21337_v42  ;;  %v19754_v2 = vpack.c.bf16 %v19477_v44, %v8153_v13  ;;  %21424 = vst [vmem:[#allocation22_spill] sm:$0xff] %v19763_v58 }
 0x58f   : > { %v9479_v9 = vadd.f32 %v9416_v7, %v19453_v51  ;;  %v9418_v23 = vpop.f32.mrb[97].mxu1  ;;  %v10053_v47 = vpop.f32.mrb[165].mxu0  ;;  %v15333_v51 = vld [vmem:[%s20956_s5 + $0xd0] sm:$0xff]  }
 0x590   : > { %v9419_v15 = vpop.f32.mrb[98].mxu1  ;;  %v19741_v46 = vpop.f32.mrb[166].mxu0  ;;  %v8155_v23 = vld [vmem:[#allocation3 + $0x290] sm:$0x1] }
 0x591   : > { %v9480_v12 = vadd.f32 %v9419_v15, %v19463_v33  ;;  %v9421_v43 = vpop.f32.mrb[99].mxu1  ;;  %v10056_v41 = vpop.f32.mrb[167].mxu0  ;;  %11307 = vmatpush1.bf16.msra.mxu1 %v15330_v55  ;;  %11933 = vmatpush1.bf16.msra.mxu0 %v15336_v56  ;;  %v19751_v16 = vadd.f32 %v21422_v50, %v9479_v9  ;;  %v8158_v33 = vld [vmem:[#allocation3 + $0x2a8] sm:$0xfe]  ;;  %v10701_v55 = vrot.slane %v10699_v62, 1  ;;  %v21425_v56 = vld [vmem:[#allocation32_spill] sm:$0xff] }
 0x592   : > { %v19757_v43 = vsel %vm1917_vm5, %v10642_v18, %v10646_v59  ;;  %v10665_v41 = vrot.slane %v10663_v4, 1  ;;  %11308 = vmatprep.subr.bf16.mxu1 %v21337_v42  ;;  %11934 = vmatprep.subr.bf16.mxu0 %v21337_v42  ;;  %v19767_v44 = vpack.c.bf16 %v19482_v20, %v8158_v33  ;;  %v21426_v18 = vld [vmem:[#allocation13_spill] sm:$0xff]  ;;  %v10661_v4 = vshrl.u32 %v19706_v11, 16  ;;  %v15335_v20 = vld [vmem:[%s20956_s5 + $0xd8] sm:$0xff]   ;;  %v15339_v47 = vld [vmem:[%s20956_s5 + $0x1d0] sm:$0xff]  }
 0x593   : > { %21423 = vst [vmem:[#allocation43_spill] sm:$0xff] %v19757_v43  ;;  %10917 = vmatmul.mubr.bf16.gmra.mrb[204].mxu1 %v19757_v43  ;;  %11557 = vmatmul.mubr.bf16.gmra.mrb[16].mxu0 %v19488_v5  ;;  %v19770_v7 = vadd.f32 %v21425_v56, %v9480_v12  ;;  %v10704_v9 = vshll.u32 %v8228_v10, 16  ;;  %v10687_v11 = vshll.u32 %v19754_v2, 16  ;;  %v8160_v15 = vld [vmem:[#allocation3 + $0x2c8] sm:$0x1]  ;;  %v10702_v12 = vor.u32 %v10701_v55, %v10697_v48  ;;  %v15340_v55 = vld [vmem:[%s20956_s5 + $0x1d8] sm:$0xff]  }
 0x594   : > { %13985 = vmatprep.mubr.msk.bf16.mxu1 %vm281_vm2, %v19763_v58  ;;  %14080 = vmatprep.mubr.msk.bf16.mxu0 %vm281_vm2, %v21426_v18  ;;  %v10666_v13 = vor.u32 %v10665_v41, %v10661_v4  ;;  %v21427_v10 = vld [vmem:[#allocation57_spill] sm:$0xff]  ;;  %v10670_v33 = vrot.slane %v10668_v26, 1  ;;  %v8227_v41 = vpack.c.bf16 %v8155_v23, %v8155_v23  ;;  %v8232_v54 = vpack.c.bf16 %v8160_v15, %v8160_v15  ;;  %v21432_v15 = vld [vmem:[#allocation74_spill] sm:$0xff] }
 0x595   : > { %11309 = vmatpush1.bf16.msra.mxu1 %v15333_v51  ;;  %11935 = vmatpush1.bf16.msra.mxu0 %v15337_v37  ;;  %v10723_v51 = vshll.u32 %v19767_v44, 16  ;;  %v8157_v37 = vld [vmem:[#allocation3 + $0x2a0] sm:$0xfe]  ;;  %v21428_v4 = vld [vmem:[#allocation61_spill] sm:$0xff]  ;;  %v10706_v58 = vrot.slane %v10704_v9, 1 }
 0x596   : > { %v9424_v61 = vpop.f32.mrb[100].mxu1  ;;  %v19784_v62 = vpop.f32.mrb[168].mxu0  ;;  %11310 = vmatprep.subr.bf16.mxu1 %v21337_v42  ;;  %11936 = vmatprep.subr.bf16.mxu0 %v21337_v42  ;;  %v21429_v26 = vld [vmem:[#allocation37_spill] sm:$0xff]  ;;  %v19804_v23 = vpack.c.bf16 %v19519_v6, %v8157_v37  ;;  %v8162_v9 = vld [vmem:[#allocation3 + $0x2d8] sm:$0xfe] }
 0x597   : > { %v9481_v28 = vadd.f32 %v9424_v61, %v21427_v10  ;;  %v9426_v59 = vpop.f32.mrb[101].mxu1  ;;  %v10061_v3 = vpop.f32.mrb[169].mxu0  ;;  %v15338_v61 = vld [vmem:[%s20956_s5 + $0xe0] sm:$0xff]   ;;  %v19817_v6 = vpack.c.bf16 %v19524_v60, %v8162_v9  ;;  %v10692_v10 = vshll.u32 %v8227_v41, 16  ;;  %v15341_v60 = vld [vmem:[%s20956_s5 + $0xe8] sm:$0xff]   ;;  %v19837_v41 = vld [vmem:[#allocation3 + $0x318] sm:$0xff] }
 0x598   : > { %v9427_v50 = vpop.f32.mrb[102].mxu1  ;;  %v19791_v56 = vpop.f32.mrb[170].mxu0  ;;  %v8159_v59 = vld [vmem:[#allocation3 + $0x2c0] sm:$0x1]  ;;  %v8164_v37 = vld [vmem:[#allocation3 + $0x2f8] sm:$0x1] }
 0x599   : > { %v9482_v18 = vadd.f32 %v9427_v50, %v21428_v4  ;;  %v9429_v5 = vpop.f32.mrb[103].mxu1  ;;  %v10064_v43 = vpop.f32.mrb[171].mxu0  ;;  %11311 = vmatpush1.bf16.msra.mxu1 %v15335_v20  ;;  %11937 = vmatpush1.bf16.msra.mxu0 %v15339_v47  ;;  %v19801_v48 = vadd.f32 %v21429_v26, %v9481_v28  ;;  %v19813_v20 = vsel %vm1917_vm5, %v10702_v12, %v10706_v58  ;;  %v10725_v47 = vrot.slane %v10723_v51, 1  ;;  %v8161_v9 = vld [vmem:[#allocation3 + $0x2d0] sm:$0xfe] }
 0x59a   : > { %v19807_v5 = vsel %vm1917_vm5, %v10666_v13, %v10670_v33  ;;  %v10689_v43 = vrot.slane %v10687_v11, 1  ;;  %11312 = vmatprep.subr.bf16.mxu1 %v21337_v42  ;;  %11938 = vmatprep.subr.bf16.mxu0 %v21337_v42  ;;  %21431 = vst [vmem:[#allocation23_spill] sm:$0xff] %v19813_v20  ;;  %v10685_v11 = vshrl.u32 %v19754_v2, 16  ;;  %v10721_v58 = vshrl.u32 %v19767_v44, 16  ;;  %v21433_v2 = vld [vmem:[#allocation17_spill] sm:$0xff] }
 0x59b   : > { %21430 = vst [vmem:[#allocation21_spill] sm:$0xff] %v19807_v5  ;;  %10925 = vmatmul.mubr.bf16.gmra.mrb[208].mxu1 %v19807_v5  ;;  %11565 = vmatmul.mubr.bf16.gmra.mrb[20].mxu0 %v19530_v8  ;;  %v19820_v13 = vadd.f32 %v21432_v15, %v9482_v18  ;;  %v10728_v28 = vshll.u32 %v8232_v54, 16  ;;  %v10711_v51 = vshll.u32 %v19804_v23, 16  ;;  %v10747_v4 = vshll.u32 %v19817_v6, 16  ;;  %v21434_v15 = vld [vmem:[#allocation18_spill] sm:$0xff]  ;;  %v8058_v5 = vld [vmem:[#allocation3 + $0x308] sm:$0xff] }
 0x59c   : > { %13986 = vmatprep.mubr.msk.bf16.mxu1 %vm281_vm2, %v19813_v20  ;;  %14081 = vmatprep.mubr.msk.bf16.mxu0 %vm281_vm2, %v19537_v40  ;;  %v10690_v12 = vor.u32 %v10689_v43, %v10685_v11  ;;  %v10726_v33 = vor.u32 %v10725_v47, %v10721_v58  ;;  %v8231_v43 = vpack.c.bf16 %v8159_v59, %v8159_v59 }
 0x59d   : > { %11313 = vmatpush1.bf16.msra.mxu1 %v15338_v61  ;;  %11939 = vmatpush1.bf16.msra.mxu0 %v15340_v55  ;;  %v10694_v55 = vrot.slane %v10692_v10, 1  ;;  %v10730_v8 = vrot.slane %v10728_v28, 1  ;;  %v8233_v58 = vpack.c.bf16 %v19551_v31, %v8161_v9  ;;  %v19851_v10 = vpack.c.bf16 %v19837_v41, %v8058_v5  ;;  %v21439_v28 = vld [vmem:[#allocation11_spill] sm:$0xff] }
 0x59e   : > { %v9432_v18 = vpop.f32.mrb[104].mxu1  ;;  %v19831_v3 = vpop.f32.mrb[172].mxu0  ;;  %11314 = vmatprep.subr.bf16.mxu1 %v21337_v42  ;;  %12337 = vmatprep.subr.bf16.mxu0 %v21337_v42  ;;  %v10713_v59 = vrot.slane %v10711_v51, 1  ;;  %v10709_v31 = vshrl.u32 %v19804_v23, 16  ;;  %v10716_v5 = vshll.u32 %v8231_v43, 16  ;;  %v8057_v43 = vld [vmem:[#allocation3 + $0x300] sm:$0xff] }
 0x59f   : > { %v9483_v54 = vadd.f32 %v9432_v18, %v21433_v2  ;;  %v9434_v44 = vpop.f32.mrb[105].mxu1  ;;  %v10069_v50 = vpop.f32.mrb[173].mxu0  ;;  %v8236_v18 = vpack.c.bf16 %v8164_v37, %v8164_v37  ;;  %v21435_v2 = vld [vmem:[#allocation41_spill] sm:$0xff]  ;;  %21437 = vst [vmem:[#allocation25_spill] sm:$0xff] %v19851_v10 }
 0x5a0   : > { %v9435_v61 = vpop.f32.mrb[106].mxu1  ;;  %v19840_v26 = vpop.f32.mrb[174].mxu0  ;;  %v19848_v44 = vsel %vm1917_vm5, %v10690_v12, %v10694_v55  ;;  %v10745_v12 = vshrl.u32 %v19817_v6, 16  ;;  %v10714_v50 = vor.u32 %v10713_v59, %v10709_v31 }
 0x5a1   : > { %v9484_v11 = vadd.f32 %v9435_v61, %v21434_v15  ;;  %v9437_v40 = vpop.f32.mrb[107].mxu1  ;;  %v10072_v20 = vpop.f32.mrb[175].mxu0  ;;  %11315 = vmatpush1.bf16.msra.mxu1 %v15341_v60  ;;  %v19844_v47 = vadd.f32 %v21435_v2, %v9483_v54  ;;  %21436 = vst [vmem:[#allocation44_spill] sm:$0xff] %v19848_v44  ;;  %v10752_v51 = vshll.u32 %v8236_v18, 16  ;;  %v10718_v2 = vrot.slane %v10716_v5, 1 }
 0x5a2   : > { %11713 = vmatprep.subr.bf16.mxu1 %v21337_v42  ;;  %v19856_v40 = vsel %vm1917_vm5, %v10726_v33, %v10730_v8  ;;  %v10749_v20 = vrot.slane %v10747_v4, 1  ;;  %v8163_v8 = vld [vmem:[#allocation3 + $0x2f0] sm:$0x1]  ;;  %v10735_v4 = vshll.u32 %v8233_v58, 16  ;;  %v8288_v18 = vld [vmem:[#allocation3 + $0x208] sm:$0x3] }
 0x5a3   : > { %10933 = vmatmul.mubr.bf16.gmra.mrb[212].mxu1 %v19848_v44  ;;  %21438 = vst [vmem:[#allocation7_spill] sm:$0xff] %v19856_v40  ;;  %11573 = vmatmul.mubr.bf16.gmra.mrb[24].mxu0 %v19558_v29  ;;  %v19860_v60 = vadd.f32 %v21439_v28, %v9484_v11  ;;  %v19870_v33 = vld [vmem:[#allocation3 + $0x310] sm:$0xff]  ;;  %v8235_v6 = vpack.c.bf16 %v8163_v8, %v8163_v8  ;;  %v10754_v29 = vrot.slane %v10752_v51, 1  ;;  %v21444_v51 = vld [vmem:[#allocation16_spill] sm:$0xff]  ;;  %v8296_v44 = vld [vmem:[#allocation3 + $0x268] sm:$0x3] }
 0x5a4   : > { %13987 = vmatprep.mubr.msk.bf16.mxu1 %vm281_vm2, %v19856_v40  ;;  %14082 = vmatprep.mubr.msk.bf16.mxu0 %vm281_vm2, %v19851_v10  ;;  %v10750_v15 = vor.u32 %v10749_v20, %v10745_v12  ;;  %v19877_v31 = vpack.c.bf16 %v19870_v33, %v8057_v43  ;;  %v8286_v40 = vld [vmem:[#allocation3 + $0x1e8] sm:$0xfc]  ;;  %v19883_v20 = vsel %vm1917_vm5, %v10714_v50, %v10718_v2  ;;  %v10737_v5 = vrot.slane %v10735_v4, 1  ;;  %v15430_v12 = vld [vmem:[#allocation3 + $0x1f8] sm:$0xff] }
 0x5a5   : > { %21442 = vst [vmem:[#allocation53_spill] sm:$0xff] %v19883_v20  ;;  %v10733_v50 = vshrl.u32 %v8233_v58, 16  ;;  %v10740_v4 = vshll.u32 %v8235_v6, 16 }
 0x5a6   : > { %v9440_v37 = vpop.f32.mrb[108].mxu1  ;;  %v19868_v54 = vpop.f32.mrb[176].mxu0  ;;  %21440 = vst [vmem:[#allocation26_spill] sm:$0xff] %v19877_v31 }
 0x5a7   : > { %v9485_v61 = vadd.f32 %v9440_v37, %v19561_v49  ;;  %v9442_v55 = vpop.f32.mrb[109].mxu1  ;;  %v10077_v9 = vpop.f32.mrb[177].mxu0  ;;  %v21441_v49 = vld [vmem:[#allocation15_spill] sm:$0xff] }
 0x5a8   : > { %v9443_v11 = vpop.f32.mrb[110].mxu1  ;;  %v19873_v23 = vpop.f32.mrb[178].mxu0  ;;  %v8358_v55 = vpack.c.bf16 %v15430_v12, %v8286_v40  ;;  %v10742_v12 = vrot.slane %v10740_v4, 1 }
 0x5a9   : > { %v9486_v28 = vadd.f32 %v9443_v11, %v19569_v22  ;;  %v9445_v10 = vpop.f32.mrb[111].mxu1  ;;  %v10080_v59 = vpop.f32.mrb[179].mxu0  ;;  %v19880_v37 = vadd.f32 %v21441_v49, %v9485_v61  ;;  %v19887_v22 = vsel %vm1917_vm5, %v10750_v15, %v10754_v29  ;;  %v21445_v61 = vld [vmem:[#allocation60_spill] sm:$0xff]  ;;  %v10738_v11 = vor.u32 %v10737_v5, %v10733_v50  ;;  %v15346_v5 = vld [vmem:[%s20956_s5 + $0x230] sm:$0xff]  }
 0x5aa   : > { %21443 = vst [vmem:[#allocation55_spill] sm:$0xff] %v19887_v22  ;;  %v8360_v10 = vpack.c.bf16 %v8288_v18, %v8288_v18  ;;  %v11159_v43 = vrot.slane %v8358_v55, 1  ;;  %v8285_v59 = vld [vmem:[#allocation3 + $0x1e0] sm:$0xfc]  ;;  %v15431_v55 = vld [vmem:[#allocation3 + $0x1f0] sm:$0xff] }
 0x5ab   : > { %10941 = vmatmul.mubr.bf16.gmra.mrb[216].mxu1 %v19883_v20  ;;  %11581 = vmatmul.mubr.bf16.gmra.mrb[28].mxu0 %v19877_v31  ;;  %v19891_v8 = vadd.f32 %v21444_v51, %v9486_v28  ;;  %v8287_v28 = vld [vmem:[#allocation3 + $0x200] sm:$0x3] }
 0x5ac   : > { %13988 = vmatprep.mubr.msk.bf16.mxu1 %vm281_vm2, %v19887_v22  ;;  %14151 = vmatprep.mubr.msk.bf16.mxu0 %vm281_vm2, %v21445_v61  ;;  %v11160_v18 = vrot.slane %v8360_v10, 1  ;;  %v8292_v22 = vld [vmem:[#allocation3 + $0x238] sm:$0x3]  ;;  %v8357_v10 = vpack.c.bf16 %v15431_v55, %v8285_v59  ;;  %v8359_v4 = vpack.c.bf16 %v8287_v28, %v8287_v28  ;;  %v8291_v55 = vld [vmem:[#allocation3 + $0x230] sm:$0x3] }
 0x5ad   : > { %v8364_v28 = vpack.c.bf16 %v8292_v22, %v8292_v22  ;;  %v15347_v59 = vld [vmem:[%s20956_s5 + $0x238] sm:$0xff]   ;;  %v15342_v22 = vld [vmem:[%s20956_s5 + $0x140] sm:$0xff]  }
 0x5ae   : > { %v9448_v40 = vpop.f32.mrb[112].mxu1  ;;  %v19897_v9 = vpop.f32.mrb[180].mxu0 }
 0x5af   : > { %v9487_v29 = vadd.f32 %v9448_v40, %v19585_v53  ;;  %v9450_v15 = vpop.f32.mrb[113].mxu1  ;;  %v10085_v2 = vpop.f32.mrb[181].mxu0  ;;  %v21446_v53 = vld [vmem:[#allocation68_spill] sm:$0xff]  ;;  %v19910_v40 = vsel %vm1917_vm5, %v10738_v11, %v10742_v12  ;;  %v15432_v11 = vld [vmem:[#allocation3 + $0x228] sm:$0xff] }
 0x5b0   : > { %v9451_v49 = vpop.f32.mrb[114].mxu1  ;;  %v19900_v51 = vpop.f32.mrb[182].mxu0  ;;  %21447 = vst [vmem:[#allocation29_spill] sm:$0xff] %v19910_v40  ;;  %v21448_v15 = vld [vmem:[#allocation14_spill] sm:$0xff]  ;;  %v8290_v2 = vld [vmem:[#allocation3 + $0x218] sm:$0xfc] }
 0x5b1   : > { %v9488_v31 = vadd.f32 %v9451_v49, %v19594_v17  ;;  %v9453_v58 = vpop.f32.mrb[115].mxu1  ;;  %v10088_v6 = vpop.f32.mrb[183].mxu0  ;;  %v19907_v50 = vadd.f32 %v21446_v53, %v9487_v29  ;;  %v19915_v17 = vsel %vm2645_vm14, %v11159_v43, %v11160_v18  ;;  %v8362_v29 = vpack.c.bf16 %v15432_v11, %v8290_v2  ;;  %v8289_v11 = vld [vmem:[#allocation3 + $0x210] sm:$0xfc] }
 0x5b2   : > { %21449 = vst [vmem:[#allocation56_spill] sm:$0xff] %v19915_v17  ;;  %v21450_v58 = vld [vmem:[#allocation10_spill] sm:$0xff]  ;;  %v11156_v43 = vrot.slane %v8357_v10, 1  ;;  %v11166_v10 = vrot.slane %v8364_v28, 1 }
 0x5b3   : > { %10949 = vmatmul.mubr.bf16.gmra.mrb[220].mxu1 %v19910_v40  ;;  %11953 = vmatmul.mubr.bf16.vlgmr.msra.gmra.mrb[32].mxu0 %v21448_v15  ;;  %v19918_v49 = vadd.f32 %v19554_v63, %v9488_v31  ;;  %v11157_v63 = vrot.slane %v8359_v4, 1  ;;  %v11165_v2 = vrot.slane %v8362_v29, 1  ;;  %v15349_v29 = vld [vmem:[%s20956_s5 + $0x240] sm:$0xff]  }
 0x5b4   : > { %14037 = vmatprep.mubr.msk.bf16.mxu1 %vm281_vm2, %v21450_v58  ;;  %14152 = vmatprep.mubr.msk.bf16.mxu0 %vm281_vm2, %v19915_v17 }
 0x5b5   : > { %12338 = vmatpush1.bf16.msra.mxu0 %v15346_v5  ;;  %v19955_v28 = vsel %vm2645_vm14, %v11165_v2, %v11166_v10 }
 0x5b6   : > { %v9456_v18 = vpop.f32.mrb[116].mxu1  ;;  %v19927_v12 = vpop.f32.mrb[184].mxu0  ;;  %12339 = vmatprep.subr.bf16.mxu0 %v21337_v42  ;;  %21454 = vst [vmem:[#allocation33_spill] sm:$0xff] %v19955_v28 }
 0x5b7   : > { %21451 = vst [vmem:[#allocation30_spill] sm:$0xff] %v19927_v12  ;;  %v9489_v31 = vadd.f32 %v9456_v18, %v19614_v24  ;;  %v9458_v6 = vpop.f32.mrb[117].mxu1  ;;  %v10093_v53 = vpop.f32.mrb[185].mxu0  ;;  %v15433_v18 = vld [vmem:[#allocation3 + $0x220] sm:$0xff]  ;;  %v8363_v12 = vpack.c.bf16 %v8291_v55, %v8291_v55 }
 0x5b8   : > { %v9459_v58 = vpop.f32.mrb[118].mxu1  ;;  %v19934_v5 = vpop.f32.mrb[186].mxu0  ;;  %v8361_v6 = vpack.c.bf16 %v15433_v18, %v8289_v11  ;;  %v19941_v53 = vsel %vm2645_vm14, %v11156_v43, %v11157_v63  ;;  %v15434_v43 = vld [vmem:[#allocation3 + $0x258] sm:$0xff] }
 0x5b9   : > { %v9490_v40 = vadd.f32 %v9459_v58, %v19629_v38  ;;  %v9461_v4 = vpop.f32.mrb[119].mxu1  ;;  %v10096_v20 = vpop.f32.mrb[187].mxu0  ;;  %12340 = vmatpush1.bf16.msra.mxu0 %v15347_v59  ;;  %v19938_v24 = vadd.f32 %v19575_v27, %v9489_v31  ;;  %21452 = vst [vmem:[#allocation58_spill] sm:$0xff] %v19941_v53  ;;  %v21453_v38 = vld [vmem:[#allocation54_spill] sm:$0xff]  ;;  %v15343_v59 = vld [vmem:[%s20956_s5 + $0x148] sm:$0xff]   ;;  %v8368_v31 = vpack.c.bf16 %v8296_v44, %v8296_v44 }
 0x5ba   : > { %12341 = vmatprep.subr.bf16.mxu0 %v21337_v42  ;;  %v8294_v20 = vld [vmem:[#allocation3 + $0x248] sm:$0xfc]  ;;  %v8295_v44 = vld [vmem:[#allocation3 + $0x260] sm:$0x3]  ;;  %v8300_v11 = vld [vmem:[#allocation3 + $0x298] sm:$0x3] }
 0x5bb   : > { %11329 = vmatmul.mubr.bf16.vlgmr.msra.gmra.mrb[224].mxu1 %v21453_v38  ;;  %11961 = vmatmul.mubr.bf16.gmra.mrb[36].mxu0 %v19941_v53  ;;  %v19950_v27 = vadd.f32 %v19578_v1, %v9490_v40  ;;  %v8366_v63 = vpack.c.bf16 %v15434_v43, %v8294_v20  ;;  %v11162_v1 = vrot.slane %v8361_v6, 1  ;;  %v15351_v58 = vld [vmem:[%s20956_s5 + $0x248] sm:$0xff]   ;;  %v8293_v38 = vld [vmem:[#allocation3 + $0x240] sm:$0xfc] }
 0x5bc   : > { %11714 = vmatpush1.bf16.msra.mxu1 %v15342_v22  ;;  %14038 = vmatprep.mubr.msk.bf16.mxu1 %vm281_vm2, %v21445_v61  ;;  %v11163_v61 = vrot.slane %v8363_v12, 1  ;;  %v15344_v12 = vld [vmem:[%s20956_s5 + $0x150] sm:$0xff]  }
 0x5bd   : > { %14153 = vmatprep.mubr.msk.bf16.mxu0 %vm281_vm2, %v19955_v28  ;;  %11715 = vmatprep.subr.bf16.mxu1 %v21337_v42  ;;  %v11171_v6 = vrot.slane %v8366_v63, 1 }
 0x5be   : > { %v9464_v40 = vpop.f32.mrb[120].mxu1  ;;  %v19963_v55 = vpop.f32.mrb[188].mxu0  ;;  %12342 = vmatpush1.bf16.msra.mxu0 %v15349_v29  ;;  %v11172_v29 = vrot.slane %v8368_v31, 1  ;;  %v8372_v31 = vpack.c.bf16 %v8300_v11, %v8300_v11 }
 0x5bf   : > { %21455 = vst [vmem:[#allocation59_spill] sm:$0xff] %v19963_v55  ;;  %v9491_v22 = vadd.f32 %v9464_v40, %v19656_v32  ;;  %v9466_v2 = vpop.f32.mrb[121].mxu1  ;;  %v10101_v10 = vpop.f32.mrb[189].mxu0  ;;  %12343 = vmatprep.subr.bf16.mxu0 %v21337_v42  ;;  %v8298_v55 = vld [vmem:[#allocation3 + $0x278] sm:$0xfc] }
 0x5c0   : > { %v9467_v4 = vpop.f32.mrb[122].mxu1  ;;  %11716 = vmatpush1.bf16.msra.mxu1 %v15343_v59  ;;  %v19970_v18 = vpop.f32.mrb[190].mxu0  ;;  %v15435_v2 = vld [vmem:[#allocation3 + $0x250] sm:$0xff]  ;;  %v19981_v10 = vsel %vm2645_vm14, %v11162_v1, %v11163_v61  ;;  %v19994_v1 = vsel %vm2645_vm14, %v11171_v6, %v11172_v29  ;;  %v11178_v6 = vrot.slane %v8372_v31, 1 }
 0x5c1   : > { %21456 = vst [vmem:[#allocation34_spill] sm:$0xff] %v19970_v18  ;;  %v9492_v20 = vadd.f32 %v9467_v4, %v19673_v21  ;;  %v9469_v32 = vpop.f32.mrb[123].mxu1  ;;  %v10104_v43 = vpop.f32.mrb[191].mxu0  ;;  %11717 = vmatprep.subr.bf16.mxu1 %v21337_v42  ;;  %v19978_v40 = vadd.f32 %v19603_v30, %v9491_v22  ;;  %v8365_v59 = vpack.c.bf16 %v15435_v2, %v8293_v38  ;;  %21457 = vst [vmem:[#allocation62_spill] sm:$0xff] %v19981_v10  ;;  %v15436_v21 = vld [vmem:[#allocation3 + $0x288] sm:$0xff]  ;;  %v15352_v30 = vld [vmem:[%s20956_s5 + $0x250] sm:$0xff]  }
 0x5c2   : > { %v8367_v18 = vpack.c.bf16 %v8295_v44, %v8295_v44  ;;  %12344 = vmatpush1.bf16.msra.mxu0 %v15351_v58  ;;  %v8370_v63 = vpack.c.bf16 %v15436_v21, %v8298_v55  ;;  %21458 = vst [vmem:[#allocation38_spill] sm:$0xff] %v19994_v1  ;;  %v8299_v29 = vld [vmem:[#allocation3 + $0x290] sm:$0x3]  ;;  %v8297_v38 = vld [vmem:[#allocation3 + $0x270] sm:$0xfc] }
 0x5c3   : > { %11337 = vmatmul.mubr.bf16.gmra.mrb[228].mxu1 %v21448_v15  ;;  %11969 = vmatmul.mubr.bf16.gmra.mrb[40].mxu0 %v19981_v10  ;;  %v19989_v22 = vadd.f32 %v19610_v35, %v9492_v20  ;;  %v15345_v15 = vld [vmem:[%s20956_s5 + $0x158] sm:$0xff]   ;;  %v11168_v55 = vrot.slane %v8365_v59, 1  ;;  %v8304_v43 = vld [vmem:[#allocation3 + $0x2c8] sm:$0x3]  ;;  %v8302_v21 = vld [vmem:[#allocation3 + $0x2a8] sm:$0xfc] }
 0x5c4   : > { %14039 = vmatprep.mubr.msk.bf16.mxu1 %vm281_vm2, %v19915_v17  ;;  %11718 = vmatpush1.bf16.msra.mxu1 %v15344_v12  ;;  %v11169_v58 = vrot.slane %v8367_v18, 1  ;;  %v11177_v12 = vrot.slane %v8370_v63, 1  ;;  %v15354_v63 = vld [vmem:[%s20956_s5 + $0x258] sm:$0xff]  }
 0x5c5   : > { %14154 = vmatprep.mubr.msk.bf16.mxu0 %vm281_vm2, %v19994_v1  ;;  %11719 = vmatprep.subr.bf16.mxu1 %v21337_v42 }
 0x5c6   : > { %v9472_v61 = vpop.f32.mrb[124].mxu1  ;;  %v20002_v35 = vpop.f32.mrb[192].mxu0  ;;  %12345 = vmatprep.subr.bf16.mxu0 %v21337_v42 }
 0x5c7   : > { %v9493_v44 = vadd.f32 %v9472_v61, %v19703_v36  ;;  %v9474_v11 = vpop.f32.mrb[125].mxu1  ;;  %v10475_v4 = vpop.f32.mrb[193].mxu0  ;;  %12346 = vmatpush1.bf16.msra.mxu0 %v15352_v30  ;;  %v15348_v36 = vld [vmem:[%s20956_s5 + $0x160] sm:$0xff]   ;;  %v8371_v61 = vpack.c.bf16 %v8299_v29, %v8299_v29 }
 0x5c8   : > { %v9475_v20 = vpop.f32.mrb[126].mxu1  ;;  %v20006_v32 = vpop.f32.mrb[194].mxu0  ;;  %11720 = vmatpush1.bf16.msra.mxu1 %v15345_v15  ;;  %12347 = vmatprep.subr.bf16.mxu0 %v21337_v42  ;;  %v15437_v30 = vld [vmem:[#allocation3 + $0x280] sm:$0xff]  ;;  %v15438_v11 = vld [vmem:[#allocation3 + $0x2b8] sm:$0xff] }
 0x5c9   : > { %v9494_v18 = vadd.f32 %v9475_v20, %v19720_v0  ;;  %v9477_v2 = vpop.f32.mrb[127].mxu1  ;;  %v10478_v59 = vpop.f32.mrb[195].mxu0  ;;  %11721 = vmatprep.subr.bf16.mxu1 %v21337_v42  ;;  %v20018_v31 = vadd.f32 %v19639_v57, %v9493_v44  ;;  %v8369_v15 = vpack.c.bf16 %v15437_v30, %v8297_v38  ;;  %v20021_v0 = vsel %vm2645_vm14, %v11168_v55, %v11169_v58  ;;  %v15350_v57 = vld [vmem:[%s20956_s5 + $0x168] sm:$0xff]   ;;  %v15356_v55 = vld [vmem:[%s20956_s5 + $0x260] sm:$0xff]  }
 0x5ca   : > { %21459 = vst [vmem:[#allocation63_spill] sm:$0xff] %v20021_v0  ;;  %v8374_v4 = vpack.c.bf16 %v15438_v11, %v8302_v21  ;;  %v20026_v20 = vsel %vm2645_vm14, %v11177_v12, %v11178_v6  ;;  %v8376_v2 = vpack.c.bf16 %v8304_v43, %v8304_v43  ;;  %v11175_v12 = vrot.slane %v8371_v61, 1  ;;  %v8301_v21 = vld [vmem:[#allocation3 + $0x2a0] sm:$0xfc]  ;;  %v15439_v11 = vld [vmem:[#allocation3 + $0x2b0] sm:$0xff] }
 0x5cb   : > { %11345 = vmatmul.mubr.bf16.gmra.mrb[232].mxu1 %v19941_v53  ;;  %11977 = vmatmul.mubr.bf16.gmra.mrb[44].mxu0 %v20021_v0  ;;  %21460 = vst [vmem:[#allocation40_spill] sm:$0xff] %v20026_v20  ;;  %v20029_v59 = vadd.f32 %v19648_v14, %v9494_v18  ;;  %v11174_v58 = vrot.slane %v8369_v15, 1  ;;  %v8308_v15 = vld [vmem:[#allocation3 + $0x2f8] sm:$0x3] }
 0x5cc   : > { %14040 = vmatprep.mubr.msk.bf16.mxu1 %vm281_vm2, %v19955_v28  ;;  %14155 = vmatprep.mubr.msk.bf16.mxu0 %vm281_vm2, %v20026_v20  ;;  %v11183_v43 = vrot.slane %v8374_v4, 1  ;;  %v11184_v18 = vrot.slane %v8376_v2, 1  ;;  %v8373_v28 = vpack.c.bf16 %v15439_v11, %v8301_v21  ;;  %v15357_v4 = vld [vmem:[%s20956_s5 + $0x268] sm:$0xff]  }
 0x5cd   : > { %11722 = vmatpush1.bf16.msra.mxu1 %v15348_v36  ;;  %12348 = vmatpush1.bf16.msra.mxu0 %v15354_v63  ;;  %v8303_v36 = vld [vmem:[#allocation3 + $0x2c0] sm:$0x3] }
 0x5ce   : > { %v9846_v44 = vpop.f32.mrb[128].mxu1  ;;  %v20041_v14 = vpop.f32.mrb[196].mxu0  ;;  %11723 = vmatprep.subr.bf16.mxu1 %v21337_v42  ;;  %12349 = vmatprep.subr.bf16.mxu0 %v21337_v42 }
 0x5cf   : > { %21461 = vst [vmem:[#allocation65_spill] sm:$0xff] %v20041_v14  ;;  %v9909_v6 = vadd.f32 %v9846_v44, %v19751_v16  ;;  %v9848_v29 = vpop.f32.mrb[129].mxu1  ;;  %v10483_v38 = vpop.f32.mrb[197].mxu0  ;;  %v8306_v14 = vld [vmem:[#allocation3 + $0x2d8] sm:$0xfc]  ;;  %v15353_v16 = vld [vmem:[%s20956_s5 + $0x170] sm:$0xff]   ;;  %v20059_v44 = vsel %vm2645_vm14, %v11174_v58, %v11175_v12 }
 0x5d0   : > { %v9849_v63 = vpop.f32.mrb[130].mxu1  ;;  %v20046_v30 = vpop.f32.mrb[198].mxu0  ;;  %21462 = vst [vmem:[#allocation42_spill] sm:$0xff] %v20059_v44  ;;  %v15355_v58 = vld [vmem:[%s20956_s5 + $0x178] sm:$0xff]   ;;  %v11180_v12 = vrot.slane %v8373_v28, 1 }
 0x5d1   : > { %v9910_v61 = vadd.f32 %v9849_v63, %v19770_v7  ;;  %v9851_v53 = vpop.f32.mrb[131].mxu1  ;;  %v10486_v17 = vpop.f32.mrb[199].mxu0  ;;  %11724 = vmatpush1.bf16.msra.mxu1 %v15350_v57  ;;  %12350 = vmatpush1.bf16.msra.mxu0 %v15356_v55  ;;  %v20056_v2 = vadd.f32 %v19685_v19, %v9909_v6  ;;  %v8375_v7 = vpack.c.bf16 %v8303_v36, %v8303_v36  ;;  %v8307_v63 = vld [vmem:[#allocation3 + $0x2f0] sm:$0x3]  ;;  %v8312_v28 = vld [vmem:[#allocation3 + $0x328] sm:$0x3] }
 0x5d2   : > { %v15440_v53 = vld [vmem:[#allocation3 + $0x2e8] sm:$0xff]  ;;  %11725 = vmatprep.subr.bf16.mxu1 %v21337_v42  ;;  %12351 = vmatprep.subr.bf16.mxu0 %v21337_v42  ;;  %v20066_v57 = vsel %vm2645_vm14, %v11183_v43, %v11184_v18  ;;  %v8380_v55 = vpack.c.bf16 %v8308_v15, %v8308_v15  ;;  %v8305_v15 = vld [vmem:[#allocation3 + $0x2d0] sm:$0xfc] }
 0x5d3   : > { %v8378_v17 = vpack.c.bf16 %v15440_v53, %v8306_v14  ;;  %11353 = vmatmul.mubr.bf16.gmra.mrb[236].mxu1 %v19981_v10  ;;  %11985 = vmatmul.mubr.bf16.gmra.mrb[48].mxu0 %v20059_v44  ;;  %21463 = vst [vmem:[#allocation66_spill] sm:$0xff] %v20066_v57  ;;  %v20069_v19 = vadd.f32 %v19691_v45, %v9910_v61  ;;  %v15359_v14 = vld [vmem:[%s20956_s5 + $0x270] sm:$0xff]   ;;  %v11181_v29 = vrot.slane %v8375_v7, 1  ;;  %v8310_v10 = vld [vmem:[#allocation3 + $0x308] sm:$0xfc] }
 0x5d4   : > { %14041 = vmatprep.mubr.msk.bf16.mxu1 %vm281_vm2, %v19994_v1  ;;  %14156 = vmatprep.mubr.msk.bf16.mxu0 %vm281_vm2, %v20066_v57  ;;  %v11190_v21 = vrot.slane %v8380_v55, 1 }
 0x5d5   : > { %11726 = vmatpush1.bf16.msra.mxu1 %v15353_v16  ;;  %12352 = vmatpush1.bf16.msra.mxu0 %v15357_v4  ;;  %v11189_v36 = vrot.slane %v8378_v17, 1  ;;  %v15441_v16 = vld [vmem:[#allocation3 + $0x2e0] sm:$0xff]  ;;  %v15360_v17 = vld [vmem:[%s20956_s5 + $0x278] sm:$0xff]  }
 0x5d6   : > { %v9854_v6 = vpop.f32.mrb[132].mxu1  ;;  %v20081_v45 = vpop.f32.mrb[200].mxu0  ;;  %11727 = vmatprep.subr.bf16.mxu1 %v21337_v42  ;;  %12353 = vmatprep.subr.bf16.mxu0 %v21337_v42  ;;  %v8377_v4 = vpack.c.bf16 %v15441_v16, %v8305_v15  ;;  %v8311_v15 = vld [vmem:[#allocation3 + $0x320] sm:$0x3] }
 0x5d7   : > { %v9911_v38 = vadd.f32 %v9854_v6, %v19801_v48  ;;  %v9856_v43 = vpop.f32.mrb[133].mxu1  ;;  %v10491_v18 = vpop.f32.mrb[201].mxu0  ;;  %v15358_v48 = vld [vmem:[%s20956_s5 + $0x180] sm:$0xff]   ;;  %v20099_v6 = vsel %vm2645_vm14, %v11180_v12, %v11181_v29 }
 0x5d8   : > { %v9857_v11 = vpop.f32.mrb[134].mxu1  ;;  %v20086_v61 = vpop.f32.mrb[202].mxu0  ;;  %21464 = vst [vmem:[#allocation45_spill] sm:$0xff] %v20099_v6  ;;  %v11186_v12 = vrot.slane %v8377_v4, 1 }
 0x5d9   : > { %v9912_v7 = vadd.f32 %v9857_v11, %v19820_v13  ;;  %v9859_v53 = vpop.f32.mrb[135].mxu1  ;;  %v10494_v1 = vpop.f32.mrb[203].mxu0  ;;  %11728 = vmatpush1.bf16.msra.mxu1 %v15355_v58  ;;  %12354 = vmatpush1.bf16.msra.mxu0 %v15359_v14  ;;  %v20096_v55 = vadd.f32 %v19734_v34, %v9911_v38  ;;  %v8379_v13 = vpack.c.bf16 %v8307_v63, %v8307_v63 }
 0x5da   : > { %v8382_v1 = vpack.c.bf16 %v19837_v41, %v8310_v10  ;;  %11729 = vmatprep.subr.bf16.mxu1 %v21337_v42  ;;  %12355 = vmatprep.subr.bf16.mxu0 %v21337_v42  ;;  %v20107_v58 = vsel %vm2645_vm14, %v11189_v36, %v11190_v21  ;;  %v8384_v14 = vpack.c.bf16 %v8312_v28, %v8312_v28  ;;  %v15361_v10 = vld [vmem:[%s20956_s5 + $0x188] sm:$0xff]   ;;  %v8309_v53 = vld [vmem:[#allocation3 + $0x300] sm:$0xfc] }
 0x5db   : > { %11361 = vmatmul.mubr.bf16.gmra.mrb[240].mxu1 %v20021_v0  ;;  %11993 = vmatmul.mubr.bf16.gmra.mrb[52].mxu0 %v20099_v6  ;;  %21465 = vst [vmem:[#allocation46_spill] sm:$0xff] %v20107_v58  ;;  %v20110_v34 = vadd.f32 %v19741_v46, %v9912_v7  ;;  %v11187_v43 = vrot.slane %v8379_v13, 1  ;;  %v8383_v13 = vpack.c.bf16 %v8311_v15, %v8311_v15 }
 0x5dc   : > { %14042 = vmatprep.mubr.msk.bf16.mxu1 %vm281_vm2, %v20026_v20  ;;  %14157 = vmatprep.mubr.msk.bf16.mxu0 %vm281_vm2, %v20107_v58  ;;  %v11833_v21 = vrot.slane %v8382_v1, 1  ;;  %v11834_v63 = vrot.slane %v8384_v14, 1 }
 0x5dd   : > { %11730 = vmatpush1.bf16.msra.mxu1 %v15358_v48  ;;  %12356 = vmatpush1.bf16.msra.mxu0 %v15360_v17  ;;  %v20131_v17 = vsel %vm2645_vm14, %v11186_v12, %v11187_v43  ;;  %v11831_v12 = vrot.slane %v8383_v13, 1 }
 0x5de   : > { %v9862_v29 = vpop.f32.mrb[136].mxu1  ;;  %v20119_v38 = vpop.f32.mrb[204].mxu0  ;;  %11731 = vmatprep.subr.bf16.mxu1 %v21337_v42  ;;  %12544 = vmatprep.subr.bf16.mxu0 %v21337_v42  ;;  %21466 = vst [vmem:[#allocation69_spill] sm:$0xff] %v20131_v17 }
 0x5df   : > { %v9913_v46 = vadd.f32 %v9862_v29, %v19844_v47  ;;  %v9864_v18 = vpop.f32.mrb[137].mxu1  ;;  %v10499_v36 = vpop.f32.mrb[205].mxu0  ;;  %v8381_v47 = vpack.c.bf16 %v19870_v33, %v8309_v53 }
 0x5e0   : > { %v9865_v11 = vpop.f32.mrb[138].mxu1  ;;  %v20124_v28 = vpop.f32.mrb[206].mxu0 }
 0x5e1   : > { %v9914_v16 = vadd.f32 %v9865_v11, %v19860_v60  ;;  %v9867_v4 = vpop.f32.mrb[139].mxu1  ;;  %v10502_v7 = vpop.f32.mrb[207].mxu0  ;;  %11732 = vmatpush1.bf16.msra.mxu1 %v15361_v10  ;;  %v20128_v48 = vadd.f32 %v19784_v62, %v9913_v46  ;;  %v20138_v60 = vsel %vm2645_vm14, %v11833_v21, %v11834_v63  ;;  %v11830_v10 = vrot.slane %v8381_v47, 1 }
 0x5e2   : > { %12116 = vmatprep.subr.bf16.mxu1 %v21337_v42  ;;  %21467 = vst [vmem:[#allocation47_spill] sm:$0xff] %v20138_v60 }
 0x5e3   : > { %11369 = vmatmul.mubr.bf16.gmra.mrb[244].mxu1 %v20059_v44  ;;  %12001 = vmatmul.mubr.bf16.gmra.mrb[56].mxu0 %v20131_v17  ;;  %v20141_v1 = vadd.f32 %v19791_v56, %v9914_v16  ;;  %v20157_v11 = vsel %vm2645_vm14, %v11830_v10, %v11831_v12  ;;  %v20177_v10 = vld [vmem:[%s20956_s5 + $0x280] sm:$0xff]  }
 0x5e4   : > { %14043 = vmatprep.mubr.msk.bf16.mxu1 %vm281_vm2, %v20066_v57  ;;  %14158 = vmatprep.mubr.msk.bf16.mxu0 %vm281_vm2, %v20138_v60  ;;  %21468 = vst [vmem:[#allocation71_spill] sm:$0xff] %v20157_v11 }
 0x5e6   : > { %v9870_v62 = vpop.f32.mrb[140].mxu1  ;;  %v20147_v14 = vpop.f32.mrb[208].mxu0 }
 0x5e7   : > { %v9915_v29 = vadd.f32 %v9870_v62, %v19880_v37  ;;  %v9872_v43 = vpop.f32.mrb[141].mxu1  ;;  %v10507_v46 = vpop.f32.mrb[209].mxu0 }
 0x5e8   : > { %v9873_v18 = vpop.f32.mrb[142].mxu1  ;;  %v20150_v36 = vpop.f32.mrb[210].mxu0 }
 0x5e9   : > { %v9916_v56 = vadd.f32 %v9873_v18, %v19891_v8  ;;  %v9875_v21 = vpop.f32.mrb[143].mxu1  ;;  %v10510_v63 = vpop.f32.mrb[211].mxu0  ;;  %v20154_v15 = vadd.f32 %v19831_v3, %v9915_v29 }
 0x5eb   : > { %11377 = vmatmul.mubr.bf16.gmra.mrb[248].mxu1 %v20099_v6  ;;  %12009 = vmatmul.mubr.bf16.gmra.mrb[60].mxu0 %v20157_v11  ;;  %v20162_v37 = vadd.f32 %v19840_v26, %v9916_v56  ;;  %v15362_v56 = vld [vmem:[%s20956_s5 + $0x1e0] sm:$0xff]  }
 0x5ec   : > { %14044 = vmatprep.mubr.msk.bf16.mxu1 %vm281_vm2, %v20107_v58  ;;  %14227 = vmatprep.mubr.msk.bf16.mxu0 %vm281_vm2, %v19663_v39 }
 0x5ee   : > { %v9878_v8 = vpop.f32.mrb[144].mxu1  ;;  %v20168_v16 = vpop.f32.mrb[212].mxu0 }
 0x5ef   : > { %v9917_v3 = vadd.f32 %v9878_v8, %v19907_v50  ;;  %v9880_v4 = vpop.f32.mrb[145].mxu1  ;;  %v10515_v7 = vpop.f32.mrb[213].mxu0 }
 0x5f0   : > { %v9881_v53 = vpop.f32.mrb[146].mxu1  ;;  %v20171_v47 = vpop.f32.mrb[214].mxu0  ;;  %v21470_v7 = vld [vmem:[#allocation70_spill] sm:$0xff] }
 0x5f1   : > { %v9918_v13 = vadd.f32 %v9881_v53, %v19918_v49  ;;  %v9883_v26 = vpop.f32.mrb[147].mxu1  ;;  %v10518_v62 = vpop.f32.mrb[215].mxu0  ;;  %v20180_v12 = vadd.f32 %v19868_v54, %v9917_v3  ;;  %v21469_v49 = vld [vmem:[#allocation20_spill] sm:$0xff]  ;;  %v20195_v54 = vld [vmem:[%s20956_s5 + $0x288] sm:$0xff]   ;;  %v21471_v53 = vld [vmem:[#allocation43_spill] sm:$0xff] }
 0x5f3   : > { %11385 = vmatmul.mubr.bf16.gmra.mrb[252].mxu1 %v20131_v17  ;;  %12370 = vmatmul.mubr.bf16.vlgmr.msra.gmra.mrb[64].mxu0 %v19709_v52  ;;  %v20185_v50 = vadd.f32 %v19873_v23, %v9918_v13  ;;  %v21472_v13 = vld [vmem:[#allocation22_spill] sm:$0xff]  ;;  %v20323_v17 = vld [vmem:[%s20957_s6] ss:$0 sm:$0xff] }
 0x5f4   : > { %14113 = vmatprep.mubr.msk.bf16.mxu1 %vm281_vm2, %v19565_v25  ;;  %14228 = vmatprep.mubr.msk.bf16.mxu0 %vm281_vm2, %v21469_v49 }
 0x5f5   : > { %12545 = vmatpush1.bf16.msra.mxu0 %v20177_v10 }
 0x5f6   : > { %v9886_v29 = vpop.f32.mrb[148].mxu1  ;;  %v20197_v43 = vpop.f32.mrb[216].mxu0  ;;  %12546 = vmatprep.subr.bf16.mxu0 %v21337_v42 }
 0x5f7   : > { %v9919_v23 = vadd.f32 %v9886_v29, %v19938_v24  ;;  %v9888_v46 = vpop.f32.mrb[149].mxu1  ;;  %v10523_v18 = vpop.f32.mrb[217].mxu0  ;;  %v20215_v24 = vld [vmem:[%s20956_s5 + $0x290] sm:$0xff]  }
 0x5f8   : > { %v9889_v25 = vpop.f32.mrb[150].mxu1  ;;  %v20204_v21 = vpop.f32.mrb[218].mxu0 }
 0x5f9   : > { %v9920_v63 = vadd.f32 %v9889_v25, %v19950_v27  ;;  %v9891_v8 = vpop.f32.mrb[151].mxu1  ;;  %v10526_v3 = vpop.f32.mrb[219].mxu0  ;;  %12547 = vmatpush1.bf16.msra.mxu0 %v20195_v54  ;;  %v20209_v4 = vadd.f32 %v19897_v9, %v9919_v23  ;;  %v15363_v9 = vld [vmem:[%s20956_s5 + $0x1e8] sm:$0xff]   ;;  %v15364_v25 = vld [vmem:[%s20956_s5 + $0x1f0] sm:$0xff]  }
 0x5fa   : > { %12548 = vmatprep.subr.bf16.mxu0 %v21337_v42  ;;  %v21474_v3 = vld [vmem:[#allocation30_spill] sm:$0xff] }
 0x5fb   : > { %11746 = vmatmul.mubr.bf16.vlgmr.msra.gmra.mrb[0].mxu1 %v21470_v7  ;;  %12378 = vmatmul.mubr.bf16.gmra.mrb[68].mxu0 %v21471_v53  ;;  %v20220_v27 = vadd.f32 %v19900_v51, %v9920_v63  ;;  %v20236_v51 = vld [vmem:[%s20956_s5 + $0x298] sm:$0xff]   ;;  %v21475_v7 = vld [vmem:[#allocation21_spill] sm:$0xff] }
 0x5fc   : > { %12117 = vmatpush1.bf16.msra.mxu1 %v15362_v56  ;;  %14114 = vmatprep.mubr.msk.bf16.mxu1 %vm281_vm2, %v19663_v39 }
 0x5fd   : > { %14229 = vmatprep.mubr.msk.bf16.mxu0 %vm281_vm2, %v21472_v13  ;;  %12118 = vmatprep.subr.bf16.mxu1 %v21337_v42 }
 0x5fe   : > { %v9894_v26 = vpop.f32.mrb[152].mxu1  ;;  %v20230_v62 = vpop.f32.mrb[220].mxu0  ;;  %12549 = vmatpush1.bf16.msra.mxu0 %v20215_v24 }
 0x5ff   : > { %v9921_v39 = vadd.f32 %v9894_v26, %v19978_v40  ;;  %v9896_v29 = vpop.f32.mrb[153].mxu1  ;;  %v10531_v23 = vpop.f32.mrb[221].mxu0  ;;  %12550 = vmatprep.subr.bf16.mxu0 %v21337_v42  ;;  %v15365_v26 = vld [vmem:[%s20956_s5 + $0x1f8] sm:$0xff]  }
 0x600   : > { %v9897_v46 = vpop.f32.mrb[154].mxu1  ;;  %12119 = vmatpush1.bf16.msra.mxu1 %v15363_v9  ;;  %v20240_v18 = vpop.f32.mrb[222].mxu0  ;;  %v20256_v9 = vld [vmem:[%s20956_s5 + $0x2a0] sm:$0xff]  }
 0x601   : > { %21473 = vst [vmem:[#allocation48_spill] sm:$0xff] %v20240_v18  ;;  %v9922_v56 = vadd.f32 %v9897_v46, %v19989_v22  ;;  %v9899_v63 = vpop.f32.mrb[155].mxu1  ;;  %v10534_v8 = vpop.f32.mrb[223].mxu0  ;;  %12120 = vmatprep.subr.bf16.mxu1 %v21337_v42  ;;  %v20248_v40 = vadd.f32 %v21474_v3, %v9921_v39  ;;  %21476 = vst [vmem:[#allocation36_spill] sm:$0xff] %v20256_v9  ;;  %v21477_v39 = vld [vmem:[#allocation23_spill] sm:$0xff]  ;;  %v20285_v3 = vld [vmem:[%s20956_s5 + $0x2a8] sm:$0xff]  }
 0x602   : > { %12551 = vmatpush1.bf16.msra.mxu0 %v20236_v51  ;;  %21480 = vst [vmem:[#allocation8_spill] sm:$0xff] %v20285_v3 }
 0x603   : > { %11754 = vmatmul.mubr.bf16.gmra.mrb[4].mxu1 %v19709_v52  ;;  %12386 = vmatmul.mubr.bf16.gmra.mrb[72].mxu0 %v21475_v7  ;;  %v20259_v22 = vadd.f32 %v19934_v5, %v9922_v56 }
 0x604   : > { %14115 = vmatprep.mubr.msk.bf16.mxu1 %vm281_vm2, %v21469_v49  ;;  %12121 = vmatpush1.bf16.msra.mxu1 %v15364_v25 }
 0x605   : > { %14230 = vmatprep.mubr.msk.bf16.mxu0 %vm281_vm2, %v21477_v39  ;;  %12122 = vmatprep.subr.bf16.mxu1 %v21337_v42 }
 0x606   : > { %v9902_v52 = vpop.f32.mrb[156].mxu1  ;;  %v20269_v29 = vpop.f32.mrb[224].mxu0  ;;  %12552 = vmatprep.subr.bf16.mxu0 %v21337_v42 }
 0x607   : > { %21478 = vst [vmem:[#allocation4_spill] sm:$0xff] %v20269_v29  ;;  %v9923_v5 = vadd.f32 %v9902_v52, %v20018_v31  ;;  %v9904_v23 = vpop.f32.mrb[157].mxu1  ;;  %v11071_v46 = vpop.f32.mrb[225].mxu0  ;;  %12553 = vmatpush1.bf16.msra.mxu0 %v20256_v9  ;;  %v15368_v31 = vld [vmem:[%s20956_s5 + $0x200] sm:$0xff]   ;;  %v21481_v52 = vld [vmem:[#allocation59_spill] sm:$0xff]  ;;  %v21493_v9 = vld [vmem:[#allocation65_spill] sm:$0xff] }
 0x608   : > { %v9905_v49 = vpop.f32.mrb[158].mxu1  ;;  %v20274_v25 = vpop.f32.mrb[226].mxu0  ;;  %12123 = vmatpush1.bf16.msra.mxu1 %v15365_v26  ;;  %12554 = vmatprep.subr.bf16.mxu0 %v21337_v42  ;;  %v8166_v26 = vld [vmem:[#allocation3 + $0x308] sm:$0xfe] }
 0x609   : > { %21479 = vst [vmem:[#allocation5_spill] sm:$0xff] %v20274_v25  ;;  %v9924_v56 = vadd.f32 %v9905_v49, %v20029_v59  ;;  %v9907_v63 = vpop.f32.mrb[159].mxu1  ;;  %v11074_v8 = vpop.f32.mrb[227].mxu0  ;;  %12124 = vmatprep.subr.bf16.mxu1 %v21337_v42  ;;  %v20288_v23 = vadd.f32 %v21481_v52, %v9923_v5  ;;  %v21482_v59 = vld [vmem:[#allocation44_spill] sm:$0xff]  ;;  %v20293_v46 = vpack.c.bf16 %v19837_v41, %v8166_v26  ;;  %v21483_v49 = vld [vmem:[#allocation34_spill] sm:$0xff] }
 0x60a   : > { %v21484_v8 = vld [vmem:[#allocation7_spill] sm:$0xff]  ;;  %v8168_v5 = vld [vmem:[#allocation3 + $0x328] sm:$0x1]  ;;  %v20309_v41 = vld [vmem:[%s20956_s5 + $0x2b0] sm:$0xff]  }
 0x60b   : > { %11762 = vmatmul.mubr.bf16.gmra.mrb[8].mxu1 %v21471_v53  ;;  %12394 = vmatmul.mubr.bf16.gmra.mrb[76].mxu0 %v21482_v59  ;;  %v20296_v63 = vadd.f32 %v21483_v49, %v9924_v56  ;;  %v15370_v53 = vld [vmem:[%s20956_s5 + $0x208] sm:$0xff]   ;;  %21485 = vst [vmem:[#allocation51_spill] sm:$0xff] %v20309_v41  ;;  %v11620_v60 = vshll.u32 %v20293_v46, 16  ;;  %v8240_v57 = vpack.c.bf16 %v8168_v5, %v8168_v5  ;;  %v8171_v25 = vld [vmem:[#allocation3 + $0x350] sm:$0x1] }
 0x60c   : > { %14116 = vmatprep.mubr.msk.bf16.mxu1 %vm281_vm2, %v21472_v13  ;;  %14231 = vmatprep.mubr.msk.bf16.mxu0 %vm281_vm2, %v21484_v8  ;;  %v20315_v13 = vld [vmem:[#allocation3 + $0x348] sm:$0xff] }
 0x60d   : > { %12125 = vmatpush1.bf16.msra.mxu1 %v15368_v31  ;;  %12555 = vmatpush1.bf16.msra.mxu0 %v20285_v3  ;;  %21487 = vst [vmem:[#allocation50_spill] sm:$0xff] %v20315_v13  ;;  %v8170_v31 = vld [vmem:[#allocation3 + $0x338] sm:$0xfe]  ;;  %v20384_v3 = vld [vmem:[#allocation2 + $0x10] sm:$0xff] }
 0x60e   : > { %v10265_v56 = vpop.f32.mrb[160].mxu1  ;;  %v20311_v52 = vpop.f32.mrb[228].mxu0  ;;  %12126 = vmatprep.subr.bf16.mxu1 %v21337_v42  ;;  %12556 = vmatprep.subr.bf16.mxu0 %v21337_v42  ;;  %v20339_v5 = vpack.c.bf16 %v20315_v13, %v8170_v31  ;;  %v21491_v31 = vld [vmem:[#allocation55_spill] sm:$0xff] }
 0x60f   : > { %21486 = vst [vmem:[#allocation9_spill] sm:$0xff] %v20311_v52  ;;  %v10328_v26 = vadd.f32 %v10265_v56, %v20056_v2  ;;  %v10267_v49 = vpop.f32.mrb[161].mxu1  ;;  %v11079_v11 = vpop.f32.mrb[229].mxu0  ;;  %v15373_v2 = vld [vmem:[%s20956_s5 + $0x210] sm:$0xff]   ;;  %v20336_v56 = vld [vmem:[%s20956_s5 + $0x2b8] sm:$0xff]  }
 0x610   : > { %v10268_v58 = vpop.f32.mrb[162].mxu1  ;;  %v20325_v6 = vpop.f32.mrb[230].mxu0  ;;  %v8165_v11 = vld [vmem:[#allocation3 + $0x300] sm:$0xfe]  ;;  %21489 = vst [vmem:[#allocation73_spill] sm:$0xff] %v20336_v56 }
 0x611   : > { %21488 = vst [vmem:[#allocation72_spill] sm:$0xff] %v20325_v6  ;;  %v10536_v44 = vadd.f32 %v20002_v35, %v10328_v26  ;;  %v10329_v20 = vadd.f32 %v10268_v58, %v20069_v19  ;;  %v10270_v0 = vpop.f32.mrb[163].mxu1  ;;  %v11082_v52 = vpop.f32.mrb[231].mxu0  ;;  %12127 = vmatpush1.bf16.msra.mxu1 %v15370_v53  ;;  %12557 = vmatpush1.bf16.msra.mxu0 %v20309_v41  ;;  %v21490_v53 = vld [vmem:[#allocation53_spill] sm:$0xff]  ;;  %v8167_v26 = vld [vmem:[#allocation3 + $0x320] sm:$0x1] }
 0x612   : > { %12128 = vmatprep.subr.bf16.mxu1 %v21337_v42  ;;  %v20348_v35 = vpack.c.bf16 %v19870_v33, %v8165_v11  ;;  %12558 = vmatprep.subr.bf16.mxu0 %v21337_v42  ;;  %v8172_v0 = vld [vmem:[#allocation3 + $0x358] sm:$0x1]  ;;  %v11622_v52 = vrot.slane %v11620_v60, 1  ;;  %v11625_v33 = vshll.u32 %v8240_v57, 16  ;;  %v20371_v57 = vld [vmem:[%s20956_s5 + $0x2c0] sm:$0xff]   ;;  %v8239_v41 = vpack.c.bf16 %v8167_v26, %v8167_v26  ;;  %v21494_v26 = vld [vmem:[#allocation29_spill] sm:$0xff] }
 0x613   : > { %v10559_v19 = vadd.f32 %v20323_v17, %v10536_v44  ;;  %v10537_v58 = vadd.f32 %v20006_v32, %v10329_v20  ;;  %11770 = vmatmul.mubr.bf16.gmra.mrb[12].mxu1 %v21475_v7  ;;  %12402 = vmatmul.mubr.bf16.gmra.mrb[80].mxu0 %v21490_v53  ;;  %v11618_v32 = vshrl.u32 %v20293_v46, 16  ;;  %v15375_v20 = vld [vmem:[%s20956_s5 + $0x218] sm:$0xff]   ;;  %v8244_v60 = vpack.c.bf16 %v8172_v0, %v8172_v0 }
 0x614   : > { %14117 = vmatprep.mubr.msk.bf16.mxu1 %vm281_vm2, %v21477_v39  ;;  %14232 = vmatprep.mubr.msk.bf16.mxu0 %vm281_vm2, %v21491_v31  ;;  %v12244_v7 = vshll.u32 %v20339_v5, 16  ;;  %v8169_v39 = vld [vmem:[#allocation3 + $0x330] sm:$0xfe]  ;;  %v11608_v46 = vshll.u32 %v20348_v35, 16 }
 0x615   : > { %10576 = vst.msk [vmem:[%s20344_s19] sm:$0xff] %vm10575_vm8, %v10559_v19  ;;  %v10560_v44 = vadd.f32 %v20323_v17, %v10537_v58  ;;  %12129 = vmatpush1.bf16.msra.mxu1 %v15373_v2  ;;  %12559 = vmatpush1.bf16.msra.mxu0 %v20336_v56  ;;  %v11623_v58 = vor.u32 %v11622_v52, %v11618_v32  ;;  %v11627_v56 = vrot.slane %v11625_v33, 1  ;;  %v12249_v32 = vshll.u32 %v8244_v60, 16  ;;  %v15378_v33 = vld [vmem:[%s20956_s5 + $0x220] sm:$0xff]  }
 0x616   : > { %v10273_v49 = vpop.f32.mrb[164].mxu1  ;;  %v20373_v11 = vpop.f32.mrb[232].mxu0  ;;  %12130 = vmatprep.subr.bf16.mxu1 %v21337_v42  ;;  %12560 = vmatprep.subr.bf16.mxu0 %v21337_v42  ;;  %v8241_v29 = vpack.c.bf16 %v20384_v3, %v8169_v39  ;;  %v12246_v52 = vrot.slane %v12244_v7, 1  ;;  %v11606_v60 = vshrl.u32 %v20348_v35, 16  ;;  %v11613_v7 = vshll.u32 %v8239_v41, 16 }
 0x617   : > { %21492 = vst [vmem:[#allocation49_spill] sm:$0xff] %v20373_v11  ;;  %10577 = vst.msk [vmem:[%s20344_s19 + $0x8] sm:$0xff] %vm10575_vm8, %v10560_v44  ;;  %v10330_v2 = vadd.f32 %v10273_v49, %v20096_v55  ;;  %v10275_v0 = vpop.f32.mrb[165].mxu1  ;;  %v11087_v19 = vpop.f32.mrb[233].mxu0  ;;  %v12242_v11 = vshrl.u32 %v20339_v5, 16  ;;  %v20396_v5 = vld [vmem:[%s20956_s5 + $0x2c8] sm:$0xff]  }
 0x618   : > { %v10276_v13 = vpop.f32.mrb[166].mxu1  ;;  %v20381_v6 = vpop.f32.mrb[234].mxu0  ;;  %v12232_v39 = vshll.u32 %v8241_v29, 16 }
 0x619   : > { %v10538_v18 = vadd.f32 %v21493_v9, %v10330_v2  ;;  %v10331_v44 = vadd.f32 %v10276_v13, %v20110_v34  ;;  %v10278_v55 = vpop.f32.mrb[167].mxu1  ;;  %v11090_v49 = vpop.f32.mrb[235].mxu0  ;;  %12131 = vmatpush1.bf16.msra.mxu1 %v15375_v20  ;;  %12561 = vmatpush1.bf16.msra.mxu0 %v20371_v57  ;;  %v11610_v9 = vrot.slane %v11608_v46, 1  ;;  %v20405_v20 = vsel %vm1917_vm5, %v11623_v58, %v11627_v56 }
 0x61a   : > { %12132 = vmatprep.subr.bf16.mxu1 %v21337_v42  ;;  %12562 = vmatprep.subr.bf16.mxu0 %v21337_v42  ;;  %v12251_v46 = vrot.slane %v12249_v32, 1  ;;  %v11615_v58 = vrot.slane %v11613_v7, 1  ;;  %v12234_v55 = vrot.slane %v12232_v39, 1 }
 0x61b   : > { %v10561_v34 = vadd.f32 %v20323_v17, %v10538_v18  ;;  %v10539_v13 = vadd.f32 %v20046_v30, %v10331_v44  ;;  %11778 = vmatmul.mubr.bf16.gmra.mrb[16].mxu1 %v21482_v59  ;;  %12410 = vmatmul.mubr.bf16.gmra.mrb[84].mxu0 %v21494_v26  ;;  %v8243_v18 = vpack.c.bf16 %v8171_v25, %v8171_v25  ;;  %v12230_v44 = vshrl.u32 %v8241_v29, 16 }
 0x61c   : > { %14118 = vmatprep.mubr.msk.bf16.mxu1 %vm281_vm2, %v21484_v8  ;;  %14233 = vmatprep.mubr.msk.bf16.mxu0 %vm281_vm2, %v20405_v20  ;;  %v12247_v59 = vor.u32 %v12246_v52, %v12242_v11  ;;  %v15381_v8 = vld [vmem:[%s20956_s5 + $0x228] sm:$0xff]   ;;  %v11611_v35 = vor.u32 %v11610_v9, %v11606_v60 }
 0x61d   : > { %10578 = vst.msk [vmem:[%s20344_s19 + $0x10] sm:$0xff] %vm10575_vm8, %v10561_v34  ;;  %v10562_v30 = vadd.f32 %v20323_v17, %v10539_v13  ;;  %12133 = vmatpush1.bf16.msra.mxu1 %v15378_v33  ;;  %12563 = vmatpush1.bf16.msra.mxu0 %v20396_v5  ;;  %v12237_v49 = vshll.u32 %v8243_v18, 16 }
 0x61e   : > { %v10281_v56 = vpop.f32.mrb[168].mxu1  ;;  %v20419_v2 = vpop.f32.mrb[236].mxu0  ;;  %12134 = vmatprep.subr.bf16.mxu1 %v21337_v42  ;;  %v12252_v34 = vsel %vm1917_vm5, %v12247_v59, %v12251_v46 }
 0x61f   : > { %10579 = vst.msk [vmem:[%s20344_s19 + $0x18] sm:$0xff] %vm10575_vm8, %v10562_v30  ;;  %v10332_v25 = vadd.f32 %v10281_v56, %v20128_v48  ;;  %v10283_v41 = vpop.f32.mrb[169].mxu1  ;;  %v11095_v11 = vpop.f32.mrb[237].mxu0  ;;  %v11616_v48 = vsel %vm1917_vm5, %v11611_v35, %v11615_v58 }
 0x620   : > { %v10284_v0 = vpop.f32.mrb[170].mxu1  ;;  %v20425_v19 = vpop.f32.mrb[238].mxu0 }
 0x621   : > { %v10540_v52 = vadd.f32 %v20081_v45, %v10332_v25  ;;  %v10333_v32 = vadd.f32 %v10284_v0, %v20141_v1  ;;  %v10286_v33 = vpop.f32.mrb[171].mxu1  ;;  %v11098_v9 = vpop.f32.mrb[239].mxu0  ;;  %12135 = vmatpush1.bf16.msra.mxu1 %v15381_v8  ;;  %v12235_v45 = vor.u32 %v12234_v55, %v12230_v44  ;;  %v12239_v1 = vrot.slane %v12237_v49, 1 }
 0x622   : > { %14294 = vmatprep.subr.bf16.mxu1 %v21337_v42  ;;  %v21496_v9 = vld [vmem:[#allocation58_spill] sm:$0xff] }
 0x623   : > { %v10563_v13 = vadd.f32 %v20323_v17, %v10540_v52  ;;  %v10541_v29 = vadd.f32 %v20086_v61, %v10333_v32  ;;  %11786 = vmatmul.mubr.bf16.gmra.mrb[20].mxu1 %v21490_v53  ;;  %12418 = vmatmul.mubr.bf16.gmra.mrb[88].mxu0 %v11616_v48  ;;  %v12240_v59 = vsel %vm1917_vm5, %v12235_v45, %v12239_v1 }
 0x624   : > { %14119 = vmatprep.mubr.msk.bf16.mxu1 %vm281_vm2, %v21491_v31  ;;  %14234 = vmatprep.mubr.msk.bf16.mxu0 %vm281_vm2, %v12252_v34 }
 0x625   : > { %10580 = vst.msk [vmem:[%s20344_s19 + $0x20] sm:$0xff] %vm10575_vm8, %v10563_v13  ;;  %v10564_v60 = vadd.f32 %v20323_v17, %v10541_v29 }
 0x626   : > { %v10289_v7 = vpop.f32.mrb[172].mxu1  ;;  %v20441_v18 = vpop.f32.mrb[240].mxu0 }
 0x627   : > { %10581 = vst.msk [vmem:[%s20344_s19 + $0x28] sm:$0xff] %vm10575_vm8, %v10564_v60  ;;  %v10334_v61 = vadd.f32 %v10289_v7, %v20154_v15  ;;  %v10291_v53 = vpop.f32.mrb[173].mxu1  ;;  %v11103_v39 = vpop.f32.mrb[241].mxu0  ;;  %v21495_v15 = vld [vmem:[#allocation56_spill] sm:$0xff] }
 0x628   : > { %v10292_v30 = vpop.f32.mrb[174].mxu1  ;;  %v20446_v31 = vpop.f32.mrb[242].mxu0 }
 0x629   : > { %v10542_v46 = vadd.f32 %v20119_v38, %v10334_v61  ;;  %v10335_v8 = vadd.f32 %v10292_v30, %v20162_v37  ;;  %v10294_v56 = vpop.f32.mrb[175].mxu1  ;;  %v11106_v35 = vpop.f32.mrb[243].mxu0  ;;  %v21498_v30 = vld [vmem:[#allocation24_spill] sm:$0xff] }
 0x62b   : > { %v10565_v25 = vadd.f32 %v20323_v17, %v10542_v46  ;;  %v10543_v41 = vadd.f32 %v20124_v28, %v10335_v8  ;;  %11794 = vmatmul.mubr.bf16.gmra.mrb[24].mxu1 %v21494_v26  ;;  %12426 = vmatmul.mubr.bf16.gmra.mrb[92].mxu0 %v12240_v59 }
 0x62c   : > { %14120 = vmatprep.mubr.msk.bf16.mxu1 %vm281_vm2, %v20405_v20  ;;  %14265 = vmatprep.mubr.msk.bf16.mxu0 %vm281_vm2, %v21495_v15 }
 0x62d   : > { %10582 = vst.msk [vmem:[%s20344_s19 + $0x30] sm:$0xff] %vm10575_vm8, %v10565_v25  ;;  %v10566_v38 = vadd.f32 %v20323_v17, %v10543_v41 }
 0x62e   : > { %v10297_v37 = vpop.f32.mrb[176].mxu1  ;;  %v20461_v11 = vpop.f32.mrb[244].mxu0 }
 0x62f   : > { %10583 = vst.msk [vmem:[%s20344_s19 + $0x38] sm:$0xff] %vm10575_vm8, %v10566_v38  ;;  %v10336_v28 = vadd.f32 %v10297_v37, %v20180_v12  ;;  %v10299_v26 = vpop.f32.mrb[177].mxu1  ;;  %v11111_v0 = vpop.f32.mrb[245].mxu0  ;;  %v21497_v12 = vld [vmem:[#allocation52_spill] sm:$0xff]  ;;  %v21500_v37 = vld [vmem:[#allocation35_spill] sm:$0xff] }
 0x630   : > { %v10300_v58 = vpop.f32.mrb[178].mxu1  ;;  %v20466_v20 = vpop.f32.mrb[246].mxu0 }
 0x631   : > { %v10544_v44 = vadd.f32 %v20147_v14, %v10336_v28  ;;  %v10337_v55 = vadd.f32 %v10300_v58, %v20185_v50  ;;  %v10302_v49 = vpop.f32.mrb[179].mxu1  ;;  %v11114_v52 = vpop.f32.mrb[247].mxu0  ;;  %v21501_v28 = vld [vmem:[#allocation31_spill] sm:$0xff] }
 0x633   : > { %v10567_v32 = vadd.f32 %v20323_v17, %v10544_v44  ;;  %v10545_v33 = vadd.f32 %v20150_v36, %v10337_v55  ;;  %11802 = vmatmul.mubr.bf16.gmra.mrb[28].mxu1 %v11616_v48  ;;  %12577 = vmatmul.mubr.bf16.vlgmr.msra.gmra.mrb[96].mxu0 %v21496_v9  ;;  %v21503_v9 = vld [vmem:[#allocation39_spill] sm:$0xff] }
 0x634   : > { %14189 = vmatprep.mubr.msk.bf16.mxu1 %vm281_vm2, %v21497_v12  ;;  %v21504_v12 = vld [vmem:[#allocation75_spill] sm:$0xff] }
 0x635   : > { %10584 = vst.msk [vmem:[%s20344_s19 + $0x40] sm:$0xff] %vm10575_vm8, %v10567_v32  ;;  %v10568_v34 = vadd.f32 %v20323_v17, %v10545_v33 }
 0x636   : > { %v10305_v13 = vpop.f32.mrb[180].mxu1  ;;  %v20478_v14 = vpop.f32.mrb[248].mxu0 }
 0x637   : > { %10585 = vst.msk [vmem:[%s20344_s19 + $0x48] sm:$0xff] %vm10575_vm8, %v10568_v34  ;;  %v10338_v50 = vadd.f32 %v10305_v13, %v20209_v4  ;;  %v10307_v29 = vpop.f32.mrb[181].mxu1  ;;  %v11119_v36 = vpop.f32.mrb[249].mxu0  ;;  %v21499_v4 = vld [vmem:[#allocation27_spill] sm:$0xff]  ;;  %v21505_v34 = vld [vmem:[#allocation36_spill] sm:$0xff] }
 0x638   : > { %v10308_v48 = vpop.f32.mrb[182].mxu1  ;;  %v20483_v45 = vpop.f32.mrb[250].mxu0  ;;  %v21506_v13 = vld [vmem:[#allocation4_spill] sm:$0xff] }
 0x639   : > { %v10546_v1 = vadd.f32 %v20168_v16, %v10338_v50  ;;  %v10339_v60 = vadd.f32 %v10308_v48, %v20220_v27  ;;  %v10310_v7 = vpop.f32.mrb[183].mxu1  ;;  %v11122_v61 = vpop.f32.mrb[251].mxu0 }
 0x63a   : > { %v21508_v7 = vld [vmem:[#allocation5_spill] sm:$0xff] }
 0x63b   : > { %v10569_v53 = vadd.f32 %v20323_v17, %v10546_v1  ;;  %v10547_v39 = vadd.f32 %v20171_v47, %v10339_v60  ;;  %12149 = vmatmul.mubr.bf16.vlgmr.msra.gmra.mrb[32].mxu1 %v21498_v30  ;;  %v21507_v60 = vld [vmem:[#allocation8_spill] sm:$0xff]  ;;  %v21510_v30 = vld [vmem:[#allocation13_spill] sm:$0xff] }
 0x63c   : > { %14304 = vmatpush1.bf16.msra.mxu1 %v20177_v10  ;;  %14190 = vmatprep.mubr.msk.bf16.mxu1 %vm281_vm2, %v21499_v4  ;;  %v21511_v4 = vld [vmem:[#allocation51_spill] sm:$0xff] }
 0x63d   : > { %10586 = vst.msk [vmem:[%s20344_s19 + $0x50] sm:$0xff] %vm10575_vm8, %v10569_v53  ;;  %v10570_v59 = vadd.f32 %v20323_v17, %v10547_v39  ;;  %14295 = vmatprep.subr.bf16.mxu1 %v21337_v42  ;;  %v21509_v39 = vld [vmem:[#allocation12_spill] sm:$0xff] }
 0x63e   : > { %v10313_v16 = vpop.f32.mrb[184].mxu1  ;;  %v20497_v27 = vpop.f32.mrb[252].mxu0 }
 0x63f   : > { %10587 = vst.msk [vmem:[%s20344_s19 + $0x58] sm:$0xff] %vm10575_vm8, %v10570_v59  ;;  %v10340_v47 = vadd.f32 %v10313_v16, %v20248_v40  ;;  %v10315_v46 = vpop.f32.mrb[185].mxu1  ;;  %v11127_v8 = vpop.f32.mrb[253].mxu0 }
 0x640   : > { %v10316_v10 = vpop.f32.mrb[186].mxu1  ;;  %14305 = vmatpush1.bf16.msra.mxu1 %v20195_v54  ;;  %v20503_v56 = vpop.f32.mrb[254].mxu0 }
 0x641   : > { %v10548_v35 = vadd.f32 %v20197_v43, %v10340_v47  ;;  %v10341_v25 = vadd.f32 %v10316_v10, %v20259_v22  ;;  %v10318_v41 = vpop.f32.mrb[187].mxu1  ;;  %v11130_v15 = vpop.f32.mrb[255].mxu0  ;;  %14296 = vmatprep.subr.bf16.mxu1 %v21337_v42  ;;  %v21512_v47 = vld [vmem:[#allocation9_spill] sm:$0xff] }
 0x642   : > { %v21513_v41 = vld [vmem:[#allocation73_spill] sm:$0xff]  ;;  %v21514_v15 = vld [vmem:[#allocation72_spill] sm:$0xff] }
 0x643   : > { %v10571_v38 = vadd.f32 %v20323_v17, %v10548_v35  ;;  %v10549_v40 = vadd.f32 %v20204_v21, %v10341_v25  ;;  %12157 = vmatmul.mubr.bf16.gmra.mrb[36].mxu1 %v21500_v37 }
 0x644   : > { %14191 = vmatprep.mubr.msk.bf16.mxu1 %vm281_vm2, %v21501_v28  ;;  %14306 = vmatpush1.bf16.msra.mxu1 %v20215_v24  ;;  %v21515_v28 = vld [vmem:[#allocation64_spill] sm:$0xff] }
 0x645   : > { %10588 = vst.msk [vmem:[%s20344_s19 + $0x60] sm:$0xff] %vm10575_vm8, %v10571_v38  ;;  %v10572_v54 = vadd.f32 %v20323_v17, %v10549_v40  ;;  %14297 = vmatprep.subr.bf16.mxu1 %v21337_v42 }
 0x646   : > { %v10321_v43 = vpop.f32.mrb[188].mxu1  ;;  %v20518_v22 = vpop.f32.mrb[0].mxu0 }
 0x647   : > { %10589 = vst.msk [vmem:[%s20344_s19 + $0x68] sm:$0xff] %vm10575_vm8, %v10572_v54  ;;  %v10342_v21 = vadd.f32 %v10321_v43, %v20288_v23  ;;  %v10323_v26 = vpop.f32.mrb[189].mxu1  ;;  %v11528_v0 = vpop.f32.mrb[1].mxu0  ;;  %v21502_v23 = vld [vmem:[#allocation48_spill] sm:$0xff]  ;;  %v21516_v54 = vld [vmem:[#allocation67_spill] sm:$0xff] }
 0x648   : > { %v10324_v58 = vpop.f32.mrb[190].mxu1  ;;  %v20523_v44 = vpop.f32.mrb[2].mxu0  ;;  %14307 = vmatpush1.bf16.msra.mxu1 %v20236_v51  ;;  %v21517_v26 = vld [vmem:[#allocation49_spill] sm:$0xff] }
 0x649   : > { %v10550_v24 = vadd.f32 %v20230_v62, %v10342_v21  ;;  %v10343_v55 = vadd.f32 %v10324_v58, %v20296_v63  ;;  %v10326_v49 = vpop.f32.mrb[191].mxu1  ;;  %v11531_v52 = vpop.f32.mrb[3].mxu0  ;;  %14298 = vmatprep.subr.bf16.mxu1 %v21337_v42 }
 0x64b   : > { %v10573_v32 = vadd.f32 %v20323_v17, %v10550_v24  ;;  %v10551_v33 = vadd.f32 %v21502_v23, %v10343_v55  ;;  %12165 = vmatmul.mubr.bf16.gmra.mrb[40].mxu1 %v21503_v9  ;;  %v21518_v23 = vld [vmem:[#allocation19_spill] sm:$0xff] }
 0x64c   : > { %14192 = vmatprep.mubr.msk.bf16.mxu1 %vm281_vm2, %v21504_v12  ;;  %14308 = vmatpush1.bf16.msra.mxu1 %v21505_v34 }
 0x64d   : > { %10590 = vst.msk [vmem:[%s20344_s19 + $0x70] sm:$0xff] %vm10575_vm8, %v10573_v32  ;;  %v10574_v62 = vadd.f32 %v20323_v17, %v10551_v33  ;;  %14299 = vmatprep.subr.bf16.mxu1 %v21337_v42  ;;  %v8062_v33 = vld [vmem:[#allocation3 + $0x338] sm:$0xff] }
 0x64e   : > { %v10894_v51 = vpop.f32.mrb[192].mxu1  ;;  %v20539_v63 = vpop.f32.mrb[4].mxu0 }
 0x64f   : > { %10591 = vst.msk [vmem:[%s20344_s19 + $0x78] sm:$0xff] %vm10575_vm8, %v10574_v62  ;;  %v20544_v50 = vadd.f32 %v21506_v13, %v10894_v51  ;;  %v10896_v29 = vpop.f32.mrb[193].mxu1  ;;  %v11536_v36 = vpop.f32.mrb[5].mxu0 }
 0x650   : > { %v10897_v48 = vpop.f32.mrb[194].mxu1  ;;  %v20546_v1 = vpop.f32.mrb[6].mxu0  ;;  %14309 = vmatpush1.bf16.msra.mxu1 %v21507_v60 }
 0x651   : > { %v20550_v61 = vadd.f32 %v21508_v7, %v10897_v48  ;;  %v10899_v17 = vpop.f32.mrb[195].mxu1  ;;  %v11539_v53 = vpop.f32.mrb[7].mxu0  ;;  %14300 = vmatprep.subr.bf16.mxu1 %v21337_v42  ;;  %v21521_v7 = vld [vmem:[#allocation26_spill] sm:$0xff] }
 0x652   : > { %v8061_v17 = vld [vmem:[#allocation3 + $0x330] sm:$0xff] }
 0x653   : > { %12173 = vmatmul.mubr.bf16.gmra.mrb[44].mxu1 %v21509_v39 }
 0x654   : > { %14193 = vmatprep.mubr.msk.bf16.mxu1 %vm281_vm2, %v21510_v30  ;;  %14310 = vmatpush1.bf16.msra.mxu1 %v21511_v4 }
 0x655   : > { %14301 = vmatprep.subr.bf16.mxu1 %v21337_v42 }
 0x656   : > { %v10902_v59 = vpop.f32.mrb[196].mxu1  ;;  %v20558_v16 = vpop.f32.mrb[8].mxu0 }
 0x657   : > { %v20561_v46 = vadd.f32 %v21512_v47, %v10902_v59  ;;  %v10904_v8 = vpop.f32.mrb[197].mxu1  ;;  %v11544_v10 = vpop.f32.mrb[9].mxu0  ;;  %v8099_v59 = vpack.c.bf16 %v20384_v3, %v8061_v17 }
 0x658   : > { %v10905_v35 = vpop.f32.mrb[198].mxu1  ;;  %v20563_v25 = vpop.f32.mrb[10].mxu0  ;;  %14311 = vmatpush1.bf16.msra.mxu1 %v21513_v41  ;;  %v21522_v41 = vld [vmem:[#allocation33_spill] sm:$0xff] }
 0x659   : > { %v20567_v38 = vadd.f32 %v21514_v15, %v10905_v35  ;;  %v10907_v40 = vpop.f32.mrb[199].mxu1  ;;  %v11547_v37 = vpop.f32.mrb[11].mxu0  ;;  %14302 = vmatprep.subr.bf16.mxu1 %v21337_v42 }
 0x65b   : > { %12181 = vmatmul.mubr.bf16.gmra.mrb[48].mxu1 %v21515_v28 }
 0x65c   : > { %14194 = vmatprep.mubr.msk.bf16.mxu1 %vm281_vm2, %v21516_v54  ;;  %14312 = vmatpush1.bf16.msra.mxu1 %v20371_v57 }
 0x65d   : > { %14303 = vmatprep.subr.bf16.mxu1 %v21337_v42  ;;  %v21519_v42 = vld [vmem:[#allocation25_spill] sm:$0xff] }
 0x65e   : > { %v10910_v43 = vpop.f32.mrb[200].mxu1  ;;  %v20575_v21 = vpop.f32.mrb[12].mxu0 }
 0x65f   : > { %v20578_v0 = vadd.f32 %v21517_v26, %v10910_v43  ;;  %v10912_v58 = vpop.f32.mrb[201].mxu1  ;;  %v11552_v24 = vpop.f32.mrb[13].mxu0 }
 0x660   : > { %v10913_v55 = vpop.f32.mrb[202].mxu1  ;;  %v20580_v49 = vpop.f32.mrb[14].mxu0  ;;  %14313 = vmatpush1.bf16.msra.mxu1 %v20396_v5  ;;  %v21523_v24 = vld [vmem:[#allocation62_spill] sm:$0xff] }
 0x661   : > { %v20584_v52 = vadd.f32 %v20381_v6, %v10913_v55  ;;  %v10915_v32 = vpop.f32.mrb[203].mxu1  ;;  %v11555_v57 = vpop.f32.mrb[15].mxu0  ;;  %v21520_v6 = vld [vmem:[#allocation50_spill] sm:$0xff] }
 0x662   : > { %v8100_v29 = vpack.c.bf16 %v21520_v6, %v8062_v33  ;;  %v21524_v55 = vld [vmem:[#allocation38_spill] sm:$0xff] }
 0x663   : > { %12189 = vmatmul.mubr.bf16.gmra.mrb[52].mxu1 %v21518_v23 }
 0x664   : > { %14195 = vmatprep.mubr.msk.bf16.mxu1 %vm281_vm2, %v21519_v42 }
 0x666   : > { %v10918_v9 = vpop.f32.mrb[204].mxu1  ;;  %v20589_v12 = vpop.f32.mrb[16].mxu0 }
 0x667   : > { %v20592_v34 = vadd.f32 %v20419_v2, %v10918_v9  ;;  %v10920_v62 = vpop.f32.mrb[205].mxu1  ;;  %v11560_v51 = vpop.f32.mrb[17].mxu0 }
 0x668   : > { %v10921_v5 = vpop.f32.mrb[206].mxu1  ;;  %v20594_v13 = vpop.f32.mrb[18].mxu0 }
 0x669   : > { %v20598_v36 = vadd.f32 %v20425_v19, %v10921_v5  ;;  %v10923_v48 = vpop.f32.mrb[207].mxu1  ;;  %v11563_v60 = vpop.f32.mrb[19].mxu0  ;;  %v21525_v5 = vld [vmem:[#allocation63_spill] sm:$0xff] }
 0x66b   : > { %12197 = vmatmul.mubr.bf16.gmra.mrb[56].mxu1 %v21521_v7 }
 0x66c   : > { %14196 = vmatprep.mubr.msk.bf16.mxu1 %vm281_vm2, %v8100_v29  ;;  %v21526_v29 = vld [vmem:[#allocation40_spill] sm:$0xff] }
 0x66e   : > { %v10926_v53 = vpop.f32.mrb[208].mxu1  ;;  %v20602_v2 = vpop.f32.mrb[20].mxu0 }
 0x66f   : > { %v20605_v39 = vadd.f32 %v20441_v18, %v10926_v53  ;;  %v10928_v30 = vpop.f32.mrb[209].mxu1  ;;  %v11568_v4 = vpop.f32.mrb[21].mxu0 }
 0x670   : > { %v10929_v47 = vpop.f32.mrb[210].mxu1  ;;  %v20608_v19 = vpop.f32.mrb[22].mxu0 }
 0x671   : > { %v20611_v8 = vadd.f32 %v20446_v31, %v10929_v47  ;;  %v10931_v10 = vpop.f32.mrb[211].mxu1  ;;  %v11571_v35 = vpop.f32.mrb[23].mxu0  ;;  %v21527_v47 = vld [vmem:[#allocation42_spill] sm:$0xff] }
 0x672   : > { %v21528_v10 = vld [vmem:[#allocation66_spill] sm:$0xff] }
 0x673   : > { %12205 = vmatmul.mubr.bf16.gmra.mrb[60].mxu1 %v8099_v59 }
 0x674   : > { %14266 = vmatprep.mubr.msk.bf16.mxu1 %vm281_vm2, %v21522_v41 }
 0x676   : > { %v10934_v15 = vpop.f32.mrb[212].mxu1  ;;  %v20615_v40 = vpop.f32.mrb[24].mxu0 }
 0x677   : > { %v20618_v18 = vadd.f32 %v20461_v11, %v10934_v15  ;;  %v10936_v37 = vpop.f32.mrb[213].mxu1  ;;  %v11576_v28 = vpop.f32.mrb[25].mxu0 }
 0x678   : > { %v10937_v54 = vpop.f32.mrb[214].mxu1  ;;  %v20620_v43 = vpop.f32.mrb[26].mxu0 }
 0x679   : > { %v20623_v31 = vadd.f32 %v20466_v20, %v10937_v54  ;;  %v10939_v26 = vpop.f32.mrb[215].mxu1  ;;  %v11579_v58 = vpop.f32.mrb[27].mxu0 }
 0x67b   : > { %12585 = vmatmul.mubr.bf16.vlgmr.msra.gmra.mrb[64].mxu1 %v21523_v24 }
 0x67c   : > { %14267 = vmatprep.mubr.msk.bf16.mxu1 %vm281_vm2, %v21524_v55  ;;  %v21529_v55 = vld [vmem:[#allocation45_spill] sm:$0xff] }
 0x67e   : > { %v10942_v32 = vpop.f32.mrb[216].mxu1  ;;  %v20628_v57 = vpop.f32.mrb[28].mxu0 }
 0x67f   : > { %v20631_v11 = vadd.f32 %v20478_v14, %v10942_v32  ;;  %v10944_v23 = vpop.f32.mrb[217].mxu1  ;;  %v11584_v42 = vpop.f32.mrb[29].mxu0 }
 0x680   : > { %v10945_v33 = vpop.f32.mrb[218].mxu1  ;;  %v20633_v9 = vpop.f32.mrb[30].mxu0  ;;  %v21530_v23 = vld [vmem:[#allocation46_spill] sm:$0xff] }
 0x681   : > { %v20636_v20 = vadd.f32 %v20483_v45, %v10945_v33  ;;  %v10947_v62 = vpop.f32.mrb[219].mxu1  ;;  %v11587_v51 = vpop.f32.mrb[31].mxu0  ;;  %v8314_v33 = vld [vmem:[#allocation3 + $0x338] sm:$0xfc] }
 0x682   : > { %v8316_v62 = vld [vmem:[#allocation3 + $0x358] sm:$0x3] }
 0x683   : > { %12593 = vmatmul.mubr.bf16.gmra.mrb[68].mxu1 %v21525_v5 }
 0x684   : > { %14268 = vmatprep.mubr.msk.bf16.mxu1 %vm281_vm2, %v21526_v29 }
 0x686   : > { %v10950_v48 = vpop.f32.mrb[220].mxu1  ;;  %v20641_v60 = vpop.f32.mrb[32].mxu0 }
 0x687   : > { %v20644_v14 = vadd.f32 %v20497_v27, %v10950_v48  ;;  %v10952_v7 = vpop.f32.mrb[221].mxu1  ;;  %v11956_v17 = vpop.f32.mrb[33].mxu0 }
 0x688   : > { %v10953_v53 = vpop.f32.mrb[222].mxu1  ;;  %v20646_v30 = vpop.f32.mrb[34].mxu0  ;;  %v8386_v17 = vpack.c.bf16 %v21520_v6, %v8314_v33 }
 0x689   : > { %v20649_v45 = vadd.f32 %v20503_v56, %v10953_v53  ;;  %v10955_v4 = vpop.f32.mrb[223].mxu1  ;;  %v11959_v59 = vpop.f32.mrb[35].mxu0  ;;  %v8388_v53 = vpack.c.bf16 %v8316_v62, %v8316_v62 }
 0x68a   : > { %v21531_v59 = vld [vmem:[#allocation69_spill] sm:$0xff] }
 0x68b   : > { %12601 = vmatmul.mubr.bf16.gmra.mrb[72].mxu1 %v21527_v47 }
 0x68c   : > { %14269 = vmatprep.mubr.msk.bf16.mxu1 %vm281_vm2, %v21528_v10  ;;  %v12457_v10 = vrot.slane %v8386_v17, 1 }
 0x68e   : > { %v11330_v35 = vpop.f32.mrb[224].mxu1  ;;  %v20654_v41 = vpop.f32.mrb[36].mxu0 }
 0x68f   : > { %v11393_v27 = vadd.f32 %v11330_v35, %v20544_v50  ;;  %v11332_v15 = vpop.f32.mrb[225].mxu1  ;;  %v11964_v37 = vpop.f32.mrb[37].mxu0  ;;  %v12458_v35 = vrot.slane %v8388_v53, 1 }
 0x690   : > { %v11333_v28 = vpop.f32.mrb[226].mxu1  ;;  %v20657_v54 = vpop.f32.mrb[38].mxu0 }
 0x691   : > { %v11394_v56 = vadd.f32 %v11333_v28, %v20550_v61  ;;  %v11335_v26 = vpop.f32.mrb[227].mxu1  ;;  %v11967_v58 = vpop.f32.mrb[39].mxu0  ;;  %v20661_v24 = vadd.f32 %v20518_v22, %v11393_v27  ;;  %v8313_v27 = vld [vmem:[#allocation3 + $0x330] sm:$0xfc]  ;;  %v12459_v33 = vsel %vm2645_vm14, %v12457_v10, %v12458_v35 }
 0x693   : > { %12609 = vmatmul.mubr.bf16.gmra.mrb[76].mxu1 %v21529_v55  ;;  %v20665_v32 = vadd.f32 %v20523_v44, %v11394_v56 }
 0x694   : > { %14270 = vmatprep.mubr.msk.bf16.mxu1 %vm281_vm2, %v21530_v23 }
 0x696   : > { %v11338_v50 = vpop.f32.mrb[228].mxu1  ;;  %v20669_v42 = vpop.f32.mrb[40].mxu0 }
 0x697   : > { %v11395_v61 = vadd.f32 %v11338_v50, %v20561_v46  ;;  %v11340_v51 = vpop.f32.mrb[229].mxu1  ;;  %v11972_v5 = vpop.f32.mrb[41].mxu0  ;;  %v21532_v46 = vld [vmem:[#allocation47_spill] sm:$0xff] }
 0x698   : > { %v11341_v29 = vpop.f32.mrb[230].mxu1  ;;  %v20672_v22 = vpop.f32.mrb[42].mxu0 }
 0x699   : > { %v11396_v48 = vadd.f32 %v11341_v29, %v20567_v38  ;;  %v11343_v7 = vpop.f32.mrb[231].mxu1  ;;  %v11975_v44 = vpop.f32.mrb[43].mxu0  ;;  %v20677_v4 = vadd.f32 %v20539_v63, %v11395_v61  ;;  %v8315_v38 = vld [vmem:[#allocation3 + $0x350] sm:$0x3]  ;;  %v21533_v61 = vld [vmem:[#allocation71_spill] sm:$0xff] }
 0x69a   : > { %v8387_v58 = vpack.c.bf16 %v8315_v38, %v8315_v38 }
 0x69b   : > { %12617 = vmatmul.mubr.bf16.gmra.mrb[80].mxu1 %v21531_v59  ;;  %v20681_v47 = vadd.f32 %v20546_v1, %v11396_v48  ;;  %v8385_v1 = vpack.c.bf16 %v20384_v3, %v8313_v27 }
 0x69c   : > { %14271 = vmatprep.mubr.msk.bf16.mxu1 %vm281_vm2, %v21532_v46  ;;  %v12455_v5 = vrot.slane %v8387_v58, 1 }
 0x69d   : > { %v12454_v51 = vrot.slane %v8385_v1, 1 }
 0x69e   : > { %v11346_v15 = vpop.f32.mrb[232].mxu1  ;;  %v20685_v37 = vpop.f32.mrb[44].mxu0 }
 0x69f   : > { %v11397_v6 = vadd.f32 %v11346_v15, %v20578_v0  ;;  %v11348_v28 = vpop.f32.mrb[233].mxu1  ;;  %v11980_v63 = vpop.f32.mrb[45].mxu0 }
 0x6a0   : > { %v11349_v56 = vpop.f32.mrb[234].mxu1  ;;  %v20688_v26 = vpop.f32.mrb[46].mxu0 }
 0x6a1   : > { %v11398_v55 = vadd.f32 %v11349_v56, %v20584_v52  ;;  %v11351_v23 = vpop.f32.mrb[235].mxu1  ;;  %v11983_v50 = vpop.f32.mrb[47].mxu0  ;;  %v20694_v62 = vadd.f32 %v20558_v16, %v11397_v6  ;;  %v12456_v16 = vsel %vm2645_vm14, %v12454_v51, %v12455_v5 }
 0x6a3   : > { %12625 = vmatmul.mubr.bf16.gmra.mrb[84].mxu1 %v21533_v61  ;;  %v20698_v0 = vadd.f32 %v20563_v25, %v11398_v55 }
 0x6a4   : > { %14272 = vmatprep.mubr.msk.bf16.mxu1 %vm281_vm2, %v12459_v33 }
 0x6a6   : > { %v11354_v3 = vpop.f32.mrb[236].mxu1  ;;  %v20701_v29 = vpop.f32.mrb[48].mxu0 }
 0x6a7   : > { %v11399_v52 = vadd.f32 %v11354_v3, %v20592_v34  ;;  %v11356_v48 = vpop.f32.mrb[237].mxu1  ;;  %v11988_v7 = vpop.f32.mrb[49].mxu0 }
 0x6a8   : > { %v11357_v44 = vpop.f32.mrb[238].mxu1  ;;  %v20705_v17 = vpop.f32.mrb[50].mxu0 }
 0x6a9   : > { %v11400_v53 = vadd.f32 %v11357_v44, %v20598_v36  ;;  %v11359_v25 = vpop.f32.mrb[239].mxu1  ;;  %v11991_v59 = vpop.f32.mrb[51].mxu0  ;;  %v20709_v46 = vadd.f32 %v20575_v21, %v11399_v52 }
 0x6ab   : > { %12633 = vmatmul.mubr.bf16.gmra.mrb[88].mxu1 %v12456_v16  ;;  %v20712_v10 = vadd.f32 %v20580_v49, %v11400_v53 }
 0x6ae   : > { %v11362_v35 = vpop.f32.mrb[240].mxu1  ;;  %v20714_v34 = vpop.f32.mrb[52].mxu0 }
 0x6af   : > { %v11401_v27 = vadd.f32 %v11362_v35, %v20605_v39  ;;  %v11364_v38 = vpop.f32.mrb[241].mxu1  ;;  %v11996_v15 = vpop.f32.mrb[53].mxu0 }
 0x6b0   : > { %v11365_v6 = vpop.f32.mrb[242].mxu1  ;;  %v20717_v28 = vpop.f32.mrb[54].mxu0 }
 0x6b1   : > { %v11402_v36 = vadd.f32 %v11365_v6, %v20611_v8  ;;  %v11367_v63 = vpop.f32.mrb[243].mxu1  ;;  %v11999_v56 = vpop.f32.mrb[55].mxu0  ;;  %v20721_v21 = vadd.f32 %v20589_v12, %v11401_v27 }
 0x6b3   : > { %v20724_v49 = vadd.f32 %v20594_v13, %v11402_v36 }
 0x6b6   : > { %v11370_v1 = vpop.f32.mrb[244].mxu1  ;;  %v20726_v58 = vpop.f32.mrb[56].mxu0 }
 0x6b7   : > { %v11403_v39 = vadd.f32 %v11370_v1, %v20618_v18  ;;  %v11372_v55 = vpop.f32.mrb[245].mxu1  ;;  %v12004_v23 = vpop.f32.mrb[57].mxu0 }
 0x6b8   : > { %v11373_v50 = vpop.f32.mrb[246].mxu1  ;;  %v20729_v33 = vpop.f32.mrb[58].mxu0 }
 0x6b9   : > { %v11404_v8 = vadd.f32 %v11373_v50, %v20623_v31  ;;  %v11375_v61 = vpop.f32.mrb[247].mxu1  ;;  %v12007_v51 = vpop.f32.mrb[59].mxu0  ;;  %v20733_v12 = vadd.f32 %v20602_v2, %v11403_v39 }
 0x6bb   : > { %v20736_v13 = vadd.f32 %v20608_v19, %v11404_v8 }
 0x6be   : > { %v11378_v5 = vpop.f32.mrb[248].mxu1  ;;  %v20738_v3 = vpop.f32.mrb[60].mxu0 }
 0x6bf   : > { %v11405_v18 = vadd.f32 %v11378_v5, %v20631_v11  ;;  %v11380_v52 = vpop.f32.mrb[249].mxu1  ;;  %v12012_v48 = vpop.f32.mrb[61].mxu0 }
 0x6c0   : > { %v11381_v7 = vpop.f32.mrb[250].mxu1  ;;  %v20741_v44 = vpop.f32.mrb[62].mxu0 }
 0x6c1   : > { %v11406_v31 = vadd.f32 %v11381_v7, %v20636_v20  ;;  %v11383_v16 = vpop.f32.mrb[251].mxu1  ;;  %v12015_v53 = vpop.f32.mrb[63].mxu0  ;;  %v20745_v2 = vadd.f32 %v20615_v40, %v11405_v18 }
 0x6c3   : > { %v20748_v19 = vadd.f32 %v20620_v43, %v11406_v31 }
 0x6c6   : > { %v11386_v25 = vpop.f32.mrb[252].mxu1  ;;  %v20750_v59 = vpop.f32.mrb[64].mxu0 }
 0x6c7   : > { %v11407_v11 = vadd.f32 %v11386_v25, %v20644_v14  ;;  %v11388_v35 = vpop.f32.mrb[253].mxu1  ;;  %v12373_v27 = vpop.f32.mrb[65].mxu0 }
 0x6c8   : > { %v11389_v38 = vpop.f32.mrb[254].mxu1  ;;  %v20753_v15 = vpop.f32.mrb[66].mxu0 }
 0x6c9   : > { %v11408_v20 = vadd.f32 %v11389_v38, %v20649_v45  ;;  %v11391_v6 = vpop.f32.mrb[255].mxu1  ;;  %v12376_v36 = vpop.f32.mrb[67].mxu0  ;;  %v20757_v40 = vadd.f32 %v20628_v57, %v11407_v11 }
 0x6cb   : > { %v20760_v43 = vadd.f32 %v20633_v9, %v11408_v20 }
 0x6ce   : > { %v11747_v63 = vpop.f32.mrb[0].mxu1  ;;  %v20762_v56 = vpop.f32.mrb[68].mxu0 }
 0x6cf   : > { %v11810_v14 = vadd.f32 %v11747_v63, %v20661_v24  ;;  %v11749_v1 = vpop.f32.mrb[1].mxu1  ;;  %v12381_v39 = vpop.f32.mrb[69].mxu0 }
 0x6d0   : > { %v11750_v55 = vpop.f32.mrb[2].mxu1  ;;  %v20765_v23 = vpop.f32.mrb[70].mxu0 }
 0x6d1   : > { %v11811_v45 = vadd.f32 %v11750_v55, %v20665_v32  ;;  %v11752_v50 = vpop.f32.mrb[3].mxu1  ;;  %v12384_v8 = vpop.f32.mrb[71].mxu0  ;;  %v20769_v57 = vadd.f32 %v20641_v60, %v11810_v14 }
 0x6d3   : > { %v20772_v9 = vadd.f32 %v20646_v30, %v11811_v45 }
 0x6d6   : > { %v11755_v61 = vpop.f32.mrb[4].mxu1  ;;  %v20774_v51 = vpop.f32.mrb[72].mxu0 }
 0x6d7   : > { %v11812_v24 = vadd.f32 %v11755_v61, %v20677_v4  ;;  %v11757_v5 = vpop.f32.mrb[5].mxu1  ;;  %v12389_v18 = vpop.f32.mrb[73].mxu0 }
 0x6d8   : > { %v11758_v52 = vpop.f32.mrb[6].mxu1  ;;  %v20777_v48 = vpop.f32.mrb[74].mxu0 }
 0x6d9   : > { %v11813_v32 = vadd.f32 %v11758_v52, %v20681_v47  ;;  %v11760_v7 = vpop.f32.mrb[7].mxu1  ;;  %v12392_v31 = vpop.f32.mrb[75].mxu0  ;;  %v20781_v60 = vadd.f32 %v20654_v41, %v11812_v24 }
 0x6db   : > { %v20784_v30 = vadd.f32 %v20657_v54, %v11813_v32 }
 0x6de   : > { %v11763_v16 = vpop.f32.mrb[8].mxu1  ;;  %v20786_v53 = vpop.f32.mrb[76].mxu0 }
 0x6df   : > { %v11814_v4 = vadd.f32 %v11763_v16, %v20694_v62  ;;  %v11765_v25 = vpop.f32.mrb[9].mxu1  ;;  %v12397_v11 = vpop.f32.mrb[77].mxu0 }
 0x6e0   : > { %v11766_v35 = vpop.f32.mrb[10].mxu1  ;;  %v20789_v27 = vpop.f32.mrb[78].mxu0 }
 0x6e1   : > { %v11815_v47 = vadd.f32 %v11766_v35, %v20698_v0  ;;  %v11768_v38 = vpop.f32.mrb[11].mxu1  ;;  %v12400_v20 = vpop.f32.mrb[79].mxu0  ;;  %v20793_v41 = vadd.f32 %v20669_v42, %v11814_v4 }
 0x6e3   : > { %v20796_v54 = vadd.f32 %v20672_v22, %v11815_v47 }
 0x6e6   : > { %v11771_v6 = vpop.f32.mrb[12].mxu1  ;;  %v20798_v36 = vpop.f32.mrb[80].mxu0 }
 0x6e7   : > { %v11816_v62 = vadd.f32 %v11771_v6, %v20709_v46  ;;  %v11773_v63 = vpop.f32.mrb[13].mxu1  ;;  %v12405_v14 = vpop.f32.mrb[81].mxu0 }
 0x6e8   : > { %v11774_v1 = vpop.f32.mrb[14].mxu1  ;;  %v20801_v39 = vpop.f32.mrb[82].mxu0 }
 0x6e9   : > { %v11817_v0 = vadd.f32 %v11774_v1, %v20712_v10  ;;  %v11776_v55 = vpop.f32.mrb[15].mxu1  ;;  %v12408_v45 = vpop.f32.mrb[83].mxu0  ;;  %v20805_v42 = vadd.f32 %v20685_v37, %v11816_v62 }
 0x6eb   : > { %v20808_v22 = vadd.f32 %v20688_v26, %v11817_v0 }
 0x6ee   : > { %v11779_v50 = vpop.f32.mrb[16].mxu1  ;;  %v20810_v8 = vpop.f32.mrb[84].mxu0 }
 0x6ef   : > { %v11818_v46 = vadd.f32 %v11779_v50, %v20721_v21  ;;  %v11781_v61 = vpop.f32.mrb[17].mxu1  ;;  %v12413_v24 = vpop.f32.mrb[85].mxu0 }
 0x6f0   : > { %v11782_v5 = vpop.f32.mrb[18].mxu1  ;;  %v20813_v18 = vpop.f32.mrb[86].mxu0 }
 0x6f1   : > { %v11819_v10 = vadd.f32 %v11782_v5, %v20724_v49  ;;  %v11784_v52 = vpop.f32.mrb[19].mxu1  ;;  %v12416_v32 = vpop.f32.mrb[87].mxu0  ;;  %v20817_v37 = vadd.f32 %v20701_v29, %v11818_v46 }
 0x6f3   : > { %v20820_v26 = vadd.f32 %v20705_v17, %v11819_v10 }
 0x6f6   : > { %v11787_v7 = vpop.f32.mrb[20].mxu1  ;;  %v20822_v31 = vpop.f32.mrb[88].mxu0 }
 0x6f7   : > { %v11820_v21 = vadd.f32 %v11787_v7, %v20733_v12  ;;  %v11789_v16 = vpop.f32.mrb[21].mxu1  ;;  %v12421_v4 = vpop.f32.mrb[89].mxu0 }
 0x6f8   : > { %v11790_v25 = vpop.f32.mrb[22].mxu1  ;;  %v20825_v11 = vpop.f32.mrb[90].mxu0  ;;  %v20860_v4 = vld [vmem:[%s20957_s6] ss:$0 sm:$0xff] }
 0x6f9   : > { %v11821_v49 = vadd.f32 %v11790_v25, %v20736_v13  ;;  %v11792_v35 = vpop.f32.mrb[23].mxu1  ;;  %v12424_v47 = vpop.f32.mrb[91].mxu0  ;;  %v20829_v29 = vadd.f32 %v20714_v34, %v11820_v21 }
 0x6fb   : > { %v20832_v17 = vadd.f32 %v20717_v28, %v11821_v49 }
 0x6fe   : > { %v11795_v38 = vpop.f32.mrb[24].mxu1  ;;  %v20834_v20 = vpop.f32.mrb[92].mxu0 }
 0x6ff   : > { %v11822_v12 = vadd.f32 %v11795_v38, %v20745_v2  ;;  %v11797_v6 = vpop.f32.mrb[25].mxu1  ;;  %v12429_v62 = vpop.f32.mrb[93].mxu0 }
 0x700   : > { %v11798_v63 = vpop.f32.mrb[26].mxu1  ;;  %v20837_v14 = vpop.f32.mrb[94].mxu0 }
 0x701   : > { %v11823_v13 = vadd.f32 %v11798_v63, %v20748_v19  ;;  %v11800_v1 = vpop.f32.mrb[27].mxu1  ;;  %v12432_v0 = vpop.f32.mrb[95].mxu0  ;;  %v20841_v34 = vadd.f32 %v20726_v58, %v11822_v12 }
 0x703   : > { %v20844_v28 = vadd.f32 %v20729_v33, %v11823_v13 }
 0x706   : > { %v11803_v55 = vpop.f32.mrb[28].mxu1  ;;  %v12578_v45 = vpop.f32.mrb[96].mxu0 }
 0x707   : > { %v11824_v50 = vadd.f32 %v11803_v55, %v20757_v40  ;;  %v11805_v2 = vpop.f32.mrb[29].mxu1  ;;  %v12580_v46 = vpop.f32.mrb[97].mxu0 }
 0x708   : > { %v11806_v61 = vpop.f32.mrb[30].mxu1  ;;  %v12581_v24 = vpop.f32.mrb[98].mxu0 }
 0x709   : > { %v11825_v5 = vadd.f32 %v11806_v61, %v20760_v43  ;;  %v11808_v10 = vpop.f32.mrb[31].mxu1  ;;  %v12583_v19 = vpop.f32.mrb[99].mxu0  ;;  %v20849_v52 = vadd.f32 %v20738_v3, %v11824_v50 }
 0x70b   : > { %v20852_v58 = vadd.f32 %v20741_v44, %v11825_v5 }
 0x70e   : > { %v12150_v33 = vpop.f32.mrb[32].mxu1 }
 0x70f   : > { %v12213_v32 = vadd.f32 %v12150_v33, %v20769_v57  ;;  %v12152_v7 = vpop.f32.mrb[33].mxu1 }
 0x710   : > { %v12153_v40 = vpop.f32.mrb[34].mxu1 }
 0x711   : > { %v12434_v21 = vadd.f32 %v20750_v59, %v12213_v32  ;;  %v12214_v16 = vadd.f32 %v12153_v40, %v20772_v9  ;;  %v12155_v43 = vpop.f32.mrb[35].mxu1 }
 0x713   : > { %v12641_v3 = vadd.f32 %v12578_v45, %v12434_v21  ;;  %v12435_v44 = vadd.f32 %v20753_v15, %v12214_v16 }
 0x715   : > { %v12664_v25 = vadd.f32 %v20860_v4, %v12641_v3  ;;  %v12642_v49 = vadd.f32 %v12581_v24, %v12435_v44 }
 0x716   : > { %v12158_v57 = vpop.f32.mrb[36].mxu1 }
 0x717   : > { %14274 = vst.msk [vmem:[%s20344_s19 + $0x80] sm:$0xff] %vm10575_vm8, %v12664_v25  ;;  %v12665_v35 = vadd.f32 %v20860_v4, %v12642_v49  ;;  %v12215_v59 = vadd.f32 %v12158_v57, %v20781_v60  ;;  %v12160_v9 = vpop.f32.mrb[37].mxu1 }
 0x718   : > { %v12161_v47 = vpop.f32.mrb[38].mxu1 }
 0x719   : > { %14275 = vst.msk [vmem:[%s20344_s19 + $0x88] sm:$0xff] %vm10575_vm8, %v12665_v35  ;;  %v12216_v38 = vadd.f32 %v12161_v47, %v20784_v30  ;;  %v12163_v12 = vpop.f32.mrb[39].mxu1  ;;  %v12436_v6 = vadd.f32 %v20762_v56, %v12215_v59 }
 0x71b   : > { %v12437_v15 = vadd.f32 %v20765_v23, %v12216_v38 }
 0x71e   : > { %v12166_v62 = vpop.f32.mrb[40].mxu1 }
 0x71f   : > { %v12217_v63 = vadd.f32 %v12166_v62, %v20793_v41  ;;  %v12168_v13 = vpop.f32.mrb[41].mxu1 }
 0x720   : > { %v12169_v1 = vpop.f32.mrb[42].mxu1 }
 0x721   : > { %v12218_v0 = vadd.f32 %v12169_v1, %v20796_v54  ;;  %v12171_v55 = vpop.f32.mrb[43].mxu1  ;;  %v12438_v60 = vadd.f32 %v20774_v51, %v12217_v63 }
 0x723   : > { %v12439_v45 = vadd.f32 %v20777_v48, %v12218_v0 }
 0x726   : > { %v12174_v50 = vpop.f32.mrb[44].mxu1 }
 0x727   : > { %v12219_v30 = vadd.f32 %v12174_v50, %v20805_v42  ;;  %v12176_v2 = vpop.f32.mrb[45].mxu1 }
 0x728   : > { %v12177_v46 = vpop.f32.mrb[46].mxu1 }
 0x729   : > { %v12220_v56 = vadd.f32 %v12177_v46, %v20808_v22  ;;  %v12179_v23 = vpop.f32.mrb[47].mxu1  ;;  %v12440_v61 = vadd.f32 %v20786_v53, %v12219_v30 }
 0x72b   : > { %v12441_v41 = vadd.f32 %v20789_v27, %v12220_v56 }
 0x72e   : > { %v12182_v24 = vpop.f32.mrb[48].mxu1 }
 0x72f   : > { %v12221_v54 = vadd.f32 %v12182_v24, %v20817_v37  ;;  %v12184_v5 = vpop.f32.mrb[49].mxu1 }
 0x730   : > { %v12185_v10 = vpop.f32.mrb[50].mxu1 }
 0x731   : > { %v12222_v51 = vadd.f32 %v12185_v10, %v20820_v26  ;;  %v12187_v48 = vpop.f32.mrb[51].mxu1  ;;  %v12442_v19 = vadd.f32 %v20798_v36, %v12221_v54 }
 0x733   : > { %v12443_v42 = vadd.f32 %v20801_v39, %v12222_v51 }
 0x736   : > { %v12190_v33 = vpop.f32.mrb[52].mxu1 }
 0x737   : > { %v12223_v22 = vadd.f32 %v12190_v33, %v20829_v29  ;;  %v12192_v32 = vpop.f32.mrb[53].mxu1 }
 0x738   : > { %v12193_v7 = vpop.f32.mrb[54].mxu1 }
 0x739   : > { %v12224_v53 = vadd.f32 %v12193_v7, %v20832_v17  ;;  %v12195_v27 = vpop.f32.mrb[55].mxu1  ;;  %v12444_v40 = vadd.f32 %v20810_v8, %v12223_v22 }
 0x73b   : > { %v12445_v37 = vadd.f32 %v20813_v18, %v12224_v53 }
 0x73e   : > { %v12198_v21 = vpop.f32.mrb[56].mxu1 }
 0x73f   : > { %v12225_v26 = vadd.f32 %v12198_v21, %v20841_v34  ;;  %v12200_v16 = vpop.f32.mrb[57].mxu1 }
 0x740   : > { %v12201_v43 = vpop.f32.mrb[58].mxu1 }
 0x741   : > { %v12226_v36 = vadd.f32 %v12201_v43, %v20844_v28  ;;  %v12203_v39 = vpop.f32.mrb[59].mxu1  ;;  %v12446_v3 = vadd.f32 %v20822_v31, %v12225_v26 }
 0x743   : > { %v20893_v29 = vadd.f32 %v20825_v11, %v12226_v36 }
 0x746   : > { %v12206_v17 = vpop.f32.mrb[60].mxu1 }
 0x747   : > { %v12227_v44 = vadd.f32 %v12206_v17, %v20849_v52  ;;  %v12208_v8 = vpop.f32.mrb[61].mxu1 }
 0x748   : > { %v12209_v18 = vpop.f32.mrb[62].mxu1 }
 0x749   : > { %v12228_v25 = vadd.f32 %v12209_v18, %v20852_v58  ;;  %v12211_v34 = vpop.f32.mrb[63].mxu1  ;;  %v20898_v49 = vadd.f32 %v20834_v20, %v12227_v44 }
 0x74b   : > { %v20901_v28 = vadd.f32 %v20837_v14, %v12228_v25 }
 0x74e   : > { %v12586_v31 = vpop.f32.mrb[64].mxu1 }
 0x74f   : > { %v12643_v57 = vadd.f32 %v12586_v31, %v12436_v6  ;;  %v12588_v11 = vpop.f32.mrb[65].mxu1 }
 0x750   : > { %v12589_v35 = vpop.f32.mrb[66].mxu1 }
 0x751   : > { %v12666_v52 = vadd.f32 %v20860_v4, %v12643_v57  ;;  %v12644_v59 = vadd.f32 %v12589_v35, %v12437_v15  ;;  %v12591_v9 = vpop.f32.mrb[67].mxu1 }
 0x753   : > { %14276 = vst.msk [vmem:[%s20344_s19 + $0x90] sm:$0xff] %vm10575_vm8, %v12666_v52  ;;  %v12667_v58 = vadd.f32 %v20860_v4, %v12644_v59 }
 0x755   : > { %14277 = vst.msk [vmem:[%s20344_s19 + $0x98] sm:$0xff] %vm10575_vm8, %v12667_v58 }
 0x756   : > { %v12594_v20 = vpop.f32.mrb[68].mxu1 }
 0x757   : > { %v12645_v47 = vadd.f32 %v12594_v20, %v12438_v60  ;;  %v12596_v14 = vpop.f32.mrb[69].mxu1 }
 0x758   : > { %v12597_v38 = vpop.f32.mrb[70].mxu1 }
 0x759   : > { %v12668_v12 = vadd.f32 %v20860_v4, %v12645_v47  ;;  %v12646_v6 = vadd.f32 %v12597_v38, %v12439_v45  ;;  %v12599_v62 = vpop.f32.mrb[71].mxu1 }
 0x75b   : > { %14278 = vst.msk [vmem:[%s20344_s19 + $0xa0] sm:$0xff] %vm10575_vm8, %v12668_v12  ;;  %v12669_v15 = vadd.f32 %v20860_v4, %v12646_v6 }
 0x75d   : > { %14279 = vst.msk [vmem:[%s20344_s19 + $0xa8] sm:$0xff] %vm10575_vm8, %v12669_v15 }
 0x75e   : > { %v12602_v63 = vpop.f32.mrb[72].mxu1 }
 0x75f   : > { %v12647_v13 = vadd.f32 %v12602_v63, %v12440_v61  ;;  %v12604_v1 = vpop.f32.mrb[73].mxu1 }
 0x760   : > { %v12605_v0 = vpop.f32.mrb[74].mxu1 }
 0x761   : > { %v12670_v55 = vadd.f32 %v20860_v4, %v12647_v13  ;;  %v12648_v60 = vadd.f32 %v12605_v0, %v12441_v41  ;;  %v12607_v50 = vpop.f32.mrb[75].mxu1 }
 0x763   : > { %14280 = vst.msk [vmem:[%s20344_s19 + $0xb0] sm:$0xff] %vm10575_vm8, %v12670_v55  ;;  %v12671_v45 = vadd.f32 %v20860_v4, %v12648_v60 }
 0x765   : > { %14281 = vst.msk [vmem:[%s20344_s19 + $0xb8] sm:$0xff] %vm10575_vm8, %v12671_v45 }
 0x766   : > { %v12610_v30 = vpop.f32.mrb[76].mxu1 }
 0x767   : > { %v12649_v2 = vadd.f32 %v12610_v30, %v12442_v19  ;;  %v12612_v46 = vpop.f32.mrb[77].mxu1 }
 0x768   : > { %v12613_v56 = vpop.f32.mrb[78].mxu1 }
 0x769   : > { %v12672_v23 = vadd.f32 %v20860_v4, %v12649_v2  ;;  %v12650_v61 = vadd.f32 %v12613_v56, %v12443_v42  ;;  %v12615_v24 = vpop.f32.mrb[79].mxu1 }
 0x76b   : > { %14282 = vst.msk [vmem:[%s20344_s19 + $0xc0] sm:$0xff] %vm10575_vm8, %v12672_v23  ;;  %v12673_v41 = vadd.f32 %v20860_v4, %v12650_v61 }
 0x76d   : > { %14283 = vst.msk [vmem:[%s20344_s19 + $0xc8] sm:$0xff] %vm10575_vm8, %v12673_v41 }
 0x76e   : > { %v12618_v54 = vpop.f32.mrb[80].mxu1 }
 0x76f   : > { %v12651_v5 = vadd.f32 %v12618_v54, %v12444_v40  ;;  %v12620_v10 = vpop.f32.mrb[81].mxu1 }
 0x770   : > { %v12621_v51 = vpop.f32.mrb[82].mxu1 }
 0x771   : > { %v12674_v48 = vadd.f32 %v20860_v4, %v12651_v5  ;;  %v12652_v19 = vadd.f32 %v12621_v51, %v12445_v37  ;;  %v12623_v33 = vpop.f32.mrb[83].mxu1 }
 0x773   : > { %14284 = vst.msk [vmem:[%s20344_s19 + $0xd0] sm:$0xff] %vm10575_vm8, %v12674_v48  ;;  %v12675_v42 = vadd.f32 %v20860_v4, %v12652_v19 }
 0x775   : > { %14285 = vst.msk [vmem:[%s20344_s19 + $0xd8] sm:$0xff] %vm10575_vm8, %v12675_v42 }
 0x776   : > { %v12626_v22 = vpop.f32.mrb[84].mxu1 }
 0x777   : > { %v12653_v32 = vadd.f32 %v12626_v22, %v12446_v3  ;;  %v12628_v7 = vpop.f32.mrb[85].mxu1 }
 0x778   : > { %v12629_v53 = vpop.f32.mrb[86].mxu1 }
 0x779   : > { %v12676_v27 = vadd.f32 %v20860_v4, %v12653_v32  ;;  %v12654_v40 = vadd.f32 %v12629_v53, %v20893_v29  ;;  %v12631_v21 = vpop.f32.mrb[87].mxu1 }
 0x77b   : > { %14286 = vst.msk [vmem:[%s20344_s19 + $0xe0] sm:$0xff] %vm10575_vm8, %v12676_v27  ;;  %v12677_v37 = vadd.f32 %v20860_v4, %v12654_v40 }
 0x77d   : > { %14287 = vst.msk [vmem:[%s20344_s19 + $0xe8] sm:$0xff] %vm10575_vm8, %v12677_v37 }
 0x77e   : > { %v12634_v26 = vpop.f32.mrb[88].mxu1 }
 0x77f   : > { %v12655_v16 = vadd.f32 %v12634_v26, %v20898_v49  ;;  %v12636_v43 = vpop.f32.mrb[89].mxu1 }
 0x780   : > { %v12637_v36 = vpop.f32.mrb[90].mxu1 }
 0x781   : > { %v12678_v39 = vadd.f32 %v20860_v4, %v12655_v16  ;;  %v12656_v3 = vadd.f32 %v12637_v36, %v20901_v28  ;;  %v12639_v17 = vpop.f32.mrb[91].mxu1 }
 0x783   : > { %14288 = vst.msk [vmem:[%s20344_s19 + $0xf0] sm:$0xff] %vm10575_vm8, %v12678_v39  ;;  %v12679_v29 = vadd.f32 %v20860_v4, %v12656_v3 }
 0x785   : > { %14289 = vst.msk [vmem:[%s20344_s19 + $0xf8] sm:$0xff] %vm10575_vm8, %v12679_v29 }
 0x786 PF: > { %s17_s24 = sadd.s32 1, %s15449_s24  }
 0x787   : > { %p14_p4 = scmp.ge.s32.totalorder %s17_s24, 4  }
 0x789   :  { %16 = sbr.rel (!%p14_p4) target bundleno = 1 (0x1), region = 170 }

</bundles_post_ra>
